<compile_context>
chip_gen: v7x
topology: tpu7x:2x2x1
jax: 0.10.0
libtpu: 0.0.40
codegen_flags: <defaults>
</compile_context>

<pallas_src>
import math
import functools

import jax
import jax.numpy as jnp
from jax.experimental import pallas as pl
from jax.experimental.pallas import tpu as pltpu


def cube_root(n):
    """Exact integer cube root for perfect cubes (no float fragility)."""
    r = int(round(n ** (1.0 / 3.0)))
    while r ** 3 > n:
        r -= 1
    while (r + 1) ** 3 <= n:
        r += 1
    return r


# ----------------------------- matmul kernels -------------------------------

def _matmul_kernel(x_ref, w_ref, o_ref, acc_ref):
    @pl.when(pl.program_id(2) == 0)
    def _():
        acc_ref[...] = jnp.zeros_like(acc_ref)

    acc_ref[...] += jnp.dot(x_ref[...], w_ref[...],
                            preferred_element_type=jnp.float32)

    @pl.when(pl.program_id(2) == pl.num_programs(2) - 1)
    def _():
        o_ref[...] = acc_ref[...].astype(o_ref.dtype)


def _matmul_bias_kernel(x_ref, w_ref, b_ref, o_ref, acc_ref):
    @pl.when(pl.program_id(2) == 0)
    def _():
        acc_ref[...] = jnp.zeros_like(acc_ref)

    acc_ref[...] += jnp.dot(x_ref[...], w_ref[...],
                            preferred_element_type=jnp.float32)

    @pl.when(pl.program_id(2) == pl.num_programs(2) - 1)
    def _():
        o_ref[...] = (acc_ref[...] + b_ref[...]).astype(o_ref.dtype)


def _matmul_bias_ln_kernel(x_ref, w_ref, b_ref, g_ref, be_ref, o_ref, acc_ref,
                           *, eps):
    """Matmul + bias + LayerNorm epilogue (requires tn == full output width)."""
    @pl.when(pl.program_id(2) == 0)
    def _():
        acc_ref[...] = jnp.zeros_like(acc_ref)

    acc_ref[...] += jnp.dot(x_ref[...], w_ref[...],
                            preferred_element_type=jnp.float32)

    @pl.when(pl.program_id(2) == pl.num_programs(2) - 1)
    def _():
        y = acc_ref[...] + b_ref[...]
        mean = jnp.mean(y, axis=-1, keepdims=True)
        yc = y - mean
        var = jnp.mean(yc * yc, axis=-1, keepdims=True)
        o_ref[...] = (yc * jax.lax.rsqrt(var + eps) * g_ref[...]
                      + be_ref[...]).astype(o_ref.dtype)


# ---------------------------- attention kernel -------------------------------

def _flash_attn_kernel(q_ref, kv_ref, o_ref, m_sc, l_sc, acc_sc,
                       *, num_heads, head_dim):
    """Flash attention for one (batch, q-block); the kv axis is innermost.

    Heads stay packed along the lane (C) dim in HBM.  Per head we load the
    (tq, d)/(tk, d) slices and do true per-head contractions (no masked
    full-width matmuls), keep logits/softmax in f32, and cast the
    probabilities back to the v dtype for the PV matmul (bf16 MXU path when
    inputs are bf16).  The output is written as one lane-dense (tq, C) tile.
    """
    d = head_dim
    C = num_heads * d
    ki = pl.program_id(2)

    @pl.when(ki == 0)
    def _():
        m_sc[...] = jnp.full(m_sc.shape, -jnp.inf, dtype=m_sc.dtype)
        l_sc[...] = jnp.zeros_like(l_sc)
        acc_sc[...] = jnp.zeros_like(acc_sc)

    # Static unroll over heads: per-head temporaries are only (tq, tk) / (tq, d)
    # and each head's chain ends in scratch stores, so live ranges stay small.
    for h in range(num_heads):
        qh = q_ref[:, h * d:(h + 1) * d]                 # (tq, d), input dtype
        kh = kv_ref[:, h * d:(h + 1) * d]                # (tk, d)
        vh = kv_ref[:, C + h * d:C + (h + 1) * d]        # (tk, d)

        s = jax.lax.dot_general(qh, kh, (((1,), (1,)), ((), ())),
                                preferred_element_type=jnp.float32)   # (tq, tk)

        m_prev = m_sc[h]                                               # (tq, 1)
        m_new = jnp.maximum(m_prev, jnp.max(s, axis=-1, keepdims=True))
        alpha = jnp.exp(m_prev - m_new)
        p = jnp.exp(s - m_new)                                         # f32
        l_sc[h] = alpha * l_sc[h] + jnp.sum(p, axis=-1, keepdims=True)
        acc_sc[h] = alpha * acc_sc[h] + jnp.dot(
            p.astype(vh.dtype), vh, preferred_element_type=jnp.float32)
        m_sc[h] = m_new

    @pl.when(ki == pl.num_programs(2) - 1)
    def _():
        for h in range(num_heads):
            inv_l = pl.reciprocal(l_sc[h], approx=True)
            o_ref[:, h * d:(h + 1) * d] = (acc_sc[h] * inv_l).astype(o_ref.dtype)


# ------------------------------ Pallas wrappers ------------------------------

def _pick_tile(dim, target, units=(8,)):
    """Largest tile <= target that divides `dim` and is a multiple of one of
    `units` (tried in preference order); falls back to the full dimension
    (always a legal block)."""
    if dim <= target:
        return dim
    for unit in units:
        t = (min(target, dim) // unit) * unit
        while t >= unit:
            if dim % t == 0:
                return t
            t -= unit
    return dim


def linear(x, w, b=None, *, ln=None, ln_eps=1e-5, tm=512, tn=512, tk=512):
    """Tiled y = x @ w (+ b) (+ fused LayerNorm epilogue if ln=(gamma, beta)).

    x: (M, K), w: (K, N).  Tiles divide the problem evenly and respect the
    (8, 128) layout rules; lane-dim tiles prefer 256 granularity (v6e/v7x MXU)
    with a 128 fallback.  Output dtype follows x.dtype with an f32 VMEM
    accumulator.  VMEM note (v7x, 64 MiB / 32 MiB scoped default): with 512
    tiles in bf16 the double-buffered working set is ~4 MiB, well under limit.
    """
    M, K = x.shape
    Kw, N = w.shape
    assert K == Kw
    tm = _pick_tile(M, tm, (8,))
    tk = _pick_tile(K, tk, (256, 128))
    tn = N if ln is not None else _pick_tile(N, tn, (256, 128))  # LN: full rows
    grid = (M // tm, N // tn, K // tk)

    in_specs = [pl.BlockSpec((tm, tk), lambda i, j, k: (i, k)),
                pl.BlockSpec((tk, tn), lambda i, j, k: (k, j))]
    args = [x, w]
    if b is not None:
        in_specs.append(pl.BlockSpec((1, tn), lambda i, j, k: (0, j)))
        args.append(b.reshape(1, N))
    if ln is not None:
        assert b is not None, "fused LayerNorm path expects a bias"
        gamma, beta = ln
        in_specs.append(pl.BlockSpec((1, tn), lambda i, j, k: (0, j)))
        in_specs.append(pl.BlockSpec((1, tn), lambda i, j, k: (0, j)))
        args.append(gamma.reshape(1, N))
        args.append(beta.reshape(1, N))
        kernel = functools.partial(_matmul_bias_ln_kernel, eps=ln_eps)
    elif b is not None:
        kernel = _matmul_bias_kernel
    else:
        kernel = _matmul_kernel

    return pl.pallas_call(
        kernel,
        out_shape=jax.ShapeDtypeStruct((M, N), x.dtype),
        grid=grid,
        in_specs=in_specs,
        out_specs=pl.BlockSpec((tm, tn), lambda i, j, k: (i, j)),
        scratch_shapes=[pltpu.VMEM((tm, tn), jnp.float32)],
        compiler_params=pltpu.CompilerParams(
            dimension_semantics=("parallel", "parallel", "arbitrary")),
    )(*args)


def attention(q, kv, num_heads, *, tq=256, tk=512):
    """q: (B, N, C), kv: (B, Nr, 2C), heads packed along C -> (B, N, C).

    Flash-style: grid = (B, N/tq, Nr/tk); batch + q-block axes "parallel"
    (megacore-ready), kv axis "arbitrary" with online-softmax scratch.
    (If profiles show exposed kv DMA on v7x, pipeline_mode=pl.Buffered(3) on
    the kv BlockSpec is a cheap follow-up.)
    """
    B, N, C = q.shape
    Nr = kv.shape[1]
    assert kv.shape == (B, Nr, 2 * C)
    assert C % num_heads == 0
    d = C // num_heads
    tq = _pick_tile(N, tq, (8,))
    tk = _pick_tile(Nr, tk, (8,))

    kern = functools.partial(_flash_attn_kernel, num_heads=num_heads,
                             head_dim=d)
    return pl.pallas_call(
        kern,
        out_shape=jax.ShapeDtypeStruct((B, N, C), q.dtype),
        grid=(B, N // tq, Nr // tk),
        in_specs=[pl.BlockSpec((None, tq, C), lambda b, qi, ki: (b, qi, 0)),
                  pl.BlockSpec((None, tk, 2 * C), lambda b, qi, ki: (b, ki, 0))],
        out_specs=pl.BlockSpec((None, tq, C), lambda b, qi, ki: (b, qi, 0)),
        scratch_shapes=[pltpu.VMEM((num_heads, tq, 1), jnp.float32),   # m
                        pltpu.VMEM((num_heads, tq, 1), jnp.float32),   # l
                        pltpu.VMEM((num_heads, tq, d), jnp.float32)],  # acc
        compiler_params=pltpu.CompilerParams(
            dimension_semantics=("parallel", "parallel", "arbitrary")),
    )(q, kv)


# --------------------------- SelfAttention forward ---------------------------

def self_attention_forward(x, params, *, num_heads, sr_ratio):
    B, N, C = x.shape
    n = cube_root(N)
    x2 = x.reshape(B * N, C)

    # q = self.query(x) (no bias).  The attention score scale 1/sqrt(num_heads)
    # (NOTE: the module scales by sqrt(num_heads), not sqrt(head_dim)) is
    # folded into w_q once here, so no per-element scaling inside the kernels.
    w_q = params["w_q"] * (1.0 / math.sqrt(num_heads))
    q = linear(x2, w_q).reshape(B, N, C)

    if sr_ratio > 1:
        nr = n // sr_ratio
        Nr = nr ** 3
        sr3 = sr_ratio ** 3
        # Conv3d(C, C, kernel=stride=sr) == non-overlapping patch matmul; the
        # bias add and sr_norm LayerNorm are fused into the same Pallas kernel.
        # TODO(synk): gather the patches via an Element-indexed / strided-DMA
        # in_spec so this permute never costs an extra HBM round trip.
        x8 = x.reshape(B, nr, sr_ratio, nr, sr_ratio, nr, sr_ratio, C)
        patches = x8.transpose(0, 1, 3, 5, 2, 4, 6, 7).reshape(B * Nr, sr3 * C)
        # w_sr: (Cout, Cin, kz, ky, kx) -> (kz, ky, kx, Cin, Cout) flattened.
        w_sr = jnp.transpose(params["w_sr"], (2, 3, 4, 1, 0)).reshape(sr3 * C, C)
        xr = linear(patches, w_sr, params["b_sr"],
                    ln=(params["g_ln"], params["b_ln"]))
    else:
        Nr = N
        xr = x2

    # Fused key/value projection (no bias): one (M, 2C) matmul; heads stay
    # packed along the lane dim and the attention kernel slices k/v per head.
    kv = linear(xr, params["w_kv"]).reshape(B, Nr, 2 * C)

    # Flash attention (attn_dropout p=0 -> identity); output is (B, N, C).
    o = attention(q, kv, num_heads)

    # Final projection (with bias); proj_dropout p=0 -> identity.
    out = linear(o.reshape(B * N, C), params["w_proj"], params["b_proj"])
    return out.reshape(B, N, C)


# ------------------------------ pure-JAX reference ---------------------------

def reference_forward(x, params, num_heads, sr_ratio):
    B, N, C = x.shape
    H = num_heads
    d = C // H
    n = cube_root(N)
    hp = jax.lax.Precision.HIGHEST

    q = jnp.matmul(x, params["w_q"], precision=hp)
    q = q.reshape(B, N, H, d).transpose(0, 2, 1, 3)

    if sr_ratio > 1:
        x_ = jnp.transpose(x, (0, 2, 1)).reshape(B, C, n, n, n)
        x_ = jax.lax.conv_general_dilated(
            x_, params["w_sr"], window_strides=(sr_ratio,) * 3, padding="VALID",
            dimension_numbers=("NCDHW", "OIDHW", "NCDHW"), precision=hp)
        x_ = x_ + params["b_sr"].reshape(1, C, 1, 1, 1)
        x_ = x_.reshape(B, C, -1).transpose(0, 2, 1)
        mean = x_.mean(-1, keepdims=True)
        var = ((x_ - mean) ** 2).mean(-1, keepdims=True)
        x_ = (x_ - mean) / jnp.sqrt(var + 1e-5) * params["g_ln"] + params["b_ln"]
    else:
        x_ = x

    kv = jnp.matmul(x_, params["w_kv"], precision=hp)
    kv = kv.reshape(B, -1, 2, H, d).transpose(2, 0, 3, 1, 4)
    k, v = kv[0], kv[1]

    s = jnp.matmul(q, jnp.swapaxes(k, -2, -1), precision=hp) / math.sqrt(num_heads)
    p = jax.nn.softmax(s, axis=-1)
    out = jnp.matmul(p, v, precision=hp).transpose(0, 2, 1, 3).reshape(B, N, C)
    out = jnp.matmul(out, params["w_proj"], precision=hp) + params["b_proj"]
    return out


# ------------------------------------ main -----------------------------------

if __name__ == "__main__":
    B, n, C, H, sr = 2, 4, 64, 8, 2           # N = n**3 = 64, head_dim = 8
    N = n ** 3

    key = jax.random.PRNGKey(0)
    ks = jax.random.split(key, 9)
    x = jax.random.normal(ks[0], (B, N, C), jnp.float32)

    params = {
        "w_q":    jax.random.normal(ks[1], (C, C), jnp.float32) * 0.02,
        "w_kv":   jax.random.normal(ks[2], (C, 2 * C), jnp.float32) * 0.02,
        "w_proj": jax.random.normal(ks[3], (C, C), jnp.float32) * 0.02,
        "b_proj": jax.random.normal(ks[4], (C,), jnp.float32) * 0.02,
        "w_sr":   jax.random.normal(ks[5], (C, C, sr, sr, sr), jnp.float32) * 0.02,
        "b_sr":   jax.random.normal(ks[6], (C,), jnp.float32) * 0.02,
        "g_ln":   1.0 + 0.1 * jax.random.normal(ks[7], (C,), jnp.float32),
        "b_ln":   0.1 * jax.random.normal(ks[8], (C,), jnp.float32),
    }

    fwd = jax.jit(functools.partial(self_attention_forward,
                                    num_heads=H, sr_ratio=sr))
    out = jax.block_until_ready(fwd(x, params))

    ref = reference_forward(x, params, H, sr)
    assert out.shape == (B, N, C)
    err = float(jnp.max(jnp.abs(out - ref)))
    assert err < 2e-3, f"max abs diff = {err}"

    print("KERNEL_OK")
</pallas_src>

<mosaic_0001>
module attributes {stable_mosaic.version = 11 : i64} {
  func.func @_matmul_bias_ln_kernel(%arg0: i32, %arg1: i32, %arg2: i32, %arg3: memref<16x512xf32, #tpu.memory_space<vmem>>, %arg4: memref<512x64xf32, #tpu.memory_space<vmem>>, %arg5: memref<1x64xf32, #tpu.memory_space<vmem>>, %arg6: memref<1x64xf32, #tpu.memory_space<vmem>>, %arg7: memref<1x64xf32, #tpu.memory_space<vmem>>, %arg8: memref<16x64xf32, #tpu.memory_space<vmem>>, %arg9: memref<16x64xf32, #tpu.memory_space<vmem>>) attributes {dimension_semantics = [#tpu.dimension_semantics<parallel>, #tpu.dimension_semantics<parallel>, #tpu.dimension_semantics<arbitrary>], iteration_bounds = array<i64: 1, 1, 1>, scalar_prefetch = 0 : i64, scratch_operands = 1 : i64, tpu.core_type = #tpu.core_type<tc>, window_params = [{transform_indices = @transform_0, window_bounds = array<i64: 16, 512>}, {transform_indices = @transform_1, window_bounds = array<i64: 512, 64>}, {transform_indices = @transform_2, window_bounds = array<i64: 1, 64>}, {transform_indices = @transform_3, window_bounds = array<i64: 1, 64>}, {transform_indices = @transform_4, window_bounds = array<i64: 1, 64>}, {transform_indices = @transform_5, window_bounds = array<i64: 16, 64>}]} {
    %c0_i32 = arith.constant 0 : i32
    %0 = arith.cmpi eq, %arg2, %c0_i32 : i32
    %1 = arith.extui %0 : i1 to i32
    %c0_i32_0 = arith.constant 0 : i32
    %2 = arith.cmpi ne, %1, %c0_i32_0 : i32
    scf.if %2 {
      %cst_10 = arith.constant 0.000000e+00 : f32
      %12 = vector.broadcast %cst_10 : f32 to vector<16x64xf32>
      %c0_11 = arith.constant 0 : index
      %c0_12 = arith.constant 0 : index
      %13 = vector.load %arg9[%c0_11, %c0_12] : memref<16x64xf32, #tpu.memory_space<vmem>>, vector<16x64xf32>
      tpu.vector_store %arg9[%c0_11, %c0_12], %12 {strides = array<i32>} : memref<16x64xf32, #tpu.memory_space<vmem>>, vector<16x64xf32>,
    } else {
    }
    %c0 = arith.constant 0 : index
    %c0_1 = arith.constant 0 : index
    %3 = vector.load %arg9[%c0, %c0_1] : memref<16x64xf32, #tpu.memory_space<vmem>>, vector<16x64xf32>
    %c0_2 = arith.constant 0 : index
    %c0_3 = arith.constant 0 : index
    %4 = vector.load %arg3[%c0_2, %c0_3] : memref<16x512xf32, #tpu.memory_space<vmem>>, vector<16x512xf32>
    %c0_4 = arith.constant 0 : index
    %c0_5 = arith.constant 0 : index
    %5 = vector.load %arg4[%c0_4, %c0_5] : memref<512x64xf32, #tpu.memory_space<vmem>>, vector<512x64xf32>
    %cst = arith.constant dense<0.000000e+00> : vector<16x64xf32>
    %6 = tpu.matmul %4, %5, %cst {dimension_numbers = #tpu.dot_dimension_numbers<[1], [0], [0], [1], [0, 0, 1, 1], [], []>} : vector<16x512xf32>, vector<512x64xf32>, vector<16x64xf32> -> vector<16x64xf32>
    %7 = arith.addf %3, %6 : vector<16x64xf32>
    %c0_6 = arith.constant 0 : index
    %c0_7 = arith.constant 0 : index
    %8 = vector.load %arg9[%c0_6, %c0_7] : memref<16x64xf32, #tpu.memory_space<vmem>>, vector<16x64xf32>
    tpu.vector_store %arg9[%c0_6, %c0_7], %7 {strides = array<i32>} : memref<16x64xf32, #tpu.memory_space<vmem>>, vector<16x64xf32>,
    %c0_i32_8 = arith.constant 0 : i32
    %9 = arith.cmpi eq, %arg2, %c0_i32_8 : i32
    %10 = arith.extui %9 : i1 to i32
    %c0_i32_9 = arith.constant 0 : i32
    %11 = arith.cmpi ne, %10, %c0_i32_9 : i32
    scf.if %11 {
      %c0_10 = arith.constant 0 : index
      %c0_11 = arith.constant 0 : index
      %12 = vector.load %arg9[%c0_10, %c0_11] : memref<16x64xf32, #tpu.memory_space<vmem>>, vector<16x64xf32>
      %c0_12 = arith.constant 0 : index
      %c0_13 = arith.constant 0 : index
      %13 = vector.load %arg5[%c0_12, %c0_13] : memref<1x64xf32, #tpu.memory_space<vmem>>, vector<1x64xf32>
      %14 = vector.broadcast %13 : vector<1x64xf32> to vector<16x64xf32>
      %15 = arith.addf %12, %14 : vector<16x64xf32>
      %cst_14 = arith.constant dense<0.000000e+00> : vector<16xf32>
      %16 = vector.multi_reduction <add>, %15, %cst_14 [1] : vector<16x64xf32> to vector<16xf32>
      %17 = vector.shape_cast %16 : vector<16xf32> to vector<16x1xf32>
      %cst_15 = arith.constant 6.400000e+01 : f32
      %18 = vector.broadcast %cst_15 : f32 to vector<16x1xf32>
      %19 = arith.divf %17, %18 : vector<16x1xf32>
      %20 = vector.broadcast %19 : vector<16x1xf32> to vector<16x64xf32>
      %21 = arith.subf %15, %20 : vector<16x64xf32>
      %22 = arith.mulf %21, %21 : vector<16x64xf32>
      %cst_16 = arith.constant dense<0.000000e+00> : vector<16xf32>
      %23 = vector.multi_reduction <add>, %22, %cst_16 [1] : vector<16x64xf32> to vector<16xf32>
      %24 = vector.shape_cast %23 : vector<16xf32> to vector<16x1xf32>
      %cst_17 = arith.constant 6.400000e+01 : f32
      %25 = vector.broadcast %cst_17 : f32 to vector<16x1xf32>
      %26 = arith.divf %24, %25 : vector<16x1xf32>
      %cst_18 = arith.constant 9.99999974E-6 : f32
      %27 = vector.broadcast %cst_18 : f32 to vector<16x1xf32>
      %28 = arith.addf %26, %27 : vector<16x1xf32>
      %29 = math.rsqrt %28 : vector<16x1xf32>
      %30 = vector.broadcast %29 : vector<16x1xf32> to vector<16x64xf32>
      %31 = arith.mulf %21, %30 : vector<16x64xf32>
      %c0_19 = arith.constant 0 : index
      %c0_20 = arith.constant 0 : index
      %32 = vector.load %arg6[%c0_19, %c0_20] : memref<1x64xf32, #tpu.memory_space<vmem>>, vector<1x64xf32>
      %33 = vector.broadcast %32 : vector<1x64xf32> to vector<16x64xf32>
      %34 = arith.mulf %31, %33 : vector<16x64xf32>
      %c0_21 = arith.constant 0 : index
      %c0_22 = arith.constant 0 : index
      %35 = vector.load %arg7[%c0_21, %c0_22] : memref<1x64xf32, #tpu.memory_space<vmem>>, vector<1x64xf32>
      %36 = vector.broadcast %35 : vector<1x64xf32> to vector<16x64xf32>
      %37 = arith.addf %34, %36 : vector<16x64xf32>
      %c0_23 = arith.constant 0 : index
      %c0_24 = arith.constant 0 : index
      %38 = vector.load %arg8[%c0_23, %c0_24] : memref<16x64xf32, #tpu.memory_space<vmem>>, vector<16x64xf32>
      tpu.vector_store %arg8[%c0_23, %c0_24], %37 {strides = array<i32>} : memref<16x64xf32, #tpu.memory_space<vmem>>, vector<16x64xf32>,
    } else {
    }
    return
  }
  func.func @transform_0(%arg0: i32, %arg1: i32, %arg2: i32) -> (i32, i32) {
    %c0_i32 = arith.constant 0 : i32
    return %arg0, %arg2 : i32, i32
  }
  func.func @transform_1(%arg0: i32, %arg1: i32, %arg2: i32) -> (i32, i32) {
    %c0_i32 = arith.constant 0 : i32
    return %arg2, %arg1 : i32, i32
  }
  func.func @transform_2(%arg0: i32, %arg1: i32, %arg2: i32) -> (i32, i32) {
    %c0_i32 = arith.constant 0 : i32
    %c0_i32_0 = arith.constant 0 : i32
    return %c0_i32, %arg1 : i32, i32
  }
  func.func @transform_3(%arg0: i32, %arg1: i32, %arg2: i32) -> (i32, i32) {
    %c0_i32 = arith.constant 0 : i32
    %c0_i32_0 = arith.constant 0 : i32
    return %c0_i32, %arg1 : i32, i32
  }
  func.func @transform_4(%arg0: i32, %arg1: i32, %arg2: i32) -> (i32, i32) {
    %c0_i32 = arith.constant 0 : i32
    %c0_i32_0 = arith.constant 0 : i32
    return %c0_i32, %arg1 : i32, i32
  }
  func.func @transform_5(%arg0: i32, %arg1: i32, %arg2: i32) -> (i32, i32) {
    %c0_i32 = arith.constant 0 : i32
    return %arg0, %arg1 : i32, i32
  }
}

module attributes {stable_mosaic.version = 11 : i64} {
  func.func @_matmul_kernel(%arg0: i32, %arg1: i32, %arg2: i32, %arg3: memref<16x64xf32, #tpu.memory_space<vmem>>, %arg4: memref<64x128xf32, #tpu.memory_space<vmem>>, %arg5: memref<16x128xf32, #tpu.memory_space<vmem>>, %arg6: memref<16x128xf32, #tpu.memory_space<vmem>>) attributes {dimension_semantics = [#tpu.dimension_semantics<parallel>, #tpu.dimension_semantics<parallel>, #tpu.dimension_semantics<arbitrary>], iteration_bounds = array<i64: 1, 1, 1>, scalar_prefetch = 0 : i64, scratch_operands = 1 : i64, tpu.core_type = #tpu.core_type<tc>, window_params = [{transform_indices = @transform_0, window_bounds = array<i64: 16, 64>}, {transform_indices = @transform_1, window_bounds = array<i64: 64, 128>}, {transform_indices = @transform_2, window_bounds = array<i64: 16, 128>}]} {
    %c0_i32 = arith.constant 0 : i32
    %0 = arith.cmpi eq, %arg2, %c0_i32 : i32
    %1 = arith.extui %0 : i1 to i32
    %c0_i32_0 = arith.constant 0 : i32
    %2 = arith.cmpi ne, %1, %c0_i32_0 : i32
    scf.if %2 {
      %cst_10 = arith.constant 0.000000e+00 : f32
      %12 = vector.broadcast %cst_10 : f32 to vector<16x128xf32>
      %c0_11 = arith.constant 0 : index
      %c0_12 = arith.constant 0 : index
      %13 = vector.load %arg6[%c0_11, %c0_12] : memref<16x128xf32, #tpu.memory_space<vmem>>, vector<16x128xf32>
      tpu.vector_store %arg6[%c0_11, %c0_12], %12 {strides = array<i32>} : memref<16x128xf32, #tpu.memory_space<vmem>>, vector<16x128xf32>,
    } else {
    }
    %c0 = arith.constant 0 : index
    %c0_1 = arith.constant 0 : index
    %3 = vector.load %arg6[%c0, %c0_1] : memref<16x128xf32, #tpu.memory_space<vmem>>, vector<16x128xf32>
    %c0_2 = arith.constant 0 : index
    %c0_3 = arith.constant 0 : index
    %4 = vector.load %arg3[%c0_2, %c0_3] : memref<16x64xf32, #tpu.memory_space<vmem>>, vector<16x64xf32>
    %c0_4 = arith.constant 0 : index
    %c0_5 = arith.constant 0 : index
    %5 = vector.load %arg4[%c0_4, %c0_5] : memref<64x128xf32, #tpu.memory_space<vmem>>, vector<64x128xf32>
    %cst = arith.constant dense<0.000000e+00> : vector<16x128xf32>
    %6 = tpu.matmul %4, %5, %cst {dimension_numbers = #tpu.dot_dimension_numbers<[1], [0], [0], [1], [0, 0, 1, 1], [], []>} : vector<16x64xf32>, vector<64x128xf32>, vector<16x128xf32> -> vector<16x128xf32>
    %7 = arith.addf %3, %6 : vector<16x128xf32>
    %c0_6 = arith.constant 0 : index
    %c0_7 = arith.constant 0 : index
    %8 = vector.load %arg6[%c0_6, %c0_7] : memref<16x128xf32, #tpu.memory_space<vmem>>, vector<16x128xf32>
    tpu.vector_store %arg6[%c0_6, %c0_7], %7 {strides = array<i32>} : memref<16x128xf32, #tpu.memory_space<vmem>>, vector<16x128xf32>,
    %c0_i32_8 = arith.constant 0 : i32
    %9 = arith.cmpi eq, %arg2, %c0_i32_8 : i32
    %10 = arith.extui %9 : i1 to i32
    %c0_i32_9 = arith.constant 0 : i32
    %11 = arith.cmpi ne, %10, %c0_i32_9 : i32
    scf.if %11 {
      %c0_10 = arith.constant 0 : index
      %c0_11 = arith.constant 0 : index
      %12 = vector.load %arg6[%c0_10, %c0_11] : memref<16x128xf32, #tpu.memory_space<vmem>>, vector<16x128xf32>
      %c0_12 = arith.constant 0 : index
      %c0_13 = arith.constant 0 : index
      %13 = vector.load %arg5[%c0_12, %c0_13] : memref<16x128xf32, #tpu.memory_space<vmem>>, vector<16x128xf32>
      tpu.vector_store %arg5[%c0_12, %c0_13], %12 {strides = array<i32>} : memref<16x128xf32, #tpu.memory_space<vmem>>, vector<16x128xf32>,
    } else {
    }
    return
  }
  func.func @transform_0(%arg0: i32, %arg1: i32, %arg2: i32) -> (i32, i32) {
    %c0_i32 = arith.constant 0 : i32
    return %arg0, %arg2 : i32, i32
  }
  func.func @transform_1(%arg0: i32, %arg1: i32, %arg2: i32) -> (i32, i32) {
    %c0_i32 = arith.constant 0 : i32
    return %arg2, %arg1 : i32, i32
  }
  func.func @transform_2(%arg0: i32, %arg1: i32, %arg2: i32) -> (i32, i32) {
    %c0_i32 = arith.constant 0 : i32
    return %arg0, %arg1 : i32, i32
  }
}

module attributes {stable_mosaic.version = 11 : i64} {
  func.func @_matmul_kernel(%arg0: i32, %arg1: i32, %arg2: i32, %arg3: memref<128x64xf32, #tpu.memory_space<vmem>>, %arg4: memref<64x64xf32, #tpu.memory_space<vmem>>, %arg5: memref<128x64xf32, #tpu.memory_space<vmem>>, %arg6: memref<128x64xf32, #tpu.memory_space<vmem>>) attributes {dimension_semantics = [#tpu.dimension_semantics<parallel>, #tpu.dimension_semantics<parallel>, #tpu.dimension_semantics<arbitrary>], iteration_bounds = array<i64: 1, 1, 1>, scalar_prefetch = 0 : i64, scratch_operands = 1 : i64, tpu.core_type = #tpu.core_type<tc>, window_params = [{transform_indices = @transform_0, window_bounds = array<i64: 128, 64>}, {transform_indices = @transform_1, window_bounds = array<i64: 64, 64>}, {transform_indices = @transform_2, window_bounds = array<i64: 128, 64>}]} {
    %c0_i32 = arith.constant 0 : i32
    %0 = arith.cmpi eq, %arg2, %c0_i32 : i32
    %1 = arith.extui %0 : i1 to i32
    %c0_i32_0 = arith.constant 0 : i32
    %2 = arith.cmpi ne, %1, %c0_i32_0 : i32
    scf.if %2 {
      %cst_10 = arith.constant 0.000000e+00 : f32
      %12 = vector.broadcast %cst_10 : f32 to vector<128x64xf32>
      %c0_11 = arith.constant 0 : index
      %c0_12 = arith.constant 0 : index
      %13 = vector.load %arg6[%c0_11, %c0_12] : memref<128x64xf32, #tpu.memory_space<vmem>>, vector<128x64xf32>
      tpu.vector_store %arg6[%c0_11, %c0_12], %12 {strides = array<i32>} : memref<128x64xf32, #tpu.memory_space<vmem>>, vector<128x64xf32>,
    } else {
    }
    %c0 = arith.constant 0 : index
    %c0_1 = arith.constant 0 : index
    %3 = vector.load %arg6[%c0, %c0_1] : memref<128x64xf32, #tpu.memory_space<vmem>>, vector<128x64xf32>
    %c0_2 = arith.constant 0 : index
    %c0_3 = arith.constant 0 : index
    %4 = vector.load %arg3[%c0_2, %c0_3] : memref<128x64xf32, #tpu.memory_space<vmem>>, vector<128x64xf32>
    %c0_4 = arith.constant 0 : index
    %c0_5 = arith.constant 0 : index
    %5 = vector.load %arg4[%c0_4, %c0_5] : memref<64x64xf32, #tpu.memory_space<vmem>>, vector<64x64xf32>
    %cst = arith.constant dense<0.000000e+00> : vector<128x64xf32>
    %6 = tpu.matmul %4, %5, %cst {dimension_numbers = #tpu.dot_dimension_numbers<[1], [0], [0], [1], [0, 0, 1, 1], [], []>} : vector<128x64xf32>, vector<64x64xf32>, vector<128x64xf32> -> vector<128x64xf32>
    %7 = arith.addf %3, %6 : vector<128x64xf32>
    %c0_6 = arith.constant 0 : index
    %c0_7 = arith.constant 0 : index
    %8 = vector.load %arg6[%c0_6, %c0_7] : memref<128x64xf32, #tpu.memory_space<vmem>>, vector<128x64xf32>
    tpu.vector_store %arg6[%c0_6, %c0_7], %7 {strides = array<i32>} : memref<128x64xf32, #tpu.memory_space<vmem>>, vector<128x64xf32>,
    %c0_i32_8 = arith.constant 0 : i32
    %9 = arith.cmpi eq, %arg2, %c0_i32_8 : i32
    %10 = arith.extui %9 : i1 to i32
    %c0_i32_9 = arith.constant 0 : i32
    %11 = arith.cmpi ne, %10, %c0_i32_9 : i32
    scf.if %11 {
      %c0_10 = arith.constant 0 : index
      %c0_11 = arith.constant 0 : index
      %12 = vector.load %arg6[%c0_10, %c0_11] : memref<128x64xf32, #tpu.memory_space<vmem>>, vector<128x64xf32>
      %c0_12 = arith.constant 0 : index
      %c0_13 = arith.constant 0 : index
      %13 = vector.load %arg5[%c0_12, %c0_13] : memref<128x64xf32, #tpu.memory_space<vmem>>, vector<128x64xf32>
      tpu.vector_store %arg5[%c0_12, %c0_13], %12 {strides = array<i32>} : memref<128x64xf32, #tpu.memory_space<vmem>>, vector<128x64xf32>,
    } else {
    }
    return
  }
  func.func @transform_0(%arg0: i32, %arg1: i32, %arg2: i32) -> (i32, i32) {
    %c0_i32 = arith.constant 0 : i32
    return %arg0, %arg2 : i32, i32
  }
  func.func @transform_1(%arg0: i32, %arg1: i32, %arg2: i32) -> (i32, i32) {
    %c0_i32 = arith.constant 0 : i32
    return %arg2, %arg1 : i32, i32
  }
  func.func @transform_2(%arg0: i32, %arg1: i32, %arg2: i32) -> (i32, i32) {
    %c0_i32 = arith.constant 0 : i32
    return %arg0, %arg1 : i32, i32
  }
}

module attributes {stable_mosaic.version = 11 : i64} {
  func.func @_flash_attn_kernel(%arg0: i32, %arg1: i32, %arg2: i32, %arg3: memref<1x64x64xf32, #tpu.memory_space<vmem>>, %arg4: memref<1x8x128xf32, #tpu.memory_space<vmem>>, %arg5: memref<1x64x64xf32, #tpu.memory_space<vmem>>, %arg6: memref<8x64x1xf32, #tpu.memory_space<vmem>>, %arg7: memref<8x64x1xf32, #tpu.memory_space<vmem>>, %arg8: memref<8x64x8xf32, #tpu.memory_space<vmem>>) attributes {dimension_semantics = [#tpu.dimension_semantics<parallel>, #tpu.dimension_semantics<parallel>, #tpu.dimension_semantics<arbitrary>], iteration_bounds = array<i64: 2, 1, 1>, scalar_prefetch = 0 : i64, scratch_operands = 3 : i64, tpu.core_type = #tpu.core_type<tc>, window_params = [{transform_indices = @transform_0, window_bounds = array<i64: 1, 64, 64>}, {transform_indices = @transform_1, window_bounds = array<i64: 1, 8, 128>}, {transform_indices = @transform_2, window_bounds = array<i64: 1, 64, 64>}]} {
    %c0_i32 = arith.constant 0 : i32
    %0 = arith.cmpi eq, %arg2, %c0_i32 : i32
    %1 = arith.extui %0 : i1 to i32
    %c0_i32_0 = arith.constant 0 : i32
    %2 = arith.cmpi ne, %1, %c0_i32_0 : i32
    scf.if %2 {
      %cst_227 = arith.constant 0xFF800000 : f32
      %310 = vector.broadcast %cst_227 : f32 to vector<8x64x1xf32>
      %c0_228 = arith.constant 0 : index
      %c0_229 = arith.constant 0 : index
      %c0_230 = arith.constant 0 : index
      %311 = vector.load %arg6[%c0_228, %c0_229, %c0_230] : memref<8x64x1xf32, #tpu.memory_space<vmem>>, vector<8x64x1xf32>
      tpu.vector_store %arg6[%c0_228, %c0_229, %c0_230], %310 {strides = array<i32>} : memref<8x64x1xf32, #tpu.memory_space<vmem>>, vector<8x64x1xf32>,
      %cst_231 = arith.constant 0.000000e+00 : f32
      %312 = vector.broadcast %cst_231 : f32 to vector<8x64x1xf32>
      %c0_232 = arith.constant 0 : index
      %c0_233 = arith.constant 0 : index
      %c0_234 = arith.constant 0 : index
      %313 = vector.load %arg7[%c0_232, %c0_233, %c0_234] : memref<8x64x1xf32, #tpu.memory_space<vmem>>, vector<8x64x1xf32>
      tpu.vector_store %arg7[%c0_232, %c0_233, %c0_234], %312 {strides = array<i32>} : memref<8x64x1xf32, #tpu.memory_space<vmem>>, vector<8x64x1xf32>,
      %cst_235 = arith.constant 0.000000e+00 : f32
      %314 = vector.broadcast %cst_235 : f32 to vector<8x64x8xf32>
      %c0_236 = arith.constant 0 : index
      %c0_237 = arith.constant 0 : index
      %c0_238 = arith.constant 0 : index
      %315 = vector.load %arg8[%c0_236, %c0_237, %c0_238] : memref<8x64x8xf32, #tpu.memory_space<vmem>>, vector<8x64x8xf32>
      tpu.vector_store %arg8[%c0_236, %c0_237, %c0_238], %314 {strides = array<i32>} : memref<8x64x8xf32, #tpu.memory_space<vmem>>, vector<8x64x8xf32>,
    } else {
    }
    %c0 = arith.constant 0 : index
    %c0_1 = arith.constant 0 : index
    %c0_2 = arith.constant 0 : index
    %3 = vector.load %arg3[%c0, %c0_1, %c0_2] : memref<1x64x64xf32, #tpu.memory_space<vmem>>, vector<1x64x8xf32>
    %4 = vector.shape_cast %3 : vector<1x64x8xf32> to vector<64x8xf32>
    %c0_3 = arith.constant 0 : index
    %c0_4 = arith.constant 0 : index
    %c0_5 = arith.constant 0 : index
    %5 = vector.load %arg4[%c0_3, %c0_4, %c0_5] : memref<1x8x128xf32, #tpu.memory_space<vmem>>, vector<1x8x8xf32>
    %6 = vector.shape_cast %5 : vector<1x8x8xf32> to vector<8x8xf32>
    %c0_6 = arith.constant 0 : index
    %c0_7 = arith.constant 0 : index
    %c64 = arith.constant 64 : index
    %7 = vector.load %arg4[%c0_6, %c0_7, %c64] : memref<1x8x128xf32, #tpu.memory_space<vmem>>, vector<1x8x8xf32>
    %8 = vector.shape_cast %7 : vector<1x8x8xf32> to vector<8x8xf32>
    %cst = arith.constant dense<0.000000e+00> : vector<64x8xf32>
    %9 = tpu.matmul %4, %6, %cst {dimension_numbers = #tpu.dot_dimension_numbers<[1], [1], [0], [0], [0, 0, 1, 0], [], []>} : vector<64x8xf32>, vector<8x8xf32>, vector<64x8xf32> -> vector<64x8xf32>
    %c0_8 = arith.constant 0 : index
    %c0_9 = arith.constant 0 : index
    %c0_10 = arith.constant 0 : index
    %10 = vector.load %arg6[%c0_8, %c0_9, %c0_10] : memref<8x64x1xf32, #tpu.memory_space<vmem>>, vector<1x64x1xf32>
    %11 = vector.shape_cast %10 : vector<1x64x1xf32> to vector<64x1xf32>
    %cst_11 = arith.constant dense<0xFF800000> : vector<64xf32>
    %12 = vector.multi_reduction <maximumf>, %9, %cst_11 [1] : vector<64x8xf32> to vector<64xf32>
    %13 = vector.shape_cast %12 : vector<64xf32> to vector<64x1xf32>
    %14 = arith.maximumf %11, %13 : vector<64x1xf32>
    %15 = arith.subf %11, %14 : vector<64x1xf32>
    %16 = math.exp %15 : vector<64x1xf32>
    %17 = vector.broadcast %14 : vector<64x1xf32> to vector<64x8xf32>
    %18 = arith.subf %9, %17 : vector<64x8xf32>
    %19 = math.exp %18 : vector<64x8xf32>
    %c0_12 = arith.constant 0 : index
    %c0_13 = arith.constant 0 : index
    %c0_14 = arith.constant 0 : index
    %20 = vector.load %arg7[%c0_12, %c0_13, %c0_14] : memref<8x64x1xf32, #tpu.memory_space<vmem>>, vector<1x64x1xf32>
    %21 = vector.shape_cast %20 : vector<1x64x1xf32> to vector<64x1xf32>
    %22 = arith.mulf %16, %21 : vector<64x1xf32>
    %cst_15 = arith.constant dense<0.000000e+00> : vector<64xf32>
    %23 = vector.multi_reduction <add>, %19, %cst_15 [1] : vector<64x8xf32> to vector<64xf32>
    %24 = vector.shape_cast %23 : vector<64xf32> to vector<64x1xf32>
    %25 = arith.addf %22, %24 : vector<64x1xf32>
    %c0_16 = arith.constant 0 : index
    %c0_17 = arith.constant 0 : index
    %c0_18 = arith.constant 0 : index
    %26 = vector.load %arg7[%c0_16, %c0_17, %c0_18] : memref<8x64x1xf32, #tpu.memory_space<vmem>>, vector<1x64x1xf32>
    %27 = vector.shape_cast %26 : vector<1x64x1xf32> to vector<64x1xf32>
    %28 = vector.shape_cast %25 : vector<64x1xf32> to vector<1x64x1xf32>
    tpu.vector_store %arg7[%c0_16, %c0_17, %c0_18], %28 {strides = array<i32>} : memref<8x64x1xf32, #tpu.memory_space<vmem>>, vector<1x64x1xf32>,
    %c0_19 = arith.constant 0 : index
    %c0_20 = arith.constant 0 : index
    %c0_21 = arith.constant 0 : index
    %29 = vector.load %arg8[%c0_19, %c0_20, %c0_21] : memref<8x64x8xf32, #tpu.memory_space<vmem>>, vector<1x64x8xf32>
    %30 = vector.shape_cast %29 : vector<1x64x8xf32> to vector<64x8xf32>
    %31 = vector.broadcast %16 : vector<64x1xf32> to vector<64x8xf32>
    %32 = arith.mulf %31, %30 : vector<64x8xf32>
    %cst_22 = arith.constant dense<0.000000e+00> : vector<64x8xf32>
    %33 = tpu.matmul %19, %8, %cst_22 {dimension_numbers = #tpu.dot_dimension_numbers<[1], [0], [0], [1], [0, 0, 1, 1], [], []>} : vector<64x8xf32>, vector<8x8xf32>, vector<64x8xf32> -> vector<64x8xf32>
    %34 = arith.addf %32, %33 : vector<64x8xf32>
    %c0_23 = arith.constant 0 : index
    %c0_24 = arith.constant 0 : index
    %c0_25 = arith.constant 0 : index
    %35 = vector.load %arg8[%c0_23, %c0_24, %c0_25] : memref<8x64x8xf32, #tpu.memory_space<vmem>>, vector<1x64x8xf32>
    %36 = vector.shape_cast %35 : vector<1x64x8xf32> to vector<64x8xf32>
    %37 = vector.shape_cast %34 : vector<64x8xf32> to vector<1x64x8xf32>
    tpu.vector_store %arg8[%c0_23, %c0_24, %c0_25], %37 {strides = array<i32>} : memref<8x64x8xf32, #tpu.memory_space<vmem>>, vector<1x64x8xf32>,
    %c0_26 = arith.constant 0 : index
    %c0_27 = arith.constant 0 : index
    %c0_28 = arith.constant 0 : index
    %38 = vector.load %arg6[%c0_26, %c0_27, %c0_28] : memref<8x64x1xf32, #tpu.memory_space<vmem>>, vector<1x64x1xf32>
    %39 = vector.shape_cast %38 : vector<1x64x1xf32> to vector<64x1xf32>
    %40 = vector.shape_cast %14 : vector<64x1xf32> to vector<1x64x1xf32>
    tpu.vector_store %arg6[%c0_26, %c0_27, %c0_28], %40 {strides = array<i32>} : memref<8x64x1xf32, #tpu.memory_space<vmem>>, vector<1x64x1xf32>,
    %c0_29 = arith.constant 0 : index
    %c0_30 = arith.constant 0 : index
    %c8 = arith.constant 8 : index
    %41 = vector.load %arg3[%c0_29, %c0_30, %c8] : memref<1x64x64xf32, #tpu.memory_space<vmem>>, vector<1x64x8xf32>
    %42 = vector.shape_cast %41 : vector<1x64x8xf32> to vector<64x8xf32>
    %c0_31 = arith.constant 0 : index
    %c0_32 = arith.constant 0 : index
    %c8_33 = arith.constant 8 : index
    %43 = vector.load %arg4[%c0_31, %c0_32, %c8_33] : memref<1x8x128xf32, #tpu.memory_space<vmem>>, vector<1x8x8xf32>
    %44 = vector.shape_cast %43 : vector<1x8x8xf32> to vector<8x8xf32>
    %c0_34 = arith.constant 0 : index
    %c0_35 = arith.constant 0 : index
    %c72 = arith.constant 72 : index
    %45 = vector.load %arg4[%c0_34, %c0_35, %c72] : memref<1x8x128xf32, #tpu.memory_space<vmem>>, vector<1x8x8xf32>
    %46 = vector.shape_cast %45 : vector<1x8x8xf32> to vector<8x8xf32>
    %cst_36 = arith.constant dense<0.000000e+00> : vector<64x8xf32>
    %47 = tpu.matmul %42, %44, %cst_36 {dimension_numbers = #tpu.dot_dimension_numbers<[1], [1], [0], [0], [0, 0, 1, 0], [], []>} : vector<64x8xf32>, vector<8x8xf32>, vector<64x8xf32> -> vector<64x8xf32>
    %c1 = arith.constant 1 : index
    %c0_37 = arith.constant 0 : index
    %c0_38 = arith.constant 0 : index
    %48 = vector.load %arg6[%c1, %c0_37, %c0_38] : memref<8x64x1xf32, #tpu.memory_space<vmem>>, vector<1x64x1xf32>
    %49 = vector.shape_cast %48 : vector<1x64x1xf32> to vector<64x1xf32>
    %cst_39 = arith.constant dense<0xFF800000> : vector<64xf32>
    %50 = vector.multi_reduction <maximumf>, %47, %cst_39 [1] : vector<64x8xf32> to vector<64xf32>
    %51 = vector.shape_cast %50 : vector<64xf32> to vector<64x1xf32>
    %52 = arith.maximumf %49, %51 : vector<64x1xf32>
    %53 = arith.subf %49, %52 : vector<64x1xf32>
    %54 = math.exp %53 : vector<64x1xf32>
    %55 = vector.broadcast %52 : vector<64x1xf32> to vector<64x8xf32>
    %56 = arith.subf %47, %55 : vector<64x8xf32>
    %57 = math.exp %56 : vector<64x8xf32>
    %c1_40 = arith.constant 1 : index
    %c0_41 = arith.constant 0 : index
    %c0_42 = arith.constant 0 : index
    %58 = vector.load %arg7[%c1_40, %c0_41, %c0_42] : memref<8x64x1xf32, #tpu.memory_space<vmem>>, vector<1x64x1xf32>
    %59 = vector.shape_cast %58 : vector<1x64x1xf32> to vector<64x1xf32>
    %60 = arith.mulf %54, %59 : vector<64x1xf32>
    %cst_43 = arith.constant dense<0.000000e+00> : vector<64xf32>
    %61 = vector.multi_reduction <add>, %57, %cst_43 [1] : vector<64x8xf32> to vector<64xf32>
    %62 = vector.shape_cast %61 : vector<64xf32> to vector<64x1xf32>
    %63 = arith.addf %60, %62 : vector<64x1xf32>
    %c1_44 = arith.constant 1 : index
    %c0_45 = arith.constant 0 : index
    %c0_46 = arith.constant 0 : index
    %64 = vector.load %arg7[%c1_44, %c0_45, %c0_46] : memref<8x64x1xf32, #tpu.memory_space<vmem>>, vector<1x64x1xf32>
    %65 = vector.shape_cast %64 : vector<1x64x1xf32> to vector<64x1xf32>
    %66 = vector.shape_cast %63 : vector<64x1xf32> to vector<1x64x1xf32>
    tpu.vector_store %arg7[%c1_44, %c0_45, %c0_46], %66 {strides = array<i32>} : memref<8x64x1xf32, #tpu.memory_space<vmem>>, vector<1x64x1xf32>,
    %c1_47 = arith.constant 1 : index
    %c0_48 = arith.constant 0 : index
    %c0_49 = arith.constant 0 : index
    %67 = vector.load %arg8[%c1_47, %c0_48, %c0_49] : memref<8x64x8xf32, #tpu.memory_space<vmem>>, vector<1x64x8xf32>
    %68 = vector.shape_cast %67 : vector<1x64x8xf32> to vector<64x8xf32>
    %69 = vector.broadcast %54 : vector<64x1xf32> to vector<64x8xf32>
    %70 = arith.mulf %69, %68 : vector<64x8xf32>
    %cst_50 = arith.constant dense<0.000000e+00> : vector<64x8xf32>
    %71 = tpu.matmul %57, %46, %cst_50 {dimension_numbers = #tpu.dot_dimension_numbers<[1], [0], [0], [1], [0, 0, 1, 1], [], []>} : vector<64x8xf32>, vector<8x8xf32>, vector<64x8xf32> -> vector<64x8xf32>
    %72 = arith.addf %70, %71 : vector<64x8xf32>
    %c1_51 = arith.constant 1 : index
    %c0_52 = arith.constant 0 : index
    %c0_53 = arith.constant 0 : index
    %73 = vector.load %arg8[%c1_51, %c0_52, %c0_53] : memref<8x64x8xf32, #tpu.memory_space<vmem>>, vector<1x64x8xf32>
    %74 = vector.shape_cast %73 : vector<1x64x8xf32> to vector<64x8xf32>
    %75 = vector.shape_cast %72 : vector<64x8xf32> to vector<1x64x8xf32>
    tpu.vector_store %arg8[%c1_51, %c0_52, %c0_53], %75 {strides = array<i32>} : memref<8x64x8xf32, #tpu.memory_space<vmem>>, vector<1x64x8xf32>,
    %c1_54 = arith.constant 1 : index
    %c0_55 = arith.constant 0 : index
    %c0_56 = arith.constant 0 : index
    %76 = vector.load %arg6[%c1_54, %c0_55, %c0_56] : memref<8x64x1xf32, #tpu.memory_space<vmem>>, vector<1x64x1xf32>
    %77 = vector.shape_cast %76 : vector<1x64x1xf32> to vector<64x1xf32>
    %78 = vector.shape_cast %52 : vector<64x1xf32> to vector<1x64x1xf32>
    tpu.vector_store %arg6[%c1_54, %c0_55, %c0_56], %78 {strides = array<i32>} : memref<8x64x1xf32, #tpu.memory_space<vmem>>, vector<1x64x1xf32>,
    %c0_57 = arith.constant 0 : index
    %c0_58 = arith.constant 0 : index
    %c16 = arith.constant 16 : index
    %79 = vector.load %arg3[%c0_57, %c0_58, %c16] : memref<1x64x64xf32, #tpu.memory_space<vmem>>, vector<1x64x8xf32>
    %80 = vector.shape_cast %79 : vector<1x64x8xf32> to vector<64x8xf32>
    %c0_59 = arith.constant 0 : index
    %c0_60 = arith.constant 0 : index
    %c16_61 = arith.constant 16 : index
    %81 = vector.load %arg4[%c0_59, %c0_60, %c16_61] : memref<1x8x128xf32, #tpu.memory_space<vmem>>, vector<1x8x8xf32>
    %82 = vector.shape_cast %81 : vector<1x8x8xf32> to vector<8x8xf32>
    %c0_62 = arith.constant 0 : index
    %c0_63 = arith.constant 0 : index
    %c80 = arith.constant 80 : index
    %83 = vector.load %arg4[%c0_62, %c0_63, %c80] : memref<1x8x128xf32, #tpu.memory_space<vmem>>, vector<1x8x8xf32>
    %84 = vector.shape_cast %83 : vector<1x8x8xf32> to vector<8x8xf32>
    %cst_64 = arith.constant dense<0.000000e+00> : vector<64x8xf32>
    %85 = tpu.matmul %80, %82, %cst_64 {dimension_numbers = #tpu.dot_dimension_numbers<[1], [1], [0], [0], [0, 0, 1, 0], [], []>} : vector<64x8xf32>, vector<8x8xf32>, vector<64x8xf32> -> vector<64x8xf32>
    %c2 = arith.constant 2 : index
    %c0_65 = arith.constant 0 : index
    %c0_66 = arith.constant 0 : index
    %86 = vector.load %arg6[%c2, %c0_65, %c0_66] : memref<8x64x1xf32, #tpu.memory_space<vmem>>, vector<1x64x1xf32>
    %87 = vector.shape_cast %86 : vector<1x64x1xf32> to vector<64x1xf32>
    %cst_67 = arith.constant dense<0xFF800000> : vector<64xf32>
    %88 = vector.multi_reduction <maximumf>, %85, %cst_67 [1] : vector<64x8xf32> to vector<64xf32>
    %89 = vector.shape_cast %88 : vector<64xf32> to vector<64x1xf32>
    %90 = arith.maximumf %87, %89 : vector<64x1xf32>
    %91 = arith.subf %87, %90 : vector<64x1xf32>
    %92 = math.exp %91 : vector<64x1xf32>
    %93 = vector.broadcast %90 : vector<64x1xf32> to vector<64x8xf32>
    %94 = arith.subf %85, %93 : vector<64x8xf32>
    %95 = math.exp %94 : vector<64x8xf32>
    %c2_68 = arith.constant 2 : index
    %c0_69 = arith.constant 0 : index
    %c0_70 = arith.constant 0 : index
    %96 = vector.load %arg7[%c2_68, %c0_69, %c0_70] : memref<8x64x1xf32, #tpu.memory_space<vmem>>, vector<1x64x1xf32>
    %97 = vector.shape_cast %96 : vector<1x64x1xf32> to vector<64x1xf32>
    %98 = arith.mulf %92, %97 : vector<64x1xf32>
    %cst_71 = arith.constant dense<0.000000e+00> : vector<64xf32>
    %99 = vector.multi_reduction <add>, %95, %cst_71 [1] : vector<64x8xf32> to vector<64xf32>
    %100 = vector.shape_cast %99 : vector<64xf32> to vector<64x1xf32>
    %101 = arith.addf %98, %100 : vector<64x1xf32>
    %c2_72 = arith.constant 2 : index
    %c0_73 = arith.constant 0 : index
    %c0_74 = arith.constant 0 : index
    %102 = vector.load %arg7[%c2_72, %c0_73, %c0_74] : memref<8x64x1xf32, #tpu.memory_space<vmem>>, vector<1x64x1xf32>
    %103 = vector.shape_cast %102 : vector<1x64x1xf32> to vector<64x1xf32>
    %104 = vector.shape_cast %101 : vector<64x1xf32> to vector<1x64x1xf32>
    tpu.vector_store %arg7[%c2_72, %c0_73, %c0_74], %104 {strides = array<i32>} : memref<8x64x1xf32, #tpu.memory_space<vmem>>, vector<1x64x1xf32>,
    %c2_75 = arith.constant 2 : index
    %c0_76 = arith.constant 0 : index
    %c0_77 = arith.constant 0 : index
    %105 = vector.load %arg8[%c2_75, %c0_76, %c0_77] : memref<8x64x8xf32, #tpu.memory_space<vmem>>, vector<1x64x8xf32>
    %106 = vector.shape_cast %105 : vector<1x64x8xf32> to vector<64x8xf32>
    %107 = vector.broadcast %92 : vector<64x1xf32> to vector<64x8xf32>
    %108 = arith.mulf %107, %106 : vector<64x8xf32>
    %cst_78 = arith.constant dense<0.000000e+00> : vector<64x8xf32>
    %109 = tpu.matmul %95, %84, %cst_78 {dimension_numbers = #tpu.dot_dimension_numbers<[1], [0], [0], [1], [0, 0, 1, 1], [], []>} : vector<64x8xf32>, vector<8x8xf32>, vector<64x8xf32> -> vector<64x8xf32>
    %110 = arith.addf %108, %109 : vector<64x8xf32>
    %c2_79 = arith.constant 2 : index
    %c0_80 = arith.constant 0 : index
    %c0_81 = arith.constant 0 : index
    %111 = vector.load %arg8[%c2_79, %c0_80, %c0_81] : memref<8x64x8xf32, #tpu.memory_space<vmem>>, vector<1x64x8xf32>
    %112 = vector.shape_cast %111 : vector<1x64x8xf32> to vector<64x8xf32>
    %113 = vector.shape_cast %110 : vector<64x8xf32> to vector<1x64x8xf32>
    tpu.vector_store %arg8[%c2_79, %c0_80, %c0_81], %113 {strides = array<i32>} : memref<8x64x8xf32, #tpu.memory_space<vmem>>, vector<1x64x8xf32>,
    %c2_82 = arith.constant 2 : index
    %c0_83 = arith.constant 0 : index
    %c0_84 = arith.constant 0 : index
    %114 = vector.load %arg6[%c2_82, %c0_83, %c0_84] : memref<8x64x1xf32, #tpu.memory_space<vmem>>, vector<1x64x1xf32>
    %115 = vector.shape_cast %114 : vector<1x64x1xf32> to vector<64x1xf32>
    %116 = vector.shape_cast %90 : vector<64x1xf32> to vector<1x64x1xf32>
    tpu.vector_store %arg6[%c2_82, %c0_83, %c0_84], %116 {strides = array<i32>} : memref<8x64x1xf32, #tpu.memory_space<vmem>>, vector<1x64x1xf32>,
    %c0_85 = arith.constant 0 : index
    %c0_86 = arith.constant 0 : index
    %c24 = arith.constant 24 : index
    %117 = vector.load %arg3[%c0_85, %c0_86, %c24] : memref<1x64x64xf32, #tpu.memory_space<vmem>>, vector<1x64x8xf32>
    %118 = vector.shape_cast %117 : vector<1x64x8xf32> to vector<64x8xf32>
    %c0_87 = arith.constant 0 : index
    %c0_88 = arith.constant 0 : index
    %c24_89 = arith.constant 24 : index
    %119 = vector.load %arg4[%c0_87, %c0_88, %c24_89] : memref<1x8x128xf32, #tpu.memory_space<vmem>>, vector<1x8x8xf32>
    %120 = vector.shape_cast %119 : vector<1x8x8xf32> to vector<8x8xf32>
    %c0_90 = arith.constant 0 : index
    %c0_91 = arith.constant 0 : index
    %c88 = arith.constant 88 : index
    %121 = vector.load %arg4[%c0_90, %c0_91, %c88] : memref<1x8x128xf32, #tpu.memory_space<vmem>>, vector<1x8x8xf32>
    %122 = vector.shape_cast %121 : vector<1x8x8xf32> to vector<8x8xf32>
    %cst_92 = arith.constant dense<0.000000e+00> : vector<64x8xf32>
    %123 = tpu.matmul %118, %120, %cst_92 {dimension_numbers = #tpu.dot_dimension_numbers<[1], [1], [0], [0], [0, 0, 1, 0], [], []>} : vector<64x8xf32>, vector<8x8xf32>, vector<64x8xf32> -> vector<64x8xf32>
    %c3 = arith.constant 3 : index
    %c0_93 = arith.constant 0 : index
    %c0_94 = arith.constant 0 : index
    %124 = vector.load %arg6[%c3, %c0_93, %c0_94] : memref<8x64x1xf32, #tpu.memory_space<vmem>>, vector<1x64x1xf32>
    %125 = vector.shape_cast %124 : vector<1x64x1xf32> to vector<64x1xf32>
    %cst_95 = arith.constant dense<0xFF800000> : vector<64xf32>
    %126 = vector.multi_reduction <maximumf>, %123, %cst_95 [1] : vector<64x8xf32> to vector<64xf32>
    %127 = vector.shape_cast %126 : vector<64xf32> to vector<64x1xf32>
    %128 = arith.maximumf %125, %127 : vector<64x1xf32>
    %129 = arith.subf %125, %128 : vector<64x1xf32>
    %130 = math.exp %129 : vector<64x1xf32>
    %131 = vector.broadcast %128 : vector<64x1xf32> to vector<64x8xf32>
    %132 = arith.subf %123, %131 : vector<64x8xf32>
    %133 = math.exp %132 : vector<64x8xf32>
    %c3_96 = arith.constant 3 : index
    %c0_97 = arith.constant 0 : index
    %c0_98 = arith.constant 0 : index
    %134 = vector.load %arg7[%c3_96, %c0_97, %c0_98] : memref<8x64x1xf32, #tpu.memory_space<vmem>>, vector<1x64x1xf32>
    %135 = vector.shape_cast %134 : vector<1x64x1xf32> to vector<64x1xf32>
    %136 = arith.mulf %130, %135 : vector<64x1xf32>
    %cst_99 = arith.constant dense<0.000000e+00> : vector<64xf32>
    %137 = vector.multi_reduction <add>, %133, %cst_99 [1] : vector<64x8xf32> to vector<64xf32>
    %138 = vector.shape_cast %137 : vector<64xf32> to vector<64x1xf32>
    %139 = arith.addf %136, %138 : vector<64x1xf32>
    %c3_100 = arith.constant 3 : index
    %c0_101 = arith.constant 0 : index
    %c0_102 = arith.constant 0 : index
    %140 = vector.load %arg7[%c3_100, %c0_101, %c0_102] : memref<8x64x1xf32, #tpu.memory_space<vmem>>, vector<1x64x1xf32>
    %141 = vector.shape_cast %140 : vector<1x64x1xf32> to vector<64x1xf32>
    %142 = vector.shape_cast %139 : vector<64x1xf32> to vector<1x64x1xf32>
    tpu.vector_store %arg7[%c3_100, %c0_101, %c0_102], %142 {strides = array<i32>} : memref<8x64x1xf32, #tpu.memory_space<vmem>>, vector<1x64x1xf32>,
    %c3_103 = arith.constant 3 : index
    %c0_104 = arith.constant 0 : index
    %c0_105 = arith.constant 0 : index
    %143 = vector.load %arg8[%c3_103, %c0_104, %c0_105] : memref<8x64x8xf32, #tpu.memory_space<vmem>>, vector<1x64x8xf32>
    %144 = vector.shape_cast %143 : vector<1x64x8xf32> to vector<64x8xf32>
    %145 = vector.broadcast %130 : vector<64x1xf32> to vector<64x8xf32>
    %146 = arith.mulf %145, %144 : vector<64x8xf32>
    %cst_106 = arith.constant dense<0.000000e+00> : vector<64x8xf32>
    %147 = tpu.matmul %133, %122, %cst_106 {dimension_numbers = #tpu.dot_dimension_numbers<[1], [0], [0], [1], [0, 0, 1, 1], [], []>} : vector<64x8xf32>, vector<8x8xf32>, vector<64x8xf32> -> vector<64x8xf32>
    %148 = arith.addf %146, %147 : vector<64x8xf32>
    %c3_107 = arith.constant 3 : index
    %c0_108 = arith.constant 0 : index
    %c0_109 = arith.constant 0 : index
    %149 = vector.load %arg8[%c3_107, %c0_108, %c0_109] : memref<8x64x8xf32, #tpu.memory_space<vmem>>, vector<1x64x8xf32>
    %150 = vector.shape_cast %149 : vector<1x64x8xf32> to vector<64x8xf32>
    %151 = vector.shape_cast %148 : vector<64x8xf32> to vector<1x64x8xf32>
    tpu.vector_store %arg8[%c3_107, %c0_108, %c0_109], %151 {strides = array<i32>} : memref<8x64x8xf32, #tpu.memory_space<vmem>>, vector<1x64x8xf32>,
    %c3_110 = arith.constant 3 : index
    %c0_111 = arith.constant 0 : index
    %c0_112 = arith.constant 0 : index
    %152 = vector.load %arg6[%c3_110, %c0_111, %c0_112] : memref<8x64x1xf32, #tpu.memory_space<vmem>>, vector<1x64x1xf32>
    %153 = vector.shape_cast %152 : vector<1x64x1xf32> to vector<64x1xf32>
    %154 = vector.shape_cast %128 : vector<64x1xf32> to vector<1x64x1xf32>
    tpu.vector_store %arg6[%c3_110, %c0_111, %c0_112], %154 {strides = array<i32>} : memref<8x64x1xf32, #tpu.memory_space<vmem>>, vector<1x64x1xf32>,
    %c0_113 = arith.constant 0 : index
    %c0_114 = arith.constant 0 : index
    %c32 = arith.constant 32 : index
    %155 = vector.load %arg3[%c0_113, %c0_114, %c32] : memref<1x64x64xf32, #tpu.memory_space<vmem>>, vector<1x64x8xf32>
    %156 = vector.shape_cast %155 : vector<1x64x8xf32> to vector<64x8xf32>
    %c0_115 = arith.constant 0 : index
    %c0_116 = arith.constant 0 : index
    %c32_117 = arith.constant 32 : index
    %157 = vector.load %arg4[%c0_115, %c0_116, %c32_117] : memref<1x8x128xf32, #tpu.memory_space<vmem>>, vector<1x8x8xf32>
    %158 = vector.shape_cast %157 : vector<1x8x8xf32> to vector<8x8xf32>
    %c0_118 = arith.constant 0 : index
    %c0_119 = arith.constant 0 : index
    %c96 = arith.constant 96 : index
    %159 = vector.load %arg4[%c0_118, %c0_119, %c96] : memref<1x8x128xf32, #tpu.memory_space<vmem>>, vector<1x8x8xf32>
    %160 = vector.shape_cast %159 : vector<1x8x8xf32> to vector<8x8xf32>
    %cst_120 = arith.constant dense<0.000000e+00> : vector<64x8xf32>
    %161 = tpu.matmul %156, %158, %cst_120 {dimension_numbers = #tpu.dot_dimension_numbers<[1], [1], [0], [0], [0, 0, 1, 0], [], []>} : vector<64x8xf32>, vector<8x8xf32>, vector<64x8xf32> -> vector<64x8xf32>
    %c4 = arith.constant 4 : index
    %c0_121 = arith.constant 0 : index
    %c0_122 = arith.constant 0 : index
    %162 = vector.load %arg6[%c4, %c0_121, %c0_122] : memref<8x64x1xf32, #tpu.memory_space<vmem>>, vector<1x64x1xf32>
    %163 = vector.shape_cast %162 : vector<1x64x1xf32> to vector<64x1xf32>
    %cst_123 = arith.constant dense<0xFF800000> : vector<64xf32>
    %164 = vector.multi_reduction <maximumf>, %161, %cst_123 [1] : vector<64x8xf32> to vector<64xf32>
    %165 = vector.shape_cast %164 : vector<64xf32> to vector<64x1xf32>
    %166 = arith.maximumf %163, %165 : vector<64x1xf32>
    %167 = arith.subf %163, %166 : vector<64x1xf32>
    %168 = math.exp %167 : vector<64x1xf32>
    %169 = vector.broadcast %166 : vector<64x1xf32> to vector<64x8xf32>
    %170 = arith.subf %161, %169 : vector<64x8xf32>
    %171 = math.exp %170 : vector<64x8xf32>
    %c4_124 = arith.constant 4 : index
    %c0_125 = arith.constant 0 : index
    %c0_126 = arith.constant 0 : index
    %172 = vector.load %arg7[%c4_124, %c0_125, %c0_126] : memref<8x64x1xf32, #tpu.memory_space<vmem>>, vector<1x64x1xf32>
    %173 = vector.shape_cast %172 : vector<1x64x1xf32> to vector<64x1xf32>
    %174 = arith.mulf %168, %173 : vector<64x1xf32>
    %cst_127 = arith.constant dense<0.000000e+00> : vector<64xf32>
    %175 = vector.multi_reduction <add>, %171, %cst_127 [1] : vector<64x8xf32> to vector<64xf32>
    %176 = vector.shape_cast %175 : vector<64xf32> to vector<64x1xf32>
    %177 = arith.addf %174, %176 : vector<64x1xf32>
    %c4_128 = arith.constant 4 : index
    %c0_129 = arith.constant 0 : index
    %c0_130 = arith.constant 0 : index
    %178 = vector.load %arg7[%c4_128, %c0_129, %c0_130] : memref<8x64x1xf32, #tpu.memory_space<vmem>>, vector<1x64x1xf32>
    %179 = vector.shape_cast %178 : vector<1x64x1xf32> to vector<64x1xf32>
    %180 = vector.shape_cast %177 : vector<64x1xf32> to vector<1x64x1xf32>
    tpu.vector_store %arg7[%c4_128, %c0_129, %c0_130], %180 {strides = array<i32>} : memref<8x64x1xf32, #tpu.memory_space<vmem>>, vector<1x64x1xf32>,
    %c4_131 = arith.constant 4 : index
    %c0_132 = arith.constant 0 : index
    %c0_133 = arith.constant 0 : index
    %181 = vector.load %arg8[%c4_131, %c0_132, %c0_133] : memref<8x64x8xf32, #tpu.memory_space<vmem>>, vector<1x64x8xf32>
    %182 = vector.shape_cast %181 : vector<1x64x8xf32> to vector<64x8xf32>
    %183 = vector.broadcast %168 : vector<64x1xf32> to vector<64x8xf32>
    %184 = arith.mulf %183, %182 : vector<64x8xf32>
    %cst_134 = arith.constant dense<0.000000e+00> : vector<64x8xf32>
    %185 = tpu.matmul %171, %160, %cst_134 {dimension_numbers = #tpu.dot_dimension_numbers<[1], [0], [0], [1], [0, 0, 1, 1], [], []>} : vector<64x8xf32>, vector<8x8xf32>, vector<64x8xf32> -> vector<64x8xf32>
    %186 = arith.addf %184, %185 : vector<64x8xf32>
    %c4_135 = arith.constant 4 : index
    %c0_136 = arith.constant 0 : index
    %c0_137 = arith.constant 0 : index
    %187 = vector.load %arg8[%c4_135, %c0_136, %c0_137] : memref<8x64x8xf32, #tpu.memory_space<vmem>>, vector<1x64x8xf32>
    %188 = vector.shape_cast %187 : vector<1x64x8xf32> to vector<64x8xf32>
    %189 = vector.shape_cast %186 : vector<64x8xf32> to vector<1x64x8xf32>
    tpu.vector_store %arg8[%c4_135, %c0_136, %c0_137], %189 {strides = array<i32>} : memref<8x64x8xf32, #tpu.memory_space<vmem>>, vector<1x64x8xf32>,
    %c4_138 = arith.constant 4 : index
    %c0_139 = arith.constant 0 : index
    %c0_140 = arith.constant 0 : index
    %190 = vector.load %arg6[%c4_138, %c0_139, %c0_140] : memref<8x64x1xf32, #tpu.memory_space<vmem>>, vector<1x64x1xf32>
    %191 = vector.shape_cast %190 : vector<1x64x1xf32> to vector<64x1xf32>
    %192 = vector.shape_cast %166 : vector<64x1xf32> to vector<1x64x1xf32>
    tpu.vector_store %arg6[%c4_138, %c0_139, %c0_140], %192 {strides = array<i32>} : memref<8x64x1xf32, #tpu.memory_space<vmem>>, vector<1x64x1xf32>,
    %c0_141 = arith.constant 0 : index
    %c0_142 = arith.constant 0 : index
    %c40 = arith.constant 40 : index
    %193 = vector.load %arg3[%c0_141, %c0_142, %c40] : memref<1x64x64xf32, #tpu.memory_space<vmem>>, vector<1x64x8xf32>
    %194 = vector.shape_cast %193 : vector<1x64x8xf32> to vector<64x8xf32>
    %c0_143 = arith.constant 0 : index
    %c0_144 = arith.constant 0 : index
    %c40_145 = arith.constant 40 : index
    %195 = vector.load %arg4[%c0_143, %c0_144, %c40_145] : memref<1x8x128xf32, #tpu.memory_space<vmem>>, vector<1x8x8xf32>
    %196 = vector.shape_cast %195 : vector<1x8x8xf32> to vector<8x8xf32>
    %c0_146 = arith.constant 0 : index
    %c0_147 = arith.constant 0 : index
    %c104 = arith.constant 104 : index
    %197 = vector.load %arg4[%c0_146, %c0_147, %c104] : memref<1x8x128xf32, #tpu.memory_space<vmem>>, vector<1x8x8xf32>
    %198 = vector.shape_cast %197 : vector<1x8x8xf32> to vector<8x8xf32>
    %cst_148 = arith.constant dense<0.000000e+00> : vector<64x8xf32>
    %199 = tpu.matmul %194, %196, %cst_148 {dimension_numbers = #tpu.dot_dimension_numbers<[1], [1], [0], [0], [0, 0, 1, 0], [], []>} : vector<64x8xf32>, vector<8x8xf32>, vector<64x8xf32> -> vector<64x8xf32>
    %c5 = arith.constant 5 : index
    %c0_149 = arith.constant 0 : index
    %c0_150 = arith.constant 0 : index
    %200 = vector.load %arg6[%c5, %c0_149, %c0_150] : memref<8x64x1xf32, #tpu.memory_space<vmem>>, vector<1x64x1xf32>
    %201 = vector.shape_cast %200 : vector<1x64x1xf32> to vector<64x1xf32>
    %cst_151 = arith.constant dense<0xFF800000> : vector<64xf32>
    %202 = vector.multi_reduction <maximumf>, %199, %cst_151 [1] : vector<64x8xf32> to vector<64xf32>
    %203 = vector.shape_cast %202 : vector<64xf32> to vector<64x1xf32>
    %204 = arith.maximumf %201, %203 : vector<64x1xf32>
    %205 = arith.subf %201, %204 : vector<64x1xf32>
    %206 = math.exp %205 : vector<64x1xf32>
    %207 = vector.broadcast %204 : vector<64x1xf32> to vector<64x8xf32>
    %208 = arith.subf %199, %207 : vector<64x8xf32>
    %209 = math.exp %208 : vector<64x8xf32>
    %c5_152 = arith.constant 5 : index
    %c0_153 = arith.constant 0 : index
    %c0_154 = arith.constant 0 : index
    %210 = vector.load %arg7[%c5_152, %c0_153, %c0_154] : memref<8x64x1xf32, #tpu.memory_space<vmem>>, vector<1x64x1xf32>
    %211 = vector.shape_cast %210 : vector<1x64x1xf32> to vector<64x1xf32>
    %212 = arith.mulf %206, %211 : vector<64x1xf32>
    %cst_155 = arith.constant dense<0.000000e+00> : vector<64xf32>
    %213 = vector.multi_reduction <add>, %209, %cst_155 [1] : vector<64x8xf32> to vector<64xf32>
    %214 = vector.shape_cast %213 : vector<64xf32> to vector<64x1xf32>
    %215 = arith.addf %212, %214 : vector<64x1xf32>
    %c5_156 = arith.constant 5 : index
    %c0_157 = arith.constant 0 : index
    %c0_158 = arith.constant 0 : index
    %216 = vector.load %arg7[%c5_156, %c0_157, %c0_158] : memref<8x64x1xf32, #tpu.memory_space<vmem>>, vector<1x64x1xf32>
    %217 = vector.shape_cast %216 : vector<1x64x1xf32> to vector<64x1xf32>
    %218 = vector.shape_cast %215 : vector<64x1xf32> to vector<1x64x1xf32>
    tpu.vector_store %arg7[%c5_156, %c0_157, %c0_158], %218 {strides = array<i32>} : memref<8x64x1xf32, #tpu.memory_space<vmem>>, vector<1x64x1xf32>,
    %c5_159 = arith.constant 5 : index
    %c0_160 = arith.constant 0 : index
    %c0_161 = arith.constant 0 : index
    %219 = vector.load %arg8[%c5_159, %c0_160, %c0_161] : memref<8x64x8xf32, #tpu.memory_space<vmem>>, vector<1x64x8xf32>
    %220 = vector.shape_cast %219 : vector<1x64x8xf32> to vector<64x8xf32>
    %221 = vector.broadcast %206 : vector<64x1xf32> to vector<64x8xf32>
    %222 = arith.mulf %221, %220 : vector<64x8xf32>
    %cst_162 = arith.constant dense<0.000000e+00> : vector<64x8xf32>
    %223 = tpu.matmul %209, %198, %cst_162 {dimension_numbers = #tpu.dot_dimension_numbers<[1], [0], [0], [1], [0, 0, 1, 1], [], []>} : vector<64x8xf32>, vector<8x8xf32>, vector<64x8xf32> -> vector<64x8xf32>
    %224 = arith.addf %222, %223 : vector<64x8xf32>
    %c5_163 = arith.constant 5 : index
    %c0_164 = arith.constant 0 : index
    %c0_165 = arith.constant 0 : index
    %225 = vector.load %arg8[%c5_163, %c0_164, %c0_165] : memref<8x64x8xf32, #tpu.memory_space<vmem>>, vector<1x64x8xf32>
    %226 = vector.shape_cast %225 : vector<1x64x8xf32> to vector<64x8xf32>
    %227 = vector.shape_cast %224 : vector<64x8xf32> to vector<1x64x8xf32>
    tpu.vector_store %arg8[%c5_163, %c0_164, %c0_165], %227 {strides = array<i32>} : memref<8x64x8xf32, #tpu.memory_space<vmem>>, vector<1x64x8xf32>,
    %c5_166 = arith.constant 5 : index
    %c0_167 = arith.constant 0 : index
    %c0_168 = arith.constant 0 : index
    %228 = vector.load %arg6[%c5_166, %c0_167, %c0_168] : memref<8x64x1xf32, #tpu.memory_space<vmem>>, vector<1x64x1xf32>
    %229 = vector.shape_cast %228 : vector<1x64x1xf32> to vector<64x1xf32>
    %230 = vector.shape_cast %204 : vector<64x1xf32> to vector<1x64x1xf32>
    tpu.vector_store %arg6[%c5_166, %c0_167, %c0_168], %230 {strides = array<i32>} : memref<8x64x1xf32, #tpu.memory_space<vmem>>, vector<1x64x1xf32>,
    %c0_169 = arith.constant 0 : index
    %c0_170 = arith.constant 0 : index
    %c48 = arith.constant 48 : index
    %231 = vector.load %arg3[%c0_169, %c0_170, %c48] : memref<1x64x64xf32, #tpu.memory_space<vmem>>, vector<1x64x8xf32>
    %232 = vector.shape_cast %231 : vector<1x64x8xf32> to vector<64x8xf32>
    %c0_171 = arith.constant 0 : index
    %c0_172 = arith.constant 0 : index
    %c48_173 = arith.constant 48 : index
    %233 = vector.load %arg4[%c0_171, %c0_172, %c48_173] : memref<1x8x128xf32, #tpu.memory_space<vmem>>, vector<1x8x8xf32>
    %234 = vector.shape_cast %233 : vector<1x8x8xf32> to vector<8x8xf32>
    %c0_174 = arith.constant 0 : index
    %c0_175 = arith.constant 0 : index
    %c112 = arith.constant 112 : index
    %235 = vector.load %arg4[%c0_174, %c0_175, %c112] : memref<1x8x128xf32, #tpu.memory_space<vmem>>, vector<1x8x8xf32>
    %236 = vector.shape_cast %235 : vector<1x8x8xf32> to vector<8x8xf32>
    %cst_176 = arith.constant dense<0.000000e+00> : vector<64x8xf32>
    %237 = tpu.matmul %232, %234, %cst_176 {dimension_numbers = #tpu.dot_dimension_numbers<[1], [1], [0], [0], [0, 0, 1, 0], [], []>} : vector<64x8xf32>, vector<8x8xf32>, vector<64x8xf32> -> vector<64x8xf32>
    %c6 = arith.constant 6 : index
    %c0_177 = arith.constant 0 : index
    %c0_178 = arith.constant 0 : index
    %238 = vector.load %arg6[%c6, %c0_177, %c0_178] : memref<8x64x1xf32, #tpu.memory_space<vmem>>, vector<1x64x1xf32>
    %239 = vector.shape_cast %238 : vector<1x64x1xf32> to vector<64x1xf32>
    %cst_179 = arith.constant dense<0xFF800000> : vector<64xf32>
    %240 = vector.multi_reduction <maximumf>, %237, %cst_179 [1] : vector<64x8xf32> to vector<64xf32>
    %241 = vector.shape_cast %240 : vector<64xf32> to vector<64x1xf32>
    %242 = arith.maximumf %239, %241 : vector<64x1xf32>
    %243 = arith.subf %239, %242 : vector<64x1xf32>
    %244 = math.exp %243 : vector<64x1xf32>
    %245 = vector.broadcast %242 : vector<64x1xf32> to vector<64x8xf32>
    %246 = arith.subf %237, %245 : vector<64x8xf32>
    %247 = math.exp %246 : vector<64x8xf32>
    %c6_180 = arith.constant 6 : index
    %c0_181 = arith.constant 0 : index
    %c0_182 = arith.constant 0 : index
    %248 = vector.load %arg7[%c6_180, %c0_181, %c0_182] : memref<8x64x1xf32, #tpu.memory_space<vmem>>, vector<1x64x1xf32>
    %249 = vector.shape_cast %248 : vector<1x64x1xf32> to vector<64x1xf32>
    %250 = arith.mulf %244, %249 : vector<64x1xf32>
    %cst_183 = arith.constant dense<0.000000e+00> : vector<64xf32>
    %251 = vector.multi_reduction <add>, %247, %cst_183 [1] : vector<64x8xf32> to vector<64xf32>
    %252 = vector.shape_cast %251 : vector<64xf32> to vector<64x1xf32>
    %253 = arith.addf %250, %252 : vector<64x1xf32>
    %c6_184 = arith.constant 6 : index
    %c0_185 = arith.constant 0 : index
    %c0_186 = arith.constant 0 : index
    %254 = vector.load %arg7[%c6_184, %c0_185, %c0_186] : memref<8x64x1xf32, #tpu.memory_space<vmem>>, vector<1x64x1xf32>
    %255 = vector.shape_cast %254 : vector<1x64x1xf32> to vector<64x1xf32>
    %256 = vector.shape_cast %253 : vector<64x1xf32> to vector<1x64x1xf32>
    tpu.vector_store %arg7[%c6_184, %c0_185, %c0_186], %256 {strides = array<i32>} : memref<8x64x1xf32, #tpu.memory_space<vmem>>, vector<1x64x1xf32>,
    %c6_187 = arith.constant 6 : index
    %c0_188 = arith.constant 0 : index
    %c0_189 = arith.constant 0 : index
    %257 = vector.load %arg8[%c6_187, %c0_188, %c0_189] : memref<8x64x8xf32, #tpu.memory_space<vmem>>, vector<1x64x8xf32>
    %258 = vector.shape_cast %257 : vector<1x64x8xf32> to vector<64x8xf32>
    %259 = vector.broadcast %244 : vector<64x1xf32> to vector<64x8xf32>
    %260 = arith.mulf %259, %258 : vector<64x8xf32>
    %cst_190 = arith.constant dense<0.000000e+00> : vector<64x8xf32>
    %261 = tpu.matmul %247, %236, %cst_190 {dimension_numbers = #tpu.dot_dimension_numbers<[1], [0], [0], [1], [0, 0, 1, 1], [], []>} : vector<64x8xf32>, vector<8x8xf32>, vector<64x8xf32> -> vector<64x8xf32>
    %262 = arith.addf %260, %261 : vector<64x8xf32>
    %c6_191 = arith.constant 6 : index
    %c0_192 = arith.constant 0 : index
    %c0_193 = arith.constant 0 : index
    %263 = vector.load %arg8[%c6_191, %c0_192, %c0_193] : memref<8x64x8xf32, #tpu.memory_space<vmem>>, vector<1x64x8xf32>
    %264 = vector.shape_cast %263 : vector<1x64x8xf32> to vector<64x8xf32>
    %265 = vector.shape_cast %262 : vector<64x8xf32> to vector<1x64x8xf32>
    tpu.vector_store %arg8[%c6_191, %c0_192, %c0_193], %265 {strides = array<i32>} : memref<8x64x8xf32, #tpu.memory_space<vmem>>, vector<1x64x8xf32>,
    %c6_194 = arith.constant 6 : index
    %c0_195 = arith.constant 0 : index
    %c0_196 = arith.constant 0 : index
    %266 = vector.load %arg6[%c6_194, %c0_195, %c0_196] : memref<8x64x1xf32, #tpu.memory_space<vmem>>, vector<1x64x1xf32>
    %267 = vector.shape_cast %266 : vector<1x64x1xf32> to vector<64x1xf32>
    %268 = vector.shape_cast %242 : vector<64x1xf32> to vector<1x64x1xf32>
    tpu.vector_store %arg6[%c6_194, %c0_195, %c0_196], %268 {strides = array<i32>} : memref<8x64x1xf32, #tpu.memory_space<vmem>>, vector<1x64x1xf32>,
    %c0_197 = arith.constant 0 : index
    %c0_198 = arith.constant 0 : index
    %c56 = arith.constant 56 : index
    %269 = vector.load %arg3[%c0_197, %c0_198, %c56] : memref<1x64x64xf32, #tpu.memory_space<vmem>>, vector<1x64x8xf32>
    %270 = vector.shape_cast %269 : vector<1x64x8xf32> to vector<64x8xf32>
    %c0_199 = arith.constant 0 : index
    %c0_200 = arith.constant 0 : index
    %c56_201 = arith.constant 56 : index
    %271 = vector.load %arg4[%c0_199, %c0_200, %c56_201] : memref<1x8x128xf32, #tpu.memory_space<vmem>>, vector<1x8x8xf32>
    %272 = vector.shape_cast %271 : vector<1x8x8xf32> to vector<8x8xf32>
    %c0_202 = arith.constant 0 : index
    %c0_203 = arith.constant 0 : index
    %c120 = arith.constant 120 : index
    %273 = vector.load %arg4[%c0_202, %c0_203, %c120] : memref<1x8x128xf32, #tpu.memory_space<vmem>>, vector<1x8x8xf32>
    %274 = vector.shape_cast %273 : vector<1x8x8xf32> to vector<8x8xf32>
    %cst_204 = arith.constant dense<0.000000e+00> : vector<64x8xf32>
    %275 = tpu.matmul %270, %272, %cst_204 {dimension_numbers = #tpu.dot_dimension_numbers<[1], [1], [0], [0], [0, 0, 1, 0], [], []>} : vector<64x8xf32>, vector<8x8xf32>, vector<64x8xf32> -> vector<64x8xf32>
    %c7 = arith.constant 7 : index
    %c0_205 = arith.constant 0 : index
    %c0_206 = arith.constant 0 : index
    %276 = vector.load %arg6[%c7, %c0_205, %c0_206] : memref<8x64x1xf32, #tpu.memory_space<vmem>>, vector<1x64x1xf32>
    %277 = vector.shape_cast %276 : vector<1x64x1xf32> to vector<64x1xf32>
    %cst_207 = arith.constant dense<0xFF800000> : vector<64xf32>
    %278 = vector.multi_reduction <maximumf>, %275, %cst_207 [1] : vector<64x8xf32> to vector<64xf32>
    %279 = vector.shape_cast %278 : vector<64xf32> to vector<64x1xf32>
    %280 = arith.maximumf %277, %279 : vector<64x1xf32>
    %281 = arith.subf %277, %280 : vector<64x1xf32>
    %282 = math.exp %281 : vector<64x1xf32>
    %283 = vector.broadcast %280 : vector<64x1xf32> to vector<64x8xf32>
    %284 = arith.subf %275, %283 : vector<64x8xf32>
    %285 = math.exp %284 : vector<64x8xf32>
    %c7_208 = arith.constant 7 : index
    %c0_209 = arith.constant 0 : index
    %c0_210 = arith.constant 0 : index
    %286 = vector.load %arg7[%c7_208, %c0_209, %c0_210] : memref<8x64x1xf32, #tpu.memory_space<vmem>>, vector<1x64x1xf32>
    %287 = vector.shape_cast %286 : vector<1x64x1xf32> to vector<64x1xf32>
    %288 = arith.mulf %282, %287 : vector<64x1xf32>
    %cst_211 = arith.constant dense<0.000000e+00> : vector<64xf32>
    %289 = vector.multi_reduction <add>, %285, %cst_211 [1] : vector<64x8xf32> to vector<64xf32>
    %290 = vector.shape_cast %289 : vector<64xf32> to vector<64x1xf32>
    %291 = arith.addf %288, %290 : vector<64x1xf32>
    %c7_212 = arith.constant 7 : index
    %c0_213 = arith.constant 0 : index
    %c0_214 = arith.constant 0 : index
    %292 = vector.load %arg7[%c7_212, %c0_213, %c0_214] : memref<8x64x1xf32, #tpu.memory_space<vmem>>, vector<1x64x1xf32>
    %293 = vector.shape_cast %292 : vector<1x64x1xf32> to vector<64x1xf32>
    %294 = vector.shape_cast %291 : vector<64x1xf32> to vector<1x64x1xf32>
    tpu.vector_store %arg7[%c7_212, %c0_213, %c0_214], %294 {strides = array<i32>} : memref<8x64x1xf32, #tpu.memory_space<vmem>>, vector<1x64x1xf32>,
    %c7_215 = arith.constant 7 : index
    %c0_216 = arith.constant 0 : index
    %c0_217 = arith.constant 0 : index
    %295 = vector.load %arg8[%c7_215, %c0_216, %c0_217] : memref<8x64x8xf32, #tpu.memory_space<vmem>>, vector<1x64x8xf32>
    %296 = vector.shape_cast %295 : vector<1x64x8xf32> to vector<64x8xf32>
    %297 = vector.broadcast %282 : vector<64x1xf32> to vector<64x8xf32>
    %298 = arith.mulf %297, %296 : vector<64x8xf32>
    %cst_218 = arith.constant dense<0.000000e+00> : vector<64x8xf32>
    %299 = tpu.matmul %285, %274, %cst_218 {dimension_numbers = #tpu.dot_dimension_numbers<[1], [0], [0], [1], [0, 0, 1, 1], [], []>} : vector<64x8xf32>, vector<8x8xf32>, vector<64x8xf32> -> vector<64x8xf32>
    %300 = arith.addf %298, %299 : vector<64x8xf32>
    %c7_219 = arith.constant 7 : index
    %c0_220 = arith.constant 0 : index
    %c0_221 = arith.constant 0 : index
    %301 = vector.load %arg8[%c7_219, %c0_220, %c0_221] : memref<8x64x8xf32, #tpu.memory_space<vmem>>, vector<1x64x8xf32>
    %302 = vector.shape_cast %301 : vector<1x64x8xf32> to vector<64x8xf32>
    %303 = vector.shape_cast %300 : vector<64x8xf32> to vector<1x64x8xf32>
    tpu.vector_store %arg8[%c7_219, %c0_220, %c0_221], %303 {strides = array<i32>} : memref<8x64x8xf32, #tpu.memory_space<vmem>>, vector<1x64x8xf32>,
    %c7_222 = arith.constant 7 : index
    %c0_223 = arith.constant 0 : index
    %c0_224 = arith.constant 0 : index
    %304 = vector.load %arg6[%c7_222, %c0_223, %c0_224] : memref<8x64x1xf32, #tpu.memory_space<vmem>>, vector<1x64x1xf32>
    %305 = vector.shape_cast %304 : vector<1x64x1xf32> to vector<64x1xf32>
    %306 = vector.shape_cast %280 : vector<64x1xf32> to vector<1x64x1xf32>
    tpu.vector_store %arg6[%c7_222, %c0_223, %c0_224], %306 {strides = array<i32>} : memref<8x64x1xf32, #tpu.memory_space<vmem>>, vector<1x64x1xf32>,
    %c0_i32_225 = arith.constant 0 : i32
    %307 = arith.cmpi eq, %arg2, %c0_i32_225 : i32
    %308 = arith.extui %307 : i1 to i32
    %c0_i32_226 = arith.constant 0 : i32
    %309 = arith.cmpi ne, %308, %c0_i32_226 : i32
    scf.if %309 {
      %c0_227 = arith.constant 0 : index
      %c0_228 = arith.constant 0 : index
      %c0_229 = arith.constant 0 : index
      %310 = vector.load %arg7[%c0_227, %c0_228, %c0_229] : memref<8x64x1xf32, #tpu.memory_space<vmem>>, vector<1x64x1xf32>
      %311 = vector.shape_cast %310 : vector<1x64x1xf32> to vector<64x1xf32>
      %312 = tpu.reciprocal %311 {approx = true} : vector<64x1xf32> -> vector<64x1xf32>
      %c0_230 = arith.constant 0 : index
      %c0_231 = arith.constant 0 : index
      %c0_232 = arith.constant 0 : index
      %313 = vector.load %arg8[%c0_230, %c0_231, %c0_232] : memref<8x64x8xf32, #tpu.memory_space<vmem>>, vector<1x64x8xf32>
      %314 = vector.shape_cast %313 : vector<1x64x8xf32> to vector<64x8xf32>
      %315 = vector.broadcast %312 : vector<64x1xf32> to vector<64x8xf32>
      %316 = arith.mulf %314, %315 : vector<64x8xf32>
      %c0_233 = arith.constant 0 : index
      %c0_234 = arith.constant 0 : index
      %c0_235 = arith.constant 0 : index
      %317 = vector.load %arg5[%c0_233, %c0_234, %c0_235] : memref<1x64x64xf32, #tpu.memory_space<vmem>>, vector<1x64x8xf32>
      %318 = vector.shape_cast %317 : vector<1x64x8xf32> to vector<64x8xf32>
      %319 = vector.shape_cast %316 : vector<64x8xf32> to vector<1x64x8xf32>
      tpu.vector_store %arg5[%c0_233, %c0_234, %c0_235], %319 {strides = array<i32>} : memref<1x64x64xf32, #tpu.memory_space<vmem>>, vector<1x64x8xf32>,
      %c1_236 = arith.constant 1 : index
      %c0_237 = arith.constant 0 : index
      %c0_238 = arith.constant 0 : index
      %320 = vector.load %arg7[%c1_236, %c0_237, %c0_238] : memref<8x64x1xf32, #tpu.memory_space<vmem>>, vector<1x64x1xf32>
      %321 = vector.shape_cast %320 : vector<1x64x1xf32> to vector<64x1xf32>
      %322 = tpu.reciprocal %321 {approx = true} : vector<64x1xf32> -> vector<64x1xf32>
      %c1_239 = arith.constant 1 : index
      %c0_240 = arith.constant 0 : index
      %c0_241 = arith.constant 0 : index
      %323 = vector.load %arg8[%c1_239, %c0_240, %c0_241] : memref<8x64x8xf32, #tpu.memory_space<vmem>>, vector<1x64x8xf32>
      %324 = vector.shape_cast %323 : vector<1x64x8xf32> to vector<64x8xf32>
      %325 = vector.broadcast %322 : vector<64x1xf32> to vector<64x8xf32>
      %326 = arith.mulf %324, %325 : vector<64x8xf32>
      %c0_242 = arith.constant 0 : index
      %c0_243 = arith.constant 0 : index
      %c8_244 = arith.constant 8 : index
      %327 = vector.load %arg5[%c0_242, %c0_243, %c8_244] : memref<1x64x64xf32, #tpu.memory_space<vmem>>, vector<1x64x8xf32>
      %328 = vector.shape_cast %327 : vector<1x64x8xf32> to vector<64x8xf32>
      %329 = vector.shape_cast %326 : vector<64x8xf32> to vector<1x64x8xf32>
      tpu.vector_store %arg5[%c0_242, %c0_243, %c8_244], %329 {strides = array<i32>} : memref<1x64x64xf32, #tpu.memory_space<vmem>>, vector<1x64x8xf32>,
      %c2_245 = arith.constant 2 : index
      %c0_246 = arith.constant 0 : index
      %c0_247 = arith.constant 0 : index
      %330 = vector.load %arg7[%c2_245, %c0_246, %c0_247] : memref<8x64x1xf32, #tpu.memory_space<vmem>>, vector<1x64x1xf32>
      %331 = vector.shape_cast %330 : vector<1x64x1xf32> to vector<64x1xf32>
      %332 = tpu.reciprocal %331 {approx = true} : vector<64x1xf32> -> vector<64x1xf32>
      %c2_248 = arith.constant 2 : index
      %c0_249 = arith.constant 0 : index
      %c0_250 = arith.constant 0 : index
      %333 = vector.load %arg8[%c2_248, %c0_249, %c0_250] : memref<8x64x8xf32, #tpu.memory_space<vmem>>, vector<1x64x8xf32>
      %334 = vector.shape_cast %333 : vector<1x64x8xf32> to vector<64x8xf32>
      %335 = vector.broadcast %332 : vector<64x1xf32> to vector<64x8xf32>
      %336 = arith.mulf %334, %335 : vector<64x8xf32>
      %c0_251 = arith.constant 0 : index
      %c0_252 = arith.constant 0 : index
      %c16_253 = arith.constant 16 : index
      %337 = vector.load %arg5[%c0_251, %c0_252, %c16_253] : memref<1x64x64xf32, #tpu.memory_space<vmem>>, vector<1x64x8xf32>
      %338 = vector.shape_cast %337 : vector<1x64x8xf32> to vector<64x8xf32>
      %339 = vector.shape_cast %336 : vector<64x8xf32> to vector<1x64x8xf32>
      tpu.vector_store %arg5[%c0_251, %c0_252, %c16_253], %339 {strides = array<i32>} : memref<1x64x64xf32, #tpu.memory_space<vmem>>, vector<1x64x8xf32>,
      %c3_254 = arith.constant 3 : index
      %c0_255 = arith.constant 0 : index
      %c0_256 = arith.constant 0 : index
      %340 = vector.load %arg7[%c3_254, %c0_255, %c0_256] : memref<8x64x1xf32, #tpu.memory_space<vmem>>, vector<1x64x1xf32>
      %341 = vector.shape_cast %340 : vector<1x64x1xf32> to vector<64x1xf32>
      %342 = tpu.reciprocal %341 {approx = true} : vector<64x1xf32> -> vector<64x1xf32>
      %c3_257 = arith.constant 3 : index
      %c0_258 = arith.constant 0 : index
      %c0_259 = arith.constant 0 : index
      %343 = vector.load %arg8[%c3_257, %c0_258, %c0_259] : memref<8x64x8xf32, #tpu.memory_space<vmem>>, vector<1x64x8xf32>
      %344 = vector.shape_cast %343 : vector<1x64x8xf32> to vector<64x8xf32>
      %345 = vector.broadcast %342 : vector<64x1xf32> to vector<64x8xf32>
      %346 = arith.mulf %344, %345 : vector<64x8xf32>
      %c0_260 = arith.constant 0 : index
      %c0_261 = arith.constant 0 : index
      %c24_262 = arith.constant 24 : index
      %347 = vector.load %arg5[%c0_260, %c0_261, %c24_262] : memref<1x64x64xf32, #tpu.memory_space<vmem>>, vector<1x64x8xf32>
      %348 = vector.shape_cast %347 : vector<1x64x8xf32> to vector<64x8xf32>
      %349 = vector.shape_cast %346 : vector<64x8xf32> to vector<1x64x8xf32>
      tpu.vector_store %arg5[%c0_260, %c0_261, %c24_262], %349 {strides = array<i32>} : memref<1x64x64xf32, #tpu.memory_space<vmem>>, vector<1x64x8xf32>,
      %c4_263 = arith.constant 4 : index
      %c0_264 = arith.constant 0 : index
      %c0_265 = arith.constant 0 : index
      %350 = vector.load %arg7[%c4_263, %c0_264, %c0_265] : memref<8x64x1xf32, #tpu.memory_space<vmem>>, vector<1x64x1xf32>
      %351 = vector.shape_cast %350 : vector<1x64x1xf32> to vector<64x1xf32>
      %352 = tpu.reciprocal %351 {approx = true} : vector<64x1xf32> -> vector<64x1xf32>
      %c4_266 = arith.constant 4 : index
      %c0_267 = arith.constant 0 : index
      %c0_268 = arith.constant 0 : index
      %353 = vector.load %arg8[%c4_266, %c0_267, %c0_268] : memref<8x64x8xf32, #tpu.memory_space<vmem>>, vector<1x64x8xf32>
      %354 = vector.shape_cast %353 : vector<1x64x8xf32> to vector<64x8xf32>
      %355 = vector.broadcast %352 : vector<64x1xf32> to vector<64x8xf32>
      %356 = arith.mulf %354, %355 : vector<64x8xf32>
      %c0_269 = arith.constant 0 : index
      %c0_270 = arith.constant 0 : index
      %c32_271 = arith.constant 32 : index
      %357 = vector.load %arg5[%c0_269, %c0_270, %c32_271] : memref<1x64x64xf32, #tpu.memory_space<vmem>>, vector<1x64x8xf32>
      %358 = vector.shape_cast %357 : vector<1x64x8xf32> to vector<64x8xf32>
      %359 = vector.shape_cast %356 : vector<64x8xf32> to vector<1x64x8xf32>
      tpu.vector_store %arg5[%c0_269, %c0_270, %c32_271], %359 {strides = array<i32>} : memref<1x64x64xf32, #tpu.memory_space<vmem>>, vector<1x64x8xf32>,
      %c5_272 = arith.constant 5 : index
      %c0_273 = arith.constant 0 : index
      %c0_274 = arith.constant 0 : index
      %360 = vector.load %arg7[%c5_272, %c0_273, %c0_274] : memref<8x64x1xf32, #tpu.memory_space<vmem>>, vector<1x64x1xf32>
      %361 = vector.shape_cast %360 : vector<1x64x1xf32> to vector<64x1xf32>
      %362 = tpu.reciprocal %361 {approx = true} : vector<64x1xf32> -> vector<64x1xf32>
      %c5_275 = arith.constant 5 : index
      %c0_276 = arith.constant 0 : index
      %c0_277 = arith.constant 0 : index
      %363 = vector.load %arg8[%c5_275, %c0_276, %c0_277] : memref<8x64x8xf32, #tpu.memory_space<vmem>>, vector<1x64x8xf32>
      %364 = vector.shape_cast %363 : vector<1x64x8xf32> to vector<64x8xf32>
      %365 = vector.broadcast %362 : vector<64x1xf32> to vector<64x8xf32>
      %366 = arith.mulf %364, %365 : vector<64x8xf32>
      %c0_278 = arith.constant 0 : index
      %c0_279 = arith.constant 0 : index
      %c40_280 = arith.constant 40 : index
      %367 = vector.load %arg5[%c0_278, %c0_279, %c40_280] : memref<1x64x64xf32, #tpu.memory_space<vmem>>, vector<1x64x8xf32>
      %368 = vector.shape_cast %367 : vector<1x64x8xf32> to vector<64x8xf32>
      %369 = vector.shape_cast %366 : vector<64x8xf32> to vector<1x64x8xf32>
      tpu.vector_store %arg5[%c0_278, %c0_279, %c40_280], %369 {strides = array<i32>} : memref<1x64x64xf32, #tpu.memory_space<vmem>>, vector<1x64x8xf32>,
      %c6_281 = arith.constant 6 : index
      %c0_282 = arith.constant 0 : index
      %c0_283 = arith.constant 0 : index
      %370 = vector.load %arg7[%c6_281, %c0_282, %c0_283] : memref<8x64x1xf32, #tpu.memory_space<vmem>>, vector<1x64x1xf32>
      %371 = vector.shape_cast %370 : vector<1x64x1xf32> to vector<64x1xf32>
      %372 = tpu.reciprocal %371 {approx = true} : vector<64x1xf32> -> vector<64x1xf32>
      %c6_284 = arith.constant 6 : index
      %c0_285 = arith.constant 0 : index
      %c0_286 = arith.constant 0 : index
      %373 = vector.load %arg8[%c6_284, %c0_285, %c0_286] : memref<8x64x8xf32, #tpu.memory_space<vmem>>, vector<1x64x8xf32>
      %374 = vector.shape_cast %373 : vector<1x64x8xf32> to vector<64x8xf32>
      %375 = vector.broadcast %372 : vector<64x1xf32> to vector<64x8xf32>
      %376 = arith.mulf %374, %375 : vector<64x8xf32>
      %c0_287 = arith.constant 0 : index
      %c0_288 = arith.constant 0 : index
      %c48_289 = arith.constant 48 : index
      %377 = vector.load %arg5[%c0_287, %c0_288, %c48_289] : memref<1x64x64xf32, #tpu.memory_space<vmem>>, vector<1x64x8xf32>
      %378 = vector.shape_cast %377 : vector<1x64x8xf32> to vector<64x8xf32>
      %379 = vector.shape_cast %376 : vector<64x8xf32> to vector<1x64x8xf32>
      tpu.vector_store %arg5[%c0_287, %c0_288, %c48_289], %379 {strides = array<i32>} : memref<1x64x64xf32, #tpu.memory_space<vmem>>, vector<1x64x8xf32>,
      %c7_290 = arith.constant 7 : index
      %c0_291 = arith.constant 0 : index
      %c0_292 = arith.constant 0 : index
      %380 = vector.load %arg7[%c7_290, %c0_291, %c0_292] : memref<8x64x1xf32, #tpu.memory_space<vmem>>, vector<1x64x1xf32>
      %381 = vector.shape_cast %380 : vector<1x64x1xf32> to vector<64x1xf32>
      %382 = tpu.reciprocal %381 {approx = true} : vector<64x1xf32> -> vector<64x1xf32>
      %c7_293 = arith.constant 7 : index
      %c0_294 = arith.constant 0 : index
      %c0_295 = arith.constant 0 : index
      %383 = vector.load %arg8[%c7_293, %c0_294, %c0_295] : memref<8x64x8xf32, #tpu.memory_space<vmem>>, vector<1x64x8xf32>
      %384 = vector.shape_cast %383 : vector<1x64x8xf32> to vector<64x8xf32>
      %385 = vector.broadcast %382 : vector<64x1xf32> to vector<64x8xf32>
      %386 = arith.mulf %384, %385 : vector<64x8xf32>
      %c0_296 = arith.constant 0 : index
      %c0_297 = arith.constant 0 : index
      %c56_298 = arith.constant 56 : index
      %387 = vector.load %arg5[%c0_296, %c0_297, %c56_298] : memref<1x64x64xf32, #tpu.memory_space<vmem>>, vector<1x64x8xf32>
      %388 = vector.shape_cast %387 : vector<1x64x8xf32> to vector<64x8xf32>
      %389 = vector.shape_cast %386 : vector<64x8xf32> to vector<1x64x8xf32>
      tpu.vector_store %arg5[%c0_296, %c0_297, %c56_298], %389 {strides = array<i32>} : memref<1x64x64xf32, #tpu.memory_space<vmem>>, vector<1x64x8xf32>,
    } else {
    }
    return
  }
  func.func @transform_0(%arg0: i32, %arg1: i32, %arg2: i32) -> (i32, i32, i32) {
    %c0_i32 = arith.constant 0 : i32
    %c0_i32_0 = arith.constant 0 : i32
    return %arg0, %arg1, %c0_i32 : i32, i32, i32
  }
  func.func @transform_1(%arg0: i32, %arg1: i32, %arg2: i32) -> (i32, i32, i32) {
    %c0_i32 = arith.constant 0 : i32
    %c0_i32_0 = arith.constant 0 : i32
    return %arg0, %arg2, %c0_i32 : i32, i32, i32
  }
  func.func @transform_2(%arg0: i32, %arg1: i32, %arg2: i32) -> (i32, i32, i32) {
    %c0_i32 = arith.constant 0 : i32
    %c0_i32_0 = arith.constant 0 : i32
    return %arg0, %arg1, %c0_i32 : i32, i32, i32
  }
}

module attributes {stable_mosaic.version = 11 : i64} {
  func.func @_matmul_bias_kernel(%arg0: i32, %arg1: i32, %arg2: i32, %arg3: memref<128x64xf32, #tpu.memory_space<vmem>>, %arg4: memref<64x64xf32, #tpu.memory_space<vmem>>, %arg5: memref<1x64xf32, #tpu.memory_space<vmem>>, %arg6: memref<128x64xf32, #tpu.memory_space<vmem>>, %arg7: memref<128x64xf32, #tpu.memory_space<vmem>>) attributes {dimension_semantics = [#tpu.dimension_semantics<parallel>, #tpu.dimension_semantics<parallel>, #tpu.dimension_semantics<arbitrary>], iteration_bounds = array<i64: 1, 1, 1>, scalar_prefetch = 0 : i64, scratch_operands = 1 : i64, tpu.core_type = #tpu.core_type<tc>, window_params = [{transform_indices = @transform_0, window_bounds = array<i64: 128, 64>}, {transform_indices = @transform_1, window_bounds = array<i64: 64, 64>}, {transform_indices = @transform_2, window_bounds = array<i64: 1, 64>}, {transform_indices = @transform_3, window_bounds = array<i64: 128, 64>}]} {
    %c0_i32 = arith.constant 0 : i32
    %0 = arith.cmpi eq, %arg2, %c0_i32 : i32
    %1 = arith.extui %0 : i1 to i32
    %c0_i32_0 = arith.constant 0 : i32
    %2 = arith.cmpi ne, %1, %c0_i32_0 : i32
    scf.if %2 {
      %cst_10 = arith.constant 0.000000e+00 : f32
      %12 = vector.broadcast %cst_10 : f32 to vector<128x64xf32>
      %c0_11 = arith.constant 0 : index
      %c0_12 = arith.constant 0 : index
      %13 = vector.load %arg7[%c0_11, %c0_12] : memref<128x64xf32, #tpu.memory_space<vmem>>, vector<128x64xf32>
      tpu.vector_store %arg7[%c0_11, %c0_12], %12 {strides = array<i32>} : memref<128x64xf32, #tpu.memory_space<vmem>>, vector<128x64xf32>,
    } else {
    }
    %c0 = arith.constant 0 : index
    %c0_1 = arith.constant 0 : index
    %3 = vector.load %arg7[%c0, %c0_1] : memref<128x64xf32, #tpu.memory_space<vmem>>, vector<128x64xf32>
    %c0_2 = arith.constant 0 : index
    %c0_3 = arith.constant 0 : index
    %4 = vector.load %arg3[%c0_2, %c0_3] : memref<128x64xf32, #tpu.memory_space<vmem>>, vector<128x64xf32>
    %c0_4 = arith.constant 0 : index
    %c0_5 = arith.constant 0 : index
    %5 = vector.load %arg4[%c0_4, %c0_5] : memref<64x64xf32, #tpu.memory_space<vmem>>, vector<64x64xf32>
    %cst = arith.constant dense<0.000000e+00> : vector<128x64xf32>
    %6 = tpu.matmul %4, %5, %cst {dimension_numbers = #tpu.dot_dimension_numbers<[1], [0], [0], [1], [0, 0, 1, 1], [], []>} : vector<128x64xf32>, vector<64x64xf32>, vector<128x64xf32> -> vector<128x64xf32>
    %7 = arith.addf %3, %6 : vector<128x64xf32>
    %c0_6 = arith.constant 0 : index
    %c0_7 = arith.constant 0 : index
    %8 = vector.load %arg7[%c0_6, %c0_7] : memref<128x64xf32, #tpu.memory_space<vmem>>, vector<128x64xf32>
    tpu.vector_store %arg7[%c0_6, %c0_7], %7 {strides = array<i32>} : memref<128x64xf32, #tpu.memory_space<vmem>>, vector<128x64xf32>,
    %c0_i32_8 = arith.constant 0 : i32
    %9 = arith.cmpi eq, %arg2, %c0_i32_8 : i32
    %10 = arith.extui %9 : i1 to i32
    %c0_i32_9 = arith.constant 0 : i32
    %11 = arith.cmpi ne, %10, %c0_i32_9 : i32
    scf.if %11 {
      %c0_10 = arith.constant 0 : index
      %c0_11 = arith.constant 0 : index
      %12 = vector.load %arg7[%c0_10, %c0_11] : memref<128x64xf32, #tpu.memory_space<vmem>>, vector<128x64xf32>
      %c0_12 = arith.constant 0 : index
      %c0_13 = arith.constant 0 : index
      %13 = vector.load %arg5[%c0_12, %c0_13] : memref<1x64xf32, #tpu.memory_space<vmem>>, vector<1x64xf32>
      %14 = vector.broadcast %13 : vector<1x64xf32> to vector<128x64xf32>
      %15 = arith.addf %12, %14 : vector<128x64xf32>
      %c0_14 = arith.constant 0 : index
      %c0_15 = arith.constant 0 : index
      %16 = vector.load %arg6[%c0_14, %c0_15] : memref<128x64xf32, #tpu.memory_space<vmem>>, vector<128x64xf32>
      tpu.vector_store %arg6[%c0_14, %c0_15], %15 {strides = array<i32>} : memref<128x64xf32, #tpu.memory_space<vmem>>, vector<128x64xf32>,
    } else {
    }
    return
  }
  func.func @transform_0(%arg0: i32, %arg1: i32, %arg2: i32) -> (i32, i32) {
    %c0_i32 = arith.constant 0 : i32
    return %arg0, %arg2 : i32, i32
  }
  func.func @transform_1(%arg0: i32, %arg1: i32, %arg2: i32) -> (i32, i32) {
    %c0_i32 = arith.constant 0 : i32
    return %arg2, %arg1 : i32, i32
  }
  func.func @transform_2(%arg0: i32, %arg1: i32, %arg2: i32) -> (i32, i32) {
    %c0_i32 = arith.constant 0 : i32
    %c0_i32_0 = arith.constant 0 : i32
    return %c0_i32, %arg1 : i32, i32
  }
  func.func @transform_3(%arg0: i32, %arg1: i32, %arg2: i32) -> (i32, i32) {
    %c0_i32 = arith.constant 0 : i32
    return %arg0, %arg1 : i32, i32
  }
}

</mosaic_0001>

<bundles_post_ra>
// kernel: self_attention_forward.7
= control target key start
LH: loop header
LB: loop body
LE: loop exit
PB: predicated region body
PF: predicated region fallthrough
CT: control target
= control target key end

     0   :  { %vm29_vm0 = vcmask 523264   ;;  %s226_s1 = inlined_call_operand.vmem [shape: f32[64,128], index: 1, kind: input, shape index: {}]   ;;  %s227_s0 = inlined_call_operand.vmem [shape: f32[16,64], index: 0, kind: input, shape index: {}]   ;;  %s228_s2 = inlined_call_operand.vmem [shape: f32[16,128], index: 2, kind: output, shape index: {}]  }
   0x1   :  { %v21_v0 = vld [vmem:[%s226_s1] sm:$0xff]  ;;  %v22_v1 = vld [vmem:[%s226_s1 + $0x8] sm:$0xff]  ;;  %v23_v2 = vld [vmem:[%s226_s1 + $0x10] sm:$0xff] }
   0x2   :  { %v157_v3 = vpack.c.bf16 %v22_v1, %v21_v0  ;;  %v24_v4 = vld [vmem:[%s226_s1 + $0x18] sm:$0xff]  ;;  %v25_v6 = vld [vmem:[%s226_s1 + $0x20] sm:$0xff]  ;;  %v26_v7 = vld [vmem:[%s226_s1 + $0x28] sm:$0xff] }
   0x3   :  { %v161_v5 = vpack.c.bf16 %v24_v4, %v23_v2  ;;  %v19_v8 = vld [vmem:[%s227_s0] sm:$0xff]  ;;  %v165_v9 = vpack.c.bf16 %v26_v7, %v25_v6  ;;  %v27_v10 = vld [vmem:[%s226_s1 + $0x30] sm:$0xff]  ;;  %v28_v11 = vld [vmem:[%s226_s1 + $0x38] sm:$0xff] }
   0x4   :  { %158 = vmatprep.subr.bf16.mxu0 %v157_v3  ;;  %154 = vmatprep.mubr.msk.f32.mxu0 %vm29_vm0, %v19_v8  ;;  %v169_v12 = vpack.c.bf16 %v28_v11, %v27_v10  ;;  %v20_v13 = vld [vmem:[%s227_s0 + $0x8] sm:$0xff] }
   0x5   :  { %160 = vmatpush3.bf16.msra.mxu0 %v157_v3 }
   0x6   :  { %162 = vmatprep.subr.bf16.mxu0 %v161_v5 }
   0x9   :  { %164 = vmatpush3.bf16.msra.mxu0 %v161_v5 }
   0xa   :  { %166 = vmatprep.subr.bf16.mxu0 %v165_v9 }
   0xd   :  { %168 = vmatpush3.bf16.msra.mxu0 %v165_v9 }
   0xe   :  { %170 = vmatprep.subr.bf16.mxu0 %v169_v12 }
  0x11   :  { %172 = vmatpush3.bf16.msra.mxu0 %v169_v12 }
  0x14   :  { %155 = vmatmul.mubr.msk.f32.vlgmr.msra.gmra.mrb[0].mxu0 %vm29_vm0, %v20_v13 }
  0xe7   :  { %v156_v14 = vpop.f32.mrb[0].mxu0 }
  0xe8   :  { %121 = vst [vmem:[%s228_s2 + $0x8] sm:$0xff] %v156_v14  ;;  %v102_v15 = vpop.f32.mrb[1].mxu0 }
  0xe9   :  { %120 = vst [vmem:[%s228_s2] sm:$0xff] %v102_v15 }

// kernel: self_attention_forward.6
= control target key start
LH: loop header
LB: loop body
LE: loop exit
PB: predicated region body
PF: predicated region fallthrough
CT: control target
= control target key end

     0   :  { %vm24_vm0 = vcmask 523264   ;;  %s741_s1 = inlined_call_operand.vmem [shape: f32[512,64], index: 1, kind: input, shape index: {}]   ;;  %s742_s0 = inlined_call_operand.vmem [shape: f32[16,512], index: 0, kind: input, shape index: {}]   ;;  %s743_s2 = inlined_call_operand.vmem [shape: f32[1,64], index: 2, kind: input, shape index: {}]   ;;  %s744_s3 = inlined_call_operand.vmem [shape: f32[1,64], index: 3, kind: input, shape index: {}]   ;;  %s745_s4 = inlined_call_operand.vmem [shape: f32[1,64], index: 4, kind: input, shape index: {}]   ;;  %s746_s5 = inlined_call_operand.vmem [shape: f32[16,64], index: 5, kind: output, shape index: {}]  }
   0x1   :  { %v53_v0 = vld [vmem:[%s741_s1 + $0x80] sm:$0xff]  ;;  %v54_v1 = vld [vmem:[%s741_s1 + $0x88] sm:$0xff]  ;;  %v55_v11 = vld [vmem:[%s741_s1 + $0x90] sm:$0xff] }
   0x2   :  { %v85_v2 = vld [vmem:[%s741_s1 + $0x180] sm:$0xff]  ;;  %v400_v3 = vpack.c.bf16 %v54_v1, %v53_v0  ;;  %v86_v4 = vld [vmem:[%s741_s1 + $0x188] sm:$0xff]  ;;  %v56_v13 = vld [vmem:[%s741_s1 + $0x98] sm:$0xff] }
   0x3   :  { %v37_v5 = vld [vmem:[%s741_s1] sm:$0xff]  ;;  %v38_v6 = vld [vmem:[%s741_s1 + $0x8] sm:$0xff]  ;;  %v432_v7 = vpack.c.bf16 %v86_v4, %v85_v2  ;;  %v87_v14 = vld [vmem:[%s741_s1 + $0x190] sm:$0xff]  ;;  %v404_v16 = vpack.c.bf16 %v56_v13, %v55_v11 }
   0x4   :  { %v402_v8 = vpack.c.bf16 %v38_v6, %v37_v5  ;;  %v69_v9 = vld [vmem:[%s741_s1 + $0x100] sm:$0xff]  ;;  %v70_v10 = vld [vmem:[%s741_s1 + $0x108] sm:$0xff]  ;;  %401 = vmatprep.subr.bf16.mxu0 %v400_v3  ;;  %v88_v15 = vld [vmem:[%s741_s1 + $0x198] sm:$0xff] }
   0x5   :  { %v434_v12 = vpack.c.bf16 %v70_v10, %v69_v9  ;;  %433 = vmatprep.subr.bf16.mxu1 %v432_v7  ;;  %v436_v17 = vpack.c.bf16 %v88_v15, %v87_v14  ;;  %v39_v18 = vld [vmem:[%s741_s1 + $0x10] sm:$0xff]  ;;  %v40_v19 = vld [vmem:[%s741_s1 + $0x18] sm:$0xff]  ;;  %v57_v23 = vld [vmem:[%s741_s1 + $0xa0] sm:$0xff] }
   0x6   :  { %403 = vmatpush3.bf16.msra.mxu0 %v402_v8  ;;  %v71_v20 = vld [vmem:[%s741_s1 + $0x110] sm:$0xff]  ;;  %v406_v21 = vpack.c.bf16 %v40_v19, %v39_v18  ;;  %v72_v22 = vld [vmem:[%s741_s1 + $0x118] sm:$0xff]  ;;  %v58_v24 = vld [vmem:[%s741_s1 + $0xa8] sm:$0xff] }
   0x7   :  { %435 = vmatpush3.bf16.msra.mxu1 %v434_v12  ;;  %405 = vmatprep.subr.bf16.mxu0 %v404_v16  ;;  %v438_v25 = vpack.c.bf16 %v72_v22, %v71_v20  ;;  %v408_v26 = vpack.c.bf16 %v58_v24, %v57_v23  ;;  %v89_v27 = vld [vmem:[%s741_s1 + $0x1a0] sm:$0xff]  ;;  %v90_v28 = vld [vmem:[%s741_s1 + $0x1a8] sm:$0xff]  ;;  %v59_v35 = vld [vmem:[%s741_s1 + $0xb0] sm:$0xff] }
   0x8   :  { %437 = vmatprep.subr.bf16.mxu1 %v436_v17  ;;  %v41_v29 = vld [vmem:[%s741_s1 + $0x20] sm:$0xff]  ;;  %v440_v30 = vpack.c.bf16 %v90_v28, %v89_v27  ;;  %v42_v31 = vld [vmem:[%s741_s1 + $0x28] sm:$0xff]  ;;  %v60_v36 = vld [vmem:[%s741_s1 + $0xb8] sm:$0xff] }
   0x9   :  { %v73_v32 = vld [vmem:[%s741_s1 + $0x120] sm:$0xff]  ;;  %v74_v33 = vld [vmem:[%s741_s1 + $0x128] sm:$0xff]  ;;  %v410_v34 = vpack.c.bf16 %v42_v31, %v41_v29  ;;  %v91_v37 = vld [vmem:[%s741_s1 + $0x1b0] sm:$0xff]  ;;  %v412_v39 = vpack.c.bf16 %v60_v36, %v59_v35 }
   0xa   :  { %407 = vmatpush3.bf16.msra.mxu0 %v406_v21  ;;  %v442_v38 = vpack.c.bf16 %v74_v33, %v73_v32  ;;  %v92_v40 = vld [vmem:[%s741_s1 + $0x1b8] sm:$0xff]  ;;  %v43_v41 = vld [vmem:[%s741_s1 + $0x30] sm:$0xff]  ;;  %v61_v46 = vld [vmem:[%s741_s1 + $0xc0] sm:$0xff] }
   0xb   :  { %439 = vmatpush3.bf16.msra.mxu1 %v438_v25  ;;  %409 = vmatprep.subr.bf16.mxu0 %v408_v26  ;;  %v44_v42 = vld [vmem:[%s741_s1 + $0x38] sm:$0xff]  ;;  %v444_v43 = vpack.c.bf16 %v92_v40, %v91_v37  ;;  %v75_v44 = vld [vmem:[%s741_s1 + $0x130] sm:$0xff]  ;;  %v62_v47 = vld [vmem:[%s741_s1 + $0xc8] sm:$0xff]  ;;  %v469_v40 = vmov 0.0  }
   0xc   :  { %441 = vmatprep.subr.bf16.mxu1 %v440_v30  ;;  %v76_v45 = vld [vmem:[%s741_s1 + $0x138] sm:$0xff]  ;;  %v93_v48 = vld [vmem:[%s741_s1 + $0x1c0] sm:$0xff]  ;;  %v94_v49 = vld [vmem:[%s741_s1 + $0x1c8] sm:$0xff]  ;;  %v414_v50 = vpack.c.bf16 %v44_v42, %v43_v41  ;;  %v416_v52 = vpack.c.bf16 %v62_v47, %v61_v46  ;;  %25 = vst.msk [vmem:[#allocation2] sm:$0xff] %vm24_vm0, %v469_v40 }
   0xd   :  { %v446_v51 = vpack.c.bf16 %v76_v45, %v75_v44  ;;  %v45_v53 = vld [vmem:[%s741_s1 + $0x40] sm:$0xff]  ;;  %v46_v54 = vld [vmem:[%s741_s1 + $0x48] sm:$0xff]  ;;  %v448_v56 = vpack.c.bf16 %v94_v49, %v93_v48  ;;  %v63_v58 = vld [vmem:[%s741_s1 + $0xd0] sm:$0xff]  ;;  %26 = vst.msk [vmem:[#allocation2 + $0x8] sm:$0xff] %vm24_vm0, %v469_v40 }
   0xe   :  { %411 = vmatpush3.bf16.msra.mxu0 %v410_v34  ;;  %v77_v55 = vld [vmem:[%s741_s1 + $0x140] sm:$0xff]  ;;  %v78_v57 = vld [vmem:[%s741_s1 + $0x148] sm:$0xff]  ;;  %v64_v59 = vld [vmem:[%s741_s1 + $0xd8] sm:$0xff]  ;;  %v418_v62 = vpack.c.bf16 %v46_v54, %v45_v53 }
   0xf   :  { %443 = vmatpush3.bf16.msra.mxu1 %v442_v38  ;;  %413 = vmatprep.subr.bf16.mxu0 %v412_v39  ;;  %v95_v60 = vld [vmem:[%s741_s1 + $0x1d0] sm:$0xff]  ;;  %v96_v61 = vld [vmem:[%s741_s1 + $0x1d8] sm:$0xff]  ;;  %v450_v63 = vpack.c.bf16 %v78_v57, %v77_v55  ;;  %v420_v0 = vpack.c.bf16 %v64_v59, %v63_v58  ;;  %v65_v6 = vld [vmem:[%s741_s1 + $0xe0] sm:$0xff] }
  0x10   :  { %445 = vmatprep.subr.bf16.mxu1 %v444_v43  ;;  %v47_v1 = vld [vmem:[%s741_s1 + $0x50] sm:$0xff]  ;;  %v48_v2 = vld [vmem:[%s741_s1 + $0x58] sm:$0xff]  ;;  %v452_v4 = vpack.c.bf16 %v96_v61, %v95_v60  ;;  %v66_v7 = vld [vmem:[%s741_s1 + $0xe8] sm:$0xff] }
  0x11   :  { %v79_v3 = vld [vmem:[%s741_s1 + $0x150] sm:$0xff]  ;;  %v80_v5 = vld [vmem:[%s741_s1 + $0x158] sm:$0xff]  ;;  %v97_v8 = vld [vmem:[%s741_s1 + $0x1e0] sm:$0xff]  ;;  %v422_v10 = vpack.c.bf16 %v48_v2, %v47_v1  ;;  %v424_v14 = vpack.c.bf16 %v66_v7, %v65_v6 }
  0x12   :  { %415 = vmatpush3.bf16.msra.mxu0 %v414_v50  ;;  %v98_v9 = vld [vmem:[%s741_s1 + $0x1e8] sm:$0xff]  ;;  %v49_v11 = vld [vmem:[%s741_s1 + $0x60] sm:$0xff]  ;;  %v454_v13 = vpack.c.bf16 %v80_v5, %v79_v3  ;;  %v32_v17 = vld [vmem:[%s742_s0 + $0x18] sm:$0xff] }
  0x13   :  { %447 = vmatpush3.bf16.msra.mxu1 %v446_v51  ;;  %417 = vmatprep.subr.bf16.mxu0 %v416_v52  ;;  %v50_v12 = vld [vmem:[%s741_s1 + $0x68] sm:$0xff]  ;;  %v81_v15 = vld [vmem:[%s741_s1 + $0x160] sm:$0xff]  ;;  %v456_v18 = vpack.c.bf16 %v98_v9, %v97_v8  ;;  %v67_v20 = vld [vmem:[%s741_s1 + $0xf0] sm:$0xff] }
  0x14   :  { %449 = vmatprep.subr.bf16.mxu1 %v448_v56  ;;  %v30_v16 = vld [vmem:[%s742_s0 + $0x8] sm:$0xff]  ;;  %v68_v21 = vld [vmem:[%s741_s1 + $0xf8] sm:$0xff]  ;;  %v99_v22 = vld [vmem:[%s741_s1 + $0x1f0] sm:$0xff]  ;;  %240 = vmatprep.mubr.f32.mxu1 %v32_v17  ;;  %v426_v24 = vpack.c.bf16 %v50_v12, %v49_v11 }
  0x15   :  { %v82_v19 = vld [vmem:[%s741_s1 + $0x168] sm:$0xff]  ;;  %165 = vmatprep.mubr.f32.mxu0 %v30_v16  ;;  %v100_v23 = vld [vmem:[%s741_s1 + $0x1f8] sm:$0xff]  ;;  %v428_v26 = vpack.c.bf16 %v68_v21, %v67_v20  ;;  %v51_v27 = vld [vmem:[%s741_s1 + $0x70] sm:$0xff] }
  0x16   :  { %419 = vmatpush3.bf16.msra.mxu0 %v418_v62  ;;  %v458_v25 = vpack.c.bf16 %v82_v19, %v81_v15  ;;  %v52_v28 = vld [vmem:[%s741_s1 + $0x78] sm:$0xff]  ;;  %v460_v29 = vpack.c.bf16 %v100_v23, %v99_v22  ;;  %v83_v30 = vld [vmem:[%s741_s1 + $0x170] sm:$0xff]  ;;  %v29_v34 = vld [vmem:[%s742_s0] sm:$0xff] }
  0x17   :  { %451 = vmatpush3.bf16.msra.mxu1 %v450_v63  ;;  %421 = vmatprep.subr.bf16.mxu0 %v420_v0  ;;  %v84_v31 = vld [vmem:[%s741_s1 + $0x178] sm:$0xff]  ;;  %v430_v32 = vpack.c.bf16 %v52_v28, %v51_v27  ;;  %v31_v35 = vld [vmem:[%s742_s0 + $0x10] sm:$0xff]  ;;  %v34_v36 = vld [vmem:[%s742_s0 + $0x28] sm:$0xff] }
  0x18   :  { %453 = vmatprep.subr.bf16.mxu1 %v452_v4  ;;  %v462_v33 = vpack.c.bf16 %v84_v31, %v83_v30  ;;  %v36_v37 = vld [vmem:[%s742_s0 + $0x38] sm:$0xff]  ;;  %v33_v38 = vld [vmem:[%s742_s0 + $0x20] sm:$0xff]  ;;  %v35_v39 = vld [vmem:[%s742_s0 + $0x30] sm:$0xff] }
  0x19   :  { %v27_v47 = vld [vmem:[#allocation2] sm:$0xff]  ;;  %v28_v56 = vld [vmem:[#allocation2 + $0x8] sm:$0xff] }
  0x1a   :  { %423 = vmatpush3.bf16.msra.mxu0 %v422_v10  ;;  %v321_v59 = vld [vmem:[%s743_s2] ss:$0 sm:$0xff] }
  0x1b   :  { %455 = vmatpush3.bf16.msra.mxu1 %v454_v13  ;;  %425 = vmatprep.subr.bf16.mxu0 %v424_v14  ;;  %v322_v19 = vld [vmem:[%s744_s3] ss:$0 sm:$0xff] }
  0x1c   :  { %457 = vmatprep.subr.bf16.mxu1 %v456_v18  ;;  %v323_v21 = vld [vmem:[%s745_s4] ss:$0 sm:$0xff] }
  0x1e   :  { %427 = vmatpush3.bf16.msra.mxu0 %v426_v24 }
  0x1f   :  { %459 = vmatpush3.bf16.msra.mxu1 %v458_v25  ;;  %429 = vmatprep.subr.bf16.mxu0 %v428_v26 }
  0x20   :  { %461 = vmatprep.subr.bf16.mxu1 %v460_v29 }
  0x22   :  { %431 = vmatpush3.bf16.msra.mxu0 %v430_v32 }
  0x23   :  { %463 = vmatpush3.bf16.msra.mxu1 %v462_v33 }
  0x25   :  { %166 = vmatmul.mubr.f32.vlgmr.msra.gmra.mrb[0].mxu0 %v29_v34 }
  0x26   :  { %241 = vmatmul.mubr.f32.vlgmr.msra.gmra.mrb[0].mxu1 %v31_v35  ;;  %170 = vmatprep.mubr.f32.mxu0 %v34_v36 }
  0x27   :  { %245 = vmatprep.mubr.f32.mxu1 %v36_v37 }
  0x29   :  { %171 = vmatmul.mubr.f32.gmra.mrb[2].mxu0 %v33_v38 }
  0x2a   :  { %246 = vmatmul.mubr.f32.gmra.mrb[2].mxu1 %v35_v39 }
  0xf8   :  { %v356_v41 = vpop.f32.mrb[0].mxu0 }
  0xf9   :  { %v394_v42 = vpop.f32.mrb[0].mxu1  ;;  %v357_v43 = vpop.f32.mrb[1].mxu0 }
  0xfa   :  { %v358_v44 = vadd.f32 %v357_v43, %v356_v41  ;;  %v395_v45 = vpop.f32.mrb[1].mxu1 }
  0xfb   :  { %v396_v46 = vadd.f32 %v395_v45, %v394_v42 }
  0xfc   :  { %v359_v48 = vpop.f32.mrb[2].mxu0 }
  0xfd   :  { %v243_v49 = vadd.f32 %v396_v46, %v358_v44  ;;  %v397_v50 = vpop.f32.mrb[2].mxu1  ;;  %v360_v51 = vpop.f32.mrb[3].mxu0 }
  0xfe   :  { %v361_v52 = vadd.f32 %v360_v51, %v359_v48  ;;  %v398_v53 = vpop.f32.mrb[3].mxu1 }
  0xff   :  { %v251_v54 = vadd.f32 %v243_v49, %v27_v47  ;;  %v399_v55 = vadd.f32 %v398_v53, %v397_v50 }
 0x101   :  { %254 = vst.msk [vmem:[#allocation2] sm:$0xff] %vm24_vm0, %v251_v54  ;;  %v248_v57 = vadd.f32 %v399_v55, %v361_v52 }
 0x103   :  { %v252_v58 = vadd.f32 %v248_v57, %v28_v56 }
 0x105   :  { %255 = vst.msk [vmem:[#allocation2 + $0x8] sm:$0xff] %vm24_vm0, %v252_v58 }
 0x108   :  { %v259_v60 = vld [vmem:[#allocation2] sm:$0xff] }
 0x109   :  { %v268_v61 = vadd.f32 %v321_v59, %v259_v60 }
 0x10b   :  { %v270_v62 = vsel %vm24_vm0, %v268_v61, 0.0 }
 0x10c   :  { %271 = vadd.xlane.f32.xlu0 %v270_v62  ;;  %v260_v63 = vld [vmem:[#allocation2 + $0x8] sm:$0xff] }
 0x10d   :  { %v269_v0 = vadd.f32 %v321_v59, %v260_v63 }
 0x10f   :  { %v273_v1 = vsel %vm24_vm0, %v269_v0, 0.0 }
 0x110   :  { %274 = vadd.xlane.f32.xlu0 %v273_v1 }
 0x199   :  { %v272_v2 = vpop.xlane.xlu0 %271 }
 0x19a   :  { %v277_v3 = vmul.f32 0.015625, %v272_v2 }
 0x19c   :  { %v279_v4 = vsub.f32 %v268_v61, %v277_v3 }
 0x19d   :  { %v275_v5 = vpop.xlane.xlu0 %274 }
 0x19e   :  { %v278_v6 = vmul.f32 0.015625, %v275_v5  ;;  %v281_v7 = vmul.f32 %v279_v4, %v279_v4 }
 0x1a0   :  { %v280_v8 = vsub.f32 %v269_v0, %v278_v6  ;;  %v283_v9 = vsel %vm24_vm0, %v281_v7, 0.0 }
 0x1a1   :  { %284 = vadd.xlane.f32.xlu1 %v283_v9 }
 0x1a2   :  { %v282_v10 = vmul.f32 %v280_v8, %v280_v8 }
 0x1a4   :  { %v286_v11 = vsel %vm24_vm0, %v282_v10, 0.0 }
 0x1a5   :  { %287 = vadd.xlane.f32.xlu1 %v286_v11 }
 0x22e   :  { %v285_v12 = vpop.xlane.xlu1 %284 }
 0x22f   :  { %v289_v13 = vmul.f32 0.015625, %v285_v12 }
 0x231   :  { %v291_v14 = vadd.f32 1e-05, %v289_v13 }
 0x232   :  { %v288_v15 = vpop.xlane.xlu1 %287 }
 0x233   :  { %465 = vrsqrt.f32 %v291_v14  ;;  %v290_v16 = vmul.f32 0.015625, %v288_v15 }
 0x235   :  { %v292_v17 = vadd.f32 1e-05, %v290_v16 }
 0x237   :  { %467 = vrsqrt.f32 %v292_v17 }
 0x23d   :  { %v466_v18 = vpop.eup %465 }
 0x23e   :  { %v295_v20 = vmul.f32 %v466_v18, %v279_v4 }
 0x240   :  { %v304_v22 = vmul.f32 %v322_v19, %v295_v20 }
 0x241   :  { %v468_v23 = vpop.eup %467 }
 0x242   :  { %v313_v24 = vadd.f32 %v323_v21, %v304_v22  ;;  %v296_v25 = vmul.f32 %v468_v23, %v280_v8 }
 0x244   :  { %315 = vst.msk [vmem:[%s746_s5] sm:$0xff] %vm24_vm0, %v313_v24  ;;  %v305_v26 = vmul.f32 %v322_v19, %v296_v25 }
 0x246   :  { %v314_v27 = vadd.f32 %v323_v21, %v305_v26 }
 0x248   :  { %316 = vst.msk [vmem:[%s746_s5 + $0x8] sm:$0xff] %vm24_vm0, %v314_v27 }

// kernel: self_attention_forward.5
= control target key start
LH: loop header
LB: loop body
LE: loop exit
PB: predicated region body
PF: predicated region fallthrough
CT: control target
= control target key end

     0   :  { %vm15_vm0 = vcmask 523264   ;;  %v442_v3 = vmov 0.0   ;;  %s642_s1 = inlined_call_operand.vmem [shape: f32[64,64], index: 1, kind: input, shape index: {}]   ;;  %s643_s0 = inlined_call_operand.vmem [shape: f32[128,64], index: 0, kind: input, shape index: {}]   ;;  %s644_s2 = inlined_call_operand.vmem [shape: f32[128,64], index: 2, kind: output, shape index: {}]  }
   0x1   :  { %v64_v0 = vld [vmem:[%s642_s1] sm:$0xff]  ;;  %v65_v1 = vld [vmem:[%s642_s1 + $0x8] sm:$0xff]  ;;  %v66_v2 = vld [vmem:[%s642_s1 + $0x10] sm:$0xff]  ;;  %17 = vst.msk [vmem:[#allocation2 + $0x8] sm:$0xff] %vm15_vm0, %v442_v3 }
   0x2   :  { %16 = vst.msk [vmem:[#allocation2] sm:$0xff] %vm15_vm0, %v442_v3  ;;  %18 = vst.msk [vmem:[#allocation2 + $0x10] sm:$0xff] %vm15_vm0, %v442_v3  ;;  %v417_v4 = vpack.c.bf16 %v65_v1, %v64_v0  ;;  %v67_v5 = vld [vmem:[%s642_s1 + $0x18] sm:$0xff]  ;;  %v68_v7 = vld [vmem:[%s642_s1 + $0x20] sm:$0xff] }
   0x3   :  { %19 = vst.msk [vmem:[#allocation2 + $0x18] sm:$0xff] %vm15_vm0, %v442_v3  ;;  %20 = vst.msk [vmem:[#allocation2 + $0x20] sm:$0xff] %vm15_vm0, %v442_v3  ;;  %v421_v6 = vpack.c.bf16 %v67_v5, %v66_v2  ;;  %v69_v8 = vld [vmem:[%s642_s1 + $0x28] sm:$0xff]  ;;  %v48_v9 = vld [vmem:[%s643_s0] sm:$0xff] }
   0x4   :  { %21 = vst.msk [vmem:[#allocation2 + $0x28] sm:$0xff] %vm15_vm0, %v442_v3  ;;  %22 = vst.msk [vmem:[#allocation2 + $0x30] sm:$0xff] %vm15_vm0, %v442_v3  ;;  %418 = vmatprep.subr.bf16.mxu0 %v417_v4  ;;  %433 = vmatprep.subr.bf16.mxu1 %v417_v4  ;;  %v56_v10 = vld [vmem:[%s643_s0 + $0x40] sm:$0xff]  ;;  %v425_v11 = vpack.c.bf16 %v69_v8, %v68_v7  ;;  %v70_v12 = vld [vmem:[%s642_s1 + $0x30] sm:$0xff] }
   0x5   :  { %23 = vst.msk [vmem:[#allocation2 + $0x38] sm:$0xff] %vm15_vm0, %v442_v3  ;;  %24 = vst.msk [vmem:[#allocation2 + $0x40] sm:$0xff] %vm15_vm0, %v442_v3  ;;  %420 = vmatpush3.bf16.msra.mxu0 %v417_v4  ;;  %437 = vmatpush3.bf16.msra.mxu1 %v417_v4  ;;  %v71_v13 = vld [vmem:[%s642_s1 + $0x38] sm:$0xff]  ;;  %v49_v15 = vld [vmem:[%s643_s0 + $0x8] sm:$0xff] }
   0x6   :  { %25 = vst.msk [vmem:[#allocation2 + $0x48] sm:$0xff] %vm15_vm0, %v442_v3  ;;  %26 = vst.msk [vmem:[#allocation2 + $0x50] sm:$0xff] %vm15_vm0, %v442_v3  ;;  %422 = vmatprep.subr.bf16.mxu0 %v421_v6  ;;  %434 = vmatprep.subr.bf16.mxu1 %v421_v6  ;;  %v429_v14 = vpack.c.bf16 %v71_v13, %v70_v12  ;;  %v57_v16 = vld [vmem:[%s643_s0 + $0x48] sm:$0xff]  ;;  %v50_v17 = vld [vmem:[%s643_s0 + $0x10] sm:$0xff] }
   0x7   :  { %27 = vst.msk [vmem:[#allocation2 + $0x58] sm:$0xff] %vm15_vm0, %v442_v3  ;;  %28 = vst.msk [vmem:[#allocation2 + $0x60] sm:$0xff] %vm15_vm0, %v442_v3  ;;  %393 = vmatprep.mubr.msk.f32.mxu0 %vm15_vm0, %v48_v9  ;;  %405 = vmatprep.mubr.msk.f32.mxu1 %vm15_vm0, %v56_v10  ;;  %v58_v18 = vld [vmem:[%s643_s0 + $0x50] sm:$0xff]  ;;  %v51_v19 = vld [vmem:[%s643_s0 + $0x18] sm:$0xff] }
   0x8   :  { %29 = vst.msk [vmem:[#allocation2 + $0x68] sm:$0xff] %vm15_vm0, %v442_v3  ;;  %30 = vst.msk [vmem:[#allocation2 + $0x70] sm:$0xff] %vm15_vm0, %v442_v3  ;;  %v59_v20 = vld [vmem:[%s643_s0 + $0x58] sm:$0xff]  ;;  %v52_v21 = vld [vmem:[%s643_s0 + $0x20] sm:$0xff] }
   0x9   :  { %31 = vst.msk [vmem:[#allocation2 + $0x78] sm:$0xff] %vm15_vm0, %v442_v3  ;;  %424 = vmatpush3.bf16.msra.mxu0 %v421_v6  ;;  %438 = vmatpush3.bf16.msra.mxu1 %v421_v6  ;;  %v60_v22 = vld [vmem:[%s643_s0 + $0x60] sm:$0xff]  ;;  %v53_v23 = vld [vmem:[%s643_s0 + $0x28] sm:$0xff]  ;;  %v54_v25 = vld [vmem:[%s643_s0 + $0x30] sm:$0xff] }
   0xa   :  { %426 = vmatprep.subr.bf16.mxu0 %v425_v11  ;;  %435 = vmatprep.subr.bf16.mxu1 %v425_v11  ;;  %v61_v24 = vld [vmem:[%s643_s0 + $0x68] sm:$0xff]  ;;  %v62_v26 = vld [vmem:[%s643_s0 + $0x70] sm:$0xff]  ;;  %v55_v27 = vld [vmem:[%s643_s0 + $0x38] sm:$0xff] }
   0xb   :  { %v63_v28 = vld [vmem:[%s643_s0 + $0x78] sm:$0xff]  ;;  %v33_v29 = vld [vmem:[#allocation2 + $0x8] sm:$0xff]  ;;  %v32_v31 = vld [vmem:[#allocation2] sm:$0xff] }
   0xc   :  { %v40_v32 = vld [vmem:[#allocation2 + $0x40] sm:$0xff]  ;;  %v35_v41 = vld [vmem:[#allocation2 + $0x18] sm:$0xff]  ;;  %v34_v43 = vld [vmem:[#allocation2 + $0x10] sm:$0xff] }
   0xd   :  { %428 = vmatpush3.bf16.msra.mxu0 %v425_v11  ;;  %439 = vmatpush3.bf16.msra.mxu1 %v425_v11  ;;  %v41_v30 = vld [vmem:[#allocation2 + $0x48] sm:$0xff]  ;;  %v42_v44 = vld [vmem:[#allocation2 + $0x50] sm:$0xff]  ;;  %v36_v55 = vld [vmem:[#allocation2 + $0x20] sm:$0xff] }
   0xe   :  { %430 = vmatprep.subr.bf16.mxu0 %v429_v14  ;;  %436 = vmatprep.subr.bf16.mxu1 %v429_v14  ;;  %v43_v42 = vld [vmem:[#allocation2 + $0x58] sm:$0xff]  ;;  %v37_v53 = vld [vmem:[#allocation2 + $0x28] sm:$0xff]  ;;  %v44_v56 = vld [vmem:[#allocation2 + $0x60] sm:$0xff] }
   0xf   :  { %v45_v54 = vld [vmem:[#allocation2 + $0x68] sm:$0xff]  ;;  %v39_v63 = vld [vmem:[#allocation2 + $0x38] sm:$0xff]  ;;  %v38_v5 = vld [vmem:[#allocation2 + $0x30] sm:$0xff] }
  0x10   :  { %v47_v0 = vld [vmem:[#allocation2 + $0x78] sm:$0xff]  ;;  %v46_v8 = vld [vmem:[#allocation2 + $0x70] sm:$0xff] }
  0x11   :  { %432 = vmatpush3.bf16.msra.mxu0 %v429_v14  ;;  %440 = vmatpush3.bf16.msra.mxu1 %v429_v14 }
  0x14   :  { %394 = vmatmul.mubr.msk.f32.vlgmr.msra.gmra.mrb[0].mxu0 %vm15_vm0, %v49_v15  ;;  %406 = vmatmul.mubr.msk.f32.vlgmr.msra.gmra.mrb[0].mxu1 %vm15_vm0, %v57_v16 }
  0x15   :  { %396 = vmatprep.mubr.msk.f32.mxu0 %vm15_vm0, %v50_v17  ;;  %408 = vmatprep.mubr.msk.f32.mxu1 %vm15_vm0, %v58_v18 }
  0x18   :  { %397 = vmatmul.mubr.msk.f32.gmra.mrb[2].mxu0 %vm15_vm0, %v51_v19  ;;  %409 = vmatmul.mubr.msk.f32.gmra.mrb[2].mxu1 %vm15_vm0, %v59_v20 }
  0x19   :  { %399 = vmatprep.mubr.msk.f32.mxu0 %vm15_vm0, %v52_v21  ;;  %411 = vmatprep.mubr.msk.f32.mxu1 %vm15_vm0, %v60_v22 }
  0x1c   :  { %400 = vmatmul.mubr.msk.f32.gmra.mrb[4].mxu0 %vm15_vm0, %v53_v23  ;;  %412 = vmatmul.mubr.msk.f32.gmra.mrb[4].mxu1 %vm15_vm0, %v61_v24 }
  0x1d   :  { %402 = vmatprep.mubr.msk.f32.mxu0 %vm15_vm0, %v54_v25  ;;  %414 = vmatprep.mubr.msk.f32.mxu1 %vm15_vm0, %v62_v26 }
  0x20   :  { %403 = vmatmul.mubr.msk.f32.gmra.mrb[6].mxu0 %vm15_vm0, %v55_v27  ;;  %415 = vmatmul.mubr.msk.f32.gmra.mrb[6].mxu1 %vm15_vm0, %v63_v28 }
  0xe7   :  { %v395_v33 = vpop.f32.mrb[0].mxu0  ;;  %v407_v34 = vpop.f32.mrb[0].mxu1 }
  0xe8   :  { %v267_v35 = vadd.f32 %v395_v33, %v33_v29  ;;  %v275_v36 = vadd.f32 %v407_v34, %v41_v30  ;;  %v187_v37 = vpop.f32.mrb[1].mxu0  ;;  %v227_v38 = vpop.f32.mrb[1].mxu1 }
  0xe9   :  { %v266_v39 = vadd.f32 %v187_v37, %v32_v31  ;;  %v274_v40 = vadd.f32 %v227_v38, %v40_v32 }
  0xea   :  { %283 = vst.msk [vmem:[#allocation2 + $0x8] sm:$0xff] %vm15_vm0, %v267_v35  ;;  %291 = vst.msk [vmem:[#allocation2 + $0x48] sm:$0xff] %vm15_vm0, %v275_v36 }
  0xeb   :  { %282 = vst.msk [vmem:[#allocation2] sm:$0xff] %vm15_vm0, %v266_v39  ;;  %290 = vst.msk [vmem:[#allocation2 + $0x40] sm:$0xff] %vm15_vm0, %v274_v40  ;;  %v398_v45 = vpop.f32.mrb[2].mxu0  ;;  %v410_v46 = vpop.f32.mrb[2].mxu1 }
  0xec   :  { %v269_v47 = vadd.f32 %v398_v45, %v35_v41  ;;  %v277_v48 = vadd.f32 %v410_v46, %v43_v42  ;;  %v197_v49 = vpop.f32.mrb[3].mxu0  ;;  %v237_v50 = vpop.f32.mrb[3].mxu1 }
  0xed   :  { %v268_v51 = vadd.f32 %v197_v49, %v34_v43  ;;  %v276_v52 = vadd.f32 %v237_v50, %v42_v44 }
  0xee   :  { %285 = vst.msk [vmem:[#allocation2 + $0x18] sm:$0xff] %vm15_vm0, %v269_v47  ;;  %293 = vst.msk [vmem:[#allocation2 + $0x58] sm:$0xff] %vm15_vm0, %v277_v48 }
  0xef   :  { %284 = vst.msk [vmem:[#allocation2 + $0x10] sm:$0xff] %vm15_vm0, %v268_v51  ;;  %292 = vst.msk [vmem:[#allocation2 + $0x50] sm:$0xff] %vm15_vm0, %v276_v52  ;;  %v401_v57 = vpop.f32.mrb[4].mxu0  ;;  %v413_v58 = vpop.f32.mrb[4].mxu1 }
  0xf0   :  { %v271_v59 = vadd.f32 %v401_v57, %v37_v53  ;;  %v279_v60 = vadd.f32 %v413_v58, %v45_v54  ;;  %v207_v61 = vpop.f32.mrb[5].mxu0  ;;  %v247_v62 = vpop.f32.mrb[5].mxu1 }
  0xf1   :  { %v302_v1 = vld [vmem:[#allocation2 + $0x8] sm:$0xff]  ;;  %v270_v3 = vadd.f32 %v207_v61, %v36_v55  ;;  %v278_v4 = vadd.f32 %v247_v62, %v44_v56 }
  0xf2   :  { %v310_v2 = vld [vmem:[#allocation2 + $0x48] sm:$0xff]  ;;  %318 = vst.msk [vmem:[%s644_s2 + $0x8] sm:$0xff] %vm15_vm0, %v302_v1  ;;  %v301_v6 = vld [vmem:[#allocation2] sm:$0xff]  ;;  %287 = vst.msk [vmem:[#allocation2 + $0x28] sm:$0xff] %vm15_vm0, %v271_v59 }
  0xf3   :  { %326 = vst.msk [vmem:[%s644_s2 + $0x48] sm:$0xff] %vm15_vm0, %v310_v2  ;;  %v309_v7 = vld [vmem:[#allocation2 + $0x40] sm:$0xff]  ;;  %295 = vst.msk [vmem:[#allocation2 + $0x68] sm:$0xff] %vm15_vm0, %v279_v60  ;;  %v404_v9 = vpop.f32.mrb[6].mxu0  ;;  %v416_v10 = vpop.f32.mrb[6].mxu1 }
  0xf4   :  { %317 = vst.msk [vmem:[%s644_s2] sm:$0xff] %vm15_vm0, %v301_v6  ;;  %325 = vst.msk [vmem:[%s644_s2 + $0x40] sm:$0xff] %vm15_vm0, %v309_v7  ;;  %v273_v11 = vadd.f32 %v404_v9, %v39_v63  ;;  %v281_v12 = vadd.f32 %v416_v10, %v47_v0  ;;  %v217_v13 = vpop.f32.mrb[7].mxu0  ;;  %v257_v14 = vpop.f32.mrb[7].mxu1 }
  0xf5   :  { %286 = vst.msk [vmem:[#allocation2 + $0x20] sm:$0xff] %vm15_vm0, %v270_v3  ;;  %294 = vst.msk [vmem:[#allocation2 + $0x60] sm:$0xff] %vm15_vm0, %v278_v4  ;;  %v304_v15 = vld [vmem:[#allocation2 + $0x18] sm:$0xff]  ;;  %v272_v17 = vadd.f32 %v217_v13, %v38_v5  ;;  %v280_v18 = vadd.f32 %v257_v14, %v46_v8 }
  0xf6   :  { %v312_v16 = vld [vmem:[#allocation2 + $0x58] sm:$0xff]  ;;  %320 = vst.msk [vmem:[%s644_s2 + $0x18] sm:$0xff] %vm15_vm0, %v304_v15  ;;  %v303_v19 = vld [vmem:[#allocation2 + $0x10] sm:$0xff]  ;;  %289 = vst.msk [vmem:[#allocation2 + $0x38] sm:$0xff] %vm15_vm0, %v273_v11 }
  0xf7   :  { %328 = vst.msk [vmem:[%s644_s2 + $0x58] sm:$0xff] %vm15_vm0, %v312_v16  ;;  %v311_v20 = vld [vmem:[#allocation2 + $0x50] sm:$0xff]  ;;  %297 = vst.msk [vmem:[#allocation2 + $0x78] sm:$0xff] %vm15_vm0, %v281_v12 }
  0xf8   :  { %319 = vst.msk [vmem:[%s644_s2 + $0x10] sm:$0xff] %vm15_vm0, %v303_v19  ;;  %327 = vst.msk [vmem:[%s644_s2 + $0x50] sm:$0xff] %vm15_vm0, %v311_v20 }
  0xf9   :  { %288 = vst.msk [vmem:[#allocation2 + $0x30] sm:$0xff] %vm15_vm0, %v272_v17  ;;  %296 = vst.msk [vmem:[#allocation2 + $0x70] sm:$0xff] %vm15_vm0, %v280_v18  ;;  %v306_v21 = vld [vmem:[#allocation2 + $0x28] sm:$0xff] }
  0xfa   :  { %v314_v22 = vld [vmem:[#allocation2 + $0x68] sm:$0xff]  ;;  %322 = vst.msk [vmem:[%s644_s2 + $0x28] sm:$0xff] %vm15_vm0, %v306_v21 }
  0xfb   :  { %330 = vst.msk [vmem:[%s644_s2 + $0x68] sm:$0xff] %vm15_vm0, %v314_v22 }
  0xfc   :  { %v305_v23 = vld [vmem:[#allocation2 + $0x20] sm:$0xff] }
  0xfd   :  { %v313_v24 = vld [vmem:[#allocation2 + $0x60] sm:$0xff]  ;;  %321 = vst.msk [vmem:[%s644_s2 + $0x20] sm:$0xff] %vm15_vm0, %v305_v23  ;;  %v308_v25 = vld [vmem:[#allocation2 + $0x38] sm:$0xff] }
  0xfe   :  { %329 = vst.msk [vmem:[%s644_s2 + $0x60] sm:$0xff] %vm15_vm0, %v313_v24  ;;  %v316_v26 = vld [vmem:[#allocation2 + $0x78] sm:$0xff]  ;;  %324 = vst.msk [vmem:[%s644_s2 + $0x38] sm:$0xff] %vm15_vm0, %v308_v25 }
  0xff   :  { %332 = vst.msk [vmem:[%s644_s2 + $0x78] sm:$0xff] %vm15_vm0, %v316_v26 }
 0x100   :  { %v307_v27 = vld [vmem:[#allocation2 + $0x30] sm:$0xff] }
 0x101   :  { %v315_v28 = vld [vmem:[#allocation2 + $0x70] sm:$0xff]  ;;  %323 = vst.msk [vmem:[%s644_s2 + $0x30] sm:$0xff] %vm15_vm0, %v307_v27 }
 0x102   :  { %331 = vst.msk [vmem:[%s644_s2 + $0x70] sm:$0xff] %vm15_vm0, %v315_v28 }

// kernel: self_attention_forward.9
= control target key start
LH: loop header
LB: loop body
LE: loop exit
PB: predicated region body
PF: predicated region fallthrough
CT: control target
= control target key end

     0   :  { %vm19_vm0 = vcmask 523264   ;;  %v509_v5 = vmov 0.0   ;;  %s702_s0 = inlined_call_operand.vmem [shape: f32[128,64], index: 0, kind: input, shape index: {}]   ;;  %s703_s1 = inlined_call_operand.vmem [shape: f32[64,64], index: 1, kind: input, shape index: {}]   ;;  %s704_s2 = inlined_call_operand.vmem [shape: f32[1,64], index: 2, kind: input, shape index: {}]   ;;  %s705_s3 = inlined_call_operand.hbm [shape: f32[128,64], index: 3, kind: output, shape index: {}]  }
   0x1   :  { %v68_v0 = vld [vmem:[%s703_s1] sm:$0xff]  ;;  %v69_v1 = vld [vmem:[%s703_s1 + $0x8] sm:$0xff]  ;;  %v70_v2 = vld [vmem:[%s703_s1 + $0x10] sm:$0xff]  ;;  %21 = vst.msk [vmem:[#allocation2 + $0x8] sm:$0xff] %vm19_vm0, %v509_v5 }
   0x2   :  { %v457_v3 = vpack.c.bf16 %v69_v1, %v68_v0  ;;  %v71_v4 = vld [vmem:[%s703_s1 + $0x18] sm:$0xff]  ;;  %20 = vst.msk [vmem:[#allocation2] sm:$0xff] %vm19_vm0, %v509_v5  ;;  %22 = vst.msk [vmem:[#allocation2 + $0x10] sm:$0xff] %vm19_vm0, %v509_v5  ;;  %v72_v7 = vld [vmem:[%s703_s1 + $0x20] sm:$0xff] }
   0x3   :  { %23 = vst.msk [vmem:[#allocation2 + $0x18] sm:$0xff] %vm19_vm0, %v509_v5  ;;  %24 = vst.msk [vmem:[#allocation2 + $0x20] sm:$0xff] %vm19_vm0, %v509_v5  ;;  %v461_v6 = vpack.c.bf16 %v71_v4, %v70_v2  ;;  %v73_v8 = vld [vmem:[%s703_s1 + $0x28] sm:$0xff]  ;;  %v52_v9 = vld [vmem:[%s702_s0] sm:$0xff] }
   0x4   :  { %25 = vst.msk [vmem:[#allocation2 + $0x28] sm:$0xff] %vm19_vm0, %v509_v5  ;;  %26 = vst.msk [vmem:[#allocation2 + $0x30] sm:$0xff] %vm19_vm0, %v509_v5  ;;  %458 = vmatprep.subr.bf16.mxu0 %v457_v3  ;;  %473 = vmatprep.subr.bf16.mxu1 %v457_v3  ;;  %v60_v10 = vld [vmem:[%s702_s0 + $0x40] sm:$0xff]  ;;  %v465_v11 = vpack.c.bf16 %v73_v8, %v72_v7  ;;  %v74_v12 = vld [vmem:[%s703_s1 + $0x30] sm:$0xff] }
   0x5   :  { %27 = vst.msk [vmem:[#allocation2 + $0x38] sm:$0xff] %vm19_vm0, %v509_v5  ;;  %28 = vst.msk [vmem:[#allocation2 + $0x40] sm:$0xff] %vm19_vm0, %v509_v5  ;;  %460 = vmatpush3.bf16.msra.mxu0 %v457_v3  ;;  %477 = vmatpush3.bf16.msra.mxu1 %v457_v3  ;;  %v75_v13 = vld [vmem:[%s703_s1 + $0x38] sm:$0xff] }
   0x6   :  { %29 = vst.msk [vmem:[#allocation2 + $0x48] sm:$0xff] %vm19_vm0, %v509_v5  ;;  %30 = vst.msk [vmem:[#allocation2 + $0x50] sm:$0xff] %vm19_vm0, %v509_v5  ;;  %462 = vmatprep.subr.bf16.mxu0 %v461_v6  ;;  %474 = vmatprep.subr.bf16.mxu1 %v461_v6 }
   0x7   :  { %31 = vst.msk [vmem:[#allocation2 + $0x58] sm:$0xff] %vm19_vm0, %v509_v5  ;;  %32 = vst.msk [vmem:[#allocation2 + $0x60] sm:$0xff] %vm19_vm0, %v509_v5  ;;  %433 = vmatprep.mubr.msk.f32.mxu0 %vm19_vm0, %v52_v9  ;;  %445 = vmatprep.mubr.msk.f32.mxu1 %vm19_vm0, %v60_v10 }
   0x8   :  { %33 = vst.msk [vmem:[#allocation2 + $0x68] sm:$0xff] %vm19_vm0, %v509_v5  ;;  %34 = vst.msk [vmem:[#allocation2 + $0x70] sm:$0xff] %vm19_vm0, %v509_v5 }
   0x9   :  { %35 = vst.msk [vmem:[#allocation2 + $0x78] sm:$0xff] %vm19_vm0, %v509_v5  ;;  %464 = vmatpush3.bf16.msra.mxu0 %v461_v6  ;;  %478 = vmatpush3.bf16.msra.mxu1 %v461_v6 }
   0xa   :  { %8 = vsyncpa [#allocation4], 0  ;;  %466 = vmatprep.subr.bf16.mxu0 %v465_v11  ;;  %475 = vmatprep.subr.bf16.mxu1 %v465_v11  ;;  %v469_v14 = vpack.c.bf16 %v75_v13, %v74_v12  ;;  %v53_v15 = vld [vmem:[%s702_s0 + $0x8] sm:$0xff]  ;;  %v54_v17 = vld [vmem:[%s702_s0 + $0x10] sm:$0xff] }
   0xb   :  { %v61_v16 = vld [vmem:[%s702_s0 + $0x48] sm:$0xff]  ;;  %v62_v18 = vld [vmem:[%s702_s0 + $0x50] sm:$0xff]  ;;  %v55_v19 = vld [vmem:[%s702_s0 + $0x18] sm:$0xff] }
   0xc   :  { %v63_v20 = vld [vmem:[%s702_s0 + $0x58] sm:$0xff]  ;;  %v56_v21 = vld [vmem:[%s702_s0 + $0x20] sm:$0xff]  ;;  %v57_v23 = vld [vmem:[%s702_s0 + $0x28] sm:$0xff] }
   0xd   :  { %468 = vmatpush3.bf16.msra.mxu0 %v465_v11  ;;  %479 = vmatpush3.bf16.msra.mxu1 %v465_v11  ;;  %v64_v22 = vld [vmem:[%s702_s0 + $0x60] sm:$0xff]  ;;  %v65_v24 = vld [vmem:[%s702_s0 + $0x68] sm:$0xff]  ;;  %v58_v25 = vld [vmem:[%s702_s0 + $0x30] sm:$0xff] }
   0xe   :  { %470 = vmatprep.subr.bf16.mxu0 %v469_v14  ;;  %476 = vmatprep.subr.bf16.mxu1 %v469_v14  ;;  %v66_v26 = vld [vmem:[%s702_s0 + $0x70] sm:$0xff]  ;;  %v59_v27 = vld [vmem:[%s702_s0 + $0x38] sm:$0xff]  ;;  %v37_v29 = vld [vmem:[#allocation2 + $0x8] sm:$0xff] }
   0xf   :  { %v67_v28 = vld [vmem:[%s702_s0 + $0x78] sm:$0xff]  ;;  %v45_v30 = vld [vmem:[#allocation2 + $0x48] sm:$0xff]  ;;  %v36_v31 = vld [vmem:[#allocation2] sm:$0xff] }
  0x10   :  { %v44_v32 = vld [vmem:[#allocation2 + $0x40] sm:$0xff]  ;;  %v39_v41 = vld [vmem:[#allocation2 + $0x18] sm:$0xff]  ;;  %v38_v43 = vld [vmem:[#allocation2 + $0x10] sm:$0xff] }
  0x11   :  { %472 = vmatpush3.bf16.msra.mxu0 %v469_v14  ;;  %480 = vmatpush3.bf16.msra.mxu1 %v469_v14  ;;  %v47_v42 = vld [vmem:[#allocation2 + $0x58] sm:$0xff]  ;;  %v46_v44 = vld [vmem:[#allocation2 + $0x50] sm:$0xff]  ;;  %v41_v53 = vld [vmem:[#allocation2 + $0x28] sm:$0xff] }
  0x12   :  { %v49_v54 = vld [vmem:[#allocation2 + $0x68] sm:$0xff]  ;;  %v40_v55 = vld [vmem:[#allocation2 + $0x20] sm:$0xff]  ;;  %v43_v0 = vld [vmem:[#allocation2 + $0x38] sm:$0xff] }
  0x13   :  { %v48_v56 = vld [vmem:[#allocation2 + $0x60] sm:$0xff]  ;;  %v51_v1 = vld [vmem:[#allocation2 + $0x78] sm:$0xff]  ;;  %v42_v6 = vld [vmem:[#allocation2 + $0x30] sm:$0xff] }
  0x14   :  { %434 = vmatmul.mubr.msk.f32.vlgmr.msra.gmra.mrb[0].mxu0 %vm19_vm0, %v53_v15  ;;  %446 = vmatmul.mubr.msk.f32.vlgmr.msra.gmra.mrb[0].mxu1 %vm19_vm0, %v61_v16  ;;  %v646_v57 = vld [vmem:[%s704_s2] ss:$0 sm:$0xff]  ;;  %v50_v11 = vld [vmem:[#allocation2 + $0x70] sm:$0xff]  ;;  %s510_s2 = smov [#allocation3]  }
  0x15   :  { %436 = vmatprep.mubr.msk.f32.mxu0 %vm19_vm0, %v54_v17  ;;  %448 = vmatprep.mubr.msk.f32.mxu1 %vm19_vm0, %v62_v18  ;;  %s365_s6 = sshll.u32 %s510_s2, 4  ;;  %s366_s6 = int_to_ptr.vmem [resolvable:$true] %s365_s6 }
  0x16   :  { %s485_s1 = scalar_lea.vmem %s366_s6, 2048  ;;  %p490_p1 = scmp.lt.s32.totalorder %s366_s6, %s366_s6 }
  0x17   :  { %p486_p0 = scmp.ne.s32.totalorder %s366_s6, %s485_s1  ;;  %p491_p2 = scmp.lt.s32.totalorder %s485_s1, %s485_s1 }
  0x18   :  { %437 = vmatmul.mubr.msk.f32.gmra.mrb[2].mxu0 %vm19_vm0, %v55_v19  ;;  %449 = vmatmul.mubr.msk.f32.gmra.mrb[2].mxu1 %vm19_vm0, %v63_v20 }
  0x19   :  { %439 = vmatprep.mubr.msk.f32.mxu0 %vm19_vm0, %v56_v21  ;;  %451 = vmatprep.mubr.msk.f32.mxu1 %vm19_vm0, %v64_v22  ;;  %p492_p3 = por %p491_p2, %p490_p1 }
  0x1b   :  { %p493_p4 = pnand %p492_p3, %p486_p0 }
  0x1c   :  { %440 = vmatmul.mubr.msk.f32.gmra.mrb[4].mxu0 %vm19_vm0, %v57_v23  ;;  %452 = vmatmul.mubr.msk.f32.gmra.mrb[4].mxu1 %vm19_vm0, %v65_v24 }
  0x1d   :  { %442 = vmatprep.mubr.msk.f32.mxu0 %vm19_vm0, %v58_v25  ;;  %454 = vmatprep.mubr.msk.f32.mxu1 %vm19_vm0, %v66_v26 }
  0x20   :  { %443 = vmatmul.mubr.msk.f32.gmra.mrb[6].mxu0 %vm19_vm0, %v59_v27  ;;  %455 = vmatmul.mubr.msk.f32.gmra.mrb[6].mxu1 %vm19_vm0, %v67_v28 }
  0xe7   :  { %v435_v33 = vpop.f32.mrb[0].mxu0  ;;  %v447_v34 = vpop.f32.mrb[0].mxu1 }
  0xe8   :  { %v271_v35 = vadd.f32 %v435_v33, %v37_v29  ;;  %v279_v36 = vadd.f32 %v447_v34, %v45_v30  ;;  %v191_v37 = vpop.f32.mrb[1].mxu0  ;;  %v231_v38 = vpop.f32.mrb[1].mxu1 }
  0xe9   :  { %v270_v39 = vadd.f32 %v191_v37, %v36_v31  ;;  %v278_v40 = vadd.f32 %v231_v38, %v44_v32 }
  0xea   :  { %287 = vst.msk [vmem:[#allocation2 + $0x8] sm:$0xff] %vm19_vm0, %v271_v35  ;;  %295 = vst.msk [vmem:[#allocation2 + $0x48] sm:$0xff] %vm19_vm0, %v279_v36 }
  0xeb   :  { %286 = vst.msk [vmem:[#allocation2] sm:$0xff] %vm19_vm0, %v270_v39  ;;  %294 = vst.msk [vmem:[#allocation2 + $0x40] sm:$0xff] %vm19_vm0, %v278_v40  ;;  %v438_v45 = vpop.f32.mrb[2].mxu0  ;;  %v450_v46 = vpop.f32.mrb[2].mxu1 }
  0xec   :  { %v273_v47 = vadd.f32 %v438_v45, %v39_v41  ;;  %v281_v48 = vadd.f32 %v450_v46, %v47_v42  ;;  %v201_v49 = vpop.f32.mrb[3].mxu0  ;;  %v241_v50 = vpop.f32.mrb[3].mxu1 }
  0xed   :  { %v272_v51 = vadd.f32 %v201_v49, %v38_v43  ;;  %v280_v52 = vadd.f32 %v241_v50, %v46_v44 }
  0xee   :  { %289 = vst.msk [vmem:[#allocation2 + $0x18] sm:$0xff] %vm19_vm0, %v273_v47  ;;  %297 = vst.msk [vmem:[#allocation2 + $0x58] sm:$0xff] %vm19_vm0, %v281_v48 }
  0xef   :  { %288 = vst.msk [vmem:[#allocation2 + $0x10] sm:$0xff] %vm19_vm0, %v272_v51  ;;  %296 = vst.msk [vmem:[#allocation2 + $0x50] sm:$0xff] %vm19_vm0, %v280_v52  ;;  %v441_v58 = vpop.f32.mrb[4].mxu0  ;;  %v453_v59 = vpop.f32.mrb[4].mxu1 }
  0xf0   :  { %v275_v60 = vadd.f32 %v441_v58, %v41_v53  ;;  %v283_v61 = vadd.f32 %v453_v59, %v49_v54  ;;  %v211_v62 = vpop.f32.mrb[5].mxu0  ;;  %v251_v63 = vpop.f32.mrb[5].mxu1 }
  0xf1   :  { %v306_v2 = vld [vmem:[#allocation2 + $0x8] sm:$0xff]  ;;  %v274_v4 = vadd.f32 %v211_v62, %v40_v55  ;;  %v282_v5 = vadd.f32 %v251_v63, %v48_v56 }
  0xf2   :  { %v314_v3 = vld [vmem:[#allocation2 + $0x48] sm:$0xff]  ;;  %v329_v7 = vadd.f32 %v646_v57, %v306_v2  ;;  %v305_v9 = vld [vmem:[#allocation2] sm:$0xff]  ;;  %291 = vst.msk [vmem:[#allocation2 + $0x28] sm:$0xff] %vm19_vm0, %v275_v60  ;;  %299 = vst.msk [vmem:[#allocation2 + $0x68] sm:$0xff] %vm19_vm0, %v283_v61 }
  0xf3   :  { %v337_v8 = vadd.f32 %v646_v57, %v314_v3  ;;  %v313_v10 = vld [vmem:[#allocation2 + $0x40] sm:$0xff]  ;;  %v328_v12 = vadd.f32 %v646_v57, %v305_v9  ;;  %290 = vst.msk [vmem:[#allocation2 + $0x20] sm:$0xff] %vm19_vm0, %v274_v4  ;;  %298 = vst.msk [vmem:[#allocation2 + $0x60] sm:$0xff] %vm19_vm0, %v282_v5  ;;  %v444_v14 = vpop.f32.mrb[6].mxu0  ;;  %v456_v15 = vpop.f32.mrb[6].mxu1 }
  0xf4   :  { %v336_v13 = vadd.f32 %v646_v57, %v313_v10  ;;  %345 = vst.msk [vmem:[#allocation3 + $0x8] sm:$0xff] %vm19_vm0, %v329_v7  ;;  %v277_v16 = vadd.f32 %v444_v14, %v43_v0  ;;  %v285_v17 = vadd.f32 %v456_v15, %v51_v1  ;;  %v221_v18 = vpop.f32.mrb[7].mxu0  ;;  %v261_v19 = vpop.f32.mrb[7].mxu1 }
  0xf5   :  { %353 = vst.msk [vmem:[#allocation3 + $0x48] sm:$0xff] %vm19_vm0, %v337_v8  ;;  %344 = vst.msk [vmem:[#allocation3] sm:$0xff] %vm19_vm0, %v328_v12  ;;  %v308_v20 = vld [vmem:[#allocation2 + $0x18] sm:$0xff]  ;;  %v276_v22 = vadd.f32 %v221_v18, %v42_v6  ;;  %v284_v23 = vadd.f32 %v261_v19, %v50_v11 }
  0xf6   :  { %352 = vst.msk [vmem:[#allocation3 + $0x40] sm:$0xff] %vm19_vm0, %v336_v13  ;;  %v316_v21 = vld [vmem:[#allocation2 + $0x58] sm:$0xff]  ;;  %v331_v24 = vadd.f32 %v646_v57, %v308_v20  ;;  %v307_v26 = vld [vmem:[#allocation2 + $0x10] sm:$0xff]  ;;  %293 = vst.msk [vmem:[#allocation2 + $0x38] sm:$0xff] %vm19_vm0, %v277_v16 }
  0xf7   :  { %v339_v25 = vadd.f32 %v646_v57, %v316_v21  ;;  %v315_v27 = vld [vmem:[#allocation2 + $0x50] sm:$0xff]  ;;  %301 = vst.msk [vmem:[#allocation2 + $0x78] sm:$0xff] %vm19_vm0, %v285_v17  ;;  %v330_v28 = vadd.f32 %v646_v57, %v307_v26  ;;  %292 = vst.msk [vmem:[#allocation2 + $0x30] sm:$0xff] %vm19_vm0, %v276_v22 }
  0xf8   :  { %v338_v29 = vadd.f32 %v646_v57, %v315_v27  ;;  %300 = vst.msk [vmem:[#allocation2 + $0x70] sm:$0xff] %vm19_vm0, %v284_v23  ;;  %347 = vst.msk [vmem:[#allocation3 + $0x18] sm:$0xff] %vm19_vm0, %v331_v24 }
  0xf9   :  { %355 = vst.msk [vmem:[#allocation3 + $0x58] sm:$0xff] %vm19_vm0, %v339_v25  ;;  %346 = vst.msk [vmem:[#allocation3 + $0x10] sm:$0xff] %vm19_vm0, %v330_v28  ;;  %v310_v30 = vld [vmem:[#allocation2 + $0x28] sm:$0xff] }
  0xfa   :  { %354 = vst.msk [vmem:[#allocation3 + $0x50] sm:$0xff] %vm19_vm0, %v338_v29  ;;  %v318_v31 = vld [vmem:[#allocation2 + $0x68] sm:$0xff]  ;;  %v333_v32 = vadd.f32 %v646_v57, %v310_v30  ;;  %v309_v34 = vld [vmem:[#allocation2 + $0x20] sm:$0xff] }
  0xfb   :  { %v341_v33 = vadd.f32 %v646_v57, %v318_v31  ;;  %v317_v35 = vld [vmem:[#allocation2 + $0x60] sm:$0xff]  ;;  %v332_v36 = vadd.f32 %v646_v57, %v309_v34 }
  0xfc   :  { %v340_v37 = vadd.f32 %v646_v57, %v317_v35  ;;  %349 = vst.msk [vmem:[#allocation3 + $0x28] sm:$0xff] %vm19_vm0, %v333_v32 }
  0xfd   :  { %357 = vst.msk [vmem:[#allocation3 + $0x68] sm:$0xff] %vm19_vm0, %v341_v33  ;;  %348 = vst.msk [vmem:[#allocation3 + $0x20] sm:$0xff] %vm19_vm0, %v332_v36  ;;  %v312_v38 = vld [vmem:[#allocation2 + $0x38] sm:$0xff] }
  0xfe   :  { %356 = vst.msk [vmem:[#allocation3 + $0x60] sm:$0xff] %vm19_vm0, %v340_v37  ;;  %v320_v39 = vld [vmem:[#allocation2 + $0x78] sm:$0xff]  ;;  %v335_v40 = vadd.f32 %v646_v57, %v312_v38  ;;  %v311_v42 = vld [vmem:[#allocation2 + $0x30] sm:$0xff] }
  0xff   :  { %v343_v41 = vadd.f32 %v646_v57, %v320_v39  ;;  %v319_v43 = vld [vmem:[#allocation2 + $0x70] sm:$0xff]  ;;  %v334_v44 = vadd.f32 %v646_v57, %v311_v42 }
 0x100   :  { %v342_v45 = vadd.f32 %v646_v57, %v319_v43  ;;  %351 = vst.msk [vmem:[#allocation3 + $0x38] sm:$0xff] %vm19_vm0, %v335_v40 }
 0x101   :  { %359 = vst.msk [vmem:[#allocation3 + $0x78] sm:$0xff] %vm19_vm0, %v343_v41  ;;  %350 = vst.msk [vmem:[#allocation3 + $0x30] sm:$0xff] %vm19_vm0, %v334_v44 }
 0x102   :  { %358 = vst.msk [vmem:[#allocation3 + $0x70] sm:$0xff] %vm19_vm0, %v342_v45 }
 0x103   :  { %496 = shalt.err (!%p493_p4)
}
 0x104   :  { %s497_s9 = scalar_lea.hbm %s705_s3, 2048 }
 0x105   :  { %p498_p5 = scmp.ne.s32.totalorder %s705_s3, %s497_s9  ;;  %p501_p6 = scmp.lt.u32.totalorder %s497_s9, %s705_s3 }
 0x107   :  { %p503_p7 = pnand %p501_p6, %p498_p5 }
 0x109   :  { %506 = shalt.err (!%p503_p7)
}
 0x10a   :  { %s511_s14 = smov 128   ;;  %s512_s15 = smov 8  }
 0x10b   :  { %371 = dma.vmem_to_hbm [thread:$0]  %s366_s6, 2048, %s705_s3, [#allocation4], %s511_s14, %s511_s14, %s512_s15  }
 0x10c   :  { %507 = dma.done.wait [#allocation4], 2048  }
 0x10d   :  { %508 = vsyncadd [#allocation4], 4294965248 }
 0x10e   :  { %375 = vsyncpa [#allocation4], 1 }

// kernel: self_attention_forward.8
= control target key start
LH: loop header
LB: loop body
LE: loop exit
PB: predicated region body
PF: predicated region fallthrough
CT: control target
= control target key end

     0   :  { %s6844_s9 = smov 0   ;;  %s6846_s10 = smov 0   ;;  %s9459_s0 = inlined_call_operand.vmem [shape: f32[2,64,64], index: 0, kind: input, shape index: {}]   ;;  %s9460_s1 = inlined_call_operand.vmem [shape: f32[2,8,128], index: 1, kind: input, shape index: {}]   ;;  %s9461_s2 = inlined_call_operand.vmem [shape: f32[2,64,64], index: 2, kind: output, shape index: {}]  }
   0x1   :  { %s6848_s11 = smov 0  }
   0x2 LB: > { %s31_s12 = sadd.s32 1, %s6805_s10  ;;  %p5844_p0 = scmp.ge.s32.totalorder %s6809_s11, 1  ;;  %s6809_s11 = sphi %s6848_s11, %s12_s11   ;;  %s6805_s10 = sphi %s6846_s10, %s9815_s10   ;;  %s6801_s9 = sphi %s6844_s9, %s9814_s9  }
   0x3   : > { %p33_p1 = scmp.ge.s32.totalorder %s31_s12, 2  ;;  %p154_p2 = scmp.lt.s32.totalorder %s6809_s11, 3 }
   0x5   : > { %s9817_s12 = smov (%p33_p1, %s31_s12), 0  ;;  %p155_p3 = pnand %p5844_p0, %p154_p2 }
   0x7   : > { %158 = sbr.rel (%p155_p3) target bundleno = 2651 (0xa5b), region = 28 }
   0xe   : > { %p192_p4 = scmp.lt.s32.totalorder %s6801_s9, 1  ;;  %vm351_vm0 = vcmask 64512   ;;  %s6811_s21 = smov 120   ;;  %vm222_vm1 = vcmask 7168   ;;  %v6823_v15 = vmov -inf   ;;  %v6825_v53 = vmov 0  }
   0xf   : > { %s6812_s22 = smov 64   ;;  %s6813_s23 = smov 112   ;;  %224 = vst.msk [vmem:[#allocation2 + $0x8] sm:$0xff] %vm222_vm1, %v6823_v15  ;;  %223 = vst.msk [vmem:[#allocation2] sm:$0xff] %vm222_vm1, %v6823_v15  ;;  %6400 = vset.pattern.permute.xlu1 %v6825_v53  ;;  %6401 = vset.pattern.permute.xlu0 %v6825_v53  ;;  %v6826_v57 = vmov 0.0   ;;  %vm5048_vm2 = vcmask 130112  }
  0x10   : > { %s9819_s9 = smov (!%p192_p4, %s6801_s9), 1  ;;  %s6814_s24 = smov 56   ;;  %225 = vst.msk [vmem:[#allocation2 + $0x10] sm:$0xff] %vm222_vm1, %v6823_v15  ;;  %226 = vst.msk [vmem:[#allocation2 + $0x18] sm:$0xff] %vm222_vm1, %v6823_v15  ;;  %vm5161_vm3 = vcmask 195712   ;;  %vm5274_vm4 = vcmask 261312  }
  0x11   : > { %s5988_s13 = sshll.u32 %s9819_s9, 6  ;;  %s5847_s14 = sshll.u32 %s9819_s9, 3  ;;  %227 = vst.msk [vmem:[#allocation2 + $0x20] sm:$0xff] %vm222_vm1, %v6823_v15  ;;  %228 = vst.msk [vmem:[#allocation2 + $0x28] sm:$0xff] %vm222_vm1, %v6823_v15  ;;  %vm5387_vm5 = vcmask 326912   ;;  %vm5500_vm6 = vcmask 392512  }
  0x12   : > { %s199_s17 = scalar_lea.vmem %s9459_s0, %s5988_s13  ;;  %s6874_s20 = scalar_lea.vmem %s9460_s1, %s5847_s14  ;;  %229 = vst.msk [vmem:[#allocation2 + $0x30] sm:$0xff] %vm222_vm1, %v6823_v15  ;;  %230 = vst.msk [vmem:[#allocation2 + $0x38] sm:$0xff] %vm222_vm1, %v6823_v15  ;;  %vm5613_vm7 = vcmask 458112   ;;  %vm5726_vm8 = vcmask 523712  }
  0x13   : > { %v6877_v0 = vld [vmem:[%s6874_s20] sm:$0xff]  ;;  %v6887_v2 = vld [vmem:[%s199_s17 + $0x8] sm:$0xff]  ;;  %v6890_v3 = vld [vmem:[%s199_s17 + $0x10] sm:$0xff]  ;;  %s6815_s25 = smov 104   ;;  %s6816_s26 = smov 48   ;;  %231 = vst.msk [vmem:[#allocation2 + $0x40] sm:$0xff] %vm222_vm1, %v6823_v15 }
  0x14   : > { %v6879_v1 = vld [vmem:[%s199_s17] sm:$0xff]  ;;  %6134 = vmatprep.subr.msk.mxu0 %vm351_vm0, %v6877_v0  ;;  %799 = vrot.lane.b32.xlu1 %v6877_v0, %s6812_s22  ;;  %v6897_v4 = vld [vmem:[%s199_s17 + $0x18] sm:$0xff]  ;;  %v6907_v6 = vld [vmem:[%s199_s17 + $0x28] sm:$0xff]  ;;  %s6817_s27 = smov 96   ;;  %s6818_s28 = smov 40   ;;  %232 = vst.msk [vmem:[#allocation2 + $0x48] sm:$0xff] %vm222_vm1, %v6823_v15 }
  0x15   : > { %6136 = vmatprep.mubr.msk.f32.mxu0 %vm351_vm0, %v6879_v1  ;;  %6135 = vmatpush3.xpose.msk.msra.mxu0 %vm351_vm0, %v6877_v0  ;;  %v6900_v5 = vld [vmem:[%s199_s17 + $0x20] sm:$0xff]  ;;  %v6910_v7 = vld [vmem:[%s199_s17 + $0x30] sm:$0xff]  ;;  %v6917_v8 = vld [vmem:[%s199_s17 + $0x38] sm:$0xff]  ;;  %s6819_s29 = smov 88   ;;  %s6820_s30 = smov 32   ;;  %233 = vst.msk [vmem:[#allocation2 + $0x50] sm:$0xff] %vm222_vm1, %v6823_v15 }
  0x16   : > { %972 = vrot.lane.b32.xlu0 %v6879_v1, %s6811_s21  ;;  %s6821_s3 = smov 80   ;;  %s6822_s4 = smov 72   ;;  %234 = vst.msk [vmem:[#allocation2 + $0x58] sm:$0xff] %vm222_vm1, %v6823_v15  ;;  %235 = vst.msk [vmem:[#allocation2 + $0x60] sm:$0xff] %vm222_vm1, %v6823_v15 }
  0x17   : > { %236 = vst.msk [vmem:[#allocation2 + $0x68] sm:$0xff] %vm222_vm1, %v6823_v15  ;;  %237 = vst.msk [vmem:[#allocation2 + $0x70] sm:$0xff] %vm222_vm1, %v6823_v15  ;;  %s6824_s5 = smov 24   ;;  %s6827_s6 = smov 16  }
  0x18   : > { %6137 = vmatmul.mubr.msk.f32.vlgmr.msra.gmra.mrb[0].mxu0 %vm351_vm0, %v6887_v2  ;;  %974 = vrot.lane.b32.xlu1 %v6887_v2, %s6811_s21  ;;  %238 = vst.msk [vmem:[#allocation2 + $0x78] sm:$0xff] %vm222_vm1, %v6823_v15  ;;  %239 = vst.msk [vmem:[#allocation2 + $0x80] sm:$0xff] %vm222_vm1, %v6823_v15  ;;  %s6828_s7 = smov 8   ;;  %s9220_s15 = scalar_lea.vmem %s9461_s2, %s5988_s13 }
  0x19   : > { %6139 = vmatprep.mubr.msk.f32.mxu0 %vm351_vm0, %v6890_v3  ;;  %240 = vst.msk [vmem:[#allocation2 + $0x88] sm:$0xff] %vm222_vm1, %v6823_v15  ;;  %241 = vst.msk [vmem:[#allocation2 + $0x90] sm:$0xff] %vm222_vm1, %v6823_v15 }
  0x1a   : > { %976 = vrot.lane.b32.xlu0 %v6890_v3, %s6811_s21  ;;  %242 = vst.msk [vmem:[#allocation2 + $0x98] sm:$0xff] %vm222_vm1, %v6823_v15  ;;  %243 = vst.msk [vmem:[#allocation2 + $0xa0] sm:$0xff] %vm222_vm1, %v6823_v15 }
  0x1b   : > { %244 = vst.msk [vmem:[#allocation2 + $0xa8] sm:$0xff] %vm222_vm1, %v6823_v15  ;;  %245 = vst.msk [vmem:[#allocation2 + $0xb0] sm:$0xff] %vm222_vm1, %v6823_v15 }
  0x1c   : > { %6140 = vmatmul.mubr.msk.f32.gmra.mrb[2].mxu0 %vm351_vm0, %v6897_v4  ;;  %978 = vrot.lane.b32.xlu1 %v6897_v4, %s6811_s21  ;;  %246 = vst.msk [vmem:[#allocation2 + $0xb8] sm:$0xff] %vm222_vm1, %v6823_v15  ;;  %247 = vst.msk [vmem:[#allocation2 + $0xc0] sm:$0xff] %vm222_vm1, %v6823_v15 }
  0x1d   : > { %6142 = vmatprep.mubr.msk.f32.mxu0 %vm351_vm0, %v6900_v5  ;;  %248 = vst.msk [vmem:[#allocation2 + $0xc8] sm:$0xff] %vm222_vm1, %v6823_v15  ;;  %249 = vst.msk [vmem:[#allocation2 + $0xd0] sm:$0xff] %vm222_vm1, %v6823_v15 }
  0x1e   : > { %980 = vrot.lane.b32.xlu0 %v6900_v5, %s6811_s21  ;;  %250 = vst.msk [vmem:[#allocation2 + $0xd8] sm:$0xff] %vm222_vm1, %v6823_v15  ;;  %251 = vst.msk [vmem:[#allocation2 + $0xe0] sm:$0xff] %vm222_vm1, %v6823_v15 }
  0x1f   : > { %252 = vst.msk [vmem:[#allocation2 + $0xe8] sm:$0xff] %vm222_vm1, %v6823_v15  ;;  %253 = vst.msk [vmem:[#allocation2 + $0xf0] sm:$0xff] %vm222_vm1, %v6823_v15 }
  0x20   : > { %6143 = vmatmul.mubr.msk.f32.gmra.mrb[4].mxu0 %vm351_vm0, %v6907_v6  ;;  %982 = vrot.lane.b32.xlu1 %v6907_v6, %s6811_s21  ;;  %254 = vst.msk [vmem:[#allocation2 + $0xf8] sm:$0xff] %vm222_vm1, %v6823_v15  ;;  %255 = vst.msk [vmem:[#allocation2 + $0x100] sm:$0xff] %vm222_vm1, %v6823_v15 }
  0x21   : > { %6145 = vmatprep.mubr.msk.f32.mxu0 %vm351_vm0, %v6910_v7  ;;  %256 = vst.msk [vmem:[#allocation2 + $0x108] sm:$0xff] %vm222_vm1, %v6823_v15  ;;  %257 = vst.msk [vmem:[#allocation2 + $0x110] sm:$0xff] %vm222_vm1, %v6823_v15 }
  0x22   : > { %984 = vrot.lane.b32.xlu0 %v6910_v7, %s6811_s21  ;;  %258 = vst.msk [vmem:[#allocation2 + $0x118] sm:$0xff] %vm222_vm1, %v6823_v15  ;;  %259 = vst.msk [vmem:[#allocation2 + $0x120] sm:$0xff] %vm222_vm1, %v6823_v15 }
  0x23   : > { %260 = vst.msk [vmem:[#allocation2 + $0x128] sm:$0xff] %vm222_vm1, %v6823_v15  ;;  %261 = vst.msk [vmem:[#allocation2 + $0x130] sm:$0xff] %vm222_vm1, %v6823_v15 }
  0x24   : > { %6146 = vmatmul.mubr.msk.f32.gmra.mrb[6].mxu0 %vm351_vm0, %v6917_v8  ;;  %986 = vrot.lane.b32.xlu1 %v6917_v8, %s6811_s21  ;;  %262 = vst.msk [vmem:[#allocation2 + $0x138] sm:$0xff] %vm222_vm1, %v6823_v15  ;;  %263 = vst.msk [vmem:[#allocation2 + $0x140] sm:$0xff] %vm222_vm1, %v6823_v15 }
  0x25   : > { %264 = vst.msk [vmem:[#allocation2 + $0x148] sm:$0xff] %vm222_vm1, %v6823_v15  ;;  %265 = vst.msk [vmem:[#allocation2 + $0x150] sm:$0xff] %vm222_vm1, %v6823_v15 }
  0x26   : > { %989 = vrot.lane.b32.xlu0 %v6877_v0, %s6811_s21  ;;  %266 = vst.msk [vmem:[#allocation2 + $0x158] sm:$0xff] %vm222_vm1, %v6823_v15  ;;  %267 = vst.msk [vmem:[#allocation2 + $0x160] sm:$0xff] %vm222_vm1, %v6823_v15 }
  0x27   : > { %268 = vst.msk [vmem:[#allocation2 + $0x168] sm:$0xff] %vm222_vm1, %v6823_v15  ;;  %269 = vst.msk [vmem:[#allocation2 + $0x170] sm:$0xff] %vm222_vm1, %v6823_v15 }
  0x28   : > { %1357 = vrot.lane.b32.xlu1 %v6877_v0, %s6814_s24  ;;  %270 = vst.msk [vmem:[#allocation2 + $0x178] sm:$0xff] %vm222_vm1, %v6823_v15  ;;  %271 = vst.msk [vmem:[#allocation2 + $0x180] sm:$0xff] %vm222_vm1, %v6823_v15 }
  0x29   : > { %272 = vst.msk [vmem:[#allocation2 + $0x188] sm:$0xff] %vm222_vm1, %v6823_v15  ;;  %273 = vst.msk [vmem:[#allocation2 + $0x190] sm:$0xff] %vm222_vm1, %v6823_v15 }
  0x2a   : > { %1530 = vrot.lane.b32.xlu0 %v6879_v1, %s6813_s23  ;;  %274 = vst.msk [vmem:[#allocation2 + $0x198] sm:$0xff] %vm222_vm1, %v6823_v15  ;;  %275 = vst.msk [vmem:[#allocation2 + $0x1a0] sm:$0xff] %vm222_vm1, %v6823_v15 }
  0x2b   : > { %276 = vst.msk [vmem:[#allocation2 + $0x1a8] sm:$0xff] %vm222_vm1, %v6823_v15  ;;  %277 = vst.msk [vmem:[#allocation2 + $0x1b0] sm:$0xff] %vm222_vm1, %v6823_v15 }
  0x2c   : > { %1532 = vrot.lane.b32.xlu1 %v6887_v2, %s6813_s23  ;;  %278 = vst.msk [vmem:[#allocation2 + $0x1b8] sm:$0xff] %vm222_vm1, %v6823_v15  ;;  %279 = vst.msk [vmem:[#allocation2 + $0x1c0] sm:$0xff] %vm222_vm1, %v6823_v15 }
  0x2d   : > { %280 = vst.msk [vmem:[#allocation2 + $0x1c8] sm:$0xff] %vm222_vm1, %v6823_v15  ;;  %281 = vst.msk [vmem:[#allocation2 + $0x1d0] sm:$0xff] %vm222_vm1, %v6823_v15 }
  0x2e   : > { %1534 = vrot.lane.b32.xlu0 %v6890_v3, %s6813_s23  ;;  %282 = vst.msk [vmem:[#allocation2 + $0x1d8] sm:$0xff] %vm222_vm1, %v6823_v15  ;;  %283 = vst.msk [vmem:[#allocation2 + $0x1e0] sm:$0xff] %vm222_vm1, %v6823_v15 }
  0x2f   : > { %284 = vst.msk [vmem:[#allocation2 + $0x1e8] sm:$0xff] %vm222_vm1, %v6823_v15  ;;  %285 = vst.msk [vmem:[#allocation2 + $0x1f0] sm:$0xff] %vm222_vm1, %v6823_v15 }
  0x30   : > { %1536 = vrot.lane.b32.xlu1 %v6897_v4, %s6813_s23  ;;  %286 = vst.msk [vmem:[#allocation2 + $0x1f8] sm:$0xff] %vm222_vm1, %v6823_v15  ;;  %287 = vst.msk [vmem:[#allocation3] sm:$0xff] %vm222_vm1, %v6826_v57 }
  0x31   : > { %352 = vst.msk [vmem:[#allocation4] sm:$0xff] %vm351_vm0, %v6826_v57  ;;  %353 = vst.msk [vmem:[#allocation4 + $0x8] sm:$0xff] %vm351_vm0, %v6826_v57 }
  0x32   : > { %1538 = vrot.lane.b32.xlu0 %v6900_v5, %s6813_s23  ;;  %288 = vst.msk [vmem:[#allocation3 + $0x8] sm:$0xff] %vm222_vm1, %v6826_v57  ;;  %289 = vst.msk [vmem:[#allocation3 + $0x10] sm:$0xff] %vm222_vm1, %v6826_v57 }
  0x33   : > { %290 = vst.msk [vmem:[#allocation3 + $0x18] sm:$0xff] %vm222_vm1, %v6826_v57  ;;  %291 = vst.msk [vmem:[#allocation3 + $0x20] sm:$0xff] %vm222_vm1, %v6826_v57 }
  0x34   : > { %1540 = vrot.lane.b32.xlu1 %v6907_v6, %s6813_s23  ;;  %292 = vst.msk [vmem:[#allocation3 + $0x28] sm:$0xff] %vm222_vm1, %v6826_v57  ;;  %293 = vst.msk [vmem:[#allocation3 + $0x30] sm:$0xff] %vm222_vm1, %v6826_v57 }
  0x35   : > { %294 = vst.msk [vmem:[#allocation3 + $0x38] sm:$0xff] %vm222_vm1, %v6826_v57  ;;  %295 = vst.msk [vmem:[#allocation3 + $0x40] sm:$0xff] %vm222_vm1, %v6826_v57 }
  0x36   : > { %1542 = vrot.lane.b32.xlu0 %v6910_v7, %s6813_s23  ;;  %296 = vst.msk [vmem:[#allocation3 + $0x48] sm:$0xff] %vm222_vm1, %v6826_v57  ;;  %297 = vst.msk [vmem:[#allocation3 + $0x50] sm:$0xff] %vm222_vm1, %v6826_v57 }
  0x37   : > { %298 = vst.msk [vmem:[#allocation3 + $0x58] sm:$0xff] %vm222_vm1, %v6826_v57  ;;  %299 = vst.msk [vmem:[#allocation3 + $0x60] sm:$0xff] %vm222_vm1, %v6826_v57 }
  0x38   : > { %1544 = vrot.lane.b32.xlu1 %v6917_v8, %s6813_s23  ;;  %300 = vst.msk [vmem:[#allocation3 + $0x68] sm:$0xff] %vm222_vm1, %v6826_v57  ;;  %301 = vst.msk [vmem:[#allocation3 + $0x70] sm:$0xff] %vm222_vm1, %v6826_v57 }
  0x39   : > { %302 = vst.msk [vmem:[#allocation3 + $0x78] sm:$0xff] %vm222_vm1, %v6826_v57  ;;  %303 = vst.msk [vmem:[#allocation3 + $0x80] sm:$0xff] %vm222_vm1, %v6826_v57 }
  0x3a   : > { %1547 = vrot.lane.b32.xlu0 %v6877_v0, %s6813_s23  ;;  %304 = vst.msk [vmem:[#allocation3 + $0x88] sm:$0xff] %vm222_vm1, %v6826_v57  ;;  %305 = vst.msk [vmem:[#allocation3 + $0x90] sm:$0xff] %vm222_vm1, %v6826_v57 }
  0x3b   : > { %306 = vst.msk [vmem:[#allocation3 + $0x98] sm:$0xff] %vm222_vm1, %v6826_v57  ;;  %307 = vst.msk [vmem:[#allocation3 + $0xa0] sm:$0xff] %vm222_vm1, %v6826_v57 }
  0x3c   : > { %1915 = vrot.lane.b32.xlu1 %v6877_v0, %s6816_s26  ;;  %308 = vst.msk [vmem:[#allocation3 + $0xa8] sm:$0xff] %vm222_vm1, %v6826_v57  ;;  %309 = vst.msk [vmem:[#allocation3 + $0xb0] sm:$0xff] %vm222_vm1, %v6826_v57 }
  0x3d   : > { %310 = vst.msk [vmem:[#allocation3 + $0xb8] sm:$0xff] %vm222_vm1, %v6826_v57  ;;  %311 = vst.msk [vmem:[#allocation3 + $0xc0] sm:$0xff] %vm222_vm1, %v6826_v57 }
  0x3e   : > { %2088 = vrot.lane.b32.xlu0 %v6879_v1, %s6815_s25  ;;  %312 = vst.msk [vmem:[#allocation3 + $0xc8] sm:$0xff] %vm222_vm1, %v6826_v57  ;;  %313 = vst.msk [vmem:[#allocation3 + $0xd0] sm:$0xff] %vm222_vm1, %v6826_v57 }
  0x3f   : > { %314 = vst.msk [vmem:[#allocation3 + $0xd8] sm:$0xff] %vm222_vm1, %v6826_v57  ;;  %315 = vst.msk [vmem:[#allocation3 + $0xe0] sm:$0xff] %vm222_vm1, %v6826_v57 }
  0x40   : > { %2090 = vrot.lane.b32.xlu1 %v6887_v2, %s6815_s25  ;;  %316 = vst.msk [vmem:[#allocation3 + $0xe8] sm:$0xff] %vm222_vm1, %v6826_v57  ;;  %317 = vst.msk [vmem:[#allocation3 + $0xf0] sm:$0xff] %vm222_vm1, %v6826_v57 }
  0x41   : > { %318 = vst.msk [vmem:[#allocation3 + $0xf8] sm:$0xff] %vm222_vm1, %v6826_v57  ;;  %319 = vst.msk [vmem:[#allocation3 + $0x100] sm:$0xff] %vm222_vm1, %v6826_v57 }
  0x42   : > { %2092 = vrot.lane.b32.xlu0 %v6890_v3, %s6815_s25  ;;  %320 = vst.msk [vmem:[#allocation3 + $0x108] sm:$0xff] %vm222_vm1, %v6826_v57  ;;  %321 = vst.msk [vmem:[#allocation3 + $0x110] sm:$0xff] %vm222_vm1, %v6826_v57 }
  0x43   : > { %322 = vst.msk [vmem:[#allocation3 + $0x118] sm:$0xff] %vm222_vm1, %v6826_v57  ;;  %323 = vst.msk [vmem:[#allocation3 + $0x120] sm:$0xff] %vm222_vm1, %v6826_v57 }
  0x44   : > { %2094 = vrot.lane.b32.xlu1 %v6897_v4, %s6815_s25  ;;  %324 = vst.msk [vmem:[#allocation3 + $0x128] sm:$0xff] %vm222_vm1, %v6826_v57  ;;  %325 = vst.msk [vmem:[#allocation3 + $0x130] sm:$0xff] %vm222_vm1, %v6826_v57 }
  0x45   : > { %326 = vst.msk [vmem:[#allocation3 + $0x138] sm:$0xff] %vm222_vm1, %v6826_v57  ;;  %327 = vst.msk [vmem:[#allocation3 + $0x140] sm:$0xff] %vm222_vm1, %v6826_v57 }
  0x46   : > { %2096 = vrot.lane.b32.xlu0 %v6900_v5, %s6815_s25  ;;  %328 = vst.msk [vmem:[#allocation3 + $0x148] sm:$0xff] %vm222_vm1, %v6826_v57  ;;  %329 = vst.msk [vmem:[#allocation3 + $0x150] sm:$0xff] %vm222_vm1, %v6826_v57 }
  0x47   : > { %330 = vst.msk [vmem:[#allocation3 + $0x158] sm:$0xff] %vm222_vm1, %v6826_v57  ;;  %331 = vst.msk [vmem:[#allocation3 + $0x160] sm:$0xff] %vm222_vm1, %v6826_v57 }
  0x48   : > { %2098 = vrot.lane.b32.xlu1 %v6907_v6, %s6815_s25  ;;  %332 = vst.msk [vmem:[#allocation3 + $0x168] sm:$0xff] %vm222_vm1, %v6826_v57  ;;  %333 = vst.msk [vmem:[#allocation3 + $0x170] sm:$0xff] %vm222_vm1, %v6826_v57 }
  0x49   : > { %334 = vst.msk [vmem:[#allocation3 + $0x178] sm:$0xff] %vm222_vm1, %v6826_v57  ;;  %335 = vst.msk [vmem:[#allocation3 + $0x180] sm:$0xff] %vm222_vm1, %v6826_v57 }
  0x4a   : > { %2100 = vrot.lane.b32.xlu0 %v6910_v7, %s6815_s25  ;;  %336 = vst.msk [vmem:[#allocation3 + $0x188] sm:$0xff] %vm222_vm1, %v6826_v57  ;;  %337 = vst.msk [vmem:[#allocation3 + $0x190] sm:$0xff] %vm222_vm1, %v6826_v57 }
  0x4b   : > { %338 = vst.msk [vmem:[#allocation3 + $0x198] sm:$0xff] %vm222_vm1, %v6826_v57  ;;  %339 = vst.msk [vmem:[#allocation3 + $0x1a0] sm:$0xff] %vm222_vm1, %v6826_v57 }
  0x4c   : > { %2102 = vrot.lane.b32.xlu1 %v6917_v8, %s6815_s25  ;;  %340 = vst.msk [vmem:[#allocation3 + $0x1a8] sm:$0xff] %vm222_vm1, %v6826_v57  ;;  %341 = vst.msk [vmem:[#allocation3 + $0x1b0] sm:$0xff] %vm222_vm1, %v6826_v57 }
  0x4d   : > { %342 = vst.msk [vmem:[#allocation3 + $0x1b8] sm:$0xff] %vm222_vm1, %v6826_v57  ;;  %343 = vst.msk [vmem:[#allocation3 + $0x1c0] sm:$0xff] %vm222_vm1, %v6826_v57 }
  0x4e   : > { %2105 = vrot.lane.b32.xlu0 %v6877_v0, %s6815_s25  ;;  %344 = vst.msk [vmem:[#allocation3 + $0x1c8] sm:$0xff] %vm222_vm1, %v6826_v57  ;;  %345 = vst.msk [vmem:[#allocation3 + $0x1d0] sm:$0xff] %vm222_vm1, %v6826_v57 }
  0x4f   : > { %346 = vst.msk [vmem:[#allocation3 + $0x1d8] sm:$0xff] %vm222_vm1, %v6826_v57  ;;  %347 = vst.msk [vmem:[#allocation3 + $0x1e0] sm:$0xff] %vm222_vm1, %v6826_v57 }
  0x50   : > { %2473 = vrot.lane.b32.xlu1 %v6877_v0, %s6818_s28  ;;  %348 = vst.msk [vmem:[#allocation3 + $0x1e8] sm:$0xff] %vm222_vm1, %v6826_v57  ;;  %349 = vst.msk [vmem:[#allocation3 + $0x1f0] sm:$0xff] %vm222_vm1, %v6826_v57 }
  0x51   : > { %350 = vst.msk [vmem:[#allocation3 + $0x1f8] sm:$0xff] %vm222_vm1, %v6826_v57 }
  0x52   : > { %2646 = vrot.lane.b32.xlu0 %v6879_v1, %s6817_s27  ;;  %354 = vst.msk [vmem:[#allocation4 + $0x10] sm:$0xff] %vm351_vm0, %v6826_v57  ;;  %355 = vst.msk [vmem:[#allocation4 + $0x18] sm:$0xff] %vm351_vm0, %v6826_v57 }
  0x53   : > { %356 = vst.msk [vmem:[#allocation4 + $0x20] sm:$0xff] %vm351_vm0, %v6826_v57  ;;  %357 = vst.msk [vmem:[#allocation4 + $0x28] sm:$0xff] %vm351_vm0, %v6826_v57 }
  0x54   : > { %2648 = vrot.lane.b32.xlu1 %v6887_v2, %s6817_s27  ;;  %358 = vst.msk [vmem:[#allocation4 + $0x30] sm:$0xff] %vm351_vm0, %v6826_v57  ;;  %359 = vst.msk [vmem:[#allocation4 + $0x38] sm:$0xff] %vm351_vm0, %v6826_v57 }
  0x55   : > { %360 = vst.msk [vmem:[#allocation4 + $0x40] sm:$0xff] %vm351_vm0, %v6826_v57  ;;  %361 = vst.msk [vmem:[#allocation4 + $0x48] sm:$0xff] %vm351_vm0, %v6826_v57 }
  0x56   : > { %2650 = vrot.lane.b32.xlu0 %v6890_v3, %s6817_s27  ;;  %362 = vst.msk [vmem:[#allocation4 + $0x50] sm:$0xff] %vm351_vm0, %v6826_v57  ;;  %363 = vst.msk [vmem:[#allocation4 + $0x58] sm:$0xff] %vm351_vm0, %v6826_v57 }
  0x57   : > { %364 = vst.msk [vmem:[#allocation4 + $0x60] sm:$0xff] %vm351_vm0, %v6826_v57  ;;  %365 = vst.msk [vmem:[#allocation4 + $0x68] sm:$0xff] %vm351_vm0, %v6826_v57 }
  0x58   : > { %2652 = vrot.lane.b32.xlu1 %v6897_v4, %s6817_s27  ;;  %366 = vst.msk [vmem:[#allocation4 + $0x70] sm:$0xff] %vm351_vm0, %v6826_v57  ;;  %367 = vst.msk [vmem:[#allocation4 + $0x78] sm:$0xff] %vm351_vm0, %v6826_v57 }
  0x59   : > { %368 = vst.msk [vmem:[#allocation4 + $0x80] sm:$0xff] %vm351_vm0, %v6826_v57  ;;  %369 = vst.msk [vmem:[#allocation4 + $0x88] sm:$0xff] %vm351_vm0, %v6826_v57 }
  0x5a   : > { %2654 = vrot.lane.b32.xlu0 %v6900_v5, %s6817_s27  ;;  %370 = vst.msk [vmem:[#allocation4 + $0x90] sm:$0xff] %vm351_vm0, %v6826_v57  ;;  %371 = vst.msk [vmem:[#allocation4 + $0x98] sm:$0xff] %vm351_vm0, %v6826_v57 }
  0x5b   : > { %372 = vst.msk [vmem:[#allocation4 + $0xa0] sm:$0xff] %vm351_vm0, %v6826_v57  ;;  %373 = vst.msk [vmem:[#allocation4 + $0xa8] sm:$0xff] %vm351_vm0, %v6826_v57 }
  0x5c   : > { %2656 = vrot.lane.b32.xlu1 %v6907_v6, %s6817_s27  ;;  %374 = vst.msk [vmem:[#allocation4 + $0xb0] sm:$0xff] %vm351_vm0, %v6826_v57  ;;  %375 = vst.msk [vmem:[#allocation4 + $0xb8] sm:$0xff] %vm351_vm0, %v6826_v57 }
  0x5d   : > { %376 = vst.msk [vmem:[#allocation4 + $0xc0] sm:$0xff] %vm351_vm0, %v6826_v57  ;;  %377 = vst.msk [vmem:[#allocation4 + $0xc8] sm:$0xff] %vm351_vm0, %v6826_v57 }
  0x5e   : > { %2658 = vrot.lane.b32.xlu0 %v6910_v7, %s6817_s27  ;;  %378 = vst.msk [vmem:[#allocation4 + $0xd0] sm:$0xff] %vm351_vm0, %v6826_v57  ;;  %379 = vst.msk [vmem:[#allocation4 + $0xd8] sm:$0xff] %vm351_vm0, %v6826_v57 }
  0x5f   : > { %380 = vst.msk [vmem:[#allocation4 + $0xe0] sm:$0xff] %vm351_vm0, %v6826_v57  ;;  %381 = vst.msk [vmem:[#allocation4 + $0xe8] sm:$0xff] %vm351_vm0, %v6826_v57 }
  0x60   : > { %2660 = vrot.lane.b32.xlu1 %v6917_v8, %s6817_s27  ;;  %382 = vst.msk [vmem:[#allocation4 + $0xf0] sm:$0xff] %vm351_vm0, %v6826_v57  ;;  %383 = vst.msk [vmem:[#allocation4 + $0xf8] sm:$0xff] %vm351_vm0, %v6826_v57 }
  0x61   : > { %384 = vst.msk [vmem:[#allocation4 + $0x100] sm:$0xff] %vm351_vm0, %v6826_v57  ;;  %385 = vst.msk [vmem:[#allocation4 + $0x108] sm:$0xff] %vm351_vm0, %v6826_v57 }
  0x62   : > { %2663 = vrot.lane.b32.xlu0 %v6877_v0, %s6817_s27  ;;  %386 = vst.msk [vmem:[#allocation4 + $0x110] sm:$0xff] %vm351_vm0, %v6826_v57  ;;  %387 = vst.msk [vmem:[#allocation4 + $0x118] sm:$0xff] %vm351_vm0, %v6826_v57 }
  0x63   : > { %388 = vst.msk [vmem:[#allocation4 + $0x120] sm:$0xff] %vm351_vm0, %v6826_v57  ;;  %389 = vst.msk [vmem:[#allocation4 + $0x128] sm:$0xff] %vm351_vm0, %v6826_v57 }
  0x64   : > { %3031 = vrot.lane.b32.xlu1 %v6877_v0, %s6820_s30  ;;  %390 = vst.msk [vmem:[#allocation4 + $0x130] sm:$0xff] %vm351_vm0, %v6826_v57  ;;  %391 = vst.msk [vmem:[#allocation4 + $0x138] sm:$0xff] %vm351_vm0, %v6826_v57 }
  0x65   : > { %392 = vst.msk [vmem:[#allocation4 + $0x140] sm:$0xff] %vm351_vm0, %v6826_v57  ;;  %393 = vst.msk [vmem:[#allocation4 + $0x148] sm:$0xff] %vm351_vm0, %v6826_v57 }
  0x66   : > { %3204 = vrot.lane.b32.xlu0 %v6879_v1, %s6819_s29  ;;  %394 = vst.msk [vmem:[#allocation4 + $0x150] sm:$0xff] %vm351_vm0, %v6826_v57  ;;  %395 = vst.msk [vmem:[#allocation4 + $0x158] sm:$0xff] %vm351_vm0, %v6826_v57 }
  0x67   : > { %396 = vst.msk [vmem:[#allocation4 + $0x160] sm:$0xff] %vm351_vm0, %v6826_v57  ;;  %397 = vst.msk [vmem:[#allocation4 + $0x168] sm:$0xff] %vm351_vm0, %v6826_v57 }
  0x68   : > { %3206 = vrot.lane.b32.xlu1 %v6887_v2, %s6819_s29  ;;  %398 = vst.msk [vmem:[#allocation4 + $0x170] sm:$0xff] %vm351_vm0, %v6826_v57  ;;  %399 = vst.msk [vmem:[#allocation4 + $0x178] sm:$0xff] %vm351_vm0, %v6826_v57 }
  0x69   : > { %400 = vst.msk [vmem:[#allocation4 + $0x180] sm:$0xff] %vm351_vm0, %v6826_v57  ;;  %401 = vst.msk [vmem:[#allocation4 + $0x188] sm:$0xff] %vm351_vm0, %v6826_v57 }
  0x6a   : > { %3208 = vrot.lane.b32.xlu0 %v6890_v3, %s6819_s29  ;;  %402 = vst.msk [vmem:[#allocation4 + $0x190] sm:$0xff] %vm351_vm0, %v6826_v57  ;;  %403 = vst.msk [vmem:[#allocation4 + $0x198] sm:$0xff] %vm351_vm0, %v6826_v57 }
  0x6b   : > { %404 = vst.msk [vmem:[#allocation4 + $0x1a0] sm:$0xff] %vm351_vm0, %v6826_v57  ;;  %405 = vst.msk [vmem:[#allocation4 + $0x1a8] sm:$0xff] %vm351_vm0, %v6826_v57 }
  0x6c   : > { %3210 = vrot.lane.b32.xlu1 %v6897_v4, %s6819_s29  ;;  %406 = vst.msk [vmem:[#allocation4 + $0x1b0] sm:$0xff] %vm351_vm0, %v6826_v57  ;;  %407 = vst.msk [vmem:[#allocation4 + $0x1b8] sm:$0xff] %vm351_vm0, %v6826_v57 }
  0x6d   : > { %408 = vst.msk [vmem:[#allocation4 + $0x1c0] sm:$0xff] %vm351_vm0, %v6826_v57  ;;  %409 = vst.msk [vmem:[#allocation4 + $0x1c8] sm:$0xff] %vm351_vm0, %v6826_v57 }
  0x6e   : > { %3212 = vrot.lane.b32.xlu0 %v6900_v5, %s6819_s29  ;;  %410 = vst.msk [vmem:[#allocation4 + $0x1d0] sm:$0xff] %vm351_vm0, %v6826_v57  ;;  %411 = vst.msk [vmem:[#allocation4 + $0x1d8] sm:$0xff] %vm351_vm0, %v6826_v57 }
  0x6f   : > { %412 = vst.msk [vmem:[#allocation4 + $0x1e0] sm:$0xff] %vm351_vm0, %v6826_v57  ;;  %413 = vst.msk [vmem:[#allocation4 + $0x1e8] sm:$0xff] %vm351_vm0, %v6826_v57 }
  0x70   : > { %3214 = vrot.lane.b32.xlu1 %v6907_v6, %s6819_s29  ;;  %414 = vst.msk [vmem:[#allocation4 + $0x1f0] sm:$0xff] %vm351_vm0, %v6826_v57  ;;  %415 = vst.msk [vmem:[#allocation4 + $0x1f8] sm:$0xff] %vm351_vm0, %v6826_v57 }
  0x72   : > { %3216 = vrot.lane.b32.xlu0 %v6910_v7, %s6819_s29 }
  0x74   : > { %3218 = vrot.lane.b32.xlu1 %v6917_v8, %s6819_s29 }
  0x76   : > { %3221 = vrot.lane.b32.xlu0 %v6877_v0, %s6819_s29 }
  0x78   : > { %3764 = vrot.lane.b32.xlu1 %v6887_v2, %s6821_s3 }
  0x7a   : > { %3779 = vrot.lane.b32.xlu0 %v6877_v0, %s6821_s3 }
  0x7c   : > { %3768 = vrot.lane.b32.xlu1 %v6897_v4, %s6821_s3 }
  0x7e   : > { %3762 = vrot.lane.b32.xlu0 %v6879_v1, %s6821_s3 }
  0x80   : > { %3772 = vrot.lane.b32.xlu1 %v6907_v6, %s6821_s3 }
  0x82   : > { %3766 = vrot.lane.b32.xlu0 %v6890_v3, %s6821_s3 }
  0x84   : > { %3776 = vrot.lane.b32.xlu1 %v6917_v8, %s6821_s3 }
  0x86   : > { %3770 = vrot.lane.b32.xlu0 %v6900_v5, %s6821_s3  ;;  %v800_v10 = vpop.permute.xlu1 %799 }
  0x87   : > { %6148 = vmatprep.subr.mxu1 %v800_v10 }
  0x88   : > { %v6977_v9 = vpop.permute.xlu0 %972  ;;  %6149 = vmatpush3.msra.mxu1 %v800_v10  ;;  %4320 = vrot.lane.b32.xlu1 %v6879_v1, %s6822_s4 }
  0x8a   : > { %3774 = vrot.lane.b32.xlu0 %v6910_v7, %s6821_s3  ;;  %v6984_v12 = vpop.permute.xlu1 %974 }
  0x8c   : > { %v6982_v11 = vpop.permute.xlu0 %976  ;;  %4324 = vrot.lane.b32.xlu1 %v6890_v3, %s6822_s4 }
  0x8e   : > { %4337 = vrot.lane.b32.xlu0 %v6877_v0, %s6822_s4  ;;  %v6992_v14 = vpop.permute.xlu1 %978 }
  0x90   : > { %v6990_v13 = vpop.permute.xlu0 %980  ;;  %4328 = vrot.lane.b32.xlu1 %v6900_v5, %s6822_s4 }
  0x92   : > { %4322 = vrot.lane.b32.xlu0 %v6887_v2, %s6822_s4  ;;  %v7128_v17 = vpop.permute.xlu1 %982 }
  0x94   : > { %v7126_v16 = vpop.permute.xlu0 %984  ;;  %4332 = vrot.lane.b32.xlu1 %v6910_v7, %s6822_s4 }
  0x96   : > { %4326 = vrot.lane.b32.xlu0 %v6897_v4, %s6822_s4  ;;  %v7138_v19 = vpop.permute.xlu1 %986 }
  0x98   : > { %v7134_v18 = vpop.permute.xlu0 %989  ;;  %3589 = vrot.lane.b32.xlu1 %v6877_v0, %s6824_s5 }
  0x99   : > { %6162 = vmatprep.subr.msk.mxu1 %vm351_vm0, %v7134_v18 }
  0x9a   : > { %4330 = vrot.lane.b32.xlu0 %v6907_v6, %s6822_s4  ;;  %v1358_v20 = vpop.permute.xlu1 %1357 }
  0x9b   : > { %6176 = vmatprep.subr.mxu0 %v1358_v20 }
  0x9c   : > { %6177 = vmatpush3.msra.mxu0 %v1358_v20  ;;  %v7157_v26 = vpop.permute.xlu0 %1530 }
  0x9e   : > { %4334 = vrot.lane.b32.xlu0 %v6917_v8, %s6822_s4  ;;  %v7146_v21 = vpop.permute.xlu1 %1532 }
  0xa0   : > { %v7159_v27 = vpop.permute.xlu0 %1534 }
  0xa2   : > { %v7148_v22 = vpop.permute.xlu1 %1536 }
  0xa4   : > { %v7161_v28 = vpop.permute.xlu0 %1538 }
  0xa6   : > { %v7150_v23 = vpop.permute.xlu1 %1540 }
  0xa8   : > { %v7163_v29 = vpop.permute.xlu0 %1542 }
  0xaa   : > { %v7152_v24 = vpop.permute.xlu1 %1544 }
  0xac   : > { %v7165_v30 = vpop.permute.xlu0 %1547 }
  0xae   : > { %v7154_v25 = vpop.permute.xlu1 %1915 }
  0xaf   : > { %9551 = vst [vmem:[#allocation5_spill] sm:$0xff] %v7154_v25  ;;  %6204 = vmatprep.subr.mxu0 %v7154_v25 }
  0xb0   : > { %v7167_v31 = vpop.permute.xlu0 %2088 }
  0xb2   : > { %v7195_v45 = vpop.permute.xlu1 %2090 }
  0xb4   : > { %v7171_v33 = vpop.permute.xlu0 %2092 }
  0xb6   : > { %v7209_v52 = vpop.permute.xlu1 %2094 }
  0xb8   : > { %v7185_v40 = vpop.permute.xlu0 %2096 }
  0xba   : > { %v7213_v55 = vpop.permute.xlu1 %2098 }
  0xbc   : > { %v7201_v48 = vpop.permute.xlu0 %2100 }
  0xbe   : > { %v7473_v58 = vpop.permute.xlu1 %2102 }
  0xc0   : > { %v7211_v54 = vpop.permute.xlu0 %2105 }
  0xc2   : > { %v7477_v60 = vpop.permute.xlu1 %2473 }
  0xc3   : > { %9552 = vst [vmem:[#allocation6_spill] sm:$0xff] %v7477_v60 }
  0xc4   : > { %v7215_v56 = vpop.permute.xlu0 %2646 }
  0xc6   : > { %v7481_v62 = vpop.permute.xlu1 %2648 }
  0xc8   : > { %v7475_v59 = vpop.permute.xlu0 %2650 }
  0xca   : > { %v7485_v0 = vpop.permute.xlu1 %2652 }
  0xcc   : > { %v7479_v61 = vpop.permute.xlu0 %2654 }
  0xce   : > { %v7489_v2 = vpop.permute.xlu1 %2656 }
  0xcf   : > { %9554 = vst [vmem:[#allocation8_spill] sm:$0xff] %v7489_v2 }
  0xd0   : > { %v7483_v63 = vpop.permute.xlu0 %2658 }
  0xd1   : > { %9553 = vst [vmem:[#allocation7_spill] sm:$0xff] %v7483_v63 }
  0xd2   : > { %v7493_v4 = vpop.permute.xlu1 %2660 }
  0xd3   : > { %9556 = vst [vmem:[#allocation10_spill] sm:$0xff] %v7493_v4 }
  0xd4   : > { %v7487_v1 = vpop.permute.xlu0 %2663 }
  0xd6   : > { %v7497_v6 = vpop.permute.xlu1 %3031 }
  0xd7   : > { %9558 = vst [vmem:[#allocation12_spill] sm:$0xff] %v7497_v6 }
  0xd8   : > { %v7491_v3 = vpop.permute.xlu0 %3204 }
  0xd9   : > { %9555 = vst [vmem:[#allocation9_spill] sm:$0xff] %v7491_v3 }
  0xda   : > { %v7501_v8 = vpop.permute.xlu1 %3206 }
  0xdb   : > { %9560 = vst [vmem:[#allocation14_spill] sm:$0xff] %v7501_v8  ;;  %v563_v8 = vld [vmem:[#allocation2 + $0x28] sm:$0xff] }
  0xdc   : > { %v7495_v5 = vpop.permute.xlu0 %3208 }
  0xdd   : > { %9557 = vst [vmem:[#allocation11_spill] sm:$0xff] %v7495_v5 }
  0xde   : > { %v7505_v15 = vpop.permute.xlu1 %3210 }
  0xdf   : > { %9562 = vst [vmem:[#allocation16_spill] sm:$0xff] %v7505_v15  ;;  %v560_v15 = vld [vmem:[#allocation2 + $0x10] sm:$0xff] }
  0xe0   : > { %v7499_v7 = vpop.permute.xlu0 %3212 }
  0xe1   : > { %9559 = vst [vmem:[#allocation13_spill] sm:$0xff] %v7499_v7  ;;  %v561_v7 = vld [vmem:[#allocation2 + $0x18] sm:$0xff] }
  0xe4   : > { %v7503_v10 = vpop.permute.xlu0 %3216 }
  0xe5   : > { %9561 = vst [vmem:[#allocation15_spill] sm:$0xff] %v7503_v10 }
  0xe8   : > { %v7507_v20 = vpop.permute.xlu0 %3221 }
  0xeb   : > { %v7169_v32 = vpop.f32.mrb[0].mxu0 }
  0xec   : > { %v7173_v34 = vpop.f32.mrb[1].mxu0  ;;  %v569_v35 = vsel %vm351_vm0, %v7169_v32, -inf }
  0xed   : > { %570 = vmax.xlane.f32.xlu0 %v569_v35  ;;  %v566_v38 = vsel %vm351_vm0, %v7173_v34, -inf  ;;  %v7509_v35 = vpop.permute.xlu1 %3214 }
  0xee   : > { %9563 = vst [vmem:[#allocation17_spill] sm:$0xff] %v7509_v35 }
  0xef   : > { %v7177_v36 = vpop.f32.mrb[2].mxu0 }
  0xf0   : > { %v7179_v37 = vpop.f32.mrb[3].mxu0  ;;  %v575_v39 = vsel %vm351_vm0, %v7177_v36, -inf }
  0xf1   : > { %567 = vmax.xlane.f32.xlu0 %v566_v38  ;;  %576 = vmax.xlane.f32.xlu1 %v575_v39  ;;  %v572_v42 = vsel %vm351_vm0, %v7179_v37, -inf  ;;  %v7511_v38 = vpop.permute.xlu0 %3779  ;;  %v7513_v39 = vpop.permute.xlu1 %3218 }
  0xf2   : > { %9564 = vst [vmem:[#allocation18_spill] sm:$0xff] %v7513_v39 }
  0xf3   : > { %v7187_v41 = vpop.f32.mrb[4].mxu0 }
  0xf4   : > { %v7191_v43 = vpop.f32.mrb[5].mxu0  ;;  %v581_v46 = vsel %vm351_vm0, %v7187_v41, -inf }
  0xf5   : > { %573 = vmax.xlane.f32.xlu1 %v572_v42  ;;  %v578_v44 = vsel %vm351_vm0, %v7191_v43, -inf  ;;  %v7515_v42 = vpop.permute.xlu0 %3762 }
  0xf6   : > { %579 = vmax.xlane.f32.xlu0 %v578_v44  ;;  %9565 = vst [vmem:[#allocation19_spill] sm:$0xff] %v7515_v42  ;;  %v7517_v44 = vpop.permute.xlu1 %3764 }
  0xf7   : > { %v7199_v47 = vpop.f32.mrb[6].mxu0  ;;  %9566 = vst [vmem:[#allocation20_spill] sm:$0xff] %v7517_v44 }
  0xf8   : > { %v7203_v49 = vpop.f32.mrb[7].mxu0  ;;  %v587_v51 = vsel %vm351_vm0, %v7199_v47, -inf }
  0xf9   : > { %582 = vmax.xlane.f32.xlu1 %v581_v46  ;;  %v584_v50 = vsel %vm351_vm0, %v7203_v49, -inf  ;;  %v7519_v46 = vpop.permute.xlu0 %3766 }
  0xfa   : > { %585 = vmax.xlane.f32.xlu0 %v584_v50  ;;  %9567 = vst [vmem:[#allocation21_spill] sm:$0xff] %v7519_v46  ;;  %v7521_v50 = vpop.permute.xlu1 %3768 }
  0xfb   : > { %9568 = vst [vmem:[#allocation22_spill] sm:$0xff] %v7521_v50 }
  0xfd   : > { %588 = vmax.xlane.f32.xlu1 %v587_v51  ;;  %v7523_v51 = vpop.permute.xlu0 %3770 }
  0xfe   : > { %9569 = vst [vmem:[#allocation23_spill] sm:$0xff] %v7523_v51  ;;  %v7525_v53 = vpop.permute.xlu1 %3772 }
  0xff   : > { %9570 = vst [vmem:[#allocation24_spill] sm:$0xff] %v7525_v53 }
 0x101   : > { %v7527_v57 = vpop.permute.xlu0 %3774 }
 0x102   : > { %9571 = vst [vmem:[#allocation25_spill] sm:$0xff] %v7527_v57  ;;  %v7529_v6 = vpop.permute.xlu1 %3776  ;;  %v559_v57 = vld [vmem:[#allocation2 + $0x8] sm:$0xff] }
 0x103   : > { %9572 = vst [vmem:[#allocation26_spill] sm:$0xff] %v7529_v6 }
 0x105   : > { %v7531_v60 = vpop.permute.xlu0 %4337 }
 0x106   : > { %9573 = vst [vmem:[#allocation27_spill] sm:$0xff] %v7531_v60  ;;  %v7533_v25 = vpop.permute.xlu1 %4320 }
 0x107   : > { %9574 = vst [vmem:[#allocation28_spill] sm:$0xff] %v7533_v25  ;;  %v558_v25 = vld [vmem:[#allocation2] sm:$0xff] }
 0x109   : > { %v7535_v39 = vpop.permute.xlu0 %4322 }
 0x10a   : > { %9575 = vst [vmem:[#allocation29_spill] sm:$0xff] %v7535_v39  ;;  %v7537_v42 = vpop.permute.xlu1 %4324 }
 0x10b   : > { %9576 = vst [vmem:[#allocation30_spill] sm:$0xff] %v7537_v42 }
 0x10d   : > { %v7539_v44 = vpop.permute.xlu0 %4326 }
 0x10e   : > { %9577 = vst [vmem:[#allocation31_spill] sm:$0xff] %v7539_v44  ;;  %v7541_v46 = vpop.permute.xlu1 %4328 }
 0x10f   : > { %9578 = vst [vmem:[#allocation32_spill] sm:$0xff] %v7541_v46 }
 0x111   : > { %v7543_v50 = vpop.permute.xlu0 %4330 }
 0x112   : > { %9579 = vst [vmem:[#allocation33_spill] sm:$0xff] %v7543_v50  ;;  %v7545_v51 = vpop.permute.xlu1 %4332 }
 0x113   : > { %9580 = vst [vmem:[#allocation34_spill] sm:$0xff] %v7545_v51 }
 0x115   : > { %v7547_v53 = vpop.permute.xlu0 %4334 }
 0x116   : > { %9581 = vst [vmem:[#allocation35_spill] sm:$0xff] %v7547_v53  ;;  %v7549_v6 = vpop.permute.xlu1 %3589 }
 0x117   : > { %9582 = vst [vmem:[#allocation36_spill] sm:$0xff] %v7549_v6  ;;  %v562_v6 = vld [vmem:[#allocation2 + $0x20] sm:$0xff] }
 0x17a   : > { %v571_v10 = vpop.xlane.xlu0 %570 }
 0x17b   : > { %v591_v35 = vmax.f32 %v559_v57, %v571_v10 }
 0x17d   : > { %948 = vst.msk [vmem:[#allocation2 + $0x8] sm:$0xff] %vm222_vm1, %v591_v35  ;;  %629 = vperm.xlu1 %6400, %v591_v35  }
 0x17e   : > { %v568_v42 = vpop.xlane.xlu0 %567  ;;  %v577_v44 = vpop.xlane.xlu1 %576 }
 0x17f   : > { %v590_v39 = vmax.f32 %v558_v25, %v568_v42  ;;  %v593_v46 = vmax.f32 %v561_v7, %v577_v44  ;;  %v599_v42 = vsub.f32 %v559_v57, %v591_v35 }
 0x181   : > { %v598_v50 = vsub.f32 %v558_v25, %v590_v39  ;;  %947 = vst.msk [vmem:[#allocation2] sm:$0xff] %vm222_vm1, %v590_v39  ;;  %v601_v51 = vsub.f32 %v561_v7, %v593_v46  ;;  %950 = vst.msk [vmem:[#allocation2 + $0x18] sm:$0xff] %vm222_vm1, %v593_v46  ;;  %639 = vperm.xlu1 %6400, %v593_v46   ;;  %624 = vperm.xlu0 %6401, %v590_v39   ;;  %v564_v25 = vld [vmem:[#allocation2 + $0x30] sm:$0xff]  ;;  %v565_v39 = vld [vmem:[#allocation2 + $0x38] sm:$0xff] }
 0x182   : > { %v574_v10 = vpop.xlane.xlu1 %573 }
 0x183   : > { %v606_v53 = vmul.f32 1.442695, %v598_v50  ;;  %v592_v60 = vmax.f32 %v560_v15, %v574_v10  ;;  %v580_v5 = vpop.xlane.xlu0 %579  ;;  %v612_v4 = vmul.f32 1.442695, %v601_v51 }
 0x184   : > { %v594_v3 = vmax.f32 %v562_v6, %v580_v5  ;;  %v608_v5 = vmul.f32 1.442695, %v599_v42 }
 0x185   : > { %6402 = vpow2.f32 %v606_v53  ;;  %949 = vst.msk [vmem:[#allocation2 + $0x10] sm:$0xff] %vm222_vm1, %v592_v60  ;;  %634 = vperm.xlu1 %6400, %v592_v60   ;;  %v600_v53 = vsub.f32 %v560_v15, %v592_v60 }
 0x186   : > { %v583_v44 = vpop.xlane.xlu1 %582  ;;  %951 = vst.msk [vmem:[#allocation2 + $0x20] sm:$0xff] %vm222_vm1, %v594_v3  ;;  %6404 = vpow2.f32 %v612_v4 }
 0x187   : > { %v595_v7 = vmax.f32 %v563_v8, %v583_v44  ;;  %v586_v46 = vpop.xlane.xlu0 %585  ;;  %v610_v57 = vmul.f32 1.442695, %v600_v53  ;;  %v602_v44 = vsub.f32 %v562_v6, %v594_v3 }
 0x188   : > { %v596_v63 = vmax.f32 %v564_v25, %v586_v46 }
 0x189   : > { %v603_v50 = vsub.f32 %v563_v8, %v595_v7  ;;  %952 = vst.msk [vmem:[#allocation2 + $0x28] sm:$0xff] %vm222_vm1, %v595_v7  ;;  %649 = vperm.xlu1 %6400, %v595_v7   ;;  %v614_v60 = vmul.f32 1.442695, %v602_v44 }
 0x18a   : > { %v589_v51 = vpop.xlane.xlu1 %588  ;;  %953 = vst.msk [vmem:[#allocation2 + $0x30] sm:$0xff] %vm222_vm1, %v596_v63  ;;  %v604_v15 = vsub.f32 %v564_v25, %v596_v63 }
 0x18b   : > { %v616_v10 = vmul.f32 1.442695, %v603_v50  ;;  %v597_v2 = vmax.f32 %v565_v39, %v589_v51 }
 0x18c   : > { %v618_v7 = vmul.f32 1.442695, %v604_v15 }
 0x18d   : > { %6406 = vpow2.f32 %v616_v10  ;;  %v605_v35 = vsub.f32 %v565_v39, %v597_v2  ;;  %954 = vst.msk [vmem:[#allocation2 + $0x38] sm:$0xff] %vm222_vm1, %v597_v2  ;;  %644 = vperm.xlu1 %6400, %v594_v3  }
 0x18e   : > { %6408 = vpow2.f32 %v608_v5 }
 0x18f   : > { %v7559_v4 = vpop.eup %6402  ;;  %v620_v8 = vmul.f32 1.442695, %v605_v35 }
 0x190   : > { %753 = vperm.xlu0 %6401, %v7559_v4   ;;  %v7562_v42 = vpop.eup %6404 }
 0x191   : > { %6410 = vpow2.f32 %v620_v8  ;;  %659 = vperm.xlu1 %6400, %v597_v2  }
 0x192   : > { %6412 = vpow2.f32 %v610_v57 }
 0x193   : > { %6414 = vpow2.f32 %v614_v60 }
 0x194   : > { %768 = vperm.xlu0 %6401, %v7562_v42   ;;  %6416 = vpow2.f32 %v618_v7 }
 0x195   : > { %654 = vperm.xlu1 %6400, %v596_v63  }
 0x197   : > { %v7565_v46 = vpop.eup %6406 }
 0x198   : > { %v7567_v3 = vpop.eup %6408  ;;  %778 = vperm.xlu0 %6401, %v7565_v46  }
 0x199   : > { %758 = vperm.xlu1 %6400, %v7567_v3  }
 0x19b   : > { %v7571_v2 = vpop.eup %6410 }
 0x19c   : > { %v7573_v6 = vpop.eup %6412  ;;  %788 = vperm.xlu0 %6401, %v7571_v2  }
 0x19d   : > { %763 = vperm.xlu1 %6400, %v7573_v6   ;;  %v7577_v63 = vpop.eup %6414 }
 0x19e   : > { %v7580_v25 = vpop.eup %6416 }
 0x19f   : > { %9583 = vst [vmem:[#allocation37_spill] sm:$0xff] %v7580_v25 }
 0x1a1   : > { %773 = vperm.xlu1 %6400, %v7577_v63  }
 0x1a5   : > { %783 = vperm.xlu1 %6400, %v7580_v25  }
 0x1fc   : > { %v630_v39 = vpop.permute.xlu1 %629 }
 0x1fd   : > { %v663_v50 = vsub.f32 %v7169_v32, %v630_v39 }
 0x1ff   : > { %v672_v5 = vmul.f32 1.442695, %v663_v50 }
 0x200   : > { %v640_v53 = vpop.permute.xlu1 %639  ;;  %v625_v51 = vpop.permute.xlu0 %624 }
 0x201   : > { %6418 = vpow2.f32 %v672_v5  ;;  %v665_v10 = vsub.f32 %v7177_v36, %v640_v53  ;;  %v662_v35 = vsub.f32 %v7173_v34, %v625_v51 }
 0x203   : > { %v670_v57 = vmul.f32 1.442695, %v662_v35  ;;  %v676_v44 = vmul.f32 1.442695, %v665_v10 }
 0x204   : > { %v635_v8 = vpop.permute.xlu1 %634 }
 0x205   : > { %v664_v60 = vsub.f32 %v7179_v37, %v635_v8  ;;  %6420 = vpow2.f32 %v670_v57 }
 0x206   : > { %6422 = vpow2.f32 %v676_v44 }
 0x207   : > { %v674_v15 = vmul.f32 1.442695, %v664_v60 }
 0x208   : > { %v650_v7 = vpop.permute.xlu1 %649 }
 0x209   : > { %6424 = vpow2.f32 %v674_v15  ;;  %v667_v32 = vsub.f32 %v7187_v41, %v650_v7 }
 0x20b   : > { %v6419_v39 = vpop.eup %6418  ;;  %v680_v50 = vmul.f32 1.442695, %v667_v32 }
 0x20c   : > { %v645_v25 = vpop.permute.xlu1 %644  ;;  %v705_v5 = vsel %vm351_vm0, %v6419_v39, 0.0 }
 0x20d   : > { %6426 = vpow2.f32 %v680_v50  ;;  %v666_v34 = vsub.f32 %v7191_v43, %v645_v25  ;;  %706 = vadd.xlane.f32.xlu0 %v705_v5 }
 0x20f   : > { %v678_v36 = vmul.f32 1.442695, %v666_v34  ;;  %v6421_v53 = vpop.eup %6420  ;;  %v687_v34 = vld [vmem:[#allocation3 + $0x8] sm:$0xff] }
 0x210   : > { %v660_v51 = vpop.permute.xlu1 %659  ;;  %6150 = vmatprep.mubr.msk.f32.mxu1 %vm351_vm0, %v6421_v53  ;;  %v702_v10 = vsel %vm351_vm0, %v6421_v53, 0.0  ;;  %v6423_v41 = vpop.eup %6422 }
 0x211   : > { %6428 = vpow2.f32 %v678_v36  ;;  %v669_v37 = vsub.f32 %v7199_v47, %v660_v51  ;;  %6151 = vmatmul.mubr.msk.f32.vlgmr.msra.gmra.mrb[0].mxu1 %vm351_vm0, %v6419_v39  ;;  %703 = vadd.xlane.f32.xlu1 %v702_v10  ;;  %v711_v44 = vsel %vm351_vm0, %v6423_v41, 0.0  ;;  %v695_v36 = vmul.f32 %v7567_v3, %v687_v34  ;;  %v686_v10 = vld [vmem:[#allocation3] sm:$0xff] }
 0x212   : > { %6163 = vmatpush3.xpose.msk.msra.mxu1 %vm351_vm0, %v7134_v18 }
 0x213   : > { %v6425_v35 = vpop.eup %6424  ;;  %v684_v57 = vmul.f32 1.442695, %v669_v37  ;;  %6190 = vmatprep.subr.msk.mxu1 %vm351_vm0, %v7165_v30 }
 0x214   : > { %v655_v43 = vpop.permute.xlu1 %654  ;;  %6153 = vmatprep.mubr.msk.f32.mxu1 %vm351_vm0, %v6425_v35  ;;  %v708_v47 = vsel %vm351_vm0, %v6425_v35, 0.0  ;;  %v688_v35 = vld [vmem:[#allocation3 + $0x10] sm:$0xff] }
 0x215   : > { %6430 = vpow2.f32 %v684_v57  ;;  %v668_v25 = vsub.f32 %v7203_v49, %v655_v43  ;;  %709 = vadd.xlane.f32.xlu0 %v708_v47  ;;  %6154 = vmatmul.mubr.msk.f32.gmra.mrb[2].mxu1 %vm351_vm0, %v6423_v41  ;;  %v694_v41 = vmul.f32 %v7559_v4, %v686_v10  ;;  %v689_v43 = vld [vmem:[#allocation3 + $0x18] sm:$0xff] }
 0x216   : > { %712 = vadd.xlane.f32.xlu1 %v711_v44  ;;  %v697_v44 = vmul.f32 %v7562_v42, %v689_v43  ;;  %v693_v42 = vld [vmem:[#allocation3 + $0x38] sm:$0xff] }
 0x217   : > { %v6427_v8 = vpop.eup %6426  ;;  %v682_v60 = vmul.f32 1.442695, %v668_v25  ;;  %v696_v25 = vmul.f32 %v7573_v6, %v688_v35 }
 0x218   : > { %v717_v18 = vsel %vm351_vm0, %v6427_v8, 0.0 }
 0x219   : > { %6432 = vpow2.f32 %v682_v60 }
 0x21a   : > { %718 = vadd.xlane.f32.xlu1 %v717_v18  ;;  %v691_v18 = vld [vmem:[#allocation3 + $0x28] sm:$0xff] }
 0x21b   : > { %v6429_v15 = vpop.eup %6428  ;;  %v699_v4 = vmul.f32 %v7565_v46, %v691_v18  ;;  %v9612_v46 = vld [vmem:[#allocation37_spill] sm:$0xff] }
 0x21c   : > { %6156 = vmatprep.mubr.msk.f32.mxu1 %vm351_vm0, %v6429_v15  ;;  %v714_v7 = vsel %vm351_vm0, %v6429_v15, 0.0 }
 0x21d   : > { %715 = vadd.xlane.f32.xlu0 %v714_v7  ;;  %6157 = vmatmul.mubr.msk.f32.gmra.mrb[4].mxu1 %vm351_vm0, %v6427_v8  ;;  %v690_v7 = vld [vmem:[#allocation3 + $0x20] sm:$0xff] }
 0x21e   : > { %v698_v6 = vmul.f32 %v7577_v63, %v690_v7  ;;  %v744_v63 = vld [vmem:[#allocation4 + $0x8] sm:$0xff] }
 0x21f   : > { %v6431_v49 = vpop.eup %6430 }
 0x220   : > { %v723_v32 = vsel %vm351_vm0, %v6431_v49, 0.0 }
 0x221   : > { %724 = vadd.xlane.f32.xlu1 %v723_v32 }
 0x223   : > { %v6433_v39 = vpop.eup %6432 }
 0x224   : > { %6159 = vmatprep.mubr.msk.f32.mxu1 %vm351_vm0, %v6433_v39  ;;  %v720_v50 = vsel %vm351_vm0, %v6433_v39, 0.0 }
 0x225   : > { %721 = vadd.xlane.f32.xlu0 %v720_v50  ;;  %6160 = vmatmul.mubr.msk.f32.gmra.mrb[6].mxu1 %vm351_vm0, %v6431_v49 }
 0x226   : > { %6164 = vmatprep.mubr.msk.f32.mxu1 %vm351_vm0, %v6977_v9  ;;  %v9584_v9 = vld [vmem:[#allocation8_spill] sm:$0xff] }
 0x229   : > { %6165 = vmatmul.mubr.msk.f32.vlgmr.msra.gmra.mrb[8].mxu1 %vm351_vm0, %v6984_v12  ;;  %v9586_v12 = vld [vmem:[#allocation10_spill] sm:$0xff] }
 0x22a   : > { %6191 = vmatpush3.xpose.msk.msra.mxu1 %vm351_vm0, %v7165_v30  ;;  %6167 = vmatprep.mubr.msk.f32.mxu1 %vm351_vm0, %v6982_v11  ;;  %v9585_v11 = vld [vmem:[#allocation7_spill] sm:$0xff] }
 0x22b   : > { %6218 = vmatprep.subr.msk.mxu1 %vm351_vm0, %v7211_v54  ;;  %v9600_v30 = vld [vmem:[#allocation23_spill] sm:$0xff] }
 0x22d   : > { %6168 = vmatmul.mubr.msk.f32.gmra.mrb[10].mxu1 %vm351_vm0, %v6992_v14  ;;  %v9588_v14 = vld [vmem:[#allocation14_spill] sm:$0xff] }
 0x22e   : > { %6170 = vmatprep.mubr.msk.f32.mxu1 %vm351_vm0, %v6990_v13  ;;  %v9587_v13 = vld [vmem:[#allocation9_spill] sm:$0xff] }
 0x231   : > { %6171 = vmatmul.mubr.msk.f32.gmra.mrb[12].mxu1 %vm351_vm0, %v7128_v17  ;;  %v9590_v17 = vld [vmem:[#allocation27_spill] sm:$0xff] }
 0x232   : > { %6173 = vmatprep.mubr.msk.f32.mxu1 %vm351_vm0, %v7126_v16  ;;  %v9589_v16 = vld [vmem:[#allocation11_spill] sm:$0xff] }
 0x235   : > { %6174 = vmatmul.mubr.msk.f32.gmra.mrb[14].mxu1 %vm351_vm0, %v7138_v19  ;;  %v9591_v19 = vld [vmem:[#allocation16_spill] sm:$0xff] }
 0x236   : > { %6192 = vmatprep.mubr.msk.f32.mxu1 %vm351_vm0, %v7157_v26  ;;  %v9596_v26 = vld [vmem:[#allocation19_spill] sm:$0xff] }
 0x239   : > { %6193 = vmatmul.mubr.msk.f32.vlgmr.msra.gmra.mrb[16].mxu1 %vm351_vm0, %v7146_v21  ;;  %v9592_v21 = vld [vmem:[#allocation13_spill] sm:$0xff] }
 0x23a   : > { %6219 = vmatpush3.xpose.msk.msra.mxu1 %vm351_vm0, %v7211_v54  ;;  %6195 = vmatprep.mubr.msk.f32.mxu1 %vm351_vm0, %v7159_v27  ;;  %v9597_v27 = vld [vmem:[#allocation20_spill] sm:$0xff]  ;;  %v9605_v54 = vld [vmem:[#allocation29_spill] sm:$0xff] }
 0x23b   : > { %6246 = vmatprep.subr.msk.mxu1 %vm351_vm0, %v7487_v1 }
 0x23d   : > { %6196 = vmatmul.mubr.msk.f32.gmra.mrb[18].mxu1 %vm351_vm0, %v7148_v22  ;;  %v9593_v22 = vld [vmem:[#allocation17_spill] sm:$0xff] }
 0x23e   : > { %6198 = vmatprep.mubr.msk.f32.mxu1 %vm351_vm0, %v7161_v28  ;;  %v9598_v28 = vld [vmem:[#allocation21_spill] sm:$0xff] }
 0x241   : > { %6199 = vmatmul.mubr.msk.f32.gmra.mrb[20].mxu1 %vm351_vm0, %v7150_v23  ;;  %v9594_v23 = vld [vmem:[#allocation15_spill] sm:$0xff] }
 0x242   : > { %6201 = vmatprep.mubr.msk.f32.mxu1 %vm351_vm0, %v7163_v29  ;;  %v9599_v29 = vld [vmem:[#allocation22_spill] sm:$0xff] }
 0x245   : > { %6202 = vmatmul.mubr.msk.f32.gmra.mrb[22].mxu1 %vm351_vm0, %v7152_v24  ;;  %v9595_v24 = vld [vmem:[#allocation18_spill] sm:$0xff] }
 0x246   : > { %6220 = vmatprep.mubr.msk.f32.mxu1 %vm351_vm0, %v7167_v31  ;;  %v9601_v31 = vld [vmem:[#allocation24_spill] sm:$0xff] }
 0x249   : > { %6221 = vmatmul.mubr.msk.f32.vlgmr.msra.gmra.mrb[24].mxu1 %vm351_vm0, %v7195_v45  ;;  %v9603_v45 = vld [vmem:[#allocation26_spill] sm:$0xff] }
 0x24a   : > { %6247 = vmatpush3.xpose.msk.msra.mxu1 %vm351_vm0, %v7487_v1  ;;  %6223 = vmatprep.mubr.msk.f32.mxu1 %vm351_vm0, %v7171_v33  ;;  %v9602_v33 = vld [vmem:[#allocation25_spill] sm:$0xff]  ;;  %v9610_v1 = vld [vmem:[#allocation34_spill] sm:$0xff] }
 0x24b   : > { %6274 = vmatprep.subr.msk.mxu1 %vm351_vm0, %v7507_v20 }
 0x24d   : > { %6224 = vmatmul.mubr.msk.f32.gmra.mrb[26].mxu1 %vm351_vm0, %v7209_v52  ;;  %v759_v52 = vpop.permute.xlu1 %758 }
 0x24e   : > { %6226 = vmatprep.mubr.msk.f32.mxu1 %vm351_vm0, %v7185_v40  ;;  %v754_v40 = vpop.permute.xlu0 %753 }
 0x251   : > { %6227 = vmatmul.mubr.msk.f32.gmra.mrb[28].mxu1 %vm351_vm0, %v7213_v55 }
 0x252   : > { %6229 = vmatprep.mubr.msk.f32.mxu1 %vm351_vm0, %v7201_v48  ;;  %v9604_v48 = vld [vmem:[#allocation28_spill] sm:$0xff]  ;;  %v769_v55 = vpop.permute.xlu0 %768 }
 0x255   : > { %6230 = vmatmul.mubr.msk.f32.gmra.mrb[30].mxu1 %vm351_vm0, %v7473_v58  ;;  %v9607_v58 = vld [vmem:[#allocation31_spill] sm:$0xff] }
 0x256   : > { %6248 = vmatprep.mubr.msk.f32.mxu1 %vm351_vm0, %v7215_v56  ;;  %v9606_v56 = vld [vmem:[#allocation30_spill] sm:$0xff] }
 0x259   : > { %6249 = vmatmul.mubr.msk.f32.vlgmr.msra.gmra.mrb[32].mxu1 %vm351_vm0, %v7481_v62  ;;  %v7739_v62 = vpop.permute.xlu0 %778 }
 0x25a   : > { %6275 = vmatpush3.xpose.msk.msra.mxu1 %vm351_vm0, %v7507_v20  ;;  %6251 = vmatprep.mubr.msk.f32.mxu1 %vm351_vm0, %v7475_v59  ;;  %v9608_v59 = vld [vmem:[#allocation32_spill] sm:$0xff] }
 0x25b   : > { %6302 = vmatprep.subr.msk.mxu1 %vm351_vm0, %v7511_v38 }
 0x25d   : > { %6252 = vmatmul.mubr.msk.f32.gmra.mrb[34].mxu1 %vm351_vm0, %v7485_v0  ;;  %v9609_v0 = vld [vmem:[#allocation33_spill] sm:$0xff]  ;;  %v7749_v5 = vpop.permute.xlu0 %788 }
 0x25e   : > { %6254 = vmatprep.mubr.msk.f32.mxu1 %vm351_vm0, %v7479_v61  ;;  %v764_v61 = vpop.permute.xlu1 %763 }
 0x261   : > { %6255 = vmatmul.mubr.msk.f32.gmra.mrb[36].mxu1 %vm351_vm0, %v9584_v9  ;;  %v701_v9 = vmul.f32 %v7571_v2, %v693_v42 }
 0x262   : > { %6257 = vmatprep.mubr.msk.f32.mxu1 %vm351_vm0, %v9585_v11  ;;  %v7745_v20 = vpop.permute.xlu1 %773 }
 0x265   : > { %6258 = vmatmul.mubr.msk.f32.gmra.mrb[38].mxu1 %vm351_vm0, %v9586_v12  ;;  %v692_v12 = vld [vmem:[#allocation3 + $0x30] sm:$0xff] }
 0x266   : > { %6276 = vmatprep.mubr.msk.f32.mxu1 %vm351_vm0, %v9587_v13  ;;  %v7752_v51 = vpop.permute.xlu1 %783 }
 0x269   : > { %6277 = vmatmul.mubr.msk.f32.vlgmr.msra.gmra.mrb[40].mxu1 %vm351_vm0, %v9588_v14  ;;  %v700_v14 = vmul.f32 %v9612_v46, %v692_v12 }
 0x26a   : > { %6303 = vmatpush3.xpose.msk.msra.mxu1 %vm351_vm0, %v7511_v38  ;;  %6279 = vmatprep.mubr.msk.f32.mxu1 %vm351_vm0, %v9589_v16  ;;  %v9611_v38 = vld [vmem:[#allocation35_spill] sm:$0xff] }
 0x26b   : > { %6330 = vmatprep.subr.msk.mxu1 %vm351_vm0, %v9590_v17 }
 0x26d   : > { %6280 = vmatmul.mubr.msk.f32.gmra.mrb[42].mxu1 %vm351_vm0, %v9591_v19  ;;  %v743_v19 = vld [vmem:[#allocation4] sm:$0xff] }
 0x26e   : > { %6282 = vmatprep.mubr.msk.f32.mxu1 %vm351_vm0, %v9592_v21  ;;  %v792_v21 = vmul.f32 %v759_v52, %v744_v63 }
 0x271   : > { %6283 = vmatmul.mubr.msk.f32.gmra.mrb[44].mxu1 %vm351_vm0, %v9593_v22  ;;  %v791_v22 = vmul.f32 %v754_v40, %v743_v19  ;;  %v747_v40 = vld [vmem:[#allocation4 + $0x20] sm:$0xff] }
 0x272   : > { %6285 = vmatprep.mubr.msk.f32.mxu1 %vm351_vm0, %v9594_v23  ;;  %v746_v23 = vld [vmem:[#allocation4 + $0x18] sm:$0xff] }
 0x275   : > { %6286 = vmatmul.mubr.msk.f32.gmra.mrb[46].mxu1 %vm351_vm0, %v9595_v24 }
 0x276   : > { %6304 = vmatprep.mubr.msk.f32.mxu1 %vm351_vm0, %v9596_v26  ;;  %v745_v26 = vld [vmem:[#allocation4 + $0x10] sm:$0xff] }
 0x279   : > { %6305 = vmatmul.mubr.msk.f32.vlgmr.msra.gmra.mrb[48].mxu1 %vm351_vm0, %v9597_v27 }
 0x27a   : > { %6331 = vmatpush3.xpose.msk.msra.mxu1 %vm351_vm0, %v9590_v17  ;;  %6307 = vmatprep.mubr.msk.f32.mxu1 %vm351_vm0, %v9598_v28 }
 0x27d   : > { %6308 = vmatmul.mubr.msk.f32.gmra.mrb[50].mxu1 %vm351_vm0, %v9599_v29  ;;  %v794_v29 = vmul.f32 %v769_v55, %v746_v23 }
 0x27e   : > { %6310 = vmatprep.mubr.msk.f32.mxu1 %vm351_vm0, %v9600_v30  ;;  %v793_v30 = vmul.f32 %v764_v61, %v745_v26 }
 0x281   : > { %6311 = vmatmul.mubr.msk.f32.gmra.mrb[52].mxu1 %vm351_vm0, %v9601_v31 }
 0x282   : > { %6313 = vmatprep.mubr.msk.f32.mxu1 %vm351_vm0, %v9602_v33 }
 0x285   : > { %6314 = vmatmul.mubr.msk.f32.gmra.mrb[54].mxu1 %vm351_vm0, %v9603_v45 }
 0x286   : > { %6332 = vmatprep.mubr.msk.f32.mxu1 %vm351_vm0, %v9604_v48 }
 0x289   : > { %6333 = vmatmul.mubr.msk.f32.vlgmr.msra.gmra.mrb[56].mxu1 %vm351_vm0, %v9605_v54  ;;  %v748_v54 = vld [vmem:[#allocation4 + $0x28] sm:$0xff] }
 0x28a   : > { %6335 = vmatprep.mubr.msk.f32.mxu1 %vm351_vm0, %v9606_v56  ;;  %v796_v52 = vmul.f32 %v7739_v62, %v748_v54  ;;  %v795_v56 = vmul.f32 %v7745_v20, %v747_v40 }
 0x28d   : > { %6336 = vmatmul.mubr.msk.f32.gmra.mrb[58].mxu1 %vm351_vm0, %v9607_v58 }
 0x28e   : > { %6338 = vmatprep.mubr.msk.f32.mxu1 %vm351_vm0, %v9608_v59 }
 0x291   : > { %6339 = vmatmul.mubr.msk.f32.gmra.mrb[60].mxu1 %vm351_vm0, %v9609_v0  ;;  %v750_v0 = vld [vmem:[#allocation4 + $0x38] sm:$0xff] }
 0x292   : > { %6341 = vmatprep.mubr.msk.f32.mxu1 %vm351_vm0, %v9610_v1  ;;  %v749_v1 = vld [vmem:[#allocation4 + $0x30] sm:$0xff] }
 0x293   : > { %v797_v34 = vmul.f32 %v7752_v51, %v749_v1 }
 0x295   : > { %6342 = vmatmul.mubr.msk.f32.gmra.mrb[62].mxu1 %vm351_vm0, %v9611_v38  ;;  %v798_v38 = vmul.f32 %v7749_v5, %v750_v0 }
 0x29a   : > { %v707_v53 = vpop.xlane.xlu0 %706 }
 0x29b   : > { %v727_v37 = vadd.f32 %v707_v53, %v695_v36 }
 0x29d   : > { %736 = vst.msk [vmem:[#allocation3 + $0x8] sm:$0xff] %vm222_vm1, %v727_v37 }
 0x29e   : > { %v704_v57 = vpop.xlane.xlu1 %703 }
 0x29f   : > { %v726_v47 = vadd.f32 %v704_v57, %v694_v41 }
 0x2a1   : > { %735 = vst.msk [vmem:[#allocation3] sm:$0xff] %vm222_vm1, %v726_v47 }
 0x2a2   : > { %v710_v3 = vpop.xlane.xlu0 %709 }
 0x2a3   : > { %v713_v8 = vpop.xlane.xlu1 %712  ;;  %v728_v60 = vadd.f32 %v710_v3, %v696_v25 }
 0x2a4   : > { %v729_v15 = vadd.f32 %v713_v8, %v697_v44 }
 0x2a5   : > { %737 = vst.msk [vmem:[#allocation3 + $0x10] sm:$0xff] %vm222_vm1, %v728_v60 }
 0x2a6   : > { %738 = vst.msk [vmem:[#allocation3 + $0x18] sm:$0xff] %vm222_vm1, %v729_v15 }
 0x2a7   : > { %v719_v49 = vpop.xlane.xlu1 %718 }
 0x2a8   : > { %v731_v32 = vadd.f32 %v719_v49, %v699_v4 }
 0x2aa   : > { %740 = vst.msk [vmem:[#allocation3 + $0x28] sm:$0xff] %vm222_vm1, %v731_v32  ;;  %v716_v39 = vpop.xlane.xlu0 %715 }
 0x2ab   : > { %v730_v50 = vadd.f32 %v716_v39, %v698_v6 }
 0x2ad   : > { %739 = vst.msk [vmem:[#allocation3 + $0x20] sm:$0xff] %vm222_vm1, %v730_v50 }
 0x2ae   : > { %v725_v11 = vpop.xlane.xlu1 %724 }
 0x2af   : > { %v733_v13 = vadd.f32 %v725_v11, %v701_v9 }
 0x2b1   : > { %742 = vst.msk [vmem:[#allocation3 + $0x38] sm:$0xff] %vm222_vm1, %v733_v13 }
 0x2b2   : > { %v722_v16 = vpop.xlane.xlu0 %721 }
 0x2b3   : > { %v732_v17 = vadd.f32 %v722_v16, %v700_v14 }
 0x2b5   : > { %741 = vst.msk [vmem:[#allocation3 + $0x30] sm:$0xff] %vm222_vm1, %v732_v17 }
 0x2e4   : > { %v6152_v24 = vpop.f32.mrb[0].mxu1 }
 0x2e5   : > { %v932_v27 = vadd.f32 %v6152_v24, %v792_v21  ;;  %v892_v2 = vpop.f32.mrb[1].mxu1 }
 0x2e6   : > { %v931_v28 = vadd.f32 %v892_v2, %v791_v22 }
 0x2e7   : > { %940 = vst.msk [vmem:[#allocation4 + $0x8] sm:$0xff] %vm351_vm0, %v932_v27 }
 0x2e8   : > { %939 = vst.msk [vmem:[#allocation4] sm:$0xff] %vm351_vm0, %v931_v28  ;;  %v6155_v31 = vpop.f32.mrb[2].mxu1 }
 0x2e9   : > { %v934_v33 = vadd.f32 %v6155_v31, %v794_v29  ;;  %v902_v45 = vpop.f32.mrb[3].mxu1 }
 0x2ea   : > { %v933_v48 = vadd.f32 %v902_v45, %v793_v30 }
 0x2eb   : > { %942 = vst.msk [vmem:[#allocation4 + $0x18] sm:$0xff] %vm351_vm0, %v934_v33 }
 0x2ec   : > { %941 = vst.msk [vmem:[#allocation4 + $0x10] sm:$0xff] %vm351_vm0, %v933_v48 }
 0x2f0   : > { %v6158_v55 = vpop.f32.mrb[4].mxu1 }
 0x2f1   : > { %v936_v58 = vadd.f32 %v6158_v55, %v796_v52  ;;  %v912_v59 = vpop.f32.mrb[5].mxu1 }
 0x2f2   : > { %v935_v61 = vadd.f32 %v912_v59, %v795_v56 }
 0x2f3   : > { %944 = vst.msk [vmem:[#allocation4 + $0x28] sm:$0xff] %vm351_vm0, %v936_v58 }
 0x2f4   : > { %943 = vst.msk [vmem:[#allocation4 + $0x20] sm:$0xff] %vm351_vm0, %v935_v61 }
 0x2f8   : > { %v6161_v36 = vpop.f32.mrb[6].mxu1 }
 0x2f9   : > { %v938_v53 = vadd.f32 %v6161_v36, %v798_v38  ;;  %v922_v37 = vpop.f32.mrb[7].mxu1 }
 0x2fa   : > { %v937_v62 = vadd.f32 %v922_v37, %v797_v34 }
 0x2fb   : > { %946 = vst.msk [vmem:[#allocation4 + $0x38] sm:$0xff] %vm351_vm0, %v938_v53 }
 0x2fc   : > { %945 = vst.msk [vmem:[#allocation4 + $0x30] sm:$0xff] %vm351_vm0, %v937_v62  ;;  %v7781_v20 = vpop.f32.mrb[8].mxu1 }
 0x2fd   : > { %v7783_v10 = vpop.f32.mrb[9].mxu1  ;;  %v1126_v41 = vsel %vm351_vm0, %v7781_v20, -inf }
 0x2fe   : > { %1127 = vmax.xlane.f32.xlu0 %v1126_v41  ;;  %v1123_v5 = vsel %vm351_vm0, %v7783_v10, -inf }
 0x2ff   : > { %1124 = vmax.xlane.f32.xlu1 %v1123_v5 }
 0x300   : > { %v7789_v51 = vpop.f32.mrb[10].mxu1 }
 0x301   : > { %v7791_v35 = vpop.f32.mrb[11].mxu1  ;;  %v1132_v57 = vsel %vm351_vm0, %v7789_v51, -inf }
 0x302   : > { %v1129_v43 = vsel %vm351_vm0, %v7791_v35, -inf }
 0x303   : > { %1130 = vmax.xlane.f32.xlu0 %v1129_v43  ;;  %1133 = vmax.xlane.f32.xlu1 %v1132_v57 }
 0x304   : > { %v7797_v47 = vpop.f32.mrb[12].mxu1 }
 0x305   : > { %v7799_v25 = vpop.f32.mrb[13].mxu1  ;;  %v1138_v44 = vsel %vm351_vm0, %v7797_v47, -inf }
 0x306   : > { %v1135_v3 = vsel %vm351_vm0, %v7799_v25, -inf }
 0x307   : > { %1136 = vmax.xlane.f32.xlu0 %v1135_v3  ;;  %1139 = vmax.xlane.f32.xlu1 %v1138_v44 }
 0x308   : > { %v7805_v8 = vpop.f32.mrb[14].mxu1 }
 0x309   : > { %v7807_v60 = vpop.f32.mrb[15].mxu1  ;;  %v1144_v18 = vsel %vm351_vm0, %v7805_v8, -inf }
 0x30a   : > { %v1141_v15 = vsel %vm351_vm0, %v7807_v60, -inf }
 0x30b   : > { %1142 = vmax.xlane.f32.xlu0 %v1141_v15  ;;  %1145 = vmax.xlane.f32.xlu1 %v1144_v18 }
 0x30c   : > { %v7813_v4 = vpop.f32.mrb[16].mxu1 }
 0x30d   : > { %v7815_v7 = vpop.f32.mrb[17].mxu1  ;;  %v1684_v49 = vsel %vm351_vm0, %v7813_v4, -inf }
 0x30e   : > { %v1681_v32 = vsel %vm351_vm0, %v7815_v7, -inf }
 0x30f   : > { %1685 = vmax.xlane.f32.xlu0 %v1684_v49  ;;  %1682 = vmax.xlane.f32.xlu1 %v1681_v32 }
 0x310   : > { %v7821_v6 = vpop.f32.mrb[18].mxu1 }
 0x311   : > { %v7823_v39 = vpop.f32.mrb[19].mxu1  ;;  %v1690_v42 = vsel %vm351_vm0, %v7821_v6, -inf }
 0x312   : > { %v1687_v50 = vsel %vm351_vm0, %v7823_v39, -inf }
 0x313   : > { %1688 = vmax.xlane.f32.xlu0 %v1687_v50  ;;  %1691 = vmax.xlane.f32.xlu1 %v1690_v42 }
 0x314   : > { %v7829_v9 = vpop.f32.mrb[20].mxu1 }
 0x315   : > { %9613 = vst [vmem:[#allocation8_spill] sm:$0xff] %v7829_v9  ;;  %v7831_v11 = vpop.f32.mrb[21].mxu1  ;;  %v1696_v12 = vsel %vm351_vm0, %v7829_v9, -inf }
 0x316   : > { %v1693_v13 = vsel %vm351_vm0, %v7831_v11, -inf }
 0x317   : > { %1694 = vmax.xlane.f32.xlu0 %v1693_v13  ;;  %1697 = vmax.xlane.f32.xlu1 %v1696_v12 }
 0x318   : > { %v7837_v46 = vpop.f32.mrb[22].mxu1 }
 0x319   : > { %9614 = vst [vmem:[#allocation7_spill] sm:$0xff] %v7837_v46  ;;  %v7839_v14 = vpop.f32.mrb[23].mxu1  ;;  %v1702_v16 = vsel %vm351_vm0, %v7837_v46, -inf  ;;  %v8310_v46 = vld [vmem:[#allocation2 + $0x188] sm:$0xff] }
 0x31a   : > { %9615 = vst [vmem:[#allocation10_spill] sm:$0xff] %v7839_v14  ;;  %v1699_v17 = vsel %vm351_vm0, %v7839_v14, -inf  ;;  %9672 = vst [vmem:[#allocation68_spill] sm:$0xff] %v8310_v46  ;;  %v8312_v14 = vld [vmem:[#allocation2 + $0x180] sm:$0xff] }
 0x31b   : > { %1700 = vmax.xlane.f32.xlu0 %v1699_v17  ;;  %1703 = vmax.xlane.f32.xlu1 %v1702_v16  ;;  %9673 = vst [vmem:[#allocation69_spill] sm:$0xff] %v8312_v14 }
 0x31c   : > { %v7845_v63 = vpop.f32.mrb[24].mxu1 }
 0x31d   : > { %9616 = vst [vmem:[#allocation9_spill] sm:$0xff] %v7845_v63  ;;  %v7847_v19 = vpop.f32.mrb[25].mxu1  ;;  %v2242_v21 = vsel %vm351_vm0, %v7845_v63, -inf }
 0x31e   : > { %9617 = vst [vmem:[#allocation14_spill] sm:$0xff] %v7847_v19  ;;  %v2239_v22 = vsel %vm351_vm0, %v7847_v19, -inf  ;;  %v8292_v19 = vld [vmem:[#allocation2 + $0x170] sm:$0xff] }
 0x31f   : > { %2243 = vmax.xlane.f32.xlu0 %v2242_v21  ;;  %2240 = vmax.xlane.f32.xlu1 %v2239_v22 }
 0x320   : > { %v7853_v23 = vpop.f32.mrb[26].mxu1 }
 0x321   : > { %9618 = vst [vmem:[#allocation11_spill] sm:$0xff] %v7853_v23  ;;  %v7855_v24 = vpop.f32.mrb[27].mxu1  ;;  %v2248_v26 = vsel %vm351_vm0, %v7853_v23, -inf  ;;  %v8262_v23 = vld [vmem:[#allocation2 + $0x168] sm:$0xff] }
 0x322   : > { %9619 = vst [vmem:[#allocation27_spill] sm:$0xff] %v7855_v24  ;;  %v2245_v27 = vsel %vm351_vm0, %v7855_v24, -inf  ;;  %v8264_v24 = vld [vmem:[#allocation2 + $0x160] sm:$0xff] }
 0x323   : > { %2246 = vmax.xlane.f32.xlu0 %v2245_v27  ;;  %2249 = vmax.xlane.f32.xlu1 %v2248_v26 }
 0x324   : > { %v7861_v2 = vpop.f32.mrb[28].mxu1 }
 0x325   : > { %9620 = vst [vmem:[#allocation16_spill] sm:$0xff] %v7861_v2  ;;  %v7863_v28 = vpop.f32.mrb[29].mxu1  ;;  %v2254_v29 = vsel %vm351_vm0, %v7861_v2, -inf  ;;  %v8244_v2 = vld [vmem:[#allocation2 + $0x150] sm:$0xff] }
 0x326   : > { %9621 = vst [vmem:[#allocation13_spill] sm:$0xff] %v7863_v28  ;;  %v2251_v30 = vsel %vm351_vm0, %v7863_v28, -inf }
 0x327   : > { %2252 = vmax.xlane.f32.xlu0 %v2251_v30  ;;  %2255 = vmax.xlane.f32.xlu1 %v2254_v29 }
 0x328   : > { %v7869_v31 = vpop.f32.mrb[30].mxu1 }
 0x329   : > { %9622 = vst [vmem:[#allocation17_spill] sm:$0xff] %v7869_v31  ;;  %v7871_v33 = vpop.f32.mrb[31].mxu1  ;;  %v2260_v45 = vsel %vm351_vm0, %v7869_v31, -inf  ;;  %v8220_v31 = vld [vmem:[#allocation2 + $0x148] sm:$0xff] }
 0x32a   : > { %9623 = vst [vmem:[#allocation15_spill] sm:$0xff] %v7871_v33  ;;  %v2257_v48 = vsel %vm351_vm0, %v7871_v33, -inf }
 0x32b   : > { %2258 = vmax.xlane.f32.xlu0 %v2257_v48  ;;  %2261 = vmax.xlane.f32.xlu1 %v2260_v45 }
 0x32c   : > { %v7877_v54 = vpop.f32.mrb[32].mxu1 }
 0x32d   : > { %9624 = vst [vmem:[#allocation18_spill] sm:$0xff] %v7877_v54  ;;  %v7879_v40 = vpop.f32.mrb[33].mxu1  ;;  %v2800_v52 = vsel %vm351_vm0, %v7877_v54, -inf }
 0x32e   : > { %9625 = vst [vmem:[#allocation19_spill] sm:$0xff] %v7879_v40  ;;  %v2797_v56 = vsel %vm351_vm0, %v7879_v40, -inf  ;;  %v8204_v40 = vld [vmem:[#allocation2 + $0x130] sm:$0xff] }
 0x32f   : > { %2801 = vmax.xlane.f32.xlu0 %v2800_v52  ;;  %2798 = vmax.xlane.f32.xlu1 %v2797_v56 }
 0x330   : > { %v7885_v55 = vpop.f32.mrb[34].mxu1 }
 0x331   : > { %9626 = vst [vmem:[#allocation20_spill] sm:$0xff] %v7885_v55  ;;  %v7887_v58 = vpop.f32.mrb[35].mxu1  ;;  %v2806_v59 = vsel %vm351_vm0, %v7885_v55, -inf  ;;  %v8180_v55 = vld [vmem:[#allocation2 + $0x120] sm:$0xff] }
 0x332   : > { %9627 = vst [vmem:[#allocation21_spill] sm:$0xff] %v7887_v58  ;;  %v2803_v61 = vsel %vm351_vm0, %v7887_v58, -inf }
 0x333   : > { %2804 = vmax.xlane.f32.xlu0 %v2803_v61  ;;  %2807 = vmax.xlane.f32.xlu1 %v2806_v59 }
 0x334   : > { %v7893_v0 = vpop.f32.mrb[36].mxu1 }
 0x335   : > { %9628 = vst [vmem:[#allocation22_spill] sm:$0xff] %v7893_v0  ;;  %v7895_v1 = vpop.f32.mrb[37].mxu1  ;;  %v2812_v38 = vsel %vm351_vm0, %v7893_v0, -inf  ;;  %v8164_v0 = vld [vmem:[#allocation2 + $0x110] sm:$0xff] }
 0x336   : > { %9629 = vst [vmem:[#allocation23_spill] sm:$0xff] %v7895_v1  ;;  %v2809_v34 = vsel %vm351_vm0, %v7895_v1, -inf }
 0x337   : > { %2810 = vmax.xlane.f32.xlu0 %v2809_v34  ;;  %2813 = vmax.xlane.f32.xlu1 %v2812_v38 }
 0x338   : > { %v7901_v36 = vpop.f32.mrb[38].mxu1 }
 0x339   : > { %9630 = vst [vmem:[#allocation24_spill] sm:$0xff] %v7901_v36  ;;  %v7903_v53 = vpop.f32.mrb[39].mxu1  ;;  %v2818_v37 = vsel %vm351_vm0, %v7901_v36, -inf  ;;  %v8140_v36 = vld [vmem:[#allocation2 + $0x108] sm:$0xff] }
 0x33a   : > { %9631 = vst [vmem:[#allocation25_spill] sm:$0xff] %v7903_v53  ;;  %v2815_v62 = vsel %vm351_vm0, %v7903_v53, -inf }
 0x33b   : > { %2816 = vmax.xlane.f32.xlu0 %v2815_v62  ;;  %2819 = vmax.xlane.f32.xlu1 %v2818_v37 }
 0x33c   : > { %v7909_v41 = vpop.f32.mrb[40].mxu1 }
 0x33d   : > { %9632 = vst [vmem:[#allocation26_spill] sm:$0xff] %v7909_v41  ;;  %v7911_v5 = vpop.f32.mrb[41].mxu1  ;;  %v3358_v57 = vsel %vm351_vm0, %v7909_v41, -inf }
 0x33e   : > { %9633 = vst [vmem:[#allocation28_spill] sm:$0xff] %v7911_v5  ;;  %v3355_v43 = vsel %vm351_vm0, %v7911_v5, -inf  ;;  %v8124_v5 = vld [vmem:[#allocation2 + $0xf0] sm:$0xff] }
 0x33f   : > { %3359 = vmax.xlane.f32.xlu0 %v3358_v57  ;;  %3356 = vmax.xlane.f32.xlu1 %v3355_v43 }
 0x340   : > { %v7917_v44 = vpop.f32.mrb[42].mxu1 }
 0x341   : > { %9634 = vst [vmem:[#allocation29_spill] sm:$0xff] %v7917_v44  ;;  %v7919_v3 = vpop.f32.mrb[43].mxu1  ;;  %v3364_v18 = vsel %vm351_vm0, %v7917_v44, -inf  ;;  %v8100_v44 = vld [vmem:[#allocation2 + $0xe0] sm:$0xff] }
 0x342   : > { %9635 = vst [vmem:[#allocation30_spill] sm:$0xff] %v7919_v3  ;;  %v3361_v15 = vsel %vm351_vm0, %v7919_v3, -inf }
 0x343   : > { %3362 = vmax.xlane.f32.xlu0 %v3361_v15  ;;  %3365 = vmax.xlane.f32.xlu1 %v3364_v18 }
 0x344   : > { %v7925_v49 = vpop.f32.mrb[44].mxu1 }
 0x345   : > { %9636 = vst [vmem:[#allocation31_spill] sm:$0xff] %v7925_v49  ;;  %v7927_v32 = vpop.f32.mrb[45].mxu1  ;;  %v3370_v42 = vsel %vm351_vm0, %v7925_v49, -inf  ;;  %v8084_v49 = vld [vmem:[#allocation2 + $0xd0] sm:$0xff] }
 0x346   : > { %9637 = vst [vmem:[#allocation32_spill] sm:$0xff] %v7927_v32  ;;  %v3367_v50 = vsel %vm351_vm0, %v7927_v32, -inf }
 0x347   : > { %3368 = vmax.xlane.f32.xlu0 %v3367_v50  ;;  %3371 = vmax.xlane.f32.xlu1 %v3370_v42 }
 0x348   : > { %v7933_v12 = vpop.f32.mrb[46].mxu1 }
 0x349   : > { %9638 = vst [vmem:[#allocation33_spill] sm:$0xff] %v7933_v12  ;;  %v7935_v13 = vpop.f32.mrb[47].mxu1  ;;  %v3376_v16 = vsel %vm351_vm0, %v7933_v12, -inf  ;;  %v8061_v12 = vld [vmem:[#allocation2 + $0xc8] sm:$0xff] }
 0x34a   : > { %9639 = vst [vmem:[#allocation34_spill] sm:$0xff] %v7935_v13  ;;  %v3373_v17 = vsel %vm351_vm0, %v7935_v13, -inf }
 0x34b   : > { %3374 = vmax.xlane.f32.xlu0 %v3373_v17  ;;  %3377 = vmax.xlane.f32.xlu1 %v3376_v16 }
 0x34c   : > { %v7941_v21 = vpop.f32.mrb[48].mxu1 }
 0x34d   : > { %9640 = vst [vmem:[#allocation35_spill] sm:$0xff] %v7941_v21  ;;  %v7943_v22 = vpop.f32.mrb[49].mxu1  ;;  %v3916_v26 = vsel %vm351_vm0, %v7941_v21, -inf }
 0x34e   : > { %9641 = vst [vmem:[#allocation37_spill] sm:$0xff] %v7943_v22  ;;  %v3913_v27 = vsel %vm351_vm0, %v7943_v22, -inf }
 0x34f   : > { %3914 = vmax.xlane.f32.xlu0 %v3913_v27  ;;  %3917 = vmax.xlane.f32.xlu1 %v3916_v26  ;;  %v1116_v26 = vld [vmem:[#allocation2 + $0x48] sm:$0xff]  ;;  %v1115_v27 = vld [vmem:[#allocation2 + $0x40] sm:$0xff] }
 0x350   : > { %v7949_v29 = vpop.f32.mrb[50].mxu1 }
 0x351   : > { %9642 = vst [vmem:[#allocation38_spill] sm:$0xff] %v7949_v29  ;;  %v7951_v30 = vpop.f32.mrb[51].mxu1  ;;  %v3922_v45 = vsel %vm351_vm0, %v7949_v29, -inf  ;;  %v8024_v29 = vld [vmem:[#allocation2 + $0xa8] sm:$0xff] }
 0x352   : > { %9643 = vst [vmem:[#allocation39_spill] sm:$0xff] %v7951_v30  ;;  %v3919_v56 = vsel %vm351_vm0, %v7951_v30, -inf }
 0x353   : > { %3923 = vmax.xlane.f32.xlu0 %v3922_v45 }
 0x354   : > { %v7955_v48 = vpop.f32.mrb[52].mxu1 }
 0x355   : > { %9644 = vst [vmem:[#allocation40_spill] sm:$0xff] %v7955_v48  ;;  %v7957_v52 = vpop.f32.mrb[53].mxu1  ;;  %v3928_v34 = vsel %vm351_vm0, %v7955_v48, -inf }
 0x356   : > { %9645 = vst [vmem:[#allocation41_spill] sm:$0xff] %v7957_v52  ;;  %v3925_v59 = vsel %vm351_vm0, %v7957_v52, -inf }
 0x357   : > { %3920 = vmax.xlane.f32.xlu0 %v3919_v56  ;;  %3926 = vmax.xlane.f32.xlu1 %v3925_v59 }
 0x358   : > { %v7963_v61 = vpop.f32.mrb[54].mxu1 }
 0x359   : > { %9646 = vst [vmem:[#allocation42_spill] sm:$0xff] %v7963_v61  ;;  %v7965_v38 = vpop.f32.mrb[55].mxu1  ;;  %v3934_v43 = vsel %vm351_vm0, %v7963_v61, -inf  ;;  %v1120_v61 = vld [vmem:[#allocation2 + $0x68] sm:$0xff] }
 0x35a   : > { %9647 = vst [vmem:[#allocation43_spill] sm:$0xff] %v7965_v38  ;;  %v3931_v37 = vsel %vm351_vm0, %v7965_v38, -inf  ;;  %v1122_v38 = vld [vmem:[#allocation2 + $0x78] sm:$0xff] }
 0x35b   : > { %3929 = vmax.xlane.f32.xlu0 %v3928_v34  ;;  %3932 = vmax.xlane.f32.xlu1 %v3931_v37 }
 0x35c   : > { %v7971_v62 = vpop.f32.mrb[56].mxu1 }
 0x35d   : > { %9648 = vst [vmem:[#allocation44_spill] sm:$0xff] %v7971_v62  ;;  %v7973_v57 = vpop.f32.mrb[57].mxu1 }
 0x35e   : > { %9649 = vst [vmem:[#allocation45_spill] sm:$0xff] %v7973_v57 }
 0x35f   : > { %3935 = vmax.xlane.f32.xlu0 %v3934_v43  ;;  %v1118_v43 = vld [vmem:[#allocation2 + $0x58] sm:$0xff] }
 0x360   : > { %v7977_v18 = vpop.f32.mrb[58].mxu1 }
 0x361   : > { %9650 = vst [vmem:[#allocation46_spill] sm:$0xff] %v7977_v18  ;;  %v7979_v15 = vpop.f32.mrb[59].mxu1 }
 0x362   : > { %9651 = vst [vmem:[#allocation47_spill] sm:$0xff] %v7979_v15  ;;  %v1117_v15 = vld [vmem:[#allocation2 + $0x50] sm:$0xff] }
 0x364   : > { %v7981_v42 = vpop.f32.mrb[60].mxu1 }
 0x365   : > { %9652 = vst [vmem:[#allocation48_spill] sm:$0xff] %v7981_v42  ;;  %v7983_v50 = vpop.f32.mrb[61].mxu1 }
 0x366   : > { %9653 = vst [vmem:[#allocation49_spill] sm:$0xff] %v7983_v50 }
 0x368   : > { %v7985_v16 = vpop.f32.mrb[62].mxu1 }
 0x369   : > { %9654 = vst [vmem:[#allocation50_spill] sm:$0xff] %v7985_v16  ;;  %v7987_v17 = vpop.f32.mrb[63].mxu1 }
 0x36a   : > { %9655 = vst [vmem:[#allocation51_spill] sm:$0xff] %v7987_v17 }
 0x38b   : > { %v1128_v45 = vpop.xlane.xlu0 %1127 }
 0x38c   : > { %v1148_v56 = vmax.f32 %v1116_v26, %v1128_v45  ;;  %v1125_v59 = vpop.xlane.xlu1 %1124  ;;  %v1119_v45 = vld [vmem:[#allocation2 + $0x60] sm:$0xff] }
 0x38d   : > { %v1147_v34 = vmax.f32 %v1115_v27, %v1125_v59 }
 0x38e   : > { %v1156_v37 = vsub.f32 %v1116_v26, %v1148_v56  ;;  %1506 = vst.msk [vmem:[#allocation2 + $0x48] sm:$0xff] %vm222_vm1, %v1148_v56  ;;  %1186 = vperm.xlu1 %6400, %v1148_v56  }
 0x38f   : > { %v1155_v62 = vsub.f32 %v1115_v27, %v1147_v34  ;;  %1505 = vst.msk [vmem:[#allocation2 + $0x40] sm:$0xff] %vm222_vm1, %v1147_v34  ;;  %1181 = vperm.xlu0 %6401, %v1147_v34  }
 0x390   : > { %v1165_v50 = vmul.f32 1.442695, %v1156_v37  ;;  %v1134_v16 = vpop.xlane.xlu1 %1133  ;;  %v1131_v42 = vpop.xlane.xlu0 %1130 }
 0x391   : > { %v1163_v17 = vmul.f32 1.442695, %v1155_v62  ;;  %v1150_v18 = vmax.f32 %v1118_v43, %v1134_v16  ;;  %v1149_v57 = vmax.f32 %v1117_v15, %v1131_v42  ;;  %v1121_v62 = vld [vmem:[#allocation2 + $0x70] sm:$0xff] }
 0x393   : > { %6434 = vpow2.f32 %v1163_v17  ;;  %v1158_v59 = vsub.f32 %v1118_v43, %v1150_v18  ;;  %1508 = vst.msk [vmem:[#allocation2 + $0x58] sm:$0xff] %vm222_vm1, %v1150_v18  ;;  %1507 = vst.msk [vmem:[#allocation2 + $0x50] sm:$0xff] %vm222_vm1, %v1149_v57  ;;  %1196 = vperm.xlu0 %6401, %v1150_v18   ;;  %1191 = vperm.xlu1 %6400, %v1149_v57   ;;  %v1157_v26 = vsub.f32 %v1117_v15, %v1149_v57  ;;  %v7997_v57 = vld [vmem:[#allocation2 + $0x88] sm:$0xff] }
 0x394   : > { %6436 = vpow2.f32 %v1165_v50  ;;  %v1140_v27 = vpop.xlane.xlu1 %1139  ;;  %v1137_v56 = vpop.xlane.xlu0 %1136  ;;  %v7995_v50 = vld [vmem:[#allocation2 + $0x80] sm:$0xff] }
 0x395   : > { %v1152_v34 = vmax.f32 %v1120_v61, %v1140_v27  ;;  %v1151_v37 = vmax.f32 %v1119_v45, %v1137_v56  ;;  %v1169_v16 = vmul.f32 1.442695, %v1158_v59  ;;  %v1167_v42 = vmul.f32 1.442695, %v1157_v26 }
 0x397   : > { %1510 = vst.msk [vmem:[#allocation2 + $0x68] sm:$0xff] %vm222_vm1, %v1152_v34  ;;  %1509 = vst.msk [vmem:[#allocation2 + $0x60] sm:$0xff] %vm222_vm1, %v1151_v37  ;;  %1206 = vperm.xlu0 %6401, %v1152_v34   ;;  %1201 = vperm.xlu1 %6400, %v1151_v37   ;;  %6438 = vpow2.f32 %v1169_v16  ;;  %v1160_v15 = vsub.f32 %v1120_v61, %v1152_v34  ;;  %v1159_v59 = vsub.f32 %v1119_v45, %v1151_v37  ;;  %v8009_v61 = vld [vmem:[#allocation2 + $0x98] sm:$0xff]  ;;  %v8011_v34 = vld [vmem:[#allocation2 + $0x90] sm:$0xff] }
 0x398   : > { %v1146_v17 = vpop.xlane.xlu1 %1145  ;;  %v1143_v43 = vpop.xlane.xlu0 %1142  ;;  %6440 = vpow2.f32 %v1167_v42 }
 0x399   : > { %v1154_v18 = vmax.f32 %v1122_v38, %v1146_v17  ;;  %v1153_v48 = vmax.f32 %v1121_v62, %v1143_v43  ;;  %v1173_v16 = vmul.f32 1.442695, %v1160_v15  ;;  %v1171_v45 = vmul.f32 1.442695, %v1159_v59  ;;  %v8026_v15 = vld [vmem:[#allocation2 + $0xa0] sm:$0xff] }
 0x39b   : > { %1512 = vst.msk [vmem:[#allocation2 + $0x78] sm:$0xff] %vm222_vm1, %v1154_v18  ;;  %1511 = vst.msk [vmem:[#allocation2 + $0x70] sm:$0xff] %vm222_vm1, %v1153_v48  ;;  %1216 = vperm.xlu0 %6401, %v1154_v18   ;;  %1211 = vperm.xlu1 %6400, %v1153_v48   ;;  %6442 = vpow2.f32 %v1173_v16  ;;  %v1162_v21 = vsub.f32 %v1122_v38, %v1154_v18  ;;  %v1161_v59 = vsub.f32 %v1121_v62, %v1153_v48  ;;  %v8043_v16 = vld [vmem:[#allocation2 + $0xb8] sm:$0xff] }
 0x39c   : > { %v1683_v27 = vpop.xlane.xlu1 %1682  ;;  %v1686_v26 = vpop.xlane.xlu0 %1685  ;;  %6444 = vpow2.f32 %v1171_v45 }
 0x39d   : > { %v8001_v56 = vpop.eup %6434  ;;  %v1705_v17 = vmax.f32 %v7995_v50, %v1683_v27  ;;  %v8005_v43 = vmax.f32 %v7997_v57, %v1686_v26  ;;  %v1177_v22 = vmul.f32 1.442695, %v1162_v21  ;;  %v1175_v48 = vmul.f32 1.442695, %v1161_v59  ;;  %v8059_v21 = vld [vmem:[#allocation2 + $0xc0] sm:$0xff] }
 0x39e   : > { %9656 = vst [vmem:[#allocation52_spill] sm:$0xff] %v8001_v56  ;;  %v8007_v52 = vpop.eup %6436 }
 0x39f   : > { %9657 = vst [vmem:[#allocation53_spill] sm:$0xff] %v8007_v52  ;;  %2063 = vst.msk [vmem:[#allocation2 + $0x80] sm:$0xff] %vm222_vm1, %v1705_v17  ;;  %1311 = vperm.xlu0 %6401, %v8001_v56   ;;  %1316 = vperm.xlu1 %6400, %v8007_v52   ;;  %v8045_v52 = vld [vmem:[#allocation2 + $0xb0] sm:$0xff]  ;;  %6446 = vpow2.f32 %v1177_v22  ;;  %v1713_v13 = vsub.f32 %v7995_v50, %v1705_v17  ;;  %v1714_v59 = vsub.f32 %v7997_v57, %v8005_v43 }
 0x3a0   : > { %2064 = vst.msk [vmem:[#allocation2 + $0x88] sm:$0xff] %vm222_vm1, %v8005_v43  ;;  %v1692_v37 = vpop.xlane.xlu1 %1691  ;;  %v1689_v42 = vpop.xlane.xlu0 %1688  ;;  %6448 = vpow2.f32 %v1175_v48 }
 0x3a1   : > { %v8019_v27 = vmax.f32 %v8009_v61, %v1692_v37  ;;  %v8022_v26 = vmax.f32 %v8011_v34, %v1689_v42  ;;  %v8033_v30 = vpop.eup %6438  ;;  %v1721_v48 = vmul.f32 1.442695, %v1713_v13  ;;  %v1723_v57 = vmul.f32 1.442695, %v1714_v59  ;;  %v8098_v13 = vld [vmem:[#allocation2 + $0xe8] sm:$0xff] }
 0x3a2   : > { %9658 = vst [vmem:[#allocation54_spill] sm:$0xff] %v8033_v30  ;;  %v8041_v18 = vpop.eup %6440 }
 0x3a3   : > { %2066 = vst.msk [vmem:[#allocation2 + $0x98] sm:$0xff] %vm222_vm1, %v8019_v27  ;;  %2065 = vst.msk [vmem:[#allocation2 + $0x90] sm:$0xff] %vm222_vm1, %v8022_v26  ;;  %1739 = vperm.xlu0 %6401, %v1705_v17   ;;  %1744 = vperm.xlu1 %6400, %v8005_v43   ;;  %6450 = vpow2.f32 %v1721_v48  ;;  %v1716_v3 = vsub.f32 %v8009_v61, %v8019_v27  ;;  %v1715_v59 = vsub.f32 %v8011_v34, %v8022_v26 }
 0x3a4   : > { %v1698_v37 = vpop.xlane.xlu1 %1697  ;;  %v1695_v42 = vpop.xlane.xlu0 %1694  ;;  %9659 = vst [vmem:[#allocation55_spill] sm:$0xff] %v8041_v18  ;;  %6452 = vpow2.f32 %v1723_v57 }
 0x3a5   : > { %v8036_v56 = vmax.f32 %v8024_v29, %v1698_v37  ;;  %v8039_v38 = vmax.f32 %v8026_v15, %v1695_v42  ;;  %v1727_v57 = vmul.f32 1.442695, %v1716_v3  ;;  %v1725_v34 = vmul.f32 1.442695, %v1715_v59  ;;  %v8138_v3 = vld [vmem:[#allocation2 + $0x100] sm:$0xff] }
 0x3a7   : > { %2068 = vst.msk [vmem:[#allocation2 + $0xa8] sm:$0xff] %vm222_vm1, %v8036_v56  ;;  %2067 = vst.msk [vmem:[#allocation2 + $0xa0] sm:$0xff] %vm222_vm1, %v8039_v38  ;;  %1326 = vperm.xlu0 %6401, %v8033_v30   ;;  %1321 = vperm.xlu1 %6400, %v8041_v18   ;;  %v8072_v30 = vpop.eup %6442  ;;  %v8082_v18 = vld [vmem:[#allocation2 + $0xd8] sm:$0xff]  ;;  %6454 = vpow2.f32 %v1727_v57  ;;  %v1718_v53 = vsub.f32 %v8024_v29, %v8036_v56  ;;  %v1717_v59 = vsub.f32 %v8026_v15, %v8039_v38 }
 0x3a8   : > { %v1704_v62 = vpop.xlane.xlu1 %1703  ;;  %v1701_v45 = vpop.xlane.xlu0 %1700  ;;  %9660 = vst [vmem:[#allocation56_spill] sm:$0xff] %v8072_v30  ;;  %6456 = vpow2.f32 %v1725_v34 }
 0x3a9   : > { %v8054_v37 = vmax.f32 %v8043_v16, %v1704_v62  ;;  %v8057_v42 = vmax.f32 %v8045_v52, %v1701_v45  ;;  %v8080_v17 = vpop.eup %6444  ;;  %v1731_v34 = vmul.f32 1.442695, %v1718_v53  ;;  %v1729_v15 = vmul.f32 1.442695, %v1717_v59  ;;  %v8178_v53 = vld [vmem:[#allocation2 + $0x128] sm:$0xff] }
 0x3aa   : > { %9661 = vst [vmem:[#allocation57_spill] sm:$0xff] %v8080_v17  ;;  %v8112_v48 = vpop.eup %6446 }
 0x3ab   : > { %2070 = vst.msk [vmem:[#allocation2 + $0xb8] sm:$0xff] %vm222_vm1, %v8054_v37  ;;  %2069 = vst.msk [vmem:[#allocation2 + $0xb0] sm:$0xff] %vm222_vm1, %v8057_v42  ;;  %1754 = vperm.xlu0 %6401, %v8019_v27   ;;  %1749 = vperm.xlu1 %6400, %v8022_v26   ;;  %6458 = vpow2.f32 %v1731_v34  ;;  %v1720_v58 = vsub.f32 %v8043_v16, %v8054_v37  ;;  %v1719_v59 = vsub.f32 %v8045_v52, %v8057_v42 }
 0x3ac   : > { %v2241_v62 = vpop.xlane.xlu1 %2240  ;;  %v2244_v45 = vpop.xlane.xlu0 %2243  ;;  %9662 = vst [vmem:[#allocation58_spill] sm:$0xff] %v8112_v48  ;;  %6460 = vpow2.f32 %v1729_v15 }
 0x3ad   : > { %v8075_v22 = vmax.f32 %v8059_v21, %v2241_v62  ;;  %v8078_v50 = vmax.f32 %v8061_v12, %v2244_v45  ;;  %v1735_v15 = vmul.f32 1.442695, %v1720_v58  ;;  %v1733_v52 = vmul.f32 1.442695, %v1719_v59  ;;  %v8218_v58 = vld [vmem:[#allocation2 + $0x140] sm:$0xff] }
 0x3af   : > { %2621 = vst.msk [vmem:[#allocation2 + $0xc0] sm:$0xff] %vm222_vm1, %v8075_v22  ;;  %2622 = vst.msk [vmem:[#allocation2 + $0xc8] sm:$0xff] %vm222_vm1, %v8078_v50  ;;  %1336 = vperm.xlu0 %6401, %v8072_v30   ;;  %1331 = vperm.xlu1 %6400, %v8080_v17   ;;  %v8120_v30 = vpop.eup %6448  ;;  %v8122_v17 = vld [vmem:[#allocation2 + $0xf8] sm:$0xff]  ;;  %6462 = vpow2.f32 %v1735_v15  ;;  %v2271_v33 = vsub.f32 %v8059_v21, %v8075_v22  ;;  %v2272_v59 = vsub.f32 %v8061_v12, %v8078_v50 }
 0x3b0   : > { %v2250_v43 = vpop.xlane.xlu1 %2249  ;;  %v2247_v62 = vpop.xlane.xlu0 %2246  ;;  %9663 = vst [vmem:[#allocation59_spill] sm:$0xff] %v8120_v30  ;;  %6464 = vpow2.f32 %v1733_v52 }
 0x3b1   : > { %v8093_v45 = vmax.f32 %v8082_v18, %v2250_v43  ;;  %v8096_v32 = vmax.f32 %v8084_v49, %v2247_v62  ;;  %v8152_v57 = vpop.eup %6450  ;;  %v2279_v52 = vmul.f32 1.442695, %v2271_v33 }
 0x3b2   : > { %9664 = vst [vmem:[#allocation60_spill] sm:$0xff] %v8152_v57 }
 0x3b3   : > { %2624 = vst.msk [vmem:[#allocation2 + $0xd8] sm:$0xff] %vm222_vm1, %v8093_v45  ;;  %2623 = vst.msk [vmem:[#allocation2 + $0xd0] sm:$0xff] %vm222_vm1, %v8096_v32  ;;  %1764 = vperm.xlu0 %6401, %v8036_v56   ;;  %1759 = vperm.xlu1 %6400, %v8039_v38   ;;  %6466 = vpow2.f32 %v2279_v52 }
 0x3b4   : > { %v2256_v43 = vpop.xlane.xlu1 %2255  ;;  %v2253_v62 = vpop.xlane.xlu0 %2252 }
 0x3b5   : > { %v8115_v61 = vmax.f32 %v8098_v13, %v2256_v43  ;;  %v8118_v27 = vmax.f32 %v8100_v44, %v2253_v62 }
 0x3b7   : > { %2626 = vst.msk [vmem:[#allocation2 + $0xe8] sm:$0xff] %vm222_vm1, %v8115_v61  ;;  %2625 = vst.msk [vmem:[#allocation2 + $0xe0] sm:$0xff] %vm222_vm1, %v8118_v27  ;;  %1346 = vperm.xlu0 %6401, %v8112_v48   ;;  %1341 = vperm.xlu1 %6400, %v8120_v30   ;;  %v8160_v48 = vpop.eup %6452  ;;  %v8162_v30 = vld [vmem:[#allocation2 + $0x118] sm:$0xff] }
 0x3b8   : > { %v2262_v26 = vpop.xlane.xlu1 %2261  ;;  %v2259_v43 = vpop.xlane.xlu0 %2258  ;;  %9665 = vst [vmem:[#allocation61_spill] sm:$0xff] %v8160_v48 }
 0x3b9   : > { %v8133_v62 = vmax.f32 %v8122_v17, %v2262_v26  ;;  %v8136_v41 = vmax.f32 %v8124_v5, %v2259_v43  ;;  %v8192_v34 = vpop.eup %6454 }
 0x3ba   : > { %9666 = vst [vmem:[#allocation62_spill] sm:$0xff] %v8192_v34 }
 0x3bb   : > { %2628 = vst.msk [vmem:[#allocation2 + $0xf8] sm:$0xff] %vm222_vm1, %v8133_v62  ;;  %2627 = vst.msk [vmem:[#allocation2 + $0xf0] sm:$0xff] %vm222_vm1, %v8136_v41  ;;  %1774 = vperm.xlu0 %6401, %v8054_v37   ;;  %1769 = vperm.xlu1 %6400, %v8057_v42  }
 0x3bc   : > { %v2799_v26 = vpop.xlane.xlu1 %2798  ;;  %v2802_v43 = vpop.xlane.xlu0 %2801 }
 0x3bd   : > { %v8155_v29 = vmax.f32 %v8138_v3, %v2799_v26  ;;  %v8158_v56 = vmax.f32 %v8140_v36, %v2802_v43 }
 0x3bf   : > { %3179 = vst.msk [vmem:[#allocation2 + $0x100] sm:$0xff] %vm222_vm1, %v8155_v29  ;;  %3180 = vst.msk [vmem:[#allocation2 + $0x108] sm:$0xff] %vm222_vm1, %v8158_v56  ;;  %1869 = vperm.xlu0 %6401, %v8152_v57   ;;  %1874 = vperm.xlu1 %6400, %v8160_v48   ;;  %v8200_v57 = vpop.eup %6456  ;;  %v8202_v48 = vld [vmem:[#allocation2 + $0x138] sm:$0xff] }
 0x3c0   : > { %v2808_v38 = vpop.xlane.xlu1 %2807  ;;  %v2805_v26 = vpop.xlane.xlu0 %2804  ;;  %9667 = vst [vmem:[#allocation63_spill] sm:$0xff] %v8200_v57 }
 0x3c1   : > { %v8173_v43 = vmax.f32 %v8162_v30, %v2808_v38  ;;  %v8176_v1 = vmax.f32 %v8164_v0, %v2805_v26  ;;  %v8232_v15 = vpop.eup %6458 }
 0x3c2   : > { %9668 = vst [vmem:[#allocation64_spill] sm:$0xff] %v8232_v15 }
 0x3c3   : > { %3182 = vst.msk [vmem:[#allocation2 + $0x118] sm:$0xff] %vm222_vm1, %v8173_v43  ;;  %3181 = vst.msk [vmem:[#allocation2 + $0x110] sm:$0xff] %vm222_vm1, %v8176_v1  ;;  %2297 = vperm.xlu0 %6401, %v8075_v22   ;;  %2302 = vperm.xlu1 %6400, %v8078_v50   ;;  %v2274_v50 = vsub.f32 %v8082_v18, %v8093_v45 }
 0x3c4   : > { %v2814_v38 = vpop.xlane.xlu1 %2813  ;;  %v2811_v26 = vpop.xlane.xlu0 %2810 }
 0x3c5   : > { %v8195_v16 = vmax.f32 %v8178_v53, %v2814_v38  ;;  %v8198_v37 = vmax.f32 %v8180_v55, %v2811_v26 }
 0x3c7   : > { %3184 = vst.msk [vmem:[#allocation2 + $0x128] sm:$0xff] %vm222_vm1, %v8195_v16  ;;  %3183 = vst.msk [vmem:[#allocation2 + $0x120] sm:$0xff] %vm222_vm1, %v8198_v37  ;;  %1884 = vperm.xlu0 %6401, %v8192_v34   ;;  %1879 = vperm.xlu1 %6400, %v8200_v57   ;;  %v8240_v34 = vpop.eup %6460  ;;  %v8242_v57 = vld [vmem:[#allocation2 + $0x158] sm:$0xff] }
 0x3c8   : > { %v2820_v42 = vpop.xlane.xlu1 %2819  ;;  %v2817_v38 = vpop.xlane.xlu0 %2816  ;;  %9669 = vst [vmem:[#allocation65_spill] sm:$0xff] %v8240_v34 }
 0x3c9   : > { %v8213_v26 = vmax.f32 %v8202_v48, %v2820_v42  ;;  %v8216_v54 = vmax.f32 %v8204_v40, %v2817_v38  ;;  %v8280_v52 = vpop.eup %6462 }
 0x3ca   : > { %9670 = vst [vmem:[#allocation66_spill] sm:$0xff] %v8280_v52 }
 0x3cb   : > { %3186 = vst.msk [vmem:[#allocation2 + $0x138] sm:$0xff] %vm222_vm1, %v8213_v26  ;;  %3185 = vst.msk [vmem:[#allocation2 + $0x130] sm:$0xff] %vm222_vm1, %v8216_v54  ;;  %2312 = vperm.xlu0 %6401, %v8093_v45   ;;  %2307 = vperm.xlu1 %6400, %v8096_v32  }
 0x3cc   : > { %v3357_v42 = vpop.xlane.xlu1 %3356  ;;  %v3360_v38 = vpop.xlane.xlu0 %3359 }
 0x3cd   : > { %v8235_v21 = vmax.f32 %v8218_v58, %v3357_v42  ;;  %v8238_v22 = vmax.f32 %v8220_v31, %v3360_v38  ;;  %v2281_v42 = vmul.f32 1.442695, %v2272_v59 }
 0x3cf   : > { %3737 = vst.msk [vmem:[#allocation2 + $0x140] sm:$0xff] %vm222_vm1, %v8235_v21  ;;  %3738 = vst.msk [vmem:[#allocation2 + $0x148] sm:$0xff] %vm222_vm1, %v8238_v22  ;;  %1894 = vperm.xlu0 %6401, %v8232_v15   ;;  %1889 = vperm.xlu1 %6400, %v8240_v34   ;;  %6468 = vpow2.f32 %v2281_v42  ;;  %v8288_v15 = vpop.eup %6464  ;;  %v8290_v34 = vld [vmem:[#allocation2 + $0x178] sm:$0xff]  ;;  %v2285_v42 = vmul.f32 1.442695, %v2274_v50 }
 0x3d0   : > { %v3366_v38 = vpop.xlane.xlu1 %3365  ;;  %v3363_v28 = vpop.xlane.xlu0 %3362  ;;  %9671 = vst [vmem:[#allocation67_spill] sm:$0xff] %v8288_v15 }
 0x3d1   : > { %v8257_v33 = vmax.f32 %v8242_v57, %v3366_v38  ;;  %v8260_v12 = vmax.f32 %v8244_v2, %v3363_v28  ;;  %v2273_v28 = vsub.f32 %v8084_v49, %v8096_v32  ;;  %6470 = vpow2.f32 %v2285_v42 }
 0x3d2   : > { %v2276_v32 = vsub.f32 %v8098_v13, %v8115_v61  ;;  %v8326_v13 = vpop.eup %6466 }
 0x3d3   : > { %3740 = vst.msk [vmem:[#allocation2 + $0x158] sm:$0xff] %vm222_vm1, %v8257_v33  ;;  %3739 = vst.msk [vmem:[#allocation2 + $0x150] sm:$0xff] %vm222_vm1, %v8260_v12  ;;  %2322 = vperm.xlu0 %6401, %v8115_v61   ;;  %2317 = vperm.xlu1 %6400, %v8118_v27  }
 0x3d4   : > { %v3372_v18 = vpop.xlane.xlu1 %3371  ;;  %v3369_v45 = vpop.xlane.xlu0 %3368  ;;  %9674 = vst [vmem:[#allocation70_spill] sm:$0xff] %v8326_v13  ;;  %v2289_v9 = vmul.f32 1.442695, %v2276_v32  ;;  %v2278_v32 = vsub.f32 %v8122_v17, %v8133_v62 }
 0x3d5   : > { %v8283_v38 = vmax.f32 %v8262_v23, %v3372_v18  ;;  %v8286_v59 = vmax.f32 %v8264_v24, %v3369_v45  ;;  %v2283_v18 = vmul.f32 1.442695, %v2273_v28 }
 0x3d7   : > { %3742 = vst.msk [vmem:[#allocation2 + $0x168] sm:$0xff] %vm222_vm1, %v8283_v38  ;;  %3741 = vst.msk [vmem:[#allocation2 + $0x160] sm:$0xff] %vm222_vm1, %v8286_v59  ;;  %1904 = vperm.xlu0 %6401, %v8280_v52   ;;  %1899 = vperm.xlu1 %6400, %v8288_v15   ;;  %6472 = vpow2.f32 %v2283_v18  ;;  %v8336_v15 = vld [vmem:[#allocation2 + $0x198] sm:$0xff] }
 0x3d8   : > { %v3378_v45 = vpop.xlane.xlu1 %3377  ;;  %v3375_v63 = vpop.xlane.xlu0 %3374  ;;  %9677 = vst [vmem:[#allocation73_spill] sm:$0xff] %v8336_v15  ;;  %6474 = vpow2.f32 %v2289_v9 }
 0x3d9   : > { %v8305_v50 = vmax.f32 %v8290_v34, %v3378_v45  ;;  %v8308_v49 = vmax.f32 %v8292_v19, %v3375_v63  ;;  %v2275_v63 = vsub.f32 %v8100_v44, %v8118_v27  ;;  %v8334_v52 = vpop.eup %6468 }
 0x3db   : > { %3744 = vst.msk [vmem:[#allocation2 + $0x178] sm:$0xff] %vm222_vm1, %v8305_v50  ;;  %3743 = vst.msk [vmem:[#allocation2 + $0x170] sm:$0xff] %vm222_vm1, %v8308_v49  ;;  %2332 = vperm.xlu0 %6401, %v8133_v62   ;;  %2327 = vperm.xlu1 %6400, %v8136_v41   ;;  %v2287_v44 = vmul.f32 1.442695, %v2275_v63  ;;  %v2277_v63 = vsub.f32 %v8124_v5, %v8136_v41 }
 0x3dc   : > { %v3918_v42 = vpop.xlane.xlu1 %3917  ;;  %v3915_v45 = vpop.xlane.xlu0 %3914 }
 0x3dd   : > { %v8329_v61 = vmax.f32 %v8310_v46, %v3918_v42  ;;  %v8332_v28 = vmax.f32 %v8312_v14, %v3915_v45  ;;  %v8347_v42 = vld [vmem:[#allocation2 + $0x1a0] sm:$0xff]  ;;  %v8349_v45 = vld [vmem:[#allocation2 + $0x190] sm:$0xff]  ;;  %6476 = vpow2.f32 %v2287_v44  ;;  %v2293_v44 = vmul.f32 1.442695, %v2278_v32  ;;  %v8385_v32 = vld [vmem:[#allocation2 + $0x1b8] sm:$0xff] }
 0x3de   : > { %9679 = vst [vmem:[#allocation75_spill] sm:$0xff] %v8347_v42  ;;  %9680 = vst [vmem:[#allocation76_spill] sm:$0xff] %v8349_v45  ;;  %v8369_v14 = vld [vmem:[#allocation2 + $0x1b0] sm:$0xff]  ;;  %v2291_v41 = vmul.f32 1.442695, %v2277_v63  ;;  %v2830_v63 = vsub.f32 %v8140_v36, %v8158_v56  ;;  %v2832_v36 = vsub.f32 %v8162_v30, %v8173_v43  ;;  %v2834_v30 = vsub.f32 %v8178_v53, %v8195_v16 }
 0x3df   : > { %9675 = vst [vmem:[#allocation71_spill] sm:$0xff] %v8329_v61  ;;  %9676 = vst [vmem:[#allocation72_spill] sm:$0xff] %v8332_v28  ;;  %2427 = vperm.xlu0 %6401, %v8326_v13   ;;  %2432 = vperm.xlu1 %6400, %v8334_v52   ;;  %v8371_v13 = vld [vmem:[#allocation2 + $0x1a8] sm:$0xff]  ;;  %6478 = vpow2.f32 %v2293_v44  ;;  %v2836_v53 = vsub.f32 %v8202_v48, %v8213_v26 }
 0x3e0   : > { %4296 = vst.msk [vmem:[#allocation2 + $0x188] sm:$0xff] %vm222_vm1, %v8329_v61  ;;  %4295 = vst.msk [vmem:[#allocation2 + $0x180] sm:$0xff] %vm222_vm1, %v8332_v28  ;;  %v3924_v27 = vpop.xlane.xlu0 %3923  ;;  %6480 = vpow2.f32 %v2291_v41  ;;  %v2839_v41 = vmul.f32 1.442695, %v2830_v63 }
 0x3e1   : > { %v8345_v18 = vmax.f32 %v8336_v15, %v3924_v27  ;;  %v8359_v15 = vpop.eup %6470  ;;  %9682 = vst [vmem:[#allocation78_spill] sm:$0xff] %v8369_v14  ;;  %9683 = vst [vmem:[#allocation79_spill] sm:$0xff] %v8371_v13 }
 0x3e2   : > { %v8367_v62 = vpop.eup %6472  ;;  %9686 = vst [vmem:[#allocation82_spill] sm:$0xff] %v8385_v32 }
 0x3e3   : > { %9678 = vst [vmem:[#allocation74_spill] sm:$0xff] %v8345_v18  ;;  %4298 = vst.msk [vmem:[#allocation2 + $0x198] sm:$0xff] %vm222_vm1, %v8345_v18  ;;  %2855 = vperm.xlu0 %6401, %v8155_v29   ;;  %2860 = vperm.xlu1 %6400, %v8158_v56   ;;  %v2831_v56 = vsub.f32 %v8164_v0, %v8176_v1  ;;  %v2833_v0 = vsub.f32 %v8180_v55, %v8198_v37 }
 0x3e4   : > { %v3927_v27 = vpop.xlane.xlu1 %3926  ;;  %v3921_v46 = vpop.xlane.xlu0 %3920  ;;  %v2835_v55 = vsub.f32 %v8204_v40, %v8216_v54  ;;  %v9688_v40 = vsub.f32 %v8218_v58, %v8235_v21  ;;  %v9690_v58 = vsub.f32 %v8242_v57, %v8257_v33  ;;  %v9692_v57 = vsub.f32 %v8244_v2, %v8260_v12 }
 0x3e5   : > { %v8362_v9 = vmax.f32 %v8347_v42, %v3927_v27  ;;  %v8365_v17 = vmax.f32 %v8349_v45, %v3921_v46  ;;  %v2829_v45 = vsub.f32 %v8138_v3, %v8155_v29  ;;  %v2841_v63 = vmul.f32 1.442695, %v2831_v56 }
 0x3e6   : > { %v3395_v56 = vmul.f32 1.442695, %v9688_v40 }
 0x3e7   : > { %9681 = vst [vmem:[#allocation77_spill] sm:$0xff] %v8362_v9  ;;  %4299 = vst.msk [vmem:[#allocation2 + $0x1a0] sm:$0xff] %vm222_vm1, %v8362_v9  ;;  %2442 = vperm.xlu0 %6401, %v8359_v15   ;;  %2437 = vperm.xlu1 %6400, %v8367_v62   ;;  %v2837_v29 = vmul.f32 1.442695, %v2829_v45 }
 0x3e8   : > { %4297 = vst.msk [vmem:[#allocation2 + $0x190] sm:$0xff] %vm222_vm1, %v8365_v17  ;;  %v3933_v46 = vpop.xlane.xlu1 %3932  ;;  %v3930_v5 = vpop.xlane.xlu0 %3929 }
 0x3e9   : > { %v8380_v27 = vmax.f32 %v8369_v14, %v3933_v46  ;;  %v8383_v42 = vmax.f32 %v8371_v13, %v3930_v5  ;;  %v8397_v5 = vpop.eup %6474  ;;  %6482 = vpow2.f32 %v2837_v29  ;;  %v2843_v14 = vmul.f32 1.442695, %v2832_v36 }
 0x3ea   : > { %v8402_v3 = vpop.eup %6476  ;;  %6484 = vpow2.f32 %v2839_v41  ;;  %v2847_v29 = vmul.f32 1.442695, %v2834_v30  ;;  %v2851_v41 = vmul.f32 1.442695, %v2836_v53  ;;  %v2849_v36 = vmul.f32 1.442695, %v2835_v55 }
 0x3eb   : > { %9684 = vst [vmem:[#allocation80_spill] sm:$0xff] %v8380_v27  ;;  %9685 = vst [vmem:[#allocation81_spill] sm:$0xff] %v8383_v42  ;;  %2870 = vperm.xlu0 %6401, %v8173_v43   ;;  %2865 = vperm.xlu1 %6400, %v8176_v1   ;;  %v8414_v45 = vpop.eup %6478  ;;  %6486 = vpow2.f32 %v2843_v14  ;;  %v2845_v14 = vmul.f32 1.442695, %v2833_v0 }
 0x3ec   : > { %4301 = vst.msk [vmem:[#allocation2 + $0x1b0] sm:$0xff] %vm222_vm1, %v8380_v27  ;;  %4300 = vst.msk [vmem:[#allocation2 + $0x1a8] sm:$0xff] %vm222_vm1, %v8383_v42  ;;  %v3936_v46 = vpop.xlane.xlu0 %3935  ;;  %6488 = vpow2.f32 %v2841_v63 }
 0x3ed   : > { %v8400_v44 = vmax.f32 %v8385_v32, %v3936_v46  ;;  %v8416_v46 = vpop.eup %6480  ;;  %6490 = vpow2.f32 %v2847_v29  ;;  %v9689_v29 = vsub.f32 %v8220_v31, %v8238_v22 }
 0x3ee   : > { %6492 = vpow2.f32 %v2845_v14 }
 0x3ef   : > { %9687 = vst [vmem:[#allocation83_spill] sm:$0xff] %v8400_v44  ;;  %4302 = vst.msk [vmem:[#allocation2 + $0x1b8] sm:$0xff] %vm222_vm1, %v8400_v44  ;;  %2452 = vperm.xlu0 %6401, %v8397_v5   ;;  %2447 = vperm.xlu1 %6400, %v8402_v3   ;;  %6494 = vpow2.f32 %v2851_v41  ;;  %v3397_v14 = vmul.f32 1.442695, %v9689_v29 }
 0x3f0   : > { %6496 = vpow2.f32 %v2849_v36 }
 0x3f1   : > { %6498 = vpow2.f32 %v3395_v56 }
 0x3f3   : > { %2880 = vperm.xlu0 %6401, %v8195_v16   ;;  %2875 = vperm.xlu1 %6400, %v8198_v37   ;;  %v8426_v1 = vpop.eup %6482 }
 0x3f4   : > { %v8428_v43 = vpop.eup %6484 }
 0x3f5   : > { %v8438_v16 = vpop.eup %6486 }
 0x3f6   : > { %v8440_v37 = vpop.eup %6488 }
 0x3f7   : > { %2462 = vperm.xlu0 %6401, %v8414_v45   ;;  %2457 = vperm.xlu1 %6400, %v8416_v46   ;;  %v8446_v48 = vpop.eup %6490 }
 0x3fb   : > { %2890 = vperm.xlu0 %6401, %v8213_v26   ;;  %2885 = vperm.xlu1 %6400, %v8216_v54   ;;  %v8448_v54 = vpop.eup %6492 }
 0x3fc   : > { %v8469_v31 = vpop.eup %6494 }
 0x3fd   : > { %9691 = vst [vmem:[#allocation84_spill] sm:$0xff] %v8469_v31  ;;  %v8474_v40 = vpop.eup %6496 }
 0x3ff   : > { %2985 = vperm.xlu0 %6401, %v8426_v1   ;;  %2990 = vperm.xlu1 %6400, %v8428_v43  }
 0x403   : > { %3413 = vperm.xlu0 %6401, %v8235_v21   ;;  %3418 = vperm.xlu1 %6400, %v8238_v22   ;;  %v3401_v21 = vmul.f32 1.442695, %v9690_v58  ;;  %v3399_v22 = vmul.f32 1.442695, %v9692_v57 }
 0x407   : > { %3000 = vperm.xlu0 %6401, %v8438_v16   ;;  %2995 = vperm.xlu1 %6400, %v8440_v37  }
 0x40b   : > { %3428 = vperm.xlu0 %6401, %v8257_v33   ;;  %3423 = vperm.xlu1 %6400, %v8260_v12  }
 0x40d   : > { %v1187_v26 = vpop.permute.xlu1 %1186 }
 0x40e   : > { %v1220_v63 = vsub.f32 %v7781_v20, %v1187_v26  ;;  %v1182_v30 = vpop.permute.xlu0 %1181  ;;  %v3394_v20 = vsub.f32 %v8290_v34, %v8305_v50 }
 0x40f   : > { %v1219_v0 = vsub.f32 %v7783_v10, %v1182_v30  ;;  %3010 = vperm.xlu0 %6401, %v8446_v48   ;;  %3005 = vperm.xlu1 %6400, %v8448_v54  }
 0x410   : > { %v1229_v53 = vmul.f32 1.442695, %v1220_v63 }
 0x411   : > { %v1227_v55 = vmul.f32 1.442695, %v1219_v0  ;;  %v9693_v0 = vsub.f32 %v8262_v23, %v8283_v38 }
 0x412   : > { %v1192_v41 = vpop.permute.xlu1 %1191  ;;  %v1197_v10 = vpop.permute.xlu0 %1196 }
 0x413   : > { %6500 = vpow2.f32 %v1227_v55  ;;  %v1221_v36 = vsub.f32 %v7791_v35, %v1192_v41  ;;  %v1222_v26 = vsub.f32 %v7789_v51, %v1197_v10  ;;  %3438 = vperm.xlu0 %6401, %v8283_v38   ;;  %3433 = vperm.xlu1 %6400, %v8286_v59   ;;  %v3409_v35 = vmul.f32 1.442695, %v3394_v20  ;;  %v8487_v55 = vpop.eup %6498 }
 0x414   : > { %6502 = vpow2.f32 %v3397_v14  ;;  %v3405_v29 = vmul.f32 1.442695, %v9693_v0  ;;  %9694 = vst [vmem:[#allocation85_spill] sm:$0xff] %v8487_v55  ;;  %v9696_v41 = vsub.f32 %v8264_v24, %v8286_v59 }
 0x415   : > { %6504 = vpow2.f32 %v1229_v53  ;;  %v1231_v34 = vmul.f32 1.442695, %v1221_v36  ;;  %v1233_v33 = vmul.f32 1.442695, %v1222_v26  ;;  %v9697_v26 = vld [vmem:[#allocation5_spill] sm:$0xff] }
 0x416   : > { %6506 = vpow2.f32 %v3401_v21  ;;  %v1202_v56 = vpop.permute.xlu1 %1201  ;;  %v1207_v51 = vpop.permute.xlu0 %1206  ;;  %v3403_v10 = vmul.f32 1.442695, %v9696_v41 }
 0x417   : > { %6508 = vpow2.f32 %v1231_v34  ;;  %v1223_v63 = vsub.f32 %v7799_v25, %v1202_v56  ;;  %v1224_v30 = vsub.f32 %v7797_v47, %v1207_v51  ;;  %3020 = vperm.xlu0 %6401, %v8469_v31   ;;  %3015 = vperm.xlu1 %6400, %v8474_v40  }
 0x418   : > { %6510 = vpow2.f32 %v1233_v33  ;;  %v9699_v33 = vld [vmem:[#allocation6_spill] sm:$0xff] }
 0x419   : > { %6512 = vpow2.f32 %v3399_v22  ;;  %v1235_v2 = vmul.f32 1.442695, %v1223_v63  ;;  %v1237_v12 = vmul.f32 1.442695, %v1224_v30  ;;  %v9698_v22 = vsub.f32 %v8292_v19, %v8308_v49 }
 0x41a   : > { %6514 = vpow2.f32 %v3409_v35  ;;  %v1212_v14 = vpop.permute.xlu1 %1211  ;;  %v1217_v53 = vpop.permute.xlu0 %1216 }
 0x41b   : > { %6516 = vpow2.f32 %v1235_v2  ;;  %v1225_v25 = vsub.f32 %v7807_v60, %v1212_v14  ;;  %v1226_v47 = vsub.f32 %v7805_v8, %v1217_v53  ;;  %3448 = vperm.xlu0 %6401, %v8305_v50   ;;  %3443 = vperm.xlu1 %6400, %v8308_v49   ;;  %v3407_v34 = vmul.f32 1.442695, %v9698_v22 }
 0x41c   : > { %6518 = vpow2.f32 %v1237_v12 }
 0x41d   : > { %v8489_v58 = vpop.eup %6500  ;;  %v1239_v21 = vmul.f32 1.442695, %v1225_v25  ;;  %v1241_v23 = vmul.f32 1.442695, %v1226_v47  ;;  %6520 = vpow2.f32 %v3405_v29 }
 0x41e   : > { %v8491_v38 = vpop.eup %6502  ;;  %v8493_v20 = vpop.permute.xlu1 %1316  ;;  %6178 = vmatprep.mubr.msk.f32.mxu0 %vm351_vm0, %v8489_v58 }
 0x41f   : > { %v8497_v8 = vpop.permute.xlu0 %1311  ;;  %v8499_v60 = vpop.eup %6504  ;;  %6522 = vpow2.f32 %v1239_v21  ;;  %3543 = vperm.xlu0 %6401, %v8487_v55   ;;  %3548 = vperm.xlu1 %6400, %v8491_v38  }
 0x420   : > { %v8503_v50 = vpop.eup %6506  ;;  %6524 = vpow2.f32 %v1241_v23  ;;  %6179 = vmatmul.mubr.msk.f32.vlgmr.msra.gmra.mrb[8].mxu0 %vm351_vm0, %v8499_v60 }
 0x421   : > { %9695 = vst [vmem:[#allocation86_spill] sm:$0xff] %v8503_v50  ;;  %v8510_v36 = vpop.eup %6508  ;;  %6205 = vmatpush3.msra.mxu0 %v9697_v26  ;;  %6526 = vpow2.f32 %v3403_v10 }
 0x422   : > { %v8513_v57 = vpop.eup %6510  ;;  %6232 = vmatprep.subr.mxu0 %v9699_v33  ;;  %v1745_v35 = vpop.permute.xlu1 %1744  ;;  %6181 = vmatprep.mubr.msk.f32.mxu0 %vm351_vm0, %v8510_v36  ;;  %6528 = vpow2.f32 %v3407_v34 }
 0x423   : > { %v1740_v24 = vpop.permute.xlu0 %1739  ;;  %v8521_v59 = vpop.eup %6512  ;;  %v1778_v56 = vsub.f32 %v7813_v4, %v1745_v35  ;;  %3558 = vperm.xlu0 %6401, %v8503_v50   ;;  %3971 = vperm.xlu1 %6400, %v8332_v28  }
 0x424   : > { %9700 = vst [vmem:[#allocation5_spill] sm:$0xff] %v8521_v59  ;;  %v1777_v51 = vsub.f32 %v7815_v7, %v1740_v24  ;;  %v8527_v63 = vpop.eup %6514  ;;  %6182 = vmatmul.mubr.msk.f32.gmra.mrb[10].mxu0 %vm351_vm0, %v8513_v57 }
 0x425   : > { %9701 = vst [vmem:[#allocation6_spill] sm:$0xff] %v8527_v63  ;;  %v8531_v19 = vpop.eup %6516  ;;  %v1787_v49 = vmul.f32 1.442695, %v1778_v56  ;;  %v9705_v56 = vld [vmem:[#allocation8_spill] sm:$0xff] }
 0x426   : > { %v1785_v30 = vmul.f32 1.442695, %v1777_v51  ;;  %v8533_v2 = vpop.eup %6518  ;;  %v8535_v4 = vpop.permute.xlu1 %1321  ;;  %6184 = vmatprep.mubr.msk.f32.mxu0 %vm351_vm0, %v8531_v19 }
 0x427   : > { %v8539_v7 = vpop.permute.xlu0 %1326  ;;  %6530 = vpow2.f32 %v1787_v49  ;;  %3578 = vperm.xlu0 %6401, %v8527_v63   ;;  %3553 = vperm.xlu1 %6400, %v8521_v59   ;;  %v8543_v12 = vpop.eup %6520  ;;  %v9715_v59 = vld [vmem:[#allocation36_spill] sm:$0xff] }
 0x428   : > { %9702 = vst [vmem:[#allocation87_spill] sm:$0xff] %v8543_v12  ;;  %6532 = vpow2.f32 %v1785_v30  ;;  %6185 = vmatmul.mubr.msk.f32.gmra.mrb[12].mxu0 %vm351_vm0, %v8533_v2 }
 0x429   : > { %v8547_v0 = vpop.eup %6522 }
 0x42a   : > { %v8549_v29 = vpop.eup %6524  ;;  %v1750_v14 = vpop.permute.xlu1 %1749  ;;  %6187 = vmatprep.mubr.msk.f32.mxu0 %vm351_vm0, %v8547_v0 }
 0x42b   : > { %v1755_v53 = vpop.permute.xlu0 %1754  ;;  %v1779_v25 = vsub.f32 %v7823_v39, %v1750_v14  ;;  %3568 = vperm.xlu1 %6400, %v8543_v12   ;;  %v8558_v41 = vpop.eup %6526  ;;  %v9706_v14 = vld [vmem:[#allocation12_spill] sm:$0xff] }
 0x42c   : > { %v1780_v47 = vsub.f32 %v7821_v6, %v1755_v53  ;;  %6188 = vmatmul.mubr.msk.f32.gmra.mrb[14].mxu0 %vm351_vm0, %v8549_v29  ;;  %9703 = vst [vmem:[#allocation88_spill] sm:$0xff] %v8558_v41  ;;  %v8565_v22 = vpop.eup %6528 }
 0x42d   : > { %v1789_v21 = vmul.f32 1.442695, %v1779_v25  ;;  %9704 = vst [vmem:[#allocation89_spill] sm:$0xff] %v8565_v22 }
 0x42e   : > { %v1791_v23 = vmul.f32 1.442695, %v1780_v47  ;;  %v8560_v10 = vpop.permute.xlu1 %1331 }
 0x42f   : > { %v8562_v26 = vpop.permute.xlu0 %1336  ;;  %6534 = vpow2.f32 %v1789_v21  ;;  %3563 = vperm.xlu1 %6400, %v8558_v41  }
 0x430   : > { %6536 = vpow2.f32 %v1791_v23 }
 0x431   : > { %v8567_v6 = vpop.eup %6530 }
 0x432   : > { %v8569_v39 = vpop.eup %6532  ;;  %v1760_v34 = vpop.permute.xlu1 %1759 }
 0x433   : > { %v1765_v35 = vpop.permute.xlu0 %1764  ;;  %v1781_v24 = vsub.f32 %v7831_v11, %v1760_v34  ;;  %6206 = vmatprep.mubr.msk.f32.mxu0 %vm351_vm0, %v8569_v39  ;;  %3573 = vperm.xlu1 %6400, %v8565_v22   ;;  %v9707_v34 = vld [vmem:[#allocation10_spill] sm:$0xff] }
 0x434   : > { %v1782_v51 = vsub.f32 %v9705_v56, %v1765_v35  ;;  %6207 = vmatmul.mubr.msk.f32.vlgmr.msra.gmra.mrb[16].mxu0 %vm351_vm0, %v8567_v6 }
 0x435   : > { %v1793_v49 = vmul.f32 1.442695, %v1781_v24  ;;  %6233 = vmatpush3.msra.mxu0 %v9699_v33  ;;  %v9708_v33 = vld [vmem:[#allocation7_spill] sm:$0xff] }
 0x436   : > { %v1795_v30 = vmul.f32 1.442695, %v1782_v51  ;;  %6260 = vmatprep.subr.mxu0 %v9706_v14  ;;  %v8580_v53 = vpop.permute.xlu1 %1341 }
 0x437   : > { %v8582_v25 = vpop.permute.xlu0 %1346  ;;  %6538 = vpow2.f32 %v1793_v49 }
 0x438   : > { %6540 = vpow2.f32 %v1795_v30 }
 0x439   : > { %v8584_v11 = vpop.eup %6534 }
 0x43a   : > { %v8586_v47 = vpop.eup %6536  ;;  %v1770_v21 = vpop.permute.xlu1 %1769  ;;  %6209 = vmatprep.mubr.msk.f32.mxu0 %vm351_vm0, %v8584_v11 }
 0x43b   : > { %v1775_v23 = vpop.permute.xlu0 %1774  ;;  %v1783_v35 = vsub.f32 %v9707_v34, %v1770_v21  ;;  %6210 = vmatmul.mubr.msk.f32.gmra.mrb[18].mxu0 %vm351_vm0, %v8586_v47 }
 0x43c   : > { %v1784_v24 = vsub.f32 %v9708_v33, %v1775_v23  ;;  %v9709_v23 = vld [vmem:[#allocation9_spill] sm:$0xff]  ;;  %v9710_v33 = vld [vmem:[#allocation14_spill] sm:$0xff] }
 0x43d   : > { %v1797_v56 = vmul.f32 1.442695, %v1783_v35 }
 0x43e   : > { %v1799_v51 = vmul.f32 1.442695, %v1784_v24  ;;  %v8594_v49 = vpop.permute.xlu1 %1874 }
 0x43f   : > { %v8596_v30 = vpop.permute.xlu0 %1869  ;;  %6542 = vpow2.f32 %v1797_v56  ;;  %v1263_v56 = vsel %vm351_vm0, %v8499_v60, 0.0 }
 0x440   : > { %6544 = vpow2.f32 %v1799_v51 }
 0x441   : > { %v8598_v32 = vpop.eup %6538 }
 0x442   : > { %v8600_v13 = vpop.eup %6540  ;;  %v2303_v28 = vpop.permute.xlu1 %2302  ;;  %6212 = vmatprep.mubr.msk.f32.mxu0 %vm351_vm0, %v8598_v32 }
 0x443   : > { %v2298_v21 = vpop.permute.xlu0 %2297  ;;  %v2336_v34 = vsub.f32 %v9709_v23, %v2303_v28  ;;  %6213 = vmatmul.mubr.msk.f32.gmra.mrb[20].mxu0 %vm351_vm0, %v8600_v13  ;;  %v1266_v28 = vsel %vm351_vm0, %v8510_v36, 0.0  ;;  %v1272_v36 = vsel %vm351_vm0, %v8531_v19, 0.0  ;;  %v9714_v19 = vld [vmem:[#allocation16_spill] sm:$0xff] }
 0x444   : > { %v2335_v35 = vsub.f32 %v9710_v33, %v2298_v21 }
 0x445   : > { %v2345_v24 = vmul.f32 1.442695, %v2336_v34  ;;  %v9711_v34 = vld [vmem:[#allocation27_spill] sm:$0xff] }
 0x446   : > { %v2343_v63 = vmul.f32 1.442695, %v2335_v35  ;;  %v8610_v51 = vpop.permute.xlu1 %1879  ;;  %1264 = vadd.xlane.f32.xlu0 %v1263_v56  ;;  %v9712_v35 = vld [vmem:[#allocation11_spill] sm:$0xff] }
 0x447   : > { %v8612_v22 = vpop.permute.xlu0 %1884  ;;  %6546 = vpow2.f32 %v2345_v24 }
 0x448   : > { %6548 = vpow2.f32 %v2343_v63 }
 0x449   : > { %v8614_v12 = vpop.eup %6542 }
 0x44a   : > { %v8618_v21 = vpop.eup %6544  ;;  %v2308_v23 = vpop.permute.xlu1 %2307  ;;  %1267 = vadd.xlane.f32.xlu0 %v1266_v28  ;;  %6215 = vmatprep.mubr.msk.f32.mxu0 %vm351_vm0, %v8614_v12 }
 0x44b   : > { %v2313_v60 = vpop.permute.xlu0 %2312  ;;  %v2337_v33 = vsub.f32 %v9711_v34, %v2308_v23  ;;  %6216 = vmatmul.mubr.msk.f32.gmra.mrb[22].mxu0 %vm351_vm0, %v8618_v21  ;;  %v1278_v23 = vsel %vm351_vm0, %v8547_v0, 0.0  ;;  %v1821_v0 = vsel %vm351_vm0, %v8567_v6, 0.0 }
 0x44c   : > { %v2338_v56 = vsub.f32 %v9712_v35, %v2313_v60  ;;  %v9713_v35 = vld [vmem:[#allocation13_spill] sm:$0xff] }
 0x44d   : > { %v2347_v63 = vmul.f32 1.442695, %v2337_v33 }
 0x44e   : > { %v2349_v24 = vmul.f32 1.442695, %v2338_v56  ;;  %v8628_v41 = vpop.permute.xlu1 %1889  ;;  %1273 = vadd.xlane.f32.xlu0 %v1272_v36 }
 0x44f   : > { %v8630_v28 = vpop.permute.xlu0 %1894  ;;  %6550 = vpow2.f32 %v2347_v63 }
 0x450   : > { %6552 = vpow2.f32 %v2349_v24 }
 0x451   : > { %v6547_v50 = vpop.eup %6546 }
 0x452   : > { %v8634_v60 = vpop.eup %6548  ;;  %v2318_v34 = vpop.permute.xlu1 %2317  ;;  %1279 = vadd.xlane.f32.xlu0 %v1278_v23 }
 0x453   : > { %v2323_v33 = vpop.permute.xlu0 %2322  ;;  %v2339_v56 = vsub.f32 %v9713_v35, %v2318_v34  ;;  %6234 = vmatprep.mubr.msk.f32.mxu0 %vm351_vm0, %v8634_v60  ;;  %v1260_v35 = vsel %vm351_vm0, %v8489_v58, 0.0  ;;  %v9717_v58 = vld [vmem:[#allocation17_spill] sm:$0xff] }
 0x454   : > { %v2340_v36 = vsub.f32 %v9714_v19, %v2323_v33  ;;  %6235 = vmatmul.mubr.msk.f32.vlgmr.msra.gmra.mrb[24].mxu0 %vm351_vm0, %v6547_v50 }
 0x455   : > { %v2351_v63 = vmul.f32 1.442695, %v2339_v56  ;;  %6261 = vmatpush3.msra.mxu0 %v9706_v14  ;;  %v1824_v14 = vsel %vm351_vm0, %v8584_v11, 0.0 }
 0x456   : > { %v2353_v24 = vmul.f32 1.442695, %v2340_v36  ;;  %6288 = vmatprep.subr.mxu0 %v9715_v59  ;;  %v8645_v23 = vpop.permute.xlu1 %1899  ;;  %1822 = vadd.xlane.f32.xlu0 %v1821_v0  ;;  %v1269_v36 = vsel %vm351_vm0, %v8513_v57, 0.0  ;;  %v9716_v0 = vld [vmem:[#allocation15_spill] sm:$0xff]  ;;  %v1275_v57 = vsel %vm351_vm0, %v8533_v2, 0.0 }
 0x457   : > { %v8647_v34 = vpop.permute.xlu0 %1904  ;;  %6554 = vpow2.f32 %v2351_v63  ;;  %1261 = vadd.xlane.f32.xlu1 %v1260_v35  ;;  %v1830_v35 = vsel %vm351_vm0, %v8598_v32, 0.0  ;;  %v9719_v2 = vld [vmem:[#allocation19_spill] sm:$0xff] }
 0x458   : > { %6556 = vpow2.f32 %v2353_v24 }
 0x459   : > { %v6551_v33 = vpop.eup %6550 }
 0x45a   : > { %v8653_v56 = vpop.eup %6552  ;;  %v2328_v6 = vpop.permute.xlu1 %2327  ;;  %1825 = vadd.xlane.f32.xlu0 %v1824_v14  ;;  %6237 = vmatprep.mubr.msk.f32.mxu0 %vm351_vm0, %v6551_v33 }
 0x45b   : > { %v2333_v19 = vpop.permute.xlu0 %2332  ;;  %v2341_v55 = vsub.f32 %v9716_v0, %v2328_v6  ;;  %1270 = vadd.xlane.f32.xlu1 %v1269_v36  ;;  %6238 = vmatmul.mubr.msk.f32.gmra.mrb[26].mxu0 %vm351_vm0, %v8653_v56  ;;  %v1281_v0 = vsel %vm351_vm0, %v8549_v29, 0.0  ;;  %v1818_v29 = vsel %vm351_vm0, %v8569_v39, 0.0 }
 0x45c   : > { %v2342_v63 = vsub.f32 %v9717_v58, %v2333_v19  ;;  %v1836_v19 = vsel %vm351_vm0, %v8614_v12, 0.0  ;;  %v9718_v58 = vld [vmem:[#allocation18_spill] sm:$0xff] }
 0x45d   : > { %v2355_v24 = vmul.f32 1.442695, %v2341_v55 }
 0x45e   : > { %v2357_v11 = vmul.f32 1.442695, %v2342_v63  ;;  %v8664_v14 = vpop.permute.xlu1 %2432  ;;  %1831 = vadd.xlane.f32.xlu0 %v1830_v35  ;;  %v2379_v35 = vsel %vm351_vm0, %v6547_v50, 0.0 }
 0x45f   : > { %v8666_v31 = vpop.permute.xlu0 %2427  ;;  %6558 = vpow2.f32 %v2355_v24  ;;  %1276 = vadd.xlane.f32.xlu1 %v1275_v57 }
 0x460   : > { %6560 = vpow2.f32 %v2357_v11 }
 0x461   : > { %v6555_v6 = vpop.eup %6554 }
 0x462   : > { %v8672_v55 = vpop.eup %6556  ;;  %v2861_v36 = vpop.permute.xlu1 %2860  ;;  %1837 = vadd.xlane.f32.xlu0 %v1836_v19  ;;  %6240 = vmatprep.mubr.msk.f32.mxu0 %vm351_vm0, %v6555_v6 }
 0x463   : > { %v2856_v32 = vpop.permute.xlu0 %2855  ;;  %v2894_v63 = vsub.f32 %v9718_v58, %v2861_v36  ;;  %1282 = vadd.xlane.f32.xlu1 %v1281_v0  ;;  %6241 = vmatmul.mubr.msk.f32.gmra.mrb[28].mxu0 %vm351_vm0, %v8672_v55 }
 0x464   : > { %v2893_v24 = vsub.f32 %v9719_v2, %v2856_v32  ;;  %v2382_v32 = vsel %vm351_vm0, %v6551_v33, 0.0  ;;  %v9720_v2 = vld [vmem:[#allocation21_spill] sm:$0xff] }
 0x465   : > { %v2903_v11 = vmul.f32 1.442695, %v2894_v63  ;;  %v1827_v63 = vsel %vm351_vm0, %v8586_v47, 0.0  ;;  %v1833_v47 = vsel %vm351_vm0, %v8600_v13, 0.0 }
 0x466   : > { %v2901_v12 = vmul.f32 1.442695, %v2893_v24  ;;  %v8682_v57 = vpop.permute.xlu1 %2437  ;;  %2380 = vadd.xlane.f32.xlu0 %v2379_v35  ;;  %v9721_v35 = vld [vmem:[#allocation20_spill] sm:$0xff] }
 0x467   : > { %v8684_v19 = vpop.permute.xlu0 %2442  ;;  %6562 = vpow2.f32 %v2903_v11  ;;  %1819 = vadd.xlane.f32.xlu1 %v1818_v29 }
 0x468   : > { %6564 = vpow2.f32 %v2901_v12  ;;  %v2388_v12 = vsel %vm351_vm0, %v6555_v6, 0.0  ;;  %v1839_v6 = vsel %vm351_vm0, %v8618_v21, 0.0  ;;  %v2376_v21 = vsel %vm351_vm0, %v8634_v60, 0.0 }
 0x469   : > { %v6559_v36 = vpop.eup %6558 }
 0x46a   : > { %v8689_v0 = vpop.eup %6560  ;;  %v2866_v58 = vpop.permute.xlu1 %2865  ;;  %2383 = vadd.xlane.f32.xlu0 %v2382_v32  ;;  %6243 = vmatprep.mubr.msk.f32.mxu0 %vm351_vm0, %v6559_v36 }
 0x46b   : > { %v2871_v50 = vpop.permute.xlu0 %2870  ;;  %v2895_v24 = vsub.f32 %v9720_v2, %v2866_v58  ;;  %1828 = vadd.xlane.f32.xlu1 %v1827_v63  ;;  %6244 = vmatmul.mubr.msk.f32.gmra.mrb[30].mxu0 %vm351_vm0, %v8689_v0 }
 0x46c   : > { %v2896_v39 = vsub.f32 %v9721_v35, %v2871_v50  ;;  %v2394_v50 = vsel %vm351_vm0, %v6559_v36, 0.0  ;;  %v9723_v35 = vld [vmem:[#allocation23_spill] sm:$0xff] }
 0x46d   : > { %v2905_v11 = vmul.f32 1.442695, %v2895_v24 }
 0x46e   : > { %v2907_v33 = vmul.f32 1.442695, %v2896_v39  ;;  %v8699_v29 = vpop.permute.xlu1 %2447  ;;  %2389 = vadd.xlane.f32.xlu0 %v2388_v12  ;;  %v9724_v12 = vld [vmem:[#allocation22_spill] sm:$0xff] }
 0x46f   : > { %9722 = vst [vmem:[#allocation8_spill] sm:$0xff] %v8699_v29  ;;  %v8701_v32 = vpop.permute.xlu0 %2452  ;;  %6566 = vpow2.f32 %v2905_v11  ;;  %1834 = vadd.xlane.f32.xlu1 %v1833_v47 }
 0x470   : > { %6568 = vpow2.f32 %v2907_v33 }
 0x471   : > { %v6563_v58 = vpop.eup %6562 }
 0x472   : > { %v6565_v63 = vpop.eup %6564  ;;  %v2876_v2 = vpop.permute.xlu1 %2875  ;;  %2395 = vadd.xlane.f32.xlu0 %v2394_v50  ;;  %v2937_v36 = vsel %vm351_vm0, %v6563_v58, 0.0 }
 0x473   : > { %v2881_v24 = vpop.permute.xlu0 %2880  ;;  %v2897_v39 = vsub.f32 %v9723_v35, %v2876_v2  ;;  %6262 = vmatprep.mubr.msk.f32.mxu0 %vm351_vm0, %v6565_v63  ;;  %1840 = vadd.xlane.f32.xlu1 %v1839_v6  ;;  %v9725_v6 = vld [vmem:[#allocation25_spill] sm:$0xff] }
 0x474   : > { %v2898_v29 = vsub.f32 %v9724_v12, %v2881_v24  ;;  %6263 = vmatmul.mubr.msk.f32.vlgmr.msra.gmra.mrb[32].mxu0 %vm351_vm0, %v6563_v58  ;;  %v2385_v58 = vsel %vm351_vm0, %v8653_v56, 0.0 }
 0x475   : > { %v2909_v13 = vmul.f32 1.442695, %v2897_v39  ;;  %6289 = vmatpush3.msra.mxu0 %v9715_v59  ;;  %v9726_v39 = vld [vmem:[#allocation24_spill] sm:$0xff] }
 0x476   : > { %v2911_v11 = vmul.f32 1.442695, %v2898_v29  ;;  %v8714_v33 = vpop.permute.xlu1 %2457  ;;  %2938 = vadd.xlane.f32.xlu0 %v2937_v36 }
 0x477   : > { %v8716_v47 = vpop.permute.xlu0 %2462  ;;  %6570 = vpow2.f32 %v2909_v13  ;;  %2377 = vadd.xlane.f32.xlu1 %v2376_v21  ;;  %v2391_v21 = vsel %vm351_vm0, %v8672_v55, 0.0 }
 0x478   : > { %6572 = vpow2.f32 %v2911_v11 }
 0x479   : > { %v6567_v50 = vpop.eup %6566 }
 0x47a   : > { %v6569_v2 = vpop.eup %6568  ;;  %v2886_v24 = vpop.permute.xlu1 %2885  ;;  %6265 = vmatprep.mubr.msk.f32.mxu0 %vm351_vm0, %v6567_v50  ;;  %v2940_v59 = vsel %vm351_vm0, %v6567_v50, 0.0 }
 0x47b   : > { %v2891_v29 = vpop.permute.xlu0 %2890  ;;  %v2899_v35 = vsub.f32 %v9725_v6, %v2886_v24  ;;  %2941 = vadd.xlane.f32.xlu0 %v2940_v59  ;;  %2386 = vadd.xlane.f32.xlu1 %v2385_v58  ;;  %v2397_v58 = vsel %vm351_vm0, %v8689_v0, 0.0  ;;  %v9728_v6 = vld [vmem:[#allocation26_spill] sm:$0xff] }
 0x47c   : > { %v2900_v12 = vsub.f32 %v9726_v39, %v2891_v29  ;;  %6266 = vmatmul.mubr.msk.f32.gmra.mrb[34].mxu0 %vm351_vm0, %v6569_v2  ;;  %v9729_v39 = vld [vmem:[#allocation28_spill] sm:$0xff] }
 0x47d   : > { %v2913_v60 = vmul.f32 1.442695, %v2899_v35 }
 0x47e   : > { %v2915_v13 = vmul.f32 1.442695, %v2900_v12  ;;  %v8727_v11 = vpop.permute.xlu1 %2990 }
 0x47f   : > { %v8729_v36 = vpop.permute.xlu0 %2985  ;;  %6574 = vpow2.f32 %v2913_v60  ;;  %2392 = vadd.xlane.f32.xlu1 %v2391_v21 }
 0x480   : > { %9727 = vst [vmem:[#allocation12_spill] sm:$0xff] %v8729_v36  ;;  %6576 = vpow2.f32 %v2915_v13  ;;  %v2934_v36 = vsel %vm351_vm0, %v6565_v63, 0.0 }
 0x481   : > { %v6571_v56 = vpop.eup %6570 }
 0x482   : > { %v6573_v50 = vpop.eup %6572  ;;  %v3419_v24 = vpop.permute.xlu1 %3418  ;;  %6268 = vmatprep.mubr.msk.f32.mxu0 %vm351_vm0, %v6571_v56  ;;  %v2946_v59 = vsel %vm351_vm0, %v6571_v56, 0.0 }
 0x483   : > { %v3414_v29 = vpop.permute.xlu0 %3413  ;;  %v3452_v35 = vsub.f32 %v9728_v6, %v3419_v24  ;;  %2947 = vadd.xlane.f32.xlu0 %v2946_v59  ;;  %2398 = vadd.xlane.f32.xlu1 %v2397_v58  ;;  %v2943_v58 = vsel %vm351_vm0, %v6569_v2, 0.0  ;;  %v9731_v6 = vld [vmem:[#allocation30_spill] sm:$0xff] }
 0x484   : > { %v3451_v12 = vsub.f32 %v9729_v39, %v3414_v29  ;;  %6269 = vmatmul.mubr.msk.f32.gmra.mrb[36].mxu0 %vm351_vm0, %v6573_v50  ;;  %v9732_v39 = vld [vmem:[#allocation29_spill] sm:$0xff] }
 0x485   : > { %v3461_v55 = vmul.f32 1.442695, %v3452_v35 }
 0x486   : > { %v3459_v60 = vmul.f32 1.442695, %v3451_v12  ;;  %v8740_v13 = vpop.permute.xlu1 %2995 }
 0x487   : > { %9730 = vst [vmem:[#allocation10_spill] sm:$0xff] %v8740_v13  ;;  %v8742_v21 = vpop.permute.xlu0 %3000  ;;  %6578 = vpow2.f32 %v3461_v55  ;;  %2935 = vadd.xlane.f32.xlu1 %v2934_v36  ;;  %v2949_v13 = vsel %vm351_vm0, %v6573_v50, 0.0 }
 0x488   : > { %6580 = vpow2.f32 %v3459_v60 }
 0x489   : > { %v6575_v0 = vpop.eup %6574 }
 0x48a   : > { %v6577_v56 = vpop.eup %6576  ;;  %v3424_v24 = vpop.permute.xlu1 %3423  ;;  %6271 = vmatprep.mubr.msk.f32.mxu0 %vm351_vm0, %v6575_v0  ;;  %v2952_v59 = vsel %vm351_vm0, %v6575_v0, 0.0 }
 0x48b   : > { %v3429_v29 = vpop.permute.xlu0 %3428  ;;  %v3453_v35 = vsub.f32 %v9731_v6, %v3424_v24  ;;  %2953 = vadd.xlane.f32.xlu0 %v2952_v59  ;;  %2944 = vadd.xlane.f32.xlu1 %v2943_v58  ;;  %v9734_v59 = vld [vmem:[#allocation32_spill] sm:$0xff] }
 0x48c   : > { %v3454_v12 = vsub.f32 %v9732_v39, %v3429_v29  ;;  %6272 = vmatmul.mubr.msk.f32.gmra.mrb[38].mxu0 %vm351_vm0, %v6577_v56 }
 0x48d   : > { %v3463_v63 = vmul.f32 1.442695, %v3453_v35  ;;  %v9735_v35 = vld [vmem:[#allocation31_spill] sm:$0xff] }
 0x48e   : > { %v3465_v36 = vmul.f32 1.442695, %v3454_v12  ;;  %v8751_v55 = vpop.permute.xlu1 %3005  ;;  %v2955_v12 = vsel %vm351_vm0, %v6577_v56, 0.0 }
 0x48f   : > { %9733 = vst [vmem:[#allocation7_spill] sm:$0xff] %v8751_v55  ;;  %v8753_v60 = vpop.permute.xlu0 %3010  ;;  %6582 = vpow2.f32 %v3463_v63  ;;  %2950 = vadd.xlane.f32.xlu1 %v2949_v13 }
 0x490   : > { %6584 = vpow2.f32 %v3465_v36 }
 0x491   : > { %v6579_v2 = vpop.eup %6578 }
 0x492   : > { %v6581_v0 = vpop.eup %6580  ;;  %v3434_v24 = vpop.permute.xlu1 %3433  ;;  %v3495_v29 = vsel %vm351_vm0, %v6579_v2, 0.0 }
 0x493   : > { %v3439_v6 = vpop.permute.xlu0 %3438  ;;  %v3455_v58 = vsub.f32 %v9734_v59, %v3434_v24  ;;  %6290 = vmatprep.mubr.msk.f32.mxu0 %vm351_vm0, %v6581_v0  ;;  %3496 = vadd.xlane.f32.xlu0 %v3495_v29  ;;  %v3492_v55 = vsel %vm351_vm0, %v6581_v0, 0.0 }
 0x494   : > { %v3456_v39 = vsub.f32 %v9735_v35, %v3439_v6  ;;  %2956 = vadd.xlane.f32.xlu1 %v2955_v12  ;;  %6291 = vmatmul.mubr.msk.f32.vlgmr.msra.gmra.mrb[40].mxu0 %vm351_vm0, %v6579_v2  ;;  %v9738_v2 = vld [vmem:[#allocation34_spill] sm:$0xff]  ;;  %v9739_v35 = vld [vmem:[#allocation33_spill] sm:$0xff] }
 0x495   : > { %v3467_v50 = vmul.f32 1.442695, %v3455_v58 }
 0x496   : > { %v3469_v13 = vmul.f32 1.442695, %v3456_v39  ;;  %v8762_v63 = vpop.permute.xlu1 %3015 }
 0x497   : > { %9736 = vst [vmem:[#allocation9_spill] sm:$0xff] %v8762_v63  ;;  %v8764_v36 = vpop.permute.xlu0 %3020  ;;  %6586 = vpow2.f32 %v3467_v50 }
 0x498   : > { %9737 = vst [vmem:[#allocation14_spill] sm:$0xff] %v8764_v36  ;;  %6588 = vpow2.f32 %v3469_v13  ;;  %3493 = vadd.xlane.f32.xlu1 %v3492_v55 }
 0x499   : > { %v6583_v24 = vpop.eup %6582 }
 0x49a   : > { %v6585_v59 = vpop.eup %6584  ;;  %v3444_v6 = vpop.permute.xlu1 %3443  ;;  %6293 = vmatprep.mubr.msk.f32.mxu0 %vm351_vm0, %v6583_v24  ;;  %v3498_v29 = vsel %vm351_vm0, %v6583_v24, 0.0 }
 0x49b   : > { %v3449_v56 = vpop.permute.xlu0 %3448  ;;  %v3457_v58 = vsub.f32 %v9738_v2, %v3444_v6  ;;  %3499 = vadd.xlane.f32.xlu0 %v3498_v29  ;;  %6294 = vmatmul.mubr.msk.f32.gmra.mrb[42].mxu0 %vm351_vm0, %v6585_v59  ;;  %v3501_v12 = vsel %vm351_vm0, %v6585_v59, 0.0  ;;  %v9740_v6 = vld [vmem:[#allocation37_spill] sm:$0xff] }
 0x49c   : > { %v3458_v39 = vsub.f32 %v9739_v35, %v3449_v56  ;;  %3502 = vadd.xlane.f32.xlu1 %v3501_v12 }
 0x49d   : > { %v3471_v0 = vmul.f32 1.442695, %v3457_v58 }
 0x49e   : > { %v3473_v55 = vmul.f32 1.442695, %v3458_v39  ;;  %v8773_v50 = vpop.permute.xlu1 %3548 }
 0x49f   : > { %6590 = vpow2.f32 %v3471_v0 }
 0x4a0   : > { %6592 = vpow2.f32 %v3473_v55 }
 0x4a1   : > { %v6587_v13 = vpop.eup %6586 }
 0x4a2   : > { %v6589_v63 = vpop.eup %6588  ;;  %v3972_v36 = vpop.permute.xlu1 %3971  ;;  %6296 = vmatprep.mubr.msk.f32.mxu0 %vm351_vm0, %v6587_v13  ;;  %v3504_v24 = vsel %vm351_vm0, %v6587_v13, 0.0  ;;  %v1245_v13 = vld [vmem:[#allocation3 + $0x48] sm:$0xff] }
 0x4a3   : > { %v4009_v56 = vsub.f32 %v9740_v6, %v3972_v36  ;;  %3505 = vadd.xlane.f32.xlu0 %v3504_v24  ;;  %6297 = vmatmul.mubr.msk.f32.gmra.mrb[44].mxu0 %vm351_vm0, %v6589_v63  ;;  %v3507_v59 = vsel %vm351_vm0, %v6589_v63, 0.0  ;;  %v8788_v63 = vpop.permute.xlu0 %3543  ;;  %v9744_v24 = vld [vmem:[#allocation53_spill] sm:$0xff] }
 0x4a4   : > { %3508 = vadd.xlane.f32.xlu1 %v3507_v59  ;;  %v1253_v6 = vmul.f32 %v9744_v24, %v1245_v13  ;;  %v1246_v59 = vld [vmem:[#allocation3 + $0x50] sm:$0xff] }
 0x4a5   : > { %v4017_v29 = vmul.f32 1.442695, %v4009_v56  ;;  %v1250_v13 = vld [vmem:[#allocation3 + $0x70] sm:$0xff] }
 0x4a6   : > { %v8796_v0 = vpop.permute.xlu1 %3553 }
 0x4a7   : > { %6594 = vpow2.f32 %v4017_v29  ;;  %v8792_v12 = vpop.permute.xlu0 %3558  ;;  %9742 = vst [vmem:[#allocation11_spill] sm:$0xff] %v8796_v0 }
 0x4a8   : > { %9741 = vst [vmem:[#allocation27_spill] sm:$0xff] %v8792_v12 }
 0x4a9   : > { %v6591_v2 = vpop.eup %6590 }
 0x4aa   : > { %v6593_v58 = vpop.eup %6592  ;;  %6299 = vmatprep.mubr.msk.f32.mxu0 %vm351_vm0, %v6591_v2  ;;  %v3510_v35 = vsel %vm351_vm0, %v6591_v2, 0.0  ;;  %v8801_v29 = vpop.permute.xlu1 %3568 }
 0x4ab   : > { %3511 = vadd.xlane.f32.xlu0 %v3510_v35  ;;  %6300 = vmatmul.mubr.msk.f32.gmra.mrb[46].mxu0 %vm351_vm0, %v6593_v58  ;;  %v3513_v39 = vsel %vm351_vm0, %v6593_v58, 0.0  ;;  %v8798_v55 = vpop.permute.xlu0 %3578  ;;  %9745 = vst [vmem:[#allocation16_spill] sm:$0xff] %v8801_v29  ;;  %v9746_v58 = vld [vmem:[#allocation55_spill] sm:$0xff] }
 0x4ac   : > { %3514 = vadd.xlane.f32.xlu1 %v3513_v39  ;;  %9743 = vst [vmem:[#allocation13_spill] sm:$0xff] %v8798_v55  ;;  %v1254_v35 = vmul.f32 %v9746_v58, %v1246_v59  ;;  %v9748_v55 = vld [vmem:[#allocation57_spill] sm:$0xff]  ;;  %v9749_v29 = vld [vmem:[#allocation59_spill] sm:$0xff] }
 0x4ad   : > { %v1244_v58 = vld [vmem:[#allocation3 + $0x40] sm:$0xff] }
 0x4b1   : > { %v6595_v36 = vpop.eup %6594 }
 0x4b2   : > { %6318 = vmatprep.mubr.msk.f32.mxu0 %vm351_vm0, %v6595_v36 }
 0x4bd   : > { %3981 = vperm.xlu1 %6400, %v8365_v17  }
 0x4c1   : > { %3986 = vperm.xlu1 %6400, %v8345_v18   ;;  %3976 = vperm.xlu0 %6401, %v8329_v61  }
 0x4c5   : > { %3996 = vperm.xlu1 %6400, %v8383_v42   ;;  %3991 = vperm.xlu0 %6401, %v8362_v9   ;;  %v1248_v9 = vld [vmem:[#allocation3 + $0x60] sm:$0xff] }
 0x4c9   : > { %4006 = vperm.xlu1 %6400, %v8400_v44   ;;  %4001 = vperm.xlu0 %6401, %v8380_v27   ;;  %v8805_v27 = vpop.permute.xlu1 %3563  ;;  %v1256_v44 = vmul.f32 %v9748_v55, %v1248_v9  ;;  %v1804_v55 = vld [vmem:[#allocation3 + $0x90] sm:$0xff] }
 0x4ca   : > { %9747 = vst [vmem:[#allocation36_spill] sm:$0xff] %v8805_v27  ;;  %v9752_v27 = vld [vmem:[#allocation52_spill] sm:$0xff] }
 0x4cb   : > { %v1252_v9 = vmul.f32 %v9752_v27, %v1244_v58  ;;  %v1249_v27 = vld [vmem:[#allocation3 + $0x68] sm:$0xff] }
 0x4cd   : > { %v8811_v18 = vpop.permute.xlu1 %3573 }
 0x4ce   : > { %9750 = vst [vmem:[#allocation15_spill] sm:$0xff] %v8811_v18 }
 0x4d3   : > { %v1265_v56 = vpop.xlane.xlu0 %1264 }
 0x4d4   : > { %v1285_v2 = vadd.f32 %v1265_v56, %v1253_v6  ;;  %v1258_v6 = vmul.f32 %v9749_v29, %v1250_v13  ;;  %v9753_v29 = vld [vmem:[#allocation63_spill] sm:$0xff] }
 0x4d5   : > { %v1812_v13 = vmul.f32 %v9753_v29, %v1804_v55  ;;  %v1251_v29 = vld [vmem:[#allocation3 + $0x78] sm:$0xff] }
 0x4d6   : > { %1293 = vst.msk [vmem:[#allocation3 + $0x48] sm:$0xff] %vm222_vm1, %v1285_v2  ;;  %v1803_v2 = vld [vmem:[#allocation3 + $0x88] sm:$0xff] }
 0x4d7   : > { %v1268_v39 = vpop.xlane.xlu0 %1267 }
 0x4d8   : > { %v1286_v61 = vadd.f32 %v1268_v39, %v1254_v35  ;;  %v9751_v35 = vld [vmem:[#allocation61_spill] sm:$0xff] }
 0x4d9   : > { %v1811_v39 = vmul.f32 %v9751_v35, %v1803_v2  ;;  %v1806_v2 = vld [vmem:[#allocation3 + $0xa0] sm:$0xff] }
 0x4da   : > { %1294 = vst.msk [vmem:[#allocation3 + $0x50] sm:$0xff] %vm222_vm1, %v1286_v61 }
 0x4db   : > { %v1274_v42 = vpop.xlane.xlu0 %1273 }
 0x4dc   : > { %v1288_v24 = vadd.f32 %v1274_v42, %v1256_v44  ;;  %v1247_v44 = vld [vmem:[#allocation3 + $0x58] sm:$0xff] }
 0x4de   : > { %1296 = vst.msk [vmem:[#allocation3 + $0x60] sm:$0xff] %vm222_vm1, %v1288_v24 }
 0x4df   : > { %v1280_v56 = vpop.xlane.xlu0 %1279 }
 0x4e0   : > { %v1290_v59 = vadd.f32 %v1280_v56, %v1258_v6  ;;  %v9754_v56 = vld [vmem:[#allocation54_spill] sm:$0xff] }
 0x4e1   : > { %v1255_v18 = vmul.f32 %v9754_v56, %v1247_v44  ;;  %v1302_v56 = vld [vmem:[#allocation4 + $0x48] sm:$0xff] }
 0x4e2   : > { %1298 = vst.msk [vmem:[#allocation3 + $0x70] sm:$0xff] %vm222_vm1, %v1290_v59  ;;  %v4050_v59 = vsel %vm351_vm0, %v6595_v36, 0.0 }
 0x4e3   : > { %v1823_v61 = vpop.xlane.xlu0 %1822 }
 0x4e4   : > { %v1843_v0 = vadd.f32 %v1823_v61, %v1811_v39  ;;  %v1262_v42 = vpop.xlane.xlu1 %1261  ;;  %v9755_v39 = vld [vmem:[#allocation65_spill] sm:$0xff] }
 0x4e5   : > { %v1284_v24 = vadd.f32 %v1262_v42, %v1252_v9  ;;  %v1814_v61 = vmul.f32 %v9755_v39, %v1806_v2  ;;  %v9756_v9 = vld [vmem:[#allocation56_spill] sm:$0xff]  ;;  %v1808_v42 = vld [vmem:[#allocation3 + $0xb0] sm:$0xff]  ;;  %v2361_v2 = vld [vmem:[#allocation3 + $0xc8] sm:$0xff] }
 0x4e6   : > { %1851 = vst.msk [vmem:[#allocation3 + $0x88] sm:$0xff] %vm222_vm1, %v1843_v0  ;;  %v1257_v55 = vmul.f32 %v9756_v9, %v1249_v27  ;;  %v1802_v27 = vld [vmem:[#allocation3 + $0x80] sm:$0xff] }
 0x4e7   : > { %1292 = vst.msk [vmem:[#allocation3 + $0x40] sm:$0xff] %vm222_vm1, %v1284_v24  ;;  %v1826_v6 = vpop.xlane.xlu0 %1825 }
 0x4e8   : > { %v1844_v35 = vadd.f32 %v1826_v6, %v1812_v13  ;;  %v1271_v12 = vpop.xlane.xlu1 %1270  ;;  %4051 = vadd.xlane.f32.xlu0 %v4050_v59  ;;  %v9757_v13 = vld [vmem:[#allocation67_spill] sm:$0xff] }
 0x4e9   : > { %v1287_v58 = vadd.f32 %v1271_v12, %v1255_v18  ;;  %v1816_v6 = vmul.f32 %v9757_v13, %v1808_v42  ;;  %v9758_v12 = vld [vmem:[#allocation58_spill] sm:$0xff]  ;;  %v1304_v42 = vld [vmem:[#allocation4 + $0x58] sm:$0xff]  ;;  %v2362_v13 = vld [vmem:[#allocation3 + $0xd0] sm:$0xff] }
 0x4ea   : > { %1852 = vst.msk [vmem:[#allocation3 + $0x90] sm:$0xff] %vm222_vm1, %v1844_v35  ;;  %v1259_v59 = vmul.f32 %v9758_v12, %v1251_v29  ;;  %v1301_v35 = vld [vmem:[#allocation4 + $0x40] sm:$0xff]  ;;  %v9759_v29 = vld [vmem:[#allocation60_spill] sm:$0xff] }
 0x4eb   : > { %1295 = vst.msk [vmem:[#allocation3 + $0x58] sm:$0xff] %vm222_vm1, %v1287_v58  ;;  %v1832_v0 = vpop.xlane.xlu0 %1831 }
 0x4ec   : > { %v1846_v24 = vadd.f32 %v1832_v0, %v1814_v61  ;;  %v1277_v44 = vpop.xlane.xlu1 %1276  ;;  %v1350_v61 = vmul.f32 %v8493_v20, %v1302_v56  ;;  %v2369_v0 = vmul.f32 %v8334_v52, %v2361_v2  ;;  %v1805_v20 = vld [vmem:[#allocation3 + $0x98] sm:$0xff]  ;;  %v1352_v52 = vmul.f32 %v8539_v7, %v1304_v42 }
 0x4ed   : > { %v1289_v36 = vadd.f32 %v1277_v44, %v1257_v55  ;;  %v1349_v55 = vmul.f32 %v8497_v8, %v1301_v35  ;;  %v2370_v8 = vmul.f32 %v8367_v62, %v2362_v13  ;;  %v1306_v35 = vld [vmem:[#allocation4 + $0x68] sm:$0xff] }
 0x4ee   : > { %1854 = vst.msk [vmem:[#allocation3 + $0xa0] sm:$0xff] %vm222_vm1, %v1846_v24 }
 0x4ef   : > { %1297 = vst.msk [vmem:[#allocation3 + $0x68] sm:$0xff] %vm222_vm1, %v1289_v36  ;;  %v1838_v18 = vpop.xlane.xlu0 %1837  ;;  %v1810_v36 = vmul.f32 %v9759_v29, %v1802_v27 }
 0x4f0   : > { %v1848_v58 = vadd.f32 %v1838_v18, %v1816_v6  ;;  %v1283_v39 = vpop.xlane.xlu1 %1282  ;;  %v1303_v6 = vld [vmem:[#allocation4 + $0x50] sm:$0xff] }
 0x4f1   : > { %v1291_v9 = vadd.f32 %v1283_v39, %v1259_v59  ;;  %v1351_v2 = vmul.f32 %v8535_v4, %v1303_v6  ;;  %v1354_v4 = vmul.f32 %v8562_v26, %v1306_v35 }
 0x4f2   : > { %1856 = vst.msk [vmem:[#allocation3 + $0xb0] sm:$0xff] %vm222_vm1, %v1848_v58 }
 0x4f3   : > { %1299 = vst.msk [vmem:[#allocation3 + $0x78] sm:$0xff] %vm222_vm1, %v1291_v9  ;;  %v6180_v24 = vpop.f32.mrb[8].mxu0  ;;  %v2381_v44 = vpop.xlane.xlu0 %2380 }
 0x4f4   : > { %v1490_v18 = vadd.f32 %v6180_v24, %v1350_v61  ;;  %v1450_v12 = vpop.f32.mrb[9].mxu0  ;;  %v2401_v59 = vadd.f32 %v2381_v44, %v2369_v0  ;;  %v1820_v39 = vpop.xlane.xlu1 %1819  ;;  %v9760_v61 = vld [vmem:[#allocation62_spill] sm:$0xff]  ;;  %v1305_v24 = vld [vmem:[#allocation4 + $0x60] sm:$0xff] }
 0x4f5   : > { %v1489_v56 = vadd.f32 %v1450_v12, %v1349_v55  ;;  %v1842_v58 = vadd.f32 %v1820_v39, %v1810_v36  ;;  %v1813_v0 = vmul.f32 %v9760_v61, %v1805_v20  ;;  %v2364_v55 = vld [vmem:[#allocation3 + $0xe0] sm:$0xff]  ;;  %v1807_v36 = vld [vmem:[#allocation3 + $0xa8] sm:$0xff]  ;;  %v1353_v6 = vmul.f32 %v8560_v10, %v1305_v24  ;;  %v1308_v12 = vld [vmem:[#allocation4 + $0x78] sm:$0xff] }
 0x4f6   : > { %1498 = vst.msk [vmem:[#allocation4 + $0x48] sm:$0xff] %vm351_vm0, %v1490_v18  ;;  %v2372_v13 = vmul.f32 %v8402_v3, %v2364_v55  ;;  %v9761_v20 = vld [vmem:[#allocation64_spill] sm:$0xff]  ;;  %v1356_v10 = vmul.f32 %v8582_v25, %v1308_v12  ;;  %v9763_v12 = vld [vmem:[#allocation70_spill] sm:$0xff] }
 0x4f7   : > { %2409 = vst.msk [vmem:[#allocation3 + $0xc8] sm:$0xff] %vm222_vm1, %v2401_v59  ;;  %1850 = vst.msk [vmem:[#allocation3 + $0x80] sm:$0xff] %vm222_vm1, %v1842_v58  ;;  %v6183_v27 = vpop.f32.mrb[10].mxu0  ;;  %v2384_v9 = vpop.xlane.xlu0 %2383  ;;  %v2366_v58 = vld [vmem:[#allocation3 + $0xf0] sm:$0xff] }
 0x4f8   : > { %1497 = vst.msk [vmem:[#allocation4 + $0x40] sm:$0xff] %vm351_vm0, %v1489_v56  ;;  %v1492_v7 = vadd.f32 %v6183_v27, %v1352_v52  ;;  %v1460_v42 = vpop.f32.mrb[11].mxu0  ;;  %v2402_v44 = vadd.f32 %v2384_v9, %v2370_v8  ;;  %v1829_v29 = vpop.xlane.xlu1 %1828  ;;  %v1815_v56 = vmul.f32 %v9761_v20, %v1807_v36  ;;  %v1307_v52 = vld [vmem:[#allocation4 + $0x70] sm:$0xff]  ;;  %v1809_v27 = vld [vmem:[#allocation3 + $0xb8] sm:$0xff]  ;;  %v2374_v61 = vmul.f32 %v8416_v46, %v2366_v58 }
 0x4f9   : > { %v1491_v18 = vadd.f32 %v1460_v42, %v1351_v2  ;;  %v1845_v62 = vadd.f32 %v1829_v29, %v1813_v0  ;;  %v1355_v0 = vmul.f32 %v8580_v53, %v1307_v52  ;;  %v1860_v53 = vld [vmem:[#allocation4 + $0x88] sm:$0xff]  ;;  %v2363_v58 = vld [vmem:[#allocation3 + $0xd8] sm:$0xff] }
 0x4fa   : > { %1500 = vst.msk [vmem:[#allocation4 + $0x58] sm:$0xff] %vm351_vm0, %v1492_v7  ;;  %v9762_v7 = vld [vmem:[#allocation66_spill] sm:$0xff] }
 0x4fb   : > { %2410 = vst.msk [vmem:[#allocation3 + $0xd0] sm:$0xff] %vm222_vm1, %v2402_v44  ;;  %1853 = vst.msk [vmem:[#allocation3 + $0x98] sm:$0xff] %vm222_vm1, %v1845_v62  ;;  %v6186_v59 = vpop.f32.mrb[12].mxu0  ;;  %v2390_v39 = vpop.xlane.xlu0 %2389  ;;  %v1817_v42 = vmul.f32 %v9762_v7, %v1809_v27  ;;  %v2919_v44 = vld [vmem:[#allocation3 + $0x108] sm:$0xff]  ;;  %v2360_v62 = vld [vmem:[#allocation3 + $0xc0] sm:$0xff] }
 0x4fc   : > { %1499 = vst.msk [vmem:[#allocation4 + $0x50] sm:$0xff] %vm351_vm0, %v1491_v18  ;;  %v1494_v26 = vadd.f32 %v6186_v59, %v1354_v4  ;;  %v1470_v8 = vpop.f32.mrb[13].mxu0  ;;  %v2404_v2 = vadd.f32 %v2390_v39, %v2372_v13  ;;  %v1835_v35 = vpop.xlane.xlu1 %1834  ;;  %v2927_v46 = vmul.f32 %v8428_v43, %v2919_v44  ;;  %v2368_v59 = vmul.f32 %v9763_v12, %v2360_v62  ;;  %v1859_v39 = vld [vmem:[#allocation4 + $0x80] sm:$0xff]  ;;  %v1862_v7 = vld [vmem:[#allocation4 + $0x98] sm:$0xff] }
 0x4fd   : > { %v1493_v9 = vadd.f32 %v1470_v8, %v1353_v6  ;;  %v1847_v3 = vadd.f32 %v1835_v35, %v1815_v56  ;;  %v1908_v8 = vmul.f32 %v8594_v49, %v1860_v53  ;;  %v1907_v43 = vmul.f32 %v8596_v30, %v1859_v39  ;;  %v2367_v44 = vld [vmem:[#allocation3 + $0xf8] sm:$0xff]  ;;  %v2918_v12 = vld [vmem:[#allocation3 + $0x100] sm:$0xff]  ;;  %v1864_v39 = vld [vmem:[#allocation4 + $0xa8] sm:$0xff] }
 0x4fe   : > { %1502 = vst.msk [vmem:[#allocation4 + $0x68] sm:$0xff] %vm351_vm0, %v1494_v26  ;;  %v2920_v26 = vld [vmem:[#allocation3 + $0x110] sm:$0xff]  ;;  %v2371_v35 = vmul.f32 %v8359_v15, %v2363_v58  ;;  %v1912_v58 = vmul.f32 %v8630_v28, %v1864_v39 }
 0x4ff   : > { %2412 = vst.msk [vmem:[#allocation3 + $0xe0] sm:$0xff] %vm222_vm1, %v2404_v2  ;;  %1855 = vst.msk [vmem:[#allocation3 + $0xa8] sm:$0xff] %vm222_vm1, %v1847_v3  ;;  %v6189_v55 = vpop.f32.mrb[14].mxu0  ;;  %v2396_v24 = vpop.xlane.xlu0 %2395 }
 0x500   : > { %1501 = vst.msk [vmem:[#allocation4 + $0x60] sm:$0xff] %vm351_vm0, %v1493_v9  ;;  %v1496_v29 = vadd.f32 %v6189_v55, %v1356_v10  ;;  %v1480_v36 = vpop.f32.mrb[15].mxu0  ;;  %v2406_v25 = vadd.f32 %v2396_v24, %v2374_v61  ;;  %v1841_v18 = vpop.xlane.xlu1 %1840  ;;  %v2928_v10 = vmul.f32 %v8440_v37, %v2920_v26  ;;  %v2365_v61 = vld [vmem:[#allocation3 + $0xe8] sm:$0xff]  ;;  %v2922_v37 = vld [vmem:[#allocation3 + $0x120] sm:$0xff] }
 0x501   : > { %v1495_v4 = vadd.f32 %v1480_v36, %v1355_v0  ;;  %v1849_v13 = vadd.f32 %v1841_v18, %v1817_v42  ;;  %v1861_v42 = vld [vmem:[#allocation4 + $0x90] sm:$0xff]  ;;  %v2373_v15 = vmul.f32 %v8397_v5, %v2365_v61 }
 0x502   : > { %1504 = vst.msk [vmem:[#allocation4 + $0x78] sm:$0xff] %vm351_vm0, %v1496_v29  ;;  %v1910_v29 = vmul.f32 %v8612_v22, %v1862_v7 }
 0x503   : > { %2414 = vst.msk [vmem:[#allocation3 + $0xf0] sm:$0xff] %vm222_vm1, %v2406_v25  ;;  %1857 = vst.msk [vmem:[#allocation3 + $0xb8] sm:$0xff] %vm222_vm1, %v1849_v13  ;;  %v2939_v6 = vpop.xlane.xlu0 %2938  ;;  %v1909_v25 = vmul.f32 %v8610_v51, %v1861_v42  ;;  %v2375_v13 = vmul.f32 %v8414_v45, %v2367_v44  ;;  %v1863_v51 = vld [vmem:[#allocation4 + $0xa0] sm:$0xff]  ;;  %v2926_v45 = vmul.f32 %v8426_v1, %v2918_v12 }
 0x504   : > { %1503 = vst.msk [vmem:[#allocation4 + $0x70] sm:$0xff] %vm351_vm0, %v1495_v4  ;;  %v2959_v20 = vadd.f32 %v2939_v6, %v2927_v46  ;;  %v2378_v56 = vpop.xlane.xlu1 %2377  ;;  %v2930_v46 = vmul.f32 %v8448_v54, %v2922_v37  ;;  %v2921_v54 = vld [vmem:[#allocation3 + $0x118] sm:$0xff]  ;;  %v1911_v26 = vmul.f32 %v8628_v41, %v1863_v51  ;;  %v1865_v41 = vld [vmem:[#allocation4 + $0xb0] sm:$0xff]  ;;  %v9766_v51 = vld [vmem:[#allocation5_spill] sm:$0xff] }
 0x505   : > { %v2400_v52 = vadd.f32 %v2378_v56, %v2368_v59  ;;  %v2924_v56 = vld [vmem:[#allocation3 + $0x130] sm:$0xff]  ;;  %v1913_v42 = vmul.f32 %v8645_v23, %v1865_v41  ;;  %v2418_v23 = vld [vmem:[#allocation4 + $0xc8] sm:$0xff] }
 0x506   : > { %2967 = vst.msk [vmem:[#allocation3 + $0x108] sm:$0xff] %vm222_vm1, %v2959_v20  ;;  %v2466_v12 = vmul.f32 %v8664_v14, %v2418_v23 }
 0x507   : > { %2408 = vst.msk [vmem:[#allocation3 + $0xc0] sm:$0xff] %vm222_vm1, %v2400_v52  ;;  %v6208_v2 = vpop.f32.mrb[16].mxu0 }
 0x508   : > { %v2048_v27 = vadd.f32 %v6208_v2, %v1908_v8  ;;  %v2008_v9 = vpop.f32.mrb[17].mxu0  ;;  %v2387_v3 = vpop.xlane.xlu1 %2386 }
 0x509   : > { %v2047_v0 = vadd.f32 %v2008_v9, %v1907_v43  ;;  %v2403_v55 = vadd.f32 %v2387_v3, %v2371_v35  ;;  %v2942_v24 = vpop.xlane.xlu0 %2941  ;;  %v2929_v35 = vmul.f32 %v8438_v16, %v2921_v54 }
 0x50a   : > { %2056 = vst.msk [vmem:[#allocation4 + $0x88] sm:$0xff] %vm351_vm0, %v2048_v27  ;;  %v2960_v49 = vadd.f32 %v2942_v24, %v2928_v10  ;;  %v2932_v27 = vmul.f32 %v8474_v40, %v2924_v56  ;;  %v2923_v10 = vld [vmem:[#allocation3 + $0x128] sm:$0xff] }
 0x50b   : > { %2055 = vst.msk [vmem:[#allocation4 + $0x80] sm:$0xff] %vm351_vm0, %v2047_v0  ;;  %v1866_v0 = vld [vmem:[#allocation4 + $0xb8] sm:$0xff]  ;;  %v2931_v16 = vmul.f32 %v8446_v48, %v2923_v10  ;;  %v3477_v40 = vld [vmem:[#allocation3 + $0x148] sm:$0xff] }
 0x50c   : > { %2411 = vst.msk [vmem:[#allocation3 + $0xd8] sm:$0xff] %vm222_vm1, %v2403_v55  ;;  %2968 = vst.msk [vmem:[#allocation3 + $0x110] sm:$0xff] %vm222_vm1, %v2960_v49  ;;  %v2393_v30 = vpop.xlane.xlu1 %2392  ;;  %v1914_v24 = vmul.f32 %v8647_v34, %v1866_v0  ;;  %v2925_v49 = vld [vmem:[#allocation3 + $0x138] sm:$0xff]  ;;  %v3485_v37 = vmul.f32 %v8491_v38, %v3477_v40  ;;  %v3476_v34 = vld [vmem:[#allocation3 + $0x140] sm:$0xff] }
 0x50d   : > { %v2405_v36 = vadd.f32 %v2393_v30, %v2373_v15  ;;  %v9767_v56 = vld [vmem:[#allocation86_spill] sm:$0xff] }
 0x50e   : > { %v6211_v18 = vpop.f32.mrb[18].mxu0 }
 0x50f   : > { %2413 = vst.msk [vmem:[#allocation3 + $0xe8] sm:$0xff] %vm222_vm1, %v2405_v36  ;;  %v2050_v62 = vadd.f32 %v6211_v18, %v1910_v29  ;;  %v2018_v4 = vpop.f32.mrb[19].mxu0  ;;  %v9764_v36 = vld [vmem:[#allocation84_spill] sm:$0xff] }
 0x510   : > { %v2049_v5 = vadd.f32 %v2018_v4, %v1909_v25  ;;  %v2399_v53 = vpop.xlane.xlu1 %2398  ;;  %v2948_v6 = vpop.xlane.xlu0 %2947  ;;  %v2933_v25 = vmul.f32 %v9764_v36, %v2925_v49  ;;  %v2422_v49 = vld [vmem:[#allocation4 + $0xe8] sm:$0xff] }
 0x511   : > { %2058 = vst.msk [vmem:[#allocation4 + $0x98] sm:$0xff] %vm351_vm0, %v2050_v62  ;;  %v2407_v59 = vadd.f32 %v2399_v53, %v2375_v13  ;;  %v2962_v22 = vadd.f32 %v2948_v6, %v2930_v46  ;;  %v2417_v13 = vld [vmem:[#allocation4 + $0xc0] sm:$0xff]  ;;  %v3479_v6 = vld [vmem:[#allocation3 + $0x158] sm:$0xff] }
 0x512   : > { %2057 = vst.msk [vmem:[#allocation4 + $0x90] sm:$0xff] %vm351_vm0, %v2049_v5  ;;  %v9765_v46 = vld [vmem:[#allocation85_spill] sm:$0xff]  ;;  %v3478_v5 = vld [vmem:[#allocation3 + $0x150] sm:$0xff] }
 0x513   : > { %2415 = vst.msk [vmem:[#allocation3 + $0xf8] sm:$0xff] %vm222_vm1, %v2407_v59  ;;  %2970 = vst.msk [vmem:[#allocation3 + $0x120] sm:$0xff] %vm222_vm1, %v2962_v22  ;;  %v3484_v38 = vmul.f32 %v9765_v46, %v3476_v34  ;;  %v2465_v22 = vmul.f32 %v8666_v31, %v2417_v13  ;;  %v3480_v31 = vld [vmem:[#allocation3 + $0x160] sm:$0xff]  ;;  %v9772_v34 = vld [vmem:[#allocation6_spill] sm:$0xff] }
 0x514   : > { %v2936_v20 = vpop.xlane.xlu1 %2935 }
 0x515   : > { %v2958_v52 = vadd.f32 %v2936_v20, %v2926_v45  ;;  %v3486_v45 = vmul.f32 %v9766_v51, %v3478_v5  ;;  %v2423_v5 = vld [vmem:[#allocation4 + $0xf0] sm:$0xff] }
 0x516   : > { %v6214_v8 = vpop.f32.mrb[20].mxu0 }
 0x517   : > { %2966 = vst.msk [vmem:[#allocation3 + $0x100] sm:$0xff] %vm222_vm1, %v2958_v52  ;;  %v2052_v43 = vadd.f32 %v6214_v8, %v1912_v58  ;;  %v2028_v2 = vpop.f32.mrb[21].mxu0  ;;  %v3487_v58 = vmul.f32 %v9767_v56, %v3479_v6 }
 0x518   : > { %v2051_v9 = vadd.f32 %v2028_v2, %v1911_v26  ;;  %v2945_v3 = vpop.xlane.xlu1 %2944  ;;  %v2954_v1 = vpop.xlane.xlu0 %2953  ;;  %v2420_v2 = vld [vmem:[#allocation4 + $0xd8] sm:$0xff] }
 0x519   : > { %2060 = vst.msk [vmem:[#allocation4 + $0xa8] sm:$0xff] %vm351_vm0, %v2052_v43  ;;  %v2961_v61 = vadd.f32 %v2945_v3, %v2929_v35  ;;  %v2964_v28 = vadd.f32 %v2954_v1, %v2932_v27  ;;  %v2419_v35 = vld [vmem:[#allocation4 + $0xd0] sm:$0xff]  ;;  %v2468_v27 = vmul.f32 %v8684_v19, %v2420_v2  ;;  %v2975_v2 = vld [vmem:[#allocation4 + $0x100] sm:$0xff] }
 0x51a   : > { %2059 = vst.msk [vmem:[#allocation4 + $0xa0] sm:$0xff] %vm351_vm0, %v2051_v9  ;;  %v3481_v9 = vld [vmem:[#allocation3 + $0x168] sm:$0xff]  ;;  %v2467_v3 = vmul.f32 %v8682_v57, %v2419_v35  ;;  %v3482_v57 = vld [vmem:[#allocation3 + $0x170] sm:$0xff] }
 0x51b   : > { %2969 = vst.msk [vmem:[#allocation3 + $0x118] sm:$0xff] %vm222_vm1, %v2961_v61  ;;  %2972 = vst.msk [vmem:[#allocation3 + $0x130] sm:$0xff] %vm222_vm1, %v2964_v28  ;;  %v9768_v28 = vld [vmem:[#allocation88_spill] sm:$0xff] }
 0x51c   : > { %v2951_v55 = vpop.xlane.xlu1 %2950  ;;  %v3488_v0 = vmul.f32 %v9768_v28, %v3480_v31 }
 0x51d   : > { %v2963_v7 = vadd.f32 %v2951_v55, %v2931_v16  ;;  %v9769_v16 = vld [vmem:[#allocation87_spill] sm:$0xff] }
 0x51e   : > { %v6217_v15 = vpop.f32.mrb[22].mxu0  ;;  %v3489_v55 = vmul.f32 %v9769_v16, %v3481_v9 }
 0x51f   : > { %2971 = vst.msk [vmem:[#allocation3 + $0x128] sm:$0xff] %vm222_vm1, %v2963_v7  ;;  %v2054_v30 = vadd.f32 %v6217_v15, %v1914_v24  ;;  %v2038_v44 = vpop.f32.mrb[23].mxu0  ;;  %v2470_v15 = vmul.f32 %v8701_v32, %v2422_v49 }
 0x520   : > { %v2053_v29 = vadd.f32 %v2038_v44, %v1913_v42  ;;  %v3497_v18 = vpop.xlane.xlu0 %3496  ;;  %v2421_v42 = vld [vmem:[#allocation4 + $0xe0] sm:$0xff]  ;;  %v9770_v44 = vld [vmem:[#allocation8_spill] sm:$0xff] }
 0x521   : > { %2062 = vst.msk [vmem:[#allocation4 + $0xb8] sm:$0xff] %vm351_vm0, %v2054_v30  ;;  %v2957_v48 = vpop.xlane.xlu1 %2956  ;;  %v3517_v62 = vadd.f32 %v3497_v18, %v3485_v37  ;;  %v3483_v30 = vld [vmem:[#allocation3 + $0x178] sm:$0xff]  ;;  %v2469_v37 = vmul.f32 %v9770_v44, %v2421_v42  ;;  %v9771_v18 = vld [vmem:[#allocation89_spill] sm:$0xff] }
 0x522   : > { %2061 = vst.msk [vmem:[#allocation4 + $0xb0] sm:$0xff] %vm351_vm0, %v2053_v29  ;;  %v2965_v4 = vadd.f32 %v2957_v48, %v2933_v25  ;;  %v3490_v48 = vmul.f32 %v9771_v18, %v3482_v57 }
 0x523   : > { %3525 = vst.msk [vmem:[#allocation3 + $0x148] sm:$0xff] %vm222_vm1, %v3517_v62 }
 0x524   : > { %2973 = vst.msk [vmem:[#allocation3 + $0x138] sm:$0xff] %vm222_vm1, %v2965_v4  ;;  %v3491_v4 = vmul.f32 %v9772_v34, %v3483_v30 }
 0x525   : > { %v3494_v53 = vpop.xlane.xlu1 %3493 }
 0x526   : > { %v3516_v59 = vadd.f32 %v3494_v53, %v3484_v38  ;;  %v2424_v38 = vld [vmem:[#allocation4 + $0xf8] sm:$0xff] }
 0x527   : > { %v6236_v39 = vpop.f32.mrb[24].mxu0  ;;  %v2472_v53 = vmul.f32 %v8716_v47, %v2424_v38  ;;  %v9775_v47 = vld [vmem:[#allocation38_spill] sm:$0xff] }
 0x528   : > { %3524 = vst.msk [vmem:[#allocation3 + $0x140] sm:$0xff] %vm222_vm1, %v3516_v59  ;;  %v2606_v20 = vadd.f32 %v6236_v39, %v2466_v12  ;;  %v2566_v54 = vpop.f32.mrb[25].mxu0  ;;  %v3500_v52 = vpop.xlane.xlu0 %3499  ;;  %v2471_v12 = vmul.f32 %v8714_v33, %v2423_v5  ;;  %v9773_v59 = vld [vmem:[#allocation39_spill] sm:$0xff]  ;;  %v2980_v5 = vld [vmem:[#allocation4 + $0x128] sm:$0xff] }
 0x529   : > { %v2605_v26 = vadd.f32 %v2566_v54, %v2465_v22  ;;  %v3503_v8 = vpop.xlane.xlu1 %3502  ;;  %v3518_v43 = vadd.f32 %v3500_v52, %v3486_v45  ;;  %v9774_v52 = vld [vmem:[#allocation35_spill] sm:$0xff] }
 0x52a   : > { %2614 = vst.msk [vmem:[#allocation4 + $0xc8] sm:$0xff] %vm351_vm0, %v2606_v20  ;;  %v3519_v14 = vadd.f32 %v3503_v8, %v3487_v58 }
 0x52b   : > { %2613 = vst.msk [vmem:[#allocation4 + $0xc0] sm:$0xff] %vm351_vm0, %v2605_v26 }
 0x52c   : > { %3526 = vst.msk [vmem:[#allocation3 + $0x150] sm:$0xff] %vm222_vm1, %v3518_v43  ;;  %3527 = vst.msk [vmem:[#allocation3 + $0x158] sm:$0xff] %vm222_vm1, %v3519_v14  ;;  %v2976_v43 = vld [vmem:[#allocation4 + $0x108] sm:$0xff] }
 0x52e   : > { %v6239_v1 = vpop.f32.mrb[26].mxu0 }
 0x52f   : > { %v2608_v10 = vadd.f32 %v6239_v1, %v2468_v27  ;;  %v2576_v61 = vpop.f32.mrb[27].mxu0  ;;  %v9776_v27 = vld [vmem:[#allocation41_spill] sm:$0xff]  ;;  %v9777_v1 = vld [vmem:[#allocation40_spill] sm:$0xff] }
 0x530   : > { %v2607_v41 = vadd.f32 %v2576_v61, %v2467_v3  ;;  %v3506_v40 = vpop.xlane.xlu0 %3505  ;;  %v3024_v3 = vmul.f32 %v8727_v11, %v2976_v43  ;;  %v9778_v61 = vld [vmem:[#allocation12_spill] sm:$0xff]  ;;  %v9780_v11 = vld [vmem:[#allocation42_spill] sm:$0xff]  ;;  %v9783_v43 = vld [vmem:[#allocation45_spill] sm:$0xff] }
 0x531   : > { %2616 = vst.msk [vmem:[#allocation4 + $0xd8] sm:$0xff] %vm351_vm0, %v2608_v10  ;;  %v3509_v24 = vpop.xlane.xlu1 %3508  ;;  %v3520_v7 = vadd.f32 %v3506_v40, %v3488_v0  ;;  %v3023_v28 = vmul.f32 %v9778_v61, %v2975_v2  ;;  %v9784_v2 = vld [vmem:[#allocation14_spill] sm:$0xff] }
 0x532   : > { %2615 = vst.msk [vmem:[#allocation4 + $0xd0] sm:$0xff] %vm351_vm0, %v2607_v41  ;;  %v3521_v19 = vadd.f32 %v3509_v24, %v3489_v55 }
 0x533   : > { %3528 = vst.msk [vmem:[#allocation3 + $0x160] sm:$0xff] %vm222_vm1, %v3520_v7 }
 0x534   : > { %3529 = vst.msk [vmem:[#allocation3 + $0x168] sm:$0xff] %vm222_vm1, %v3521_v19  ;;  %v9779_v19 = vld [vmem:[#allocation43_spill] sm:$0xff] }
 0x536   : > { %v6242_v29 = vpop.f32.mrb[28].mxu0 }
 0x537   : > { %v2610_v36 = vadd.f32 %v6242_v29, %v2470_v15  ;;  %v2586_v25 = vpop.f32.mrb[29].mxu0  ;;  %v2978_v15 = vld [vmem:[#allocation4 + $0x118] sm:$0xff] }
 0x538   : > { %v2609_v62 = vadd.f32 %v2586_v25, %v2469_v37  ;;  %v3512_v23 = vpop.xlane.xlu0 %3511  ;;  %v2977_v37 = vld [vmem:[#allocation4 + $0x110] sm:$0xff]  ;;  %v3026_v25 = vmul.f32 %v8742_v21, %v2978_v15  ;;  %v9790_v15 = vld [vmem:[#allocation50_spill] sm:$0xff] }
 0x539   : > { %2618 = vst.msk [vmem:[#allocation4 + $0xe8] sm:$0xff] %vm351_vm0, %v2610_v36  ;;  %v3515_v13 = vpop.xlane.xlu1 %3514  ;;  %v3522_v46 = vadd.f32 %v3512_v23, %v3490_v48  ;;  %v9781_v48 = vld [vmem:[#allocation10_spill] sm:$0xff] }
 0x53a   : > { %2617 = vst.msk [vmem:[#allocation4 + $0xe0] sm:$0xff] %vm351_vm0, %v2609_v62  ;;  %v3523_v32 = vadd.f32 %v3515_v13, %v3491_v4  ;;  %v3025_v62 = vmul.f32 %v9781_v48, %v2977_v37  ;;  %v3535_v48 = vld [vmem:[#allocation4 + $0x150] sm:$0xff] }
 0x53b   : > { %3530 = vst.msk [vmem:[#allocation3 + $0x170] sm:$0xff] %vm222_vm1, %v3522_v46 }
 0x53c   : > { %3531 = vst.msk [vmem:[#allocation3 + $0x178] sm:$0xff] %vm222_vm1, %v3523_v32 }
 0x53d   : > { %v3982_v6 = vpop.permute.xlu1 %3981 }
 0x53e   : > { %v4011_v22 = vsub.f32 %v9773_v59, %v3982_v6  ;;  %v6245_v39 = vpop.f32.mrb[30].mxu0  ;;  %v2979_v6 = vld [vmem:[#allocation4 + $0x120] sm:$0xff] }
 0x53f   : > { %v2612_v51 = vadd.f32 %v6245_v39, %v2472_v53  ;;  %v2596_v45 = vpop.f32.mrb[31].mxu0 }
 0x540   : > { %v4021_v20 = vmul.f32 1.442695, %v4011_v22  ;;  %v2611_v54 = vadd.f32 %v2596_v45, %v2471_v12  ;;  %v3977_v56 = vpop.permute.xlu0 %3976  ;;  %v3028_v22 = vmul.f32 %v8753_v60, %v2980_v5  ;;  %v2982_v60 = vld [vmem:[#allocation4 + $0x138] sm:$0xff] }
 0x541   : > { %2620 = vst.msk [vmem:[#allocation4 + $0xf8] sm:$0xff] %vm351_vm0, %v2612_v51  ;;  %v3987_v58 = vpop.permute.xlu1 %3986  ;;  %v4010_v26 = vsub.f32 %v9774_v52, %v3977_v56  ;;  %v9782_v51 = vld [vmem:[#allocation7_spill] sm:$0xff] }
 0x542   : > { %6596 = vpow2.f32 %v4021_v20  ;;  %2619 = vst.msk [vmem:[#allocation4 + $0xf0] sm:$0xff] %vm351_vm0, %v2611_v54  ;;  %v4012_v8 = vsub.f32 %v9775_v47, %v3987_v58  ;;  %v3027_v45 = vmul.f32 %v9782_v51, %v2979_v6  ;;  %v3538_v51 = vld [vmem:[#allocation4 + $0x168] sm:$0xff] }
 0x543   : > { %v4019_v33 = vmul.f32 1.442695, %v4010_v26 }
 0x544   : > { %v4023_v14 = vmul.f32 1.442695, %v4012_v8  ;;  %v3992_v35 = vpop.permute.xlu0 %3991  ;;  %v2981_v8 = vld [vmem:[#allocation4 + $0x130] sm:$0xff] }
 0x545   : > { %6598 = vpow2.f32 %v4019_v33  ;;  %v3997_v31 = vpop.permute.xlu1 %3996  ;;  %v4013_v9 = vsub.f32 %v9776_v27, %v3992_v35  ;;  %v4471_v33 = vsel %vm351_vm0, %v9783_v43, -inf  ;;  %v9785_v35 = vld [vmem:[#allocation72_spill] sm:$0xff] }
 0x546   : > { %6600 = vpow2.f32 %v4023_v14  ;;  %v4014_v10 = vsub.f32 %v9777_v1, %v3997_v31  ;;  %v3030_v14 = vmul.f32 %v9784_v2, %v2982_v60  ;;  %v9786_v31 = vld [vmem:[#allocation69_spill] sm:$0xff] }
 0x547   : > { %v4025_v0 = vmul.f32 1.442695, %v4013_v9  ;;  %v6264_v41 = vpop.f32.mrb[32].mxu0  ;;  %v3945_v27 = vsub.f32 %v9786_v31, %v9785_v35  ;;  %v9787_v9 = vld [vmem:[#allocation9_spill] sm:$0xff] }
 0x548   : > { %v4027_v16 = vmul.f32 1.442695, %v4014_v10  ;;  %v3164_v55 = vadd.f32 %v6264_v41, %v3024_v3  ;;  %v3124_v40 = vpop.f32.mrb[33].mxu0  ;;  %v4002_v24 = vpop.permute.xlu0 %4001  ;;  %v3029_v3 = vmul.f32 %v9787_v9, %v2981_v8  ;;  %v9801_v9 = vld [vmem:[#allocation82_spill] sm:$0xff] }
 0x549   : > { %6602 = vpow2.f32 %v4025_v0  ;;  %v3163_v7 = vadd.f32 %v3124_v40, %v3023_v28  ;;  %v4007_v49 = vpop.permute.xlu1 %4006  ;;  %v4015_v42 = vsub.f32 %v9779_v19, %v4002_v24  ;;  %v9788_v28 = vld [vmem:[#allocation46_spill] sm:$0xff]  ;;  %v3533_v40 = vld [vmem:[#allocation4 + $0x140] sm:$0xff]  ;;  %v9789_v24 = vld [vmem:[#allocation48_spill] sm:$0xff] }
 0x54a   : > { %6604 = vpow2.f32 %v4027_v16  ;;  %3172 = vst.msk [vmem:[#allocation4 + $0x108] sm:$0xff] %vm351_vm0, %v3164_v55  ;;  %v4016_v57 = vsub.f32 %v9780_v11, %v4007_v49  ;;  %v4480_v0 = vsel %vm351_vm0, %v9788_v28, -inf  ;;  %v3953_v16 = vmul.f32 1.442695, %v3945_v27  ;;  %v3534_v55 = vld [vmem:[#allocation4 + $0x148] sm:$0xff]  ;;  %v9800_v27 = vld [vmem:[#allocation83_spill] sm:$0xff] }
 0x54b   : > { %3171 = vst.msk [vmem:[#allocation4 + $0x100] sm:$0xff] %vm351_vm0, %v3163_v7  ;;  %v4029_v30 = vmul.f32 1.442695, %v4015_v42  ;;  %v4486_v7 = vsel %vm351_vm0, %v9789_v24, -inf  ;;  %v3582_v49 = vmul.f32 %v8773_v50, %v3534_v55  ;;  %v3581_v19 = vmul.f32 %v8788_v63, %v3533_v40  ;;  %v9792_v50 = vld [vmem:[#allocation27_spill] sm:$0xff]  ;;  %v9802_v40 = vld [vmem:[#allocation13_spill] sm:$0xff] }
 0x54c   : > { %v8946_v44 = vpop.eup %6596  ;;  %v4031_v29 = vmul.f32 1.442695, %v4016_v57 }
 0x54d   : > { %6606 = vpow2.f32 %v4029_v30  ;;  %v4056_v36 = vsel %vm351_vm0, %v8946_v44, 0.0  ;;  %v4492_v30 = vsel %vm351_vm0, %v9790_v15, -inf }
 0x54e   : > { %6608 = vpow2.f32 %v4031_v29  ;;  %4057 = vadd.xlane.f32.xlu0 %v4056_v36  ;;  %v3536_v29 = vld [vmem:[#allocation4 + $0x158] sm:$0xff] }
 0x54f   : > { %v8951_v18 = vpop.eup %6598  ;;  %v6267_v34 = vpop.f32.mrb[34].mxu0  ;;  %6610 = vpow2.f32 %v3953_v16  ;;  %v9791_v36 = vld [vmem:[#allocation76_spill] sm:$0xff]  ;;  %v3584_v63 = vmul.f32 %v9792_v50, %v3536_v29  ;;  %v3539_v16 = vld [vmem:[#allocation4 + $0x170] sm:$0xff] }
 0x550   : > { %v8954_v4 = vpop.eup %6600  ;;  %v3166_v23 = vadd.f32 %v6267_v34, %v3026_v25  ;;  %v3134_v13 = vpop.f32.mrb[35].mxu0  ;;  %v4053_v46 = vsel %vm351_vm0, %v8951_v18, 0.0  ;;  %v3947_v25 = vsub.f32 %v9791_v36, %v8365_v17  ;;  %v9805_v50 = vld [vmem:[#allocation47_spill] sm:$0xff] }
 0x551   : > { %v3165_v38 = vadd.f32 %v3134_v13, %v3025_v62  ;;  %v4059_v32 = vsel %vm351_vm0, %v8954_v4, 0.0  ;;  %4054 = vadd.xlane.f32.xlu1 %v4053_v46  ;;  %v9793_v62 = vld [vmem:[#allocation11_spill] sm:$0xff]  ;;  %v9794_v13 = vld [vmem:[#allocation74_spill] sm:$0xff]  ;;  %v9795_v46 = vld [vmem:[#allocation73_spill] sm:$0xff] }
 0x552   : > { %3174 = vst.msk [vmem:[#allocation4 + $0x118] sm:$0xff] %vm351_vm0, %v3166_v23  ;;  %4060 = vadd.xlane.f32.xlu0 %v4059_v32  ;;  %v3583_v34 = vmul.f32 %v9793_v62, %v3535_v48  ;;  %v3957_v32 = vmul.f32 1.442695, %v3947_v25  ;;  %v9804_v25 = vld [vmem:[#allocation44_spill] sm:$0xff]  ;;  %v9806_v62 = vld [vmem:[#allocation49_spill] sm:$0xff] }
 0x553   : > { %v8961_v21 = vpop.eup %6602  ;;  %3173 = vst.msk [vmem:[#allocation4 + $0x110] sm:$0xff] %vm351_vm0, %v3165_v38  ;;  %v3948_v38 = vsub.f32 %v9795_v46, %v9794_v13  ;;  %v4474_v48 = vsel %vm351_vm0, %v9804_v25, -inf  ;;  %v9808_v46 = vld [vmem:[#allocation71_spill] sm:$0xff] }
 0x554   : > { %v8964_v53 = vpop.eup %6604  ;;  %v4062_v12 = vsel %vm351_vm0, %v8961_v21, 0.0  ;;  %6612 = vpow2.f32 %v3957_v32 }
 0x555   : > { %v4065_v59 = vsel %vm351_vm0, %v8964_v53, 0.0  ;;  %4063 = vadd.xlane.f32.xlu1 %v4062_v12 }
 0x556   : > { %4066 = vadd.xlane.f32.xlu0 %v4065_v59  ;;  %v9007_v59 = vld [vmem:[%s6874_s20] sm:$0xff] }
 0x557   : > { %v8971_v39 = vpop.eup %6606  ;;  %v6270_v20 = vpop.f32.mrb[36].mxu0 }
 0x558   : > { %v8974_v54 = vpop.eup %6608  ;;  %v3168_v56 = vadd.f32 %v6270_v20, %v3028_v22  ;;  %v3144_v58 = vpop.f32.mrb[37].mxu0  ;;  %v4068_v52 = vsel %vm351_vm0, %v8971_v39, 0.0  ;;  %v4034_v22 = vld [vmem:[#allocation3 + $0x180] sm:$0xff] }
 0x559   : > { %v3167_v26 = vadd.f32 %v3144_v58, %v3027_v45  ;;  %v4071_v47 = vsel %vm351_vm0, %v8974_v54, 0.0  ;;  %4069 = vadd.xlane.f32.xlu1 %v4068_v52  ;;  %v6611_v17 = vpop.eup %6610  ;;  %v3959_v45 = vmul.f32 1.442695, %v3948_v38  ;;  %v9796_v20 = vld [vmem:[#allocation81_spill] sm:$0xff]  ;;  %v9809_v38 = vld [vmem:[#allocation68_spill] sm:$0xff] }
 0x55a   : > { %3176 = vst.msk [vmem:[#allocation4 + $0x128] sm:$0xff] %vm351_vm0, %v3168_v56  ;;  %4072 = vadd.xlane.f32.xlu0 %v4071_v47  ;;  %v9797_v56 = vld [vmem:[#allocation79_spill] sm:$0xff]  ;;  %v3537_v52 = vld [vmem:[#allocation4 + $0x160] sm:$0xff]  ;;  %v9798_v47 = vld [vmem:[#allocation16_spill] sm:$0xff]  ;;  %v3946_v32 = vsub.f32 %v9809_v38, %v9808_v46 }
 0x55b   : > { %3175 = vst.msk [vmem:[#allocation4 + $0x120] sm:$0xff] %vm351_vm0, %v3167_v26  ;;  %v3950_v58 = vsub.f32 %v9797_v56, %v9796_v20  ;;  %v4042_v26 = vmul.f32 %v6611_v17, %v4034_v22  ;;  %v3586_v60 = vmul.f32 %v9798_v47, %v3538_v51  ;;  %6614 = vpow2.f32 %v3959_v45  ;;  %v9812_v51 = vld [vmem:[#allocation80_spill] sm:$0xff]  ;;  %v9813_v45 = vld [vmem:[#allocation78_spill] sm:$0xff]  ;;  %v4036_v47 = vld [vmem:[#allocation3 + $0x190] sm:$0xff] }
 0x55c   : > { %v3951_v20 = vsub.f32 %v9813_v45, %v9812_v51  ;;  %v9052_v46 = vld [vmem:[#allocation2 + $0x1d8] sm:$0xff]  ;;  %v4464_v51 = vld [vmem:[#allocation2 + $0x1c8] sm:$0xff] }
 0x55d   : > { %4472 = vmax.xlane.f32.xlu1 %v4471_v33  ;;  %v9799_v33 = vld [vmem:[#allocation36_spill] sm:$0xff]  ;;  %v3963_v31 = vmul.f32 1.442695, %v3950_v58 }
 0x55e   : > { %v3585_v2 = vmul.f32 %v9799_v33, %v3537_v52  ;;  %v6613_v55 = vpop.eup %6612  ;;  %v3965_v56 = vmul.f32 1.442695, %v3951_v20  ;;  %v4465_v20 = vld [vmem:[#allocation2 + $0x1d0] sm:$0xff] }
 0x55f   : > { %v6273_v1 = vpop.f32.mrb[38].mxu0  ;;  %6616 = vpow2.f32 %v3963_v31 }
 0x560   : > { %v3170_v10 = vadd.f32 %v6273_v1, %v3030_v14  ;;  %v3154_v61 = vpop.f32.mrb[39].mxu0 }
 0x561   : > { %v3169_v41 = vadd.f32 %v3154_v61, %v3029_v3  ;;  %4481 = vmax.xlane.f32.xlu1 %v4480_v0  ;;  %v3952_v3 = vsub.f32 %v9801_v9, %v9800_v27  ;;  %v3540_v0 = vld [vmem:[#allocation4 + $0x178] sm:$0xff]  ;;  %v4038_v9 = vld [vmem:[#allocation3 + $0x1a0] sm:$0xff] }
 0x562   : > { %3178 = vst.msk [vmem:[#allocation4 + $0x138] sm:$0xff] %vm351_vm0, %v3170_v10 }
 0x563   : > { %3177 = vst.msk [vmem:[#allocation4 + $0x130] sm:$0xff] %vm351_vm0, %v3169_v41  ;;  %v3967_v41 = vmul.f32 1.442695, %v3952_v3 }
 0x565   : > { %4487 = vmax.xlane.f32.xlu1 %v4486_v7  ;;  %v3588_v7 = vmul.f32 %v9802_v40, %v3540_v0  ;;  %6618 = vpow2.f32 %v3967_v41 }
 0x567   : > { %v6292_v42 = vpop.f32.mrb[40].mxu0 }
 0x568   : > { %v3722_v11 = vadd.f32 %v6292_v42, %v3582_v49  ;;  %v3682_v57 = vpop.f32.mrb[41].mxu0  ;;  %v9803_v49 = vld [vmem:[#allocation15_spill] sm:$0xff] }
 0x569   : > { %v3721_v37 = vadd.f32 %v3682_v57, %v3581_v19  ;;  %4493 = vmax.xlane.f32.xlu1 %v4492_v30  ;;  %v3587_v19 = vmul.f32 %v9803_v49, %v3539_v16  ;;  %v4041_v49 = vld [vmem:[#allocation3 + $0x1b8] sm:$0xff] }
 0x56a   : > { %3730 = vst.msk [vmem:[#allocation4 + $0x148] sm:$0xff] %vm351_vm0, %v3722_v11 }
 0x56b   : > { %3729 = vst.msk [vmem:[#allocation4 + $0x140] sm:$0xff] %vm351_vm0, %v3721_v37  ;;  %v6615_v37 = vpop.eup %6614 }
 0x56c   : > { %v6617_v29 = vpop.eup %6616 }
 0x56e   : > { %v6295_v23 = vpop.f32.mrb[42].mxu0 }
 0x56f   : > { %v3724_v5 = vadd.f32 %v6295_v23, %v3584_v63  ;;  %v3692_v6 = vpop.f32.mrb[43].mxu0  ;;  %v6619_v36 = vpop.eup %6618  ;;  %v4477_v63 = vsel %vm351_vm0, %v9805_v50, -inf  ;;  %v9807_v23 = vld [vmem:[#allocation51_spill] sm:$0xff] }
 0x570   : > { %v3723_v12 = vadd.f32 %v3692_v6, %v3583_v34  ;;  %4147 = vrot.lane.b32.xlu0 %v9007_v59, %s6827_s6  ;;  %v4483_v34 = vsel %vm351_vm0, %v9806_v62, -inf  ;;  %v4489_v13 = vsel %vm351_vm0, %v9807_v23, -inf  ;;  %v9810_v6 = vld [vmem:[#allocation77_spill] sm:$0xff] }
 0x571   : > { %3732 = vst.msk [vmem:[#allocation4 + $0x158] sm:$0xff] %vm351_vm0, %v3724_v5  ;;  %v3955_v5 = vmul.f32 1.442695, %v3946_v32 }
 0x572   : > { %3731 = vst.msk [vmem:[#allocation4 + $0x150] sm:$0xff] %vm351_vm0, %v3723_v12  ;;  %v9811_v12 = vld [vmem:[#allocation75_spill] sm:$0xff] }
 0x573   : > { %6620 = vpow2.f32 %v3955_v5  ;;  %v9066_v5 = vld [vmem:[#allocation2 + $0x1e8] sm:$0xff] }
 0x575   : > { %v4052_v8 = vpop.xlane.xlu0 %4051 }
 0x576   : > { %v4074_v14 = vadd.f32 %v4052_v8, %v4042_v26  ;;  %v6298_v35 = vpop.f32.mrb[44].mxu0  ;;  %v4035_v8 = vld [vmem:[#allocation3 + $0x188] sm:$0xff] }
 0x577   : > { %v3726_v1 = vadd.f32 %v6298_v35, %v3586_v60  ;;  %v3702_v10 = vpop.f32.mrb[45].mxu0  ;;  %v4044_v60 = vmul.f32 %v6613_v55, %v4036_v47 }
 0x578   : > { %4082 = vst.msk [vmem:[#allocation3 + $0x180] sm:$0xff] %vm222_vm1, %v4074_v14  ;;  %v3725_v61 = vadd.f32 %v3702_v10, %v3585_v2  ;;  %v4037_v2 = vld [vmem:[#allocation3 + $0x198] sm:$0xff]  ;;  %v4039_v10 = vld [vmem:[#allocation3 + $0x1a8] sm:$0xff] }
 0x579   : > { %3734 = vst.msk [vmem:[#allocation4 + $0x168] sm:$0xff] %vm351_vm0, %v3726_v1  ;;  %v4045_v27 = vmul.f32 %v6615_v37, %v4037_v2  ;;  %v4047_v16 = vmul.f32 %v6617_v29, %v4039_v10 }
 0x57a   : > { %3733 = vst.msk [vmem:[#allocation4 + $0x160] sm:$0xff] %vm351_vm0, %v3725_v61  ;;  %4101 = vperm.xlu1 %6400, %v6611_v17   ;;  %v3949_v17 = vsub.f32 %v9811_v12, %v9810_v6 }
 0x57c   : > { %v3961_v22 = vmul.f32 1.442695, %v3949_v17 }
 0x57d   : > { %v6621_v58 = vpop.eup %6620 }
 0x57e   : > { %v6301_v42 = vpop.f32.mrb[46].mxu0  ;;  %4111 = vperm.xlu1 %6400, %v6613_v55   ;;  %6622 = vpow2.f32 %v3961_v22  ;;  %v4043_v35 = vmul.f32 %v6621_v58, %v4035_v8  ;;  %v4040_v55 = vld [vmem:[#allocation3 + $0x1b0] sm:$0xff] }
 0x57f   : > { %v3728_v11 = vadd.f32 %v6301_v42, %v3588_v7  ;;  %v3712_v57 = vpop.f32.mrb[47].mxu0  ;;  %6624 = vpow2.f32 %v3965_v56  ;;  %v4469_v8 = vld [vmem:[#allocation2 + $0x1f0] sm:$0xff] }
 0x580   : > { %v3727_v30 = vadd.f32 %v3712_v57, %v3587_v19  ;;  %v4049_v57 = vmul.f32 %v6619_v36, %v4041_v49 }
 0x581   : > { %3736 = vst.msk [vmem:[#allocation4 + $0x178] sm:$0xff] %vm351_vm0, %v3728_v11 }
 0x582   : > { %3735 = vst.msk [vmem:[#allocation4 + $0x170] sm:$0xff] %vm351_vm0, %v3727_v30  ;;  %4116 = vperm.xlu1 %6400, %v6615_v37  }
 0x586   : > { %4126 = vperm.xlu1 %6400, %v6617_v29  }
 0x588   : > { %v6623_v52 = vpop.eup %6622 }
 0x589   : > { %v6625_v26 = vpop.eup %6624  ;;  %v4046_v0 = vmul.f32 %v6623_v52, %v4038_v9 }
 0x58a   : > { %4136 = vperm.xlu1 %6400, %v6619_v36   ;;  %v4048_v42 = vmul.f32 %v6625_v26, %v4040_v55 }
 0x58f   : > { %4475 = vmax.xlane.f32.xlu0 %v4474_v48 }
 0x593   : > { %4478 = vmax.xlane.f32.xlu0 %v4477_v63  ;;  %v9045_v63 = vld [vmem:[#allocation2 + $0x1c0] sm:$0xff] }
 0x597   : > { %4484 = vmax.xlane.f32.xlu0 %v4483_v34 }
 0x59b   : > { %4490 = vmax.xlane.f32.xlu0 %v4489_v13 }
 0x5b1   : > { %4106 = vperm.xlu0 %6401, %v6621_v58  }
 0x5b5   : > { %4121 = vperm.xlu0 %6401, %v6623_v52   ;;  %v4467_v52 = vld [vmem:[#allocation2 + $0x1e0] sm:$0xff] }
 0x5b9   : > { %4131 = vperm.xlu0 %6401, %v6625_v26  }
 0x5db   : > { %v4058_v33 = vpop.xlane.xlu0 %4057 }
 0x5dc   : > { %v4076_v14 = vadd.f32 %v4058_v33, %v4044_v60 }
 0x5de   : > { %4084 = vst.msk [vmem:[#allocation3 + $0x190] sm:$0xff] %vm222_vm1, %v4076_v14  ;;  %v4055_v31 = vpop.xlane.xlu1 %4054 }
 0x5df   : > { %v4075_v3 = vadd.f32 %v4055_v31, %v4043_v35  ;;  %v4061_v1 = vpop.xlane.xlu0 %4060 }
 0x5e0   : > { %v4077_v61 = vadd.f32 %v4061_v1, %v4045_v27 }
 0x5e1   : > { %4083 = vst.msk [vmem:[#allocation3 + $0x188] sm:$0xff] %vm222_vm1, %v4075_v3 }
 0x5e2   : > { %4085 = vst.msk [vmem:[#allocation3 + $0x198] sm:$0xff] %vm222_vm1, %v4077_v61  ;;  %v4064_v41 = vpop.xlane.xlu1 %4063 }
 0x5e3   : > { %v4078_v40 = vadd.f32 %v4064_v41, %v4046_v0  ;;  %v4067_v7 = vpop.xlane.xlu0 %4066 }
 0x5e4   : > { %v4079_v19 = vadd.f32 %v4067_v7, %v4047_v16 }
 0x5e5   : > { %4086 = vst.msk [vmem:[#allocation3 + $0x1a0] sm:$0xff] %vm222_vm1, %v4078_v40 }
 0x5e6   : > { %4087 = vst.msk [vmem:[#allocation3 + $0x1a8] sm:$0xff] %vm222_vm1, %v4079_v19  ;;  %v4070_v11 = vpop.xlane.xlu1 %4069 }
 0x5e7   : > { %v4080_v30 = vadd.f32 %v4070_v11, %v4048_v42  ;;  %v4073_v37 = vpop.xlane.xlu0 %4072 }
 0x5e8   : > { %v4081_v48 = vadd.f32 %v4073_v37, %v4049_v57 }
 0x5e9   : > { %4088 = vst.msk [vmem:[#allocation3 + $0x1b0] sm:$0xff] %vm222_vm1, %v4080_v30 }
 0x5ea   : > { %4089 = vst.msk [vmem:[#allocation3 + $0x1b8] sm:$0xff] %vm222_vm1, %v4081_v48  ;;  %v4473_v29 = vpop.xlane.xlu1 %4472 }
 0x5eb   : > { %v9050_v34 = vmax.f32 %v9045_v63, %v4473_v29  ;;  %v4148_v13 = vpop.permute.xlu0 %4147 }
 0x5ec   : > { %6316 = vmatprep.subr.mxu0 %v4148_v13 }
 0x5ed   : > { %v4503_v36 = vsub.f32 %v9045_v63, %v9050_v34  ;;  %4853 = vst.msk [vmem:[#allocation2 + $0x1c0] sm:$0xff] %vm222_vm1, %v9050_v34  ;;  %6317 = vmatpush3.msra.mxu0 %v4148_v13  ;;  %4529 = vperm.xlu0 %6401, %v9050_v34   ;;  %v4095_v34 = vld [vmem:[#allocation4 + $0x1a0] sm:$0xff] }
 0x5ee   : > { %6319 = vmatmul.mubr.msk.f32.vlgmr.msra.gmra.mrb[48].mxu0 %vm351_vm0, %v8951_v18  ;;  %v4482_v38 = vpop.xlane.xlu1 %4481 }
 0x5ef   : > { %v9062_v32 = vmax.f32 %v9052_v46, %v4482_v38  ;;  %6321 = vmatprep.mubr.msk.f32.mxu0 %vm351_vm0, %v8946_v44  ;;  %v9080_v44 = vld [vmem:[#allocation2 + $0x1f8] sm:$0xff] }
 0x5f1   : > { %v4506_v6 = vsub.f32 %v9052_v46, %v9062_v32  ;;  %4856 = vst.msk [vmem:[#allocation2 + $0x1d8] sm:$0xff] %vm222_vm1, %v9062_v32  ;;  %4544 = vperm.xlu0 %6401, %v9062_v32   ;;  %v4097_v32 = vld [vmem:[#allocation4 + $0x1b0] sm:$0xff] }
 0x5f2   : > { %6322 = vmatmul.mubr.msk.f32.gmra.mrb[50].mxu0 %vm351_vm0, %v8954_v4  ;;  %v4488_v18 = vpop.xlane.xlu1 %4487 }
 0x5f3   : > { %v9076_v12 = vmax.f32 %v9066_v5, %v4488_v18  ;;  %6324 = vmatprep.mubr.msk.f32.mxu0 %vm351_vm0, %v8961_v21  ;;  %v4517_v63 = vmul.f32 1.442695, %v4506_v6 }
 0x5f5   : > { %v4508_v17 = vsub.f32 %v9066_v5, %v9076_v12  ;;  %4858 = vst.msk [vmem:[#allocation2 + $0x1e8] sm:$0xff] %vm222_vm1, %v9076_v12  ;;  %4554 = vperm.xlu0 %6401, %v9076_v12  }
 0x5f6   : > { %6325 = vmatmul.mubr.msk.f32.gmra.mrb[52].mxu0 %vm351_vm0, %v8964_v53  ;;  %v4494_v4 = vpop.xlane.xlu1 %4493 }
 0x5f7   : > { %v9090_v22 = vmax.f32 %v9080_v44, %v4494_v4  ;;  %6327 = vmatprep.mubr.msk.f32.mxu0 %vm351_vm0, %v8971_v39  ;;  %v4521_v46 = vmul.f32 1.442695, %v4508_v17 }
 0x5f9   : > { %v4510_v21 = vsub.f32 %v9080_v44, %v9090_v22  ;;  %4860 = vst.msk [vmem:[#allocation2 + $0x1f8] sm:$0xff] %vm222_vm1, %v9090_v22  ;;  %4564 = vperm.xlu0 %6401, %v9090_v22   ;;  %v4868_v44 = vld [vmem:[#allocation3 + $0x20] sm:$0xff] }
 0x5fa   : > { %6328 = vmatmul.mubr.msk.f32.gmra.mrb[54].mxu0 %vm351_vm0, %v8974_v54 }
 0x5fb   : > { %v4525_v5 = vmul.f32 1.442695, %v4510_v21  ;;  %v4870_v21 = vld [vmem:[#allocation3 + $0x30] sm:$0xff] }
 0x61c   : > { %v4476_v53 = vpop.xlane.xlu0 %4475 }
 0x61d   : > { %v4496_v45 = vmax.f32 %v4464_v51, %v4476_v53 }
 0x61f   : > { %v4504_v56 = vsub.f32 %v4464_v51, %v4496_v45  ;;  %4854 = vst.msk [vmem:[#allocation2 + $0x1c8] sm:$0xff] %vm222_vm1, %v4496_v45  ;;  %4534 = vperm.xlu1 %6400, %v4496_v45  }
 0x620   : > { %v4479_v39 = vpop.xlane.xlu0 %4478 }
 0x621   : > { %v4497_v58 = vmax.f32 %v4465_v20, %v4479_v39  ;;  %v4513_v48 = vmul.f32 1.442695, %v4504_v56  ;;  %v4865_v56 = vld [vmem:[#allocation3 + $0x8] sm:$0xff] }
 0x623   : > { %v4505_v26 = vsub.f32 %v4465_v20, %v4497_v58  ;;  %4855 = vst.msk [vmem:[#allocation2 + $0x1d0] sm:$0xff] %vm222_vm1, %v4497_v58  ;;  %4539 = vperm.xlu1 %6400, %v4497_v58  }
 0x624   : > { %v4485_v47 = vpop.xlane.xlu0 %4484 }
 0x625   : > { %v4499_v60 = vmax.f32 %v4467_v52, %v4485_v47  ;;  %v4515_v13 = vmul.f32 1.442695, %v4505_v26  ;;  %v4867_v47 = vld [vmem:[#allocation3 + $0x18] sm:$0xff] }
 0x627   : > { %v4507_v33 = vsub.f32 %v4467_v52, %v4499_v60  ;;  %4857 = vst.msk [vmem:[#allocation2 + $0x1e0] sm:$0xff] %vm222_vm1, %v4499_v60  ;;  %4549 = vperm.xlu1 %6400, %v4499_v60  }
 0x628   : > { %v4491_v54 = vpop.xlane.xlu0 %4490 }
 0x629   : > { %v4501_v2 = vmax.f32 %v4469_v8, %v4491_v54  ;;  %v4519_v38 = vmul.f32 1.442695, %v4507_v33 }
 0x62b   : > { %v4509_v14 = vsub.f32 %v4469_v8, %v4501_v2  ;;  %4859 = vst.msk [vmem:[#allocation2 + $0x1f0] sm:$0xff] %vm222_vm1, %v4501_v2  ;;  %4559 = vperm.xlu1 %6400, %v4501_v2   ;;  %v4869_v2 = vld [vmem:[#allocation3 + $0x28] sm:$0xff] }
 0x62d   : > { %v4523_v4 = vmul.f32 1.442695, %v4509_v14 }
 0x630   : > { %v9105_v35 = vpop.permute.xlu0 %4106 }
 0x634   : > { %v9107_v31 = vpop.permute.xlu0 %4121 }
 0x638   : > { %v9109_v27 = vpop.permute.xlu0 %4131 }
 0x66c   : > { %v4530_v9 = vpop.permute.xlu0 %4529 }
 0x66d   : > { %v4567_v3 = vsub.f32 %v9783_v43, %v4530_v9 }
 0x66f   : > { %v4575_v1 = vmul.f32 1.442695, %v4567_v3  ;;  %v4871_v3 = vld [vmem:[#allocation3 + $0x38] sm:$0xff] }
 0x670   : > { %v4545_v10 = vpop.permute.xlu0 %4544 }
 0x671   : > { %6626 = vpow2.f32 %v4575_v1  ;;  %v4570_v61 = vsub.f32 %v9788_v28, %v4545_v10 }
 0x673   : > { %v4581_v0 = vmul.f32 1.442695, %v4570_v61 }
 0x674   : > { %v4555_v41 = vpop.permute.xlu0 %4554 }
 0x675   : > { %6628 = vpow2.f32 %v4581_v0  ;;  %v4572_v16 = vsub.f32 %v9789_v24, %v4555_v41  ;;  %v9121_v24 = vpop.permute.xlu1 %4101  ;;  %v4945_v41 = vld [vmem:[#allocation3 + $0x48] sm:$0xff] }
 0x677   : > { %v4585_v55 = vmul.f32 1.442695, %v4572_v16 }
 0x678   : > { %v4565_v40 = vpop.permute.xlu0 %4564 }
 0x679   : > { %6630 = vpow2.f32 %v4585_v55  ;;  %v4574_v7 = vsub.f32 %v9790_v15, %v4565_v40  ;;  %v9129_v30 = vpop.permute.xlu1 %4111  ;;  %v4947_v55 = vld [vmem:[#allocation3 + $0x58] sm:$0xff] }
 0x67b   : > { %v6627_v49 = vpop.eup %6626  ;;  %v4589_v19 = vmul.f32 1.442695, %v4574_v7 }
 0x67c   : > { %6346 = vmatprep.mubr.msk.f32.mxu0 %vm351_vm0, %v6627_v49  ;;  %v4608_v43 = vsel %vm351_vm0, %v6627_v49, 0.0 }
 0x67d   : > { %6632 = vpow2.f32 %v4589_v19  ;;  %4609 = vadd.xlane.f32.xlu1 %v4608_v43  ;;  %v9133_v29 = vpop.permute.xlu1 %4116  ;;  %v4949_v19 = vld [vmem:[#allocation3 + $0x68] sm:$0xff] }
 0x67e   : > { %6634 = vpow2.f32 %v4513_v48  ;;  %v4092_v48 = vld [vmem:[#allocation4 + $0x188] sm:$0xff] }
 0x67f   : > { %v9117_v42 = vpop.eup %6628  ;;  %6636 = vpow2.f32 %v4515_v13  ;;  %v4091_v13 = vld [vmem:[#allocation4 + $0x180] sm:$0xff] }
 0x680   : > { %v4617_v28 = vsel %vm351_vm0, %v9117_v42, 0.0  ;;  %6638 = vpow2.f32 %v4519_v38  ;;  %v4140_v38 = vmul.f32 %v9105_v35, %v4092_v48 }
 0x681   : > { %4618 = vadd.xlane.f32.xlu1 %v4617_v28  ;;  %v9135_v18 = vpop.permute.xlu1 %4126  ;;  %6640 = vpow2.f32 %v4523_v4 }
 0x682   : > { %6642 = vrcp.f32 %v4865_v56  ;;  %v4094_v56 = vld [vmem:[#allocation4 + $0x198] sm:$0xff] }
 0x683   : > { %v9123_v11 = vpop.eup %6630 }
 0x684   : > { %v4623_v15 = vsel %vm351_vm0, %v9123_v11, 0.0 }
 0x685   : > { %4624 = vadd.xlane.f32.xlu1 %v4623_v15  ;;  %v9139_v53 = vpop.permute.xlu1 %4136  ;;  %v4951_v15 = vld [vmem:[#allocation3 + $0x78] sm:$0xff] }
 0x687   : > { %v9127_v57 = vpop.eup %6632 }
 0x688   : > { %v4629_v37 = vsel %vm351_vm0, %v9127_v57, 0.0  ;;  %v9137_v51 = vpop.eup %6634 }
 0x689   : > { %4630 = vadd.xlane.f32.xlu1 %v4629_v37  ;;  %v9142_v45 = vpop.eup %6636 }
 0x68a   : > { %v9146_v58 = vpop.eup %6638 }
 0x68b   : > { %v9150_v8 = vpop.eup %6640 }
 0x68c   : > { %v6643_v1 = vpop.eup %6642 }
 0x69a   : > { %4664 = vperm.xlu1 %6400, %v9137_v51  }
 0x69e   : > { %v4535_v20 = vpop.permute.xlu1 %4534  ;;  %4669 = vperm.xlu1 %6400, %v9142_v45  }
 0x69f   : > { %v4568_v39 = vsub.f32 %v9804_v25, %v4535_v20  ;;  %v4139_v20 = vmul.f32 %v9121_v24, %v4091_v13  ;;  %v4950_v13 = vld [vmem:[#allocation3 + $0x70] sm:$0xff] }
 0x6a1   : > { %v4577_v52 = vmul.f32 1.442695, %v4568_v39 }
 0x6a2   : > { %v4540_v26 = vpop.permute.xlu1 %4539  ;;  %4679 = vperm.xlu1 %6400, %v9146_v58  }
 0x6a3   : > { %6644 = vpow2.f32 %v4577_v52  ;;  %v4569_v60 = vsub.f32 %v9805_v50, %v4540_v26  ;;  %v4511_v52 = vmul.f32 1.442695, %v4503_v36  ;;  %v4093_v26 = vld [vmem:[#allocation4 + $0x190] sm:$0xff] }
 0x6a4   : > { %6646 = vrcp.f32 %v4867_v47  ;;  %v4141_v35 = vmul.f32 %v9129_v30, %v4093_v26  ;;  %v4098_v30 = vld [vmem:[#allocation4 + $0x1b8] sm:$0xff] }
 0x6a5   : > { %v4579_v33 = vmul.f32 1.442695, %v4569_v60 }
 0x6a6   : > { %v4550_v54 = vpop.permute.xlu1 %4549  ;;  %4689 = vperm.xlu1 %6400, %v9150_v8  }
 0x6a7   : > { %6648 = vpow2.f32 %v4579_v33  ;;  %v4571_v25 = vsub.f32 %v9806_v62, %v4550_v54  ;;  %v4142_v54 = vmul.f32 %v9133_v29, %v4094_v56 }
 0x6a8   : > { %6650 = vrcp.f32 %v4869_v2 }
 0x6a9   : > { %v4583_v14 = vmul.f32 1.442695, %v4571_v25  ;;  %v4096_v25 = vld [vmem:[#allocation4 + $0x1a8] sm:$0xff] }
 0x6aa   : > { %v4560_v9 = vpop.permute.xlu1 %4559  ;;  %4705 = vrot.lane.b32.xlu1 %v9007_v59, %s6828_s7  ;;  %v4144_v29 = vmul.f32 %v9135_v18, %v4096_v25  ;;  %v4146_v18 = vmul.f32 %v9139_v53, %v4098_v30  ;;  %v4864_v53 = vld [vmem:[#allocation3] sm:$0xff] }
 0x6ab   : > { %6652 = vpow2.f32 %v4583_v14  ;;  %v4573_v50 = vsub.f32 %v9807_v23, %v4560_v9 }
 0x6ac   : > { %6654 = vrcp.f32 %v4871_v3 }
 0x6ad   : > { %v9157_v10 = vpop.eup %6644  ;;  %v4587_v61 = vmul.f32 1.442695, %v4573_v50  ;;  %v4143_v50 = vmul.f32 %v9107_v31, %v4095_v34 }
 0x6ae   : > { %v4611_v0 = vsel %vm351_vm0, %v9157_v10, 0.0  ;;  %4895 = vperm.xlu1 %6400, %v6643_v1   ;;  %v6647_v62 = vpop.eup %6646 }
 0x6af   : > { %6656 = vpow2.f32 %v4587_v61  ;;  %4612 = vadd.xlane.f32.xlu0 %v4611_v0 }
 0x6b0   : > { %6658 = vrcp.f32 %v4945_v41 }
 0x6b1   : > { %v9161_v16 = vpop.eup %6648  ;;  %6660 = vrcp.f32 %v4947_v55 }
 0x6b2   : > { %v4614_v59 = vsel %vm351_vm0, %v9161_v16, 0.0  ;;  %4905 = vperm.xlu1 %6400, %v6647_v62   ;;  %v6651_v23 = vpop.eup %6650  ;;  %6662 = vrcp.f32 %v4949_v19  ;;  %v4145_v62 = vmul.f32 %v9109_v27, %v4097_v32 }
 0x6b3   : > { %4615 = vadd.xlane.f32.xlu0 %v4614_v59  ;;  %6664 = vrcp.f32 %v4951_v15 }
 0x6b4   : > { %6666 = vpow2.f32 %v4511_v52 }
 0x6b5   : > { %v9165_v40 = vpop.eup %6652  ;;  %6668 = vpow2.f32 %v4517_v63  ;;  %v4599_v63 = vld [vmem:[#allocation3 + $0x1f8] sm:$0xff] }
 0x6b6   : > { %v4620_v7 = vsel %vm351_vm0, %v9165_v40, 0.0  ;;  %4915 = vperm.xlu1 %6400, %v6651_v23   ;;  %v6655_v49 = vpop.eup %6654  ;;  %6670 = vpow2.f32 %v4521_v46  ;;  %v4866_v23 = vld [vmem:[#allocation3 + $0x10] sm:$0xff]  ;;  %v4881_v46 = vld [vmem:[#allocation4 + $0x8] sm:$0xff] }
 0x6b7   : > { %4621 = vadd.xlane.f32.xlu0 %v4620_v7  ;;  %6672 = vpow2.f32 %v4525_v5 }
 0x6b8   : > { %6674 = vrcp.f32 %v4864_v53 }
 0x6b9   : > { %v9169_v43 = vpop.eup %6656  ;;  %6676 = vrcp.f32 %v4866_v23 }
 0x6ba   : > { %v4626_v28 = vsel %vm351_vm0, %v9169_v43, 0.0  ;;  %4925 = vperm.xlu1 %6400, %v6655_v49   ;;  %v6659_v37 = vpop.eup %6658  ;;  %6678 = vrcp.f32 %v4868_v44  ;;  %v4944_v49 = vld [vmem:[#allocation3 + $0x40] sm:$0xff]  ;;  %v4963_v44 = vld [vmem:[#allocation4 + $0x58] sm:$0xff] }
 0x6bb   : > { %4627 = vadd.xlane.f32.xlu0 %v4626_v28  ;;  %v6661_v4 = vpop.eup %6660  ;;  %6680 = vrcp.f32 %v4870_v21  ;;  %v4946_v28 = vld [vmem:[#allocation3 + $0x50] sm:$0xff] }
 0x6bc   : > { %v6663_v2 = vpop.eup %6662  ;;  %6682 = vrcp.f32 %v4944_v49 }
 0x6bd   : > { %v6665_v3 = vpop.eup %6664  ;;  %6684 = vrcp.f32 %v4946_v28 }
 0x6be   : > { %4975 = vperm.xlu1 %6400, %v6659_v37   ;;  %v6667_v59 = vpop.eup %6666  ;;  %v4948_v37 = vld [vmem:[#allocation3 + $0x60] sm:$0xff] }
 0x6bf   : > { %v6669_v27 = vpop.eup %6668  ;;  %6686 = vrcp.f32 %v4948_v37  ;;  %v5060_v37 = vld [vmem:[#allocation3 + $0x98] sm:$0xff] }
 0x6c0   : > { %v6671_v55 = vpop.eup %6670  ;;  %6688 = vrcp.f32 %v4950_v13 }
 0x6c1   : > { %v6320_v39 = vpop.f32.mrb[48].mxu0  ;;  %v6673_v22 = vpop.eup %6672 }
 0x6c2   : > { %v4280_v47 = vadd.f32 %v6320_v39, %v4140_v38  ;;  %v4240_v60 = vpop.f32.mrb[49].mxu0  ;;  %4985 = vperm.xlu1 %6400, %v6661_v4   ;;  %v6675_v7 = vpop.eup %6674  ;;  %v4592_v39 = vld [vmem:[#allocation3 + $0x1c0] sm:$0xff] }
 0x6c3   : > { %v4279_v33 = vadd.f32 %v4240_v60, %v4139_v20  ;;  %v6677_v19 = vpop.eup %6676  ;;  %v4600_v52 = vmul.f32 %v6667_v59, %v4592_v39 }
 0x6c4   : > { %4288 = vst.msk [vmem:[#allocation4 + $0x188] sm:$0xff] %vm351_vm0, %v4280_v47  ;;  %v6679_v15 = vpop.eup %6678  ;;  %v4595_v47 = vld [vmem:[#allocation3 + $0x1d8] sm:$0xff] }
 0x6c5   : > { %4287 = vst.msk [vmem:[#allocation4 + $0x180] sm:$0xff] %vm351_vm0, %v4279_v33  ;;  %v6323_v24 = vpop.f32.mrb[50].mxu0  ;;  %v6681_v48 = vpop.eup %6680  ;;  %v4603_v33 = vmul.f32 %v6669_v27, %v4595_v47 }
 0x6c6   : > { %v4282_v36 = vadd.f32 %v6323_v24, %v4142_v54  ;;  %v4250_v14 = vpop.f32.mrb[51].mxu0  ;;  %4995 = vperm.xlu1 %6400, %v6663_v2   ;;  %v6683_v38 = vpop.eup %6682  ;;  %v4597_v2 = vld [vmem:[#allocation3 + $0x1e8] sm:$0xff] }
 0x6c7   : > { %v4281_v9 = vadd.f32 %v4250_v14, %v4141_v35  ;;  %v6685_v4 = vpop.eup %6684  ;;  %v4605_v25 = vmul.f32 %v6671_v55, %v4597_v2 }
 0x6c8   : > { %4290 = vst.msk [vmem:[#allocation4 + $0x198] sm:$0xff] %vm351_vm0, %v4282_v36  ;;  %v4607_v36 = vmul.f32 %v6673_v22, %v4599_v63 }
 0x6c9   : > { %4289 = vst.msk [vmem:[#allocation4 + $0x190] sm:$0xff] %vm351_vm0, %v4281_v9  ;;  %v6326_v1 = vpop.f32.mrb[52].mxu0  ;;  %v6687_v20 = vpop.eup %6686 }
 0x6ca   : > { %v4284_v6 = vadd.f32 %v6326_v1, %v4144_v29  ;;  %v4260_v61 = vpop.f32.mrb[53].mxu0  ;;  %5005 = vperm.xlu1 %6400, %v6665_v3   ;;  %v6689_v56 = vpop.eup %6688 }
 0x6cb   : > { %v4283_v0 = vadd.f32 %v4260_v61, %v4143_v50 }
 0x6cc   : > { %4292 = vst.msk [vmem:[#allocation4 + $0x1a8] sm:$0xff] %vm351_vm0, %v4284_v6 }
 0x6cd   : > { %4291 = vst.msk [vmem:[#allocation4 + $0x1a0] sm:$0xff] %vm351_vm0, %v4283_v0  ;;  %v6329_v31 = vpop.f32.mrb[54].mxu0 }
 0x6ce   : > { %v4286_v12 = vadd.f32 %v6329_v31, %v4146_v18  ;;  %v4270_v17 = vpop.f32.mrb[55].mxu0  ;;  %v4593_v31 = vld [vmem:[#allocation3 + $0x1c8] sm:$0xff] }
 0x6cf   : > { %v4285_v41 = vadd.f32 %v4270_v17, %v4145_v62 }
 0x6d0   : > { %4294 = vst.msk [vmem:[#allocation4 + $0x1b8] sm:$0xff] %vm351_vm0, %v4286_v12  ;;  %v4601_v12 = vmul.f32 %v9137_v51, %v4593_v31  ;;  %v5058_v51 = vld [vmem:[#allocation3 + $0x88] sm:$0xff]  ;;  %v5057_v31 = vld [vmem:[#allocation3 + $0x80] sm:$0xff] }
 0x6d1   : > { %4293 = vst.msk [vmem:[#allocation4 + $0x1b0] sm:$0xff] %vm351_vm0, %v4285_v41  ;;  %4659 = vperm.xlu0 %6401, %v6667_v59   ;;  %v4594_v41 = vld [vmem:[#allocation3 + $0x1d0] sm:$0xff]  ;;  %6690 = vrcp.f32 %v5058_v51 }
 0x6d2   : > { %6692 = vrcp.f32 %v5060_v37 }
 0x6d5   : > { %4674 = vperm.xlu0 %6401, %v6669_v27   ;;  %v4602_v27 = vmul.f32 %v9142_v45, %v4594_v41  ;;  %v4965_v45 = vld [vmem:[#allocation4 + $0x68] sm:$0xff]  ;;  %v4966_v41 = vld [vmem:[#allocation4 + $0x70] sm:$0xff] }
 0x6d9   : > { %4684 = vperm.xlu0 %6401, %v6671_v55   ;;  %v4596_v55 = vld [vmem:[#allocation3 + $0x1e0] sm:$0xff] }
 0x6dd   : > { %4694 = vperm.xlu0 %6401, %v6673_v22  }
 0x6e1   : > { %4890 = vperm.xlu0 %6401, %v6675_v7   ;;  %v4604_v7 = vmul.f32 %v9146_v58, %v4596_v55  ;;  %v4967_v58 = vld [vmem:[#allocation4 + $0x78] sm:$0xff] }
 0x6e5   : > { %4900 = vperm.xlu0 %6401, %v6677_v19   ;;  %v4598_v19 = vld [vmem:[#allocation3 + $0x1f0] sm:$0xff] }
 0x6e6   : > { %v4606_v13 = vmul.f32 %v9150_v8, %v4598_v19 }
 0x6e9   : > { %4910 = vperm.xlu0 %6401, %v6679_v15  }
 0x6ed   : > { %4920 = vperm.xlu0 %6401, %v6681_v48  }
 0x6f1   : > { %4970 = vperm.xlu0 %6401, %v6683_v38  }
 0x6f5   : > { %4980 = vperm.xlu0 %6401, %v6685_v4  }
 0x6f9   : > { %4990 = vperm.xlu0 %6401, %v6687_v20  }
 0x6fd   : > { %5000 = vperm.xlu0 %6401, %v6689_v56   ;;  %v5062_v56 = vld [vmem:[#allocation3 + $0xa8] sm:$0xff] }
 0x6fe   : > { %6694 = vrcp.f32 %v5062_v56  ;;  %v5175_v56 = vld [vmem:[#allocation3 + $0xe8] sm:$0xff] }
 0x70a   : > { %v4610_v26 = vpop.xlane.xlu1 %4609 }
 0x70b   : > { %v4632_v60 = vadd.f32 %v4610_v26, %v4600_v52  ;;  %v5064_v52 = vld [vmem:[#allocation3 + $0xb8] sm:$0xff]  ;;  %v6691_v26 = vpop.eup %6690 }
 0x70c   : > { %6696 = vrcp.f32 %v5064_v52  ;;  %v6693_v8 = vpop.eup %6692  ;;  %v5177_v52 = vld [vmem:[#allocation3 + $0xf8] sm:$0xff] }
 0x70d   : > { %4640 = vst.msk [vmem:[#allocation3 + $0x1c0] sm:$0xff] %vm222_vm1, %v4632_v60  ;;  %6698 = vrcp.f32 %v5057_v31 }
 0x70e   : > { %v4619_v54 = vpop.xlane.xlu1 %4618 }
 0x70f   : > { %v4635_v35 = vadd.f32 %v4619_v54, %v4603_v33  ;;  %v6695_v33 = vpop.eup %6694 }
 0x711   : > { %4643 = vst.msk [vmem:[#allocation3 + $0x1d8] sm:$0xff] %vm222_vm1, %v4635_v35 }
 0x712   : > { %v4625_v24 = vpop.xlane.xlu1 %4624 }
 0x713   : > { %v4637_v34 = vadd.f32 %v4625_v24, %v4605_v25  ;;  %v4880_v25 = vld [vmem:[#allocation4] sm:$0xff] }
 0x715   : > { %4645 = vst.msk [vmem:[#allocation3 + $0x1e8] sm:$0xff] %vm222_vm1, %v4637_v34  ;;  %v4882_v34 = vld [vmem:[#allocation4 + $0x10] sm:$0xff] }
 0x716   : > { %v4631_v14 = vpop.xlane.xlu1 %4630  ;;  %v6697_v2 = vpop.eup %6696 }
 0x717   : > { %v4639_v9 = vadd.f32 %v4631_v14, %v4607_v36 }
 0x719   : > { %4647 = vst.msk [vmem:[#allocation3 + $0x1f8] sm:$0xff] %vm222_vm1, %v4639_v9  ;;  %v4884_v9 = vld [vmem:[#allocation4 + $0x20] sm:$0xff] }
 0x71a   : > { %v9205_v29 = vpop.permute.xlu1 %4664 }
 0x71e   : > { %v9207_v3 = vpop.permute.xlu1 %4669 }
 0x722   : > { %v9209_v30 = vpop.permute.xlu1 %4679 }
 0x726   : > { %v9211_v50 = vpop.permute.xlu1 %4689 }
 0x72a   : > { %v4706_v1 = vpop.permute.xlu1 %4705 }
 0x72b   : > { %6344 = vmatprep.subr.mxu0 %v4706_v1 }
 0x72c   : > { %6345 = vmatpush3.msra.mxu0 %v4706_v1 }
 0x72d   : > { %6347 = vmatmul.mubr.msk.f32.vlgmr.msra.gmra.mrb[56].mxu0 %vm351_vm0, %v9157_v10  ;;  %v4883_v10 = vld [vmem:[#allocation4 + $0x18] sm:$0xff] }
 0x72e   : > { %6349 = vmatprep.mubr.msk.f32.mxu0 %vm351_vm0, %v9161_v16  ;;  %v4896_v32 = vpop.permute.xlu1 %4895  ;;  %v4885_v16 = vld [vmem:[#allocation4 + $0x28] sm:$0xff] }
 0x72f   : > { %v4929_v6 = vmul.f32 %v4896_v32, %v4881_v46  ;;  %v4886_v32 = vld [vmem:[#allocation4 + $0x30] sm:$0xff] }
 0x731   : > { %4937 = vst.msk [vmem:[%s9220_s15 + $0x8] sm:$0xff] %vm351_vm0, %v4929_v6  ;;  %6350 = vmatmul.mubr.msk.f32.gmra.mrb[58].mxu0 %vm351_vm0, %v9117_v42  ;;  %v4887_v42 = vld [vmem:[#allocation4 + $0x38] sm:$0xff] }
 0x732   : > { %6352 = vmatprep.mubr.msk.f32.mxu0 %vm351_vm0, %v9165_v40  ;;  %v4906_v61 = vpop.permute.xlu1 %4905 }
 0x733   : > { %v4931_v0 = vmul.f32 %v4906_v61, %v4883_v10  ;;  %v4960_v61 = vld [vmem:[#allocation4 + $0x40] sm:$0xff] }
 0x735   : > { %4939 = vst.msk [vmem:[%s9220_s15 + $0x18] sm:$0xff] %vm351_vm0, %v4931_v0  ;;  %6353 = vmatmul.mubr.msk.f32.gmra.mrb[60].mxu0 %vm351_vm0, %v9123_v11 }
 0x736   : > { %6355 = vmatprep.mubr.msk.f32.mxu0 %vm351_vm0, %v9169_v43  ;;  %v4916_v18 = vpop.permute.xlu1 %4915  ;;  %v4961_v43 = vld [vmem:[#allocation4 + $0x48] sm:$0xff] }
 0x737   : > { %v4933_v62 = vmul.f32 %v4916_v18, %v4885_v16  ;;  %v4962_v18 = vld [vmem:[#allocation4 + $0x50] sm:$0xff] }
 0x739   : > { %4941 = vst.msk [vmem:[%s9220_s15 + $0x28] sm:$0xff] %vm351_vm0, %v4933_v62  ;;  %6356 = vmatmul.mubr.msk.f32.gmra.mrb[62].mxu0 %vm351_vm0, %v9127_v57 }
 0x73a   : > { %v4926_v40 = vpop.permute.xlu1 %4925 }
 0x73b   : > { %v4935_v5 = vmul.f32 %v4926_v40, %v4887_v42  ;;  %v4964_v40 = vld [vmem:[#allocation4 + $0x60] sm:$0xff] }
 0x73c   : > { %v4613_v17 = vpop.xlane.xlu0 %4612 }
 0x73d   : > { %4943 = vst.msk [vmem:[%s9220_s15 + $0x38] sm:$0xff] %vm351_vm0, %v4935_v5  ;;  %v4633_v11 = vadd.f32 %v4613_v17, %v4601_v12  ;;  %v5059_v12 = vld [vmem:[#allocation3 + $0x90] sm:$0xff] }
 0x73e   : > { %v4976_v59 = vpop.permute.xlu1 %4975  ;;  %6700 = vrcp.f32 %v5059_v12 }
 0x73f   : > { %4641 = vst.msk [vmem:[#allocation3 + $0x1c8] sm:$0xff] %vm222_vm1, %v4633_v11  ;;  %v5009_v53 = vmul.f32 %v4976_v59, %v4961_v43  ;;  %v5061_v43 = vld [vmem:[#allocation3 + $0xa0] sm:$0xff] }
 0x740   : > { %v4616_v23 = vpop.xlane.xlu0 %4615  ;;  %6702 = vrcp.f32 %v5061_v43  ;;  %v5170_v43 = vld [vmem:[#allocation3 + $0xc0] sm:$0xff] }
 0x741   : > { %v4634_v57 = vadd.f32 %v4616_v23, %v4602_v27  ;;  %5026 = vrot.lane.b32.xlu1 %v5009_v53, %s6828_s7  ;;  %v5063_v53 = vld [vmem:[#allocation3 + $0xb0] sm:$0xff]  ;;  %v6699_v27 = vpop.eup %6698 }
 0x742   : > { %v4986_v22 = vpop.permute.xlu1 %4985  ;;  %6704 = vrcp.f32 %v5063_v53  ;;  %v4656_v53 = vld [vmem:[#allocation4 + $0x1f8] sm:$0xff] }
 0x743   : > { %4642 = vst.msk [vmem:[#allocation3 + $0x1d0] sm:$0xff] %vm222_vm1, %v4634_v57  ;;  %v5011_v21 = vmul.f32 %v4986_v22, %v4963_v44 }
 0x744   : > { %v4622_v49 = vpop.xlane.xlu0 %4621 }
 0x745   : > { %v4636_v28 = vadd.f32 %v4622_v49, %v4604_v7  ;;  %5030 = vrot.lane.b32.xlu1 %v5011_v21, %s6828_s7  ;;  %v5074_v7 = vld [vmem:[#allocation4 + $0x88] sm:$0xff] }
 0x746   : > { %v4996_v15 = vpop.permute.xlu1 %4995 }
 0x747   : > { %4644 = vst.msk [vmem:[#allocation3 + $0x1e0] sm:$0xff] %vm222_vm1, %v4636_v28  ;;  %v5013_v48 = vmul.f32 %v4996_v15, %v4965_v45  ;;  %v5076_v28 = vld [vmem:[#allocation4 + $0x98] sm:$0xff]  ;;  %v5171_v15 = vld [vmem:[#allocation3 + $0xc8] sm:$0xff] }
 0x748   : > { %v4628_v38 = vpop.xlane.xlu0 %4627  ;;  %v6701_v23 = vpop.eup %6700  ;;  %6706 = vrcp.f32 %v5171_v15  ;;  %v5079_v15 = vld [vmem:[#allocation4 + $0xb0] sm:$0xff] }
 0x749   : > { %v4638_v4 = vadd.f32 %v4628_v38, %v4606_v13  ;;  %5034 = vrot.lane.b32.xlu1 %v5013_v48, %s6828_s7  ;;  %v5078_v48 = vld [vmem:[#allocation4 + $0xa8] sm:$0xff]  ;;  %v5173_v38 = vld [vmem:[#allocation3 + $0xd8] sm:$0xff] }
 0x74a   : > { %v5006_v20 = vpop.permute.xlu1 %5005  ;;  %v6703_v55 = vpop.eup %6702  ;;  %6708 = vrcp.f32 %v5173_v38 }
 0x74b   : > { %4646 = vst.msk [vmem:[#allocation3 + $0x1f0] sm:$0xff] %vm222_vm1, %v4638_v4  ;;  %v5015_v39 = vmul.f32 %v5006_v20, %v4967_v58  ;;  %v5080_v58 = vld [vmem:[#allocation4 + $0xb8] sm:$0xff]  ;;  %6710 = vrcp.f32 %v5175_v56 }
 0x74c   : > { %v6705_v57 = vpop.eup %6704  ;;  %6712 = vrcp.f32 %v5177_v52 }
 0x74d   : > { %5038 = vrot.lane.b32.xlu1 %v5015_v39, %s6828_s7  ;;  %6714 = vrcp.f32 %v5170_v43  ;;  %v5190_v43 = vld [vmem:[#allocation4 + $0xe0] sm:$0xff] }
 0x750   : > { %v9254_v47 = vpop.permute.xlu0 %4659 }
 0x751   : > { %5088 = vperm.xlu1 %6400, %v6691_v26  }
 0x752   : > { %v6707_v26 = vpop.eup %6706 }
 0x754   : > { %v9256_v60 = vpop.permute.xlu0 %4674 }
 0x755   : > { %5098 = vperm.xlu1 %6400, %v6693_v8  }
 0x758   : > { %v9258_v54 = vpop.permute.xlu0 %4684 }
 0x759   : > { %5108 = vperm.xlu1 %6400, %v6695_v33   ;;  %v6709_v33 = vpop.eup %6708 }
 0x75c   : > { %v9260_v35 = vpop.permute.xlu0 %4694 }
 0x75d   : > { %5118 = vperm.xlu1 %6400, %v6697_v2  }
 0x760   : > { %v4891_v24 = vpop.permute.xlu0 %4890 }
 0x761   : > { %v4928_v63 = vmul.f32 %v4891_v24, %v4880_v25  ;;  %v6711_v25 = vpop.eup %6710 }
 0x763   : > { %4936 = vst.msk [vmem:[%s9220_s15] sm:$0xff] %vm351_vm0, %v4928_v63  ;;  %v6713_v63 = vpop.eup %6712 }
 0x764   : > { %v4901_v36 = vpop.permute.xlu0 %4900 }
 0x765   : > { %v4930_v14 = vmul.f32 %v4901_v36, %v4882_v34  ;;  %v4650_v36 = vld [vmem:[#allocation4 + $0x1c8] sm:$0xff] }
 0x767   : > { %4938 = vst.msk [vmem:[%s9220_s15 + $0x10] sm:$0xff] %vm351_vm0, %v4930_v14  ;;  %v4649_v14 = vld [vmem:[#allocation4 + $0x1c0] sm:$0xff] }
 0x768   : > { %v4911_v1 = vpop.permute.xlu0 %4910 }
 0x769   : > { %v4932_v46 = vmul.f32 %v4911_v1, %v4884_v9  ;;  %v4698_v9 = vmul.f32 %v9205_v29, %v4650_v36  ;;  %v4697_v1 = vmul.f32 %v9254_v47, %v4649_v14  ;;  %v4653_v47 = vld [vmem:[#allocation4 + $0x1e0] sm:$0xff]  ;;  %v5286_v14 = vld [vmem:[#allocation3 + $0x118] sm:$0xff] }
 0x76b   : > { %4940 = vst.msk [vmem:[%s9220_s15 + $0x20] sm:$0xff] %vm351_vm0, %v4932_v46  ;;  %v4652_v46 = vld [vmem:[#allocation4 + $0x1d8] sm:$0xff] }
 0x76c   : > { %v4921_v6 = vpop.permute.xlu0 %4920 }
 0x76d   : > { %v4934_v10 = vmul.f32 %v4921_v6, %v4886_v32  ;;  %v4651_v6 = vld [vmem:[#allocation4 + $0x1d0] sm:$0xff] }
 0x76f   : > { %4942 = vst.msk [vmem:[%s9220_s15 + $0x30] sm:$0xff] %vm351_vm0, %v4934_v10 }
 0x770   : > { %v4971_v0 = vpop.permute.xlu0 %4970 }
 0x771   : > { %v5008_v16 = vmul.f32 %v4971_v0, %v4960_v61 }
 0x773   : > { %5024 = vrot.lane.b32.xlu0 %v5008_v16, %s6828_s7  ;;  %v5073_v16 = vld [vmem:[#allocation4 + $0x80] sm:$0xff] }
 0x774   : > { %v4981_v62 = vpop.permute.xlu0 %4980 }
 0x775   : > { %v5010_v42 = vmul.f32 %v4981_v62, %v4962_v18  ;;  %v4700_v62 = vmul.f32 %v9256_v60, %v4652_v46 }
 0x777   : > { %5028 = vrot.lane.b32.xlu0 %v5010_v42, %s6828_s7  ;;  %v4699_v42 = vmul.f32 %v9207_v3, %v4651_v6  ;;  %v4701_v3 = vmul.f32 %v9209_v30, %v4653_v47 }
 0x778   : > { %v4991_v5 = vpop.permute.xlu0 %4990 }
 0x779   : > { %v5012_v17 = vmul.f32 %v4991_v5, %v4964_v40  ;;  %v4654_v40 = vld [vmem:[#allocation4 + $0x1e8] sm:$0xff] }
 0x77a   : > { %v4702_v60 = vmul.f32 %v9258_v54, %v4654_v40  ;;  %v4704_v54 = vmul.f32 %v9260_v35, %v4656_v53  ;;  %v5192_v53 = vld [vmem:[#allocation4 + $0xf0] sm:$0xff] }
 0x77b   : > { %5032 = vrot.lane.b32.xlu0 %v5012_v17, %s6828_s7 }
 0x77c   : > { %v5001_v11 = vpop.permute.xlu0 %5000 }
 0x77d   : > { %v5014_v59 = vmul.f32 %v5001_v11, %v4966_v41  ;;  %v5075_v41 = vld [vmem:[#allocation4 + $0x90] sm:$0xff] }
 0x77f   : > { %5036 = vrot.lane.b32.xlu0 %v5014_v59, %s6828_s7 }
 0x783   : > { %5083 = vperm.xlu0 %6401, %v6699_v27  }
 0x787   : > { %5093 = vperm.xlu0 %6401, %v6701_v23   ;;  %v4655_v23 = vld [vmem:[#allocation4 + $0x1f0] sm:$0xff] }
 0x788   : > { %v4703_v30 = vmul.f32 %v9211_v50, %v4655_v23  ;;  %v5176_v50 = vld [vmem:[#allocation3 + $0xf0] sm:$0xff]  ;;  %v5287_v23 = vld [vmem:[#allocation3 + $0x120] sm:$0xff] }
 0x78b   : > { %5103 = vperm.xlu0 %6401, %v6703_v55  }
 0x78f   : > { %5113 = vperm.xlu0 %6401, %v6705_v57  }
 0x7b3   : > { %v5027_v44 = vpop.permute.xlu1 %5026 }
 0x7b4   : > { %5050 = vst.msk [vmem:[%s9220_s15 + $0x8] sm:$0xff] %vm5048_vm2, %v5027_v44 }
 0x7b7   : > { %v5031_v22 = vpop.permute.xlu1 %5030 }
 0x7b8   : > { %5052 = vst.msk [vmem:[%s9220_s15 + $0x18] sm:$0xff] %vm5048_vm2, %v5031_v22  ;;  %v5077_v22 = vld [vmem:[#allocation4 + $0xa0] sm:$0xff] }
 0x7bb   : > { %v5035_v51 = vpop.permute.xlu1 %5034 }
 0x7bc   : > { %5054 = vst.msk [vmem:[%s9220_s15 + $0x28] sm:$0xff] %vm5048_vm2, %v5035_v51 }
 0x7bf   : > { %v5039_v21 = vpop.permute.xlu1 %5038 }
 0x7c0   : > { %5056 = vst.msk [vmem:[%s9220_s15 + $0x38] sm:$0xff] %vm5048_vm2, %v5039_v21  ;;  %v5172_v21 = vld [vmem:[#allocation3 + $0xd0] sm:$0xff] }
 0x7c1   : > { %6716 = vrcp.f32 %v5172_v21 }
 0x7d0   : > { %v5089_v49 = vpop.permute.xlu1 %5088 }
 0x7d1   : > { %v5122_v19 = vmul.f32 %v5089_v49, %v5074_v7 }
 0x7d3   : > { %5139 = vrot.lane.b32.xlu1 %v5122_v19, %s6827_s6 }
 0x7d4   : > { %v5099_v45 = vpop.permute.xlu1 %5098 }
 0x7d5   : > { %v5124_v37 = vmul.f32 %v5099_v45, %v5076_v28 }
 0x7d7   : > { %5143 = vrot.lane.b32.xlu1 %v5124_v37, %s6827_s6 }
 0x7d8   : > { %v5109_v13 = vpop.permute.xlu1 %5108 }
 0x7d9   : > { %v5126_v4 = vmul.f32 %v5109_v13, %v5078_v48  ;;  %v5174_v48 = vld [vmem:[#allocation3 + $0xe0] sm:$0xff]  ;;  %v6715_v13 = vpop.eup %6714 }
 0x7da   : > { %6718 = vrcp.f32 %v5174_v48  ;;  %v6717_v38 = vpop.eup %6716  ;;  %v5397_v48 = vld [vmem:[#allocation3 + $0x148] sm:$0xff] }
 0x7db   : > { %5147 = vrot.lane.b32.xlu1 %v5126_v4, %s6827_s6  ;;  %6720 = vrcp.f32 %v5176_v50  ;;  %v5304_v50 = vld [vmem:[#allocation4 + $0x128] sm:$0xff] }
 0x7dc   : > { %v5119_v20 = vpop.permute.xlu1 %5118 }
 0x7dd   : > { %v5128_v39 = vmul.f32 %v5119_v20, %v5080_v58 }
 0x7df   : > { %5151 = vrot.lane.b32.xlu1 %v5128_v39, %s6827_s6 }
 0x7e3   : > { %5201 = vperm.xlu1 %6400, %v6707_v26   ;;  %v5187_v26 = vld [vmem:[#allocation4 + $0xc8] sm:$0xff] }
 0x7e4   : > { %v6719_v4 = vpop.eup %6718 }
 0x7e5   : > { %v5025_v8 = vpop.permute.xlu0 %5024  ;;  %v6721_v58 = vpop.eup %6720 }
 0x7e6   : > { %5049 = vst.msk [vmem:[%s9220_s15] sm:$0xff] %vm5048_vm2, %v5025_v8 }
 0x7e7   : > { %5211 = vperm.xlu1 %6400, %v6709_v33  }
 0x7e9   : > { %v5029_v2 = vpop.permute.xlu0 %5028 }
 0x7ea   : > { %5051 = vst.msk [vmem:[%s9220_s15 + $0x10] sm:$0xff] %vm5048_vm2, %v5029_v2  ;;  %v5189_v2 = vld [vmem:[#allocation4 + $0xd8] sm:$0xff] }
 0x7eb   : > { %5221 = vperm.xlu1 %6400, %v6711_v25  }
 0x7ed   : > { %v5033_v24 = vpop.permute.xlu0 %5032 }
 0x7ee   : > { %5053 = vst.msk [vmem:[%s9220_s15 + $0x20] sm:$0xff] %vm5048_vm2, %v5033_v24  ;;  %v5284_v24 = vld [vmem:[#allocation3 + $0x108] sm:$0xff] }
 0x7ef   : > { %5231 = vperm.xlu1 %6400, %v6713_v63   ;;  %6722 = vrcp.f32 %v5284_v24 }
 0x7f0   : > { %6724 = vrcp.f32 %v5286_v14 }
 0x7f1   : > { %v5037_v34 = vpop.permute.xlu0 %5036 }
 0x7f2   : > { %5055 = vst.msk [vmem:[%s9220_s15 + $0x30] sm:$0xff] %vm5048_vm2, %v5037_v34  ;;  %v5191_v34 = vld [vmem:[#allocation4 + $0xe8] sm:$0xff] }
 0x800   : > { %v6348_v32 = vpop.f32.mrb[56].mxu0 }
 0x801   : > { %v4838_v10 = vadd.f32 %v6348_v32, %v4698_v9  ;;  %v4798_v61 = vpop.f32.mrb[57].mxu0  ;;  %v5288_v32 = vld [vmem:[#allocation3 + $0x128] sm:$0xff] }
 0x802   : > { %v4837_v0 = vadd.f32 %v4798_v61, %v4697_v1  ;;  %v5084_v18 = vpop.permute.xlu0 %5083  ;;  %v5193_v1 = vld [vmem:[#allocation4 + $0xf8] sm:$0xff]  ;;  %6726 = vrcp.f32 %v5288_v32  ;;  %v6723_v61 = vpop.eup %6722  ;;  %v5623_v32 = vld [vmem:[#allocation3 + $0x1c8] sm:$0xff] }
 0x803   : > { %4846 = vst.msk [vmem:[#allocation4 + $0x1c8] sm:$0xff] %vm351_vm0, %v4838_v10  ;;  %v5121_v31 = vmul.f32 %v5084_v18, %v5073_v16  ;;  %v5290_v10 = vld [vmem:[#allocation3 + $0x138] sm:$0xff]  ;;  %v6725_v16 = vpop.eup %6724 }
 0x804   : > { %4845 = vst.msk [vmem:[#allocation4 + $0x1c0] sm:$0xff] %vm351_vm0, %v4837_v0  ;;  %v6351_v29 = vpop.f32.mrb[58].mxu0  ;;  %6728 = vrcp.f32 %v5290_v10  ;;  %v5625_v10 = vld [vmem:[#allocation3 + $0x1d8] sm:$0xff] }
 0x805   : > { %v4840_v5 = vadd.f32 %v6351_v29, %v4700_v62  ;;  %5137 = vrot.lane.b32.xlu0 %v5121_v31, %s6827_s6  ;;  %v4808_v12 = vpop.f32.mrb[59].mxu0  ;;  %v5186_v29 = vld [vmem:[#allocation4 + $0xc0] sm:$0xff] }
 0x806   : > { %v4839_v17 = vadd.f32 %v4808_v12, %v4699_v42  ;;  %v5094_v11 = vpop.permute.xlu0 %5093  ;;  %v5188_v12 = vld [vmem:[#allocation4 + $0xd0] sm:$0xff] }
 0x807   : > { %4848 = vst.msk [vmem:[#allocation4 + $0x1d8] sm:$0xff] %vm351_vm0, %v4840_v5  ;;  %v5123_v59 = vmul.f32 %v5094_v11, %v5075_v41  ;;  %v5283_v41 = vld [vmem:[#allocation3 + $0x100] sm:$0xff] }
 0x808   : > { %4847 = vst.msk [vmem:[#allocation4 + $0x1d0] sm:$0xff] %vm351_vm0, %v4839_v17  ;;  %v6354_v27 = vpop.f32.mrb[60].mxu0  ;;  %6730 = vrcp.f32 %v5283_v41 }
 0x809   : > { %v4842_v55 = vadd.f32 %v6354_v27, %v4702_v60  ;;  %5141 = vrot.lane.b32.xlu0 %v5123_v59, %s6827_s6  ;;  %v4818_v57 = vpop.f32.mrb[61].mxu0  ;;  %v5285_v59 = vld [vmem:[#allocation3 + $0x110] sm:$0xff] }
 0x80a   : > { %v4841_v44 = vadd.f32 %v4818_v57, %v4701_v3  ;;  %v5104_v51 = vpop.permute.xlu0 %5103  ;;  %6732 = vrcp.f32 %v5285_v59  ;;  %v5289_v57 = vld [vmem:[#allocation3 + $0x130] sm:$0xff] }
 0x80b   : > { %4850 = vst.msk [vmem:[#allocation4 + $0x1e8] sm:$0xff] %vm351_vm0, %v4842_v55  ;;  %v5125_v7 = vmul.f32 %v5104_v51, %v5077_v22  ;;  %6734 = vrcp.f32 %v5287_v23  ;;  %v5400_v23 = vld [vmem:[#allocation3 + $0x160] sm:$0xff] }
 0x80c   : > { %4849 = vst.msk [vmem:[#allocation4 + $0x1e0] sm:$0xff] %vm351_vm0, %v4841_v44  ;;  %v6357_v49 = vpop.f32.mrb[62].mxu0  ;;  %v6727_v62 = vpop.eup %6726  ;;  %6736 = vrcp.f32 %v5289_v57  ;;  %v5402_v57 = vld [vmem:[#allocation3 + $0x170] sm:$0xff] }
 0x80d   : > { %v4844_v19 = vadd.f32 %v6357_v49, %v4704_v54  ;;  %5145 = vrot.lane.b32.xlu0 %v5125_v7, %s6827_s6  ;;  %v4828_v28 = vpop.f32.mrb[63].mxu0  ;;  %6738 = vrcp.f32 %v5397_v48  ;;  %v5626_v48 = vld [vmem:[#allocation3 + $0x1e0] sm:$0xff] }
 0x80e   : > { %v4843_v45 = vadd.f32 %v4828_v28, %v4703_v30  ;;  %v5114_v37 = vpop.permute.xlu0 %5113  ;;  %v6729_v42 = vpop.eup %6728 }
 0x80f   : > { %4852 = vst.msk [vmem:[#allocation4 + $0x1f8] sm:$0xff] %vm351_vm0, %v4844_v19  ;;  %v5127_v35 = vmul.f32 %v5114_v37, %v5079_v15  ;;  %v5300_v19 = vld [vmem:[#allocation4 + $0x108] sm:$0xff]  ;;  %v5302_v15 = vld [vmem:[#allocation4 + $0x118] sm:$0xff] }
 0x810   : > { %4851 = vst.msk [vmem:[#allocation4 + $0x1f0] sm:$0xff] %vm351_vm0, %v4843_v45 }
 0x811   : > { %5149 = vrot.lane.b32.xlu0 %v5127_v35, %s6827_s6 }
 0x812   : > { %v6731_v44 = vpop.eup %6730 }
 0x814   : > { %v6733_v22 = vpop.eup %6732 }
 0x815   : > { %5196 = vperm.xlu0 %6401, %v6715_v13   ;;  %v6735_v51 = vpop.eup %6734 }
 0x816   : > { %v6737_v21 = vpop.eup %6736 }
 0x819   : > { %5206 = vperm.xlu0 %6401, %v6717_v38   ;;  %v5399_v38 = vld [vmem:[#allocation3 + $0x158] sm:$0xff] }
 0x81a   : > { %6740 = vrcp.f32 %v5399_v38 }
 0x81d   : > { %5216 = vperm.xlu0 %6401, %v6719_v4  }
 0x821   : > { %5226 = vperm.xlu0 %6401, %v6721_v58   ;;  %v5306_v58 = vld [vmem:[#allocation4 + $0x138] sm:$0xff] }
 0x845   : > { %v5140_v20 = vpop.permute.xlu1 %5139 }
 0x846   : > { %5163 = vst.msk [vmem:[%s9220_s15 + $0x8] sm:$0xff] %vm5161_vm3, %v5140_v20 }
 0x849   : > { %v5144_v56 = vpop.permute.xlu1 %5143 }
 0x84a   : > { %5165 = vst.msk [vmem:[%s9220_s15 + $0x18] sm:$0xff] %vm5161_vm3, %v5144_v56  ;;  %v5401_v56 = vld [vmem:[#allocation3 + $0x168] sm:$0xff] }
 0x84b   : > { %6742 = vrcp.f32 %v5401_v56 }
 0x84d   : > { %v5148_v39 = vpop.permute.xlu1 %5147 }
 0x84e   : > { %5167 = vst.msk [vmem:[%s9220_s15 + $0x28] sm:$0xff] %vm5161_vm3, %v5148_v39 }
 0x851   : > { %v5152_v52 = vpop.permute.xlu1 %5151 }
 0x852   : > { %5169 = vst.msk [vmem:[%s9220_s15 + $0x38] sm:$0xff] %vm5161_vm3, %v5152_v52  ;;  %v5403_v52 = vld [vmem:[#allocation3 + $0x178] sm:$0xff] }
 0x853   : > { %6744 = vrcp.f32 %v5403_v52 }
 0x862   : > { %v5202_v8 = vpop.permute.xlu1 %5201 }
 0x863   : > { %v5235_v33 = vmul.f32 %v5202_v8, %v5187_v26  ;;  %v6739_v26 = vpop.eup %6738  ;;  %v5510_v8 = vld [vmem:[#allocation3 + $0x188] sm:$0xff] }
 0x864   : > { %6746 = vrcp.f32 %v5510_v8 }
 0x865   : > { %5252 = vrot.lane.b32.xlu1 %v5235_v33, %s6824_s5 }
 0x866   : > { %v5212_v25 = vpop.permute.xlu1 %5211 }
 0x867   : > { %v5237_v63 = vmul.f32 %v5212_v25, %v5189_v2  ;;  %v6741_v2 = vpop.eup %6740  ;;  %v5512_v25 = vld [vmem:[#allocation3 + $0x198] sm:$0xff] }
 0x868   : > { %6748 = vrcp.f32 %v5512_v25 }
 0x869   : > { %5256 = vrot.lane.b32.xlu1 %v5237_v63, %s6824_s5  ;;  %v6743_v63 = vpop.eup %6742 }
 0x86a   : > { %v5222_v36 = vpop.permute.xlu1 %5221  ;;  %v6745_v14 = vpop.eup %6744 }
 0x86b   : > { %v5239_v9 = vmul.f32 %v5222_v36, %v5191_v34  ;;  %v5514_v34 = vld [vmem:[#allocation3 + $0x1a8] sm:$0xff] }
 0x86c   : > { %6750 = vrcp.f32 %v5514_v34 }
 0x86d   : > { %5260 = vrot.lane.b32.xlu1 %v5239_v9, %s6824_s5  ;;  %v5516_v9 = vld [vmem:[#allocation3 + $0x1b8] sm:$0xff] }
 0x86e   : > { %v5232_v46 = vpop.permute.xlu1 %5231  ;;  %6752 = vrcp.f32 %v5516_v9 }
 0x86f   : > { %v5241_v6 = vmul.f32 %v5232_v46, %v5193_v1  ;;  %v6747_v46 = vpop.eup %6746  ;;  %6754 = vrcp.f32 %v5623_v32 }
 0x870   : > { %6756 = vrcp.f32 %v5625_v10  ;;  %v5528_v10 = vld [vmem:[#allocation4 + $0x198] sm:$0xff] }
 0x871   : > { %5264 = vrot.lane.b32.xlu1 %v5241_v6, %s6824_s5 }
 0x872   : > { %v6749_v6 = vpop.eup %6748 }
 0x875   : > { %5314 = vperm.xlu1 %6400, %v6723_v61  }
 0x876   : > { %v6751_v61 = vpop.eup %6750 }
 0x877   : > { %v5138_v0 = vpop.permute.xlu0 %5137 }
 0x878   : > { %5162 = vst.msk [vmem:[%s9220_s15] sm:$0xff] %vm5161_vm3, %v5138_v0  ;;  %v5627_v0 = vld [vmem:[#allocation3 + $0x1e8] sm:$0xff] }
 0x879   : > { %5324 = vperm.xlu1 %6400, %v6725_v16   ;;  %v6753_v16 = vpop.eup %6752  ;;  %6758 = vrcp.f32 %v5627_v0 }
 0x87b   : > { %v5142_v18 = vpop.permute.xlu0 %5141 }
 0x87c   : > { %5164 = vst.msk [vmem:[%s9220_s15 + $0x10] sm:$0xff] %vm5161_vm3, %v5142_v18  ;;  %v5629_v18 = vld [vmem:[#allocation3 + $0x1f8] sm:$0xff] }
 0x87d   : > { %5334 = vperm.xlu1 %6400, %v6727_v62   ;;  %v6755_v62 = vpop.eup %6754  ;;  %6760 = vrcp.f32 %v5629_v18  ;;  %v5530_v18 = vld [vmem:[#allocation4 + $0x1a8] sm:$0xff] }
 0x87f   : > { %v5146_v31 = vpop.permute.xlu0 %5145 }
 0x880   : > { %5166 = vst.msk [vmem:[%s9220_s15 + $0x20] sm:$0xff] %vm5161_vm3, %v5146_v31  ;;  %v5299_v31 = vld [vmem:[#allocation4 + $0x100] sm:$0xff] }
 0x881   : > { %5344 = vperm.xlu1 %6400, %v6729_v42  }
 0x883   : > { %v5150_v40 = vpop.permute.xlu0 %5149 }
 0x884   : > { %5168 = vst.msk [vmem:[%s9220_s15 + $0x30] sm:$0xff] %vm5161_vm3, %v5150_v40 }
 0x894   : > { %v5197_v47 = vpop.permute.xlu0 %5196 }
 0x895   : > { %v5234_v5 = vmul.f32 %v5197_v47, %v5186_v29  ;;  %v6757_v29 = vpop.eup %6756  ;;  %v5301_v47 = vld [vmem:[#allocation4 + $0x110] sm:$0xff] }
 0x896   : > { %v6759_v41 = vpop.eup %6758 }
 0x897   : > { %5250 = vrot.lane.b32.xlu0 %v5234_v5, %s6824_s5 }
 0x898   : > { %v5207_v17 = vpop.permute.xlu0 %5206 }
 0x899   : > { %v5236_v11 = vmul.f32 %v5207_v17, %v5188_v12  ;;  %v5396_v12 = vld [vmem:[#allocation3 + $0x140] sm:$0xff] }
 0x89a   : > { %6762 = vrcp.f32 %v5396_v12  ;;  %v5639_v12 = vld [vmem:[#allocation4 + $0x1c8] sm:$0xff] }
 0x89b   : > { %5254 = vrot.lane.b32.xlu0 %v5236_v11, %s6824_s5  ;;  %v5303_v11 = vld [vmem:[#allocation4 + $0x120] sm:$0xff] }
 0x89c   : > { %v5217_v60 = vpop.permute.xlu0 %5216 }
 0x89d   : > { %v5238_v3 = vmul.f32 %v5217_v60, %v5190_v43  ;;  %v5398_v60 = vld [vmem:[#allocation3 + $0x150] sm:$0xff] }
 0x89e   : > { %6764 = vrcp.f32 %v5398_v60  ;;  %v5641_v60 = vld [vmem:[#allocation4 + $0x1d8] sm:$0xff] }
 0x89f   : > { %5258 = vrot.lane.b32.xlu0 %v5238_v3, %s6824_s5  ;;  %v6761_v3 = vpop.eup %6760  ;;  %6766 = vrcp.f32 %v5400_v23 }
 0x8a0   : > { %v5227_v27 = vpop.permute.xlu0 %5226  ;;  %6768 = vrcp.f32 %v5402_v57 }
 0x8a1   : > { %v5240_v55 = vmul.f32 %v5227_v27, %v5192_v53  ;;  %v5305_v53 = vld [vmem:[#allocation4 + $0x130] sm:$0xff] }
 0x8a3   : > { %5262 = vrot.lane.b32.xlu0 %v5240_v55, %s6824_s5 }
 0x8a7   : > { %5309 = vperm.xlu0 %6401, %v6731_v44   ;;  %v6763_v44 = vpop.eup %6762 }
 0x8ab   : > { %5319 = vperm.xlu0 %6401, %v6733_v22   ;;  %v5509_v22 = vld [vmem:[#allocation3 + $0x180] sm:$0xff] }
 0x8ac   : > { %6770 = vrcp.f32 %v5509_v22 }
 0x8af   : > { %5329 = vperm.xlu0 %6401, %v6735_v51   ;;  %v6765_v51 = vpop.eup %6764 }
 0x8b3   : > { %5339 = vperm.xlu0 %6401, %v6737_v21   ;;  %v5511_v21 = vld [vmem:[#allocation3 + $0x190] sm:$0xff] }
 0x8b4   : > { %6772 = vrcp.f32 %v5511_v21  ;;  %v5414_v21 = vld [vmem:[#allocation4 + $0x150] sm:$0xff] }
 0x8d7   : > { %v5253_v54 = vpop.permute.xlu1 %5252 }
 0x8d8   : > { %5276 = vst.msk [vmem:[%s9220_s15 + $0x8] sm:$0xff] %vm5274_vm4, %v5253_v54  ;;  %v6767_v54 = vpop.eup %6766 }
 0x8db   : > { %v5257_v7 = vpop.permute.xlu1 %5256 }
 0x8dc   : > { %5278 = vst.msk [vmem:[%s9220_s15 + $0x18] sm:$0xff] %vm5274_vm4, %v5257_v7  ;;  %v5513_v7 = vld [vmem:[#allocation3 + $0x1a0] sm:$0xff] }
 0x8dd   : > { %6774 = vrcp.f32 %v5513_v7 }
 0x8df   : > { %v5261_v30 = vpop.permute.xlu1 %5260 }
 0x8e0   : > { %5280 = vst.msk [vmem:[%s9220_s15 + $0x28] sm:$0xff] %vm5274_vm4, %v5261_v30  ;;  %v6769_v30 = vpop.eup %6768 }
 0x8e3   : > { %v5265_v49 = vpop.permute.xlu1 %5264 }
 0x8e4   : > { %5282 = vst.msk [vmem:[%s9220_s15 + $0x38] sm:$0xff] %vm5274_vm4, %v5265_v49  ;;  %v5515_v49 = vld [vmem:[#allocation3 + $0x1b0] sm:$0xff] }
 0x8e5   : > { %6776 = vrcp.f32 %v5515_v49 }
 0x8f4   : > { %v5315_v28 = vpop.permute.xlu1 %5314 }
 0x8f5   : > { %v5348_v45 = vmul.f32 %v5315_v28, %v5300_v19  ;;  %v6771_v19 = vpop.eup %6770  ;;  %v5622_v28 = vld [vmem:[#allocation3 + $0x1c0] sm:$0xff] }
 0x8f6   : > { %6778 = vrcp.f32 %v5622_v28  ;;  %v5418_v28 = vld [vmem:[#allocation4 + $0x170] sm:$0xff] }
 0x8f7   : > { %5365 = vrot.lane.b32.xlu1 %v5348_v45, %s6820_s30  ;;  %v6773_v45 = vpop.eup %6772 }
 0x8f8   : > { %v5325_v37 = vpop.permute.xlu1 %5324 }
 0x8f9   : > { %v5350_v35 = vmul.f32 %v5325_v37, %v5302_v15  ;;  %v5624_v15 = vld [vmem:[#allocation3 + $0x1d0] sm:$0xff]  ;;  %v6775_v37 = vpop.eup %6774 }
 0x8fa   : > { %6780 = vrcp.f32 %v5624_v15 }
 0x8fb   : > { %5369 = vrot.lane.b32.xlu1 %v5350_v35, %s6820_s30  ;;  %v6777_v35 = vpop.eup %6776  ;;  %6782 = vrcp.f32 %v5626_v48 }
 0x8fc   : > { %v5335_v13 = vpop.permute.xlu1 %5334 }
 0x8fd   : > { %v5352_v4 = vmul.f32 %v5335_v13, %v5304_v50  ;;  %v5628_v50 = vld [vmem:[#allocation3 + $0x1f0] sm:$0xff] }
 0x8fe   : > { %6784 = vrcp.f32 %v5628_v50  ;;  %v5527_v50 = vld [vmem:[#allocation4 + $0x190] sm:$0xff] }
 0x8ff   : > { %5373 = vrot.lane.b32.xlu1 %v5352_v4, %s6820_s30 }
 0x900   : > { %v5345_v20 = vpop.permute.xlu1 %5344  ;;  %v6779_v13 = vpop.eup %6778 }
 0x901   : > { %v5354_v39 = vmul.f32 %v5345_v20, %v5306_v58 }
 0x903   : > { %5377 = vrot.lane.b32.xlu1 %v5354_v39, %s6820_s30 }
 0x904   : > { %v6781_v38 = vpop.eup %6780 }
 0x905   : > { %v6783_v4 = vpop.eup %6782 }
 0x907   : > { %5427 = vperm.xlu1 %6400, %v6739_v26   ;;  %v5413_v26 = vld [vmem:[#allocation4 + $0x148] sm:$0xff] }
 0x908   : > { %v6785_v58 = vpop.eup %6784 }
 0x909   : > { %v5251_v33 = vpop.permute.xlu0 %5250 }
 0x90a   : > { %5275 = vst.msk [vmem:[%s9220_s15] sm:$0xff] %vm5274_vm4, %v5251_v33 }
 0x90b   : > { %5437 = vperm.xlu1 %6400, %v6741_v2   ;;  %v5415_v2 = vld [vmem:[#allocation4 + $0x158] sm:$0xff] }
 0x90d   : > { %v5255_v24 = vpop.permute.xlu0 %5254 }
 0x90e   : > { %5277 = vst.msk [vmem:[%s9220_s15 + $0x10] sm:$0xff] %vm5274_vm4, %v5255_v24 }
 0x90f   : > { %5447 = vperm.xlu1 %6400, %v6743_v63   ;;  %v5417_v63 = vld [vmem:[#allocation4 + $0x168] sm:$0xff] }
 0x911   : > { %v5259_v36 = vpop.permute.xlu0 %5258 }
 0x912   : > { %5279 = vst.msk [vmem:[%s9220_s15 + $0x20] sm:$0xff] %vm5274_vm4, %v5259_v36 }
 0x913   : > { %5457 = vperm.xlu1 %6400, %v6745_v14   ;;  %v5419_v14 = vld [vmem:[#allocation4 + $0x178] sm:$0xff] }
 0x915   : > { %v5263_v1 = vpop.permute.xlu0 %5262 }
 0x916   : > { %5281 = vst.msk [vmem:[%s9220_s15 + $0x30] sm:$0xff] %vm5274_vm4, %v5263_v1 }
 0x917   : > { %5540 = vperm.xlu1 %6400, %v6747_v46   ;;  %v5526_v46 = vld [vmem:[#allocation4 + $0x188] sm:$0xff] }
 0x91b   : > { %5550 = vperm.xlu1 %6400, %v6749_v6  }
 0x91f   : > { %5560 = vperm.xlu1 %6400, %v6751_v61  }
 0x923   : > { %5570 = vperm.xlu1 %6400, %v6753_v16  }
 0x926   : > { %v5310_v42 = vpop.permute.xlu0 %5309 }
 0x927   : > { %v5347_v40 = vmul.f32 %v5310_v42, %v5299_v31  ;;  %5653 = vperm.xlu1 %6400, %v6755_v62  }
 0x929   : > { %5363 = vrot.lane.b32.xlu0 %v5347_v40, %s6820_s30  ;;  %v5532_v40 = vld [vmem:[#allocation4 + $0x1b8] sm:$0xff] }
 0x92a   : > { %v5320_v5 = vpop.permute.xlu0 %5319 }
 0x92b   : > { %v5349_v17 = vmul.f32 %v5320_v5, %v5301_v47  ;;  %5663 = vperm.xlu1 %6400, %v6757_v29  }
 0x92d   : > { %5367 = vrot.lane.b32.xlu0 %v5349_v17, %s6820_s30 }
 0x92e   : > { %v5330_v43 = vpop.permute.xlu0 %5329 }
 0x92f   : > { %v5351_v59 = vmul.f32 %v5330_v43, %v5303_v11  ;;  %5673 = vperm.xlu1 %6400, %v6759_v41  }
 0x931   : > { %5371 = vrot.lane.b32.xlu0 %v5351_v59, %s6820_s30 }
 0x932   : > { %v5340_v27 = vpop.permute.xlu0 %5339 }
 0x933   : > { %v5353_v55 = vmul.f32 %v5340_v27, %v5305_v53  ;;  %5683 = vperm.xlu1 %6400, %v6761_v3   ;;  %v5643_v53 = vld [vmem:[#allocation4 + $0x1e8] sm:$0xff] }
 0x935   : > { %5375 = vrot.lane.b32.xlu0 %v5353_v55, %s6820_s30  ;;  %v5645_v55 = vld [vmem:[#allocation4 + $0x1f8] sm:$0xff] }
 0x939   : > { %5422 = vperm.xlu0 %6401, %v6763_v44   ;;  %v5412_v44 = vld [vmem:[#allocation4 + $0x140] sm:$0xff] }
 0x93d   : > { %5432 = vperm.xlu0 %6401, %v6765_v51  }
 0x941   : > { %5442 = vperm.xlu0 %6401, %v6767_v54  }
 0x945   : > { %5452 = vperm.xlu0 %6401, %v6769_v30   ;;  %v5416_v30 = vld [vmem:[#allocation4 + $0x160] sm:$0xff] }
 0x949   : > { %5535 = vperm.xlu0 %6401, %v6771_v19  }
 0x94d   : > { %5545 = vperm.xlu0 %6401, %v6773_v45  }
 0x951   : > { %5555 = vperm.xlu0 %6401, %v6775_v37   ;;  %v5525_v37 = vld [vmem:[#allocation4 + $0x180] sm:$0xff] }
 0x955   : > { %5565 = vperm.xlu0 %6401, %v6777_v35  }
 0x959   : > { %5648 = vperm.xlu0 %6401, %v6779_v13  }
 0x95d   : > { %5658 = vperm.xlu0 %6401, %v6781_v38  }
 0x961   : > { %5668 = vperm.xlu0 %6401, %v6783_v4   ;;  %v5529_v4 = vld [vmem:[#allocation4 + $0x1a0] sm:$0xff] }
 0x965   : > { %5678 = vperm.xlu0 %6401, %v6785_v58  }
 0x969   : > { %v5366_v20 = vpop.permute.xlu1 %5365 }
 0x96a   : > { %5389 = vst.msk [vmem:[%s9220_s15 + $0x8] sm:$0xff] %vm5387_vm5, %v5366_v20 }
 0x96d   : > { %v5370_v56 = vpop.permute.xlu1 %5369 }
 0x96e   : > { %5391 = vst.msk [vmem:[%s9220_s15 + $0x18] sm:$0xff] %vm5387_vm5, %v5370_v56  ;;  %v5531_v56 = vld [vmem:[#allocation4 + $0x1b0] sm:$0xff] }
 0x971   : > { %v5374_v39 = vpop.permute.xlu1 %5373 }
 0x972   : > { %5393 = vst.msk [vmem:[%s9220_s15 + $0x28] sm:$0xff] %vm5387_vm5, %v5374_v39 }
 0x975   : > { %v5378_v52 = vpop.permute.xlu1 %5377 }
 0x976   : > { %5395 = vst.msk [vmem:[%s9220_s15 + $0x38] sm:$0xff] %vm5387_vm5, %v5378_v52 }
 0x986   : > { %v5428_v8 = vpop.permute.xlu1 %5427 }
 0x987   : > { %v5461_v33 = vmul.f32 %v5428_v8, %v5413_v26  ;;  %v5638_v26 = vld [vmem:[#allocation4 + $0x1c0] sm:$0xff] }
 0x989   : > { %5478 = vrot.lane.b32.xlu1 %v5461_v33, %s6818_s28 }
 0x98a   : > { %v5438_v25 = vpop.permute.xlu1 %5437 }
 0x98b   : > { %v5463_v24 = vmul.f32 %v5438_v25, %v5415_v2  ;;  %v5640_v2 = vld [vmem:[#allocation4 + $0x1d0] sm:$0xff] }
 0x98d   : > { %5482 = vrot.lane.b32.xlu1 %v5463_v24, %s6818_s28 }
 0x98e   : > { %v5448_v34 = vpop.permute.xlu1 %5447 }
 0x98f   : > { %v5465_v36 = vmul.f32 %v5448_v34, %v5417_v63  ;;  %v5642_v63 = vld [vmem:[#allocation4 + $0x1e0] sm:$0xff] }
 0x991   : > { %5486 = vrot.lane.b32.xlu1 %v5465_v36, %s6818_s28 }
 0x992   : > { %v5458_v9 = vpop.permute.xlu1 %5457 }
 0x993   : > { %v5467_v1 = vmul.f32 %v5458_v9, %v5419_v14  ;;  %v5644_v14 = vld [vmem:[#allocation4 + $0x1f0] sm:$0xff] }
 0x995   : > { %5490 = vrot.lane.b32.xlu1 %v5467_v1, %s6818_s28 }
 0x996   : > { %v5541_v32 = vpop.permute.xlu1 %5540 }
 0x997   : > { %v5574_v6 = vmul.f32 %v5541_v32, %v5526_v46 }
 0x999   : > { %5591 = vrot.lane.b32.xlu1 %v5574_v6, %s6816_s26 }
 0x99a   : > { %v5551_v61 = vpop.permute.xlu1 %5550 }
 0x99b   : > { %v5576_v0 = vmul.f32 %v5551_v61, %v5528_v10  ;;  %v5364_v16 = vpop.permute.xlu0 %5363 }
 0x99c   : > { %5388 = vst.msk [vmem:[%s9220_s15] sm:$0xff] %vm5387_vm5, %v5364_v16 }
 0x99d   : > { %5595 = vrot.lane.b32.xlu1 %v5576_v0, %s6816_s26 }
 0x99e   : > { %v5561_v62 = vpop.permute.xlu1 %5560 }
 0x99f   : > { %v5578_v31 = vmul.f32 %v5561_v62, %v5530_v18  ;;  %v5368_v42 = vpop.permute.xlu0 %5367 }
 0x9a0   : > { %5390 = vst.msk [vmem:[%s9220_s15 + $0x10] sm:$0xff] %vm5387_vm5, %v5368_v42 }
 0x9a1   : > { %5599 = vrot.lane.b32.xlu1 %v5578_v31, %s6816_s26 }
 0x9a2   : > { %v5571_v29 = vpop.permute.xlu1 %5570 }
 0x9a3   : > { %v5580_v47 = vmul.f32 %v5571_v29, %v5532_v40  ;;  %v5372_v5 = vpop.permute.xlu0 %5371 }
 0x9a4   : > { %5392 = vst.msk [vmem:[%s9220_s15 + $0x20] sm:$0xff] %vm5387_vm5, %v5372_v5 }
 0x9a5   : > { %5603 = vrot.lane.b32.xlu1 %v5580_v47, %s6816_s26 }
 0x9a6   : > { %v5654_v17 = vpop.permute.xlu1 %5653 }
 0x9a7   : > { %v5687_v41 = vmul.f32 %v5654_v17, %v5639_v12  ;;  %v5376_v11 = vpop.permute.xlu0 %5375 }
 0x9a8   : > { %5394 = vst.msk [vmem:[%s9220_s15 + $0x30] sm:$0xff] %vm5387_vm5, %v5376_v11 }
 0x9a9   : > { %5704 = vrot.lane.b32.xlu1 %v5687_v41, %s6814_s24 }
 0x9aa   : > { %v5664_v43 = vpop.permute.xlu1 %5663 }
 0x9ab   : > { %v5689_v59 = vmul.f32 %v5664_v43, %v5641_v60 }
 0x9ad   : > { %5708 = vrot.lane.b32.xlu1 %v5689_v59, %s6814_s24 }
 0x9ae   : > { %v5674_v3 = vpop.permute.xlu1 %5673 }
 0x9af   : > { %v5691_v27 = vmul.f32 %v5674_v3, %v5643_v53 }
 0x9b1   : > { %5712 = vrot.lane.b32.xlu1 %v5691_v27, %s6814_s24 }
 0x9b2   : > { %v5684_v23 = vpop.permute.xlu1 %5683 }
 0x9b3   : > { %v5693_v57 = vmul.f32 %v5684_v23, %v5645_v55 }
 0x9b5   : > { %5716 = vrot.lane.b32.xlu1 %v5693_v57, %s6814_s24 }
 0x9b8   : > { %v5423_v22 = vpop.permute.xlu0 %5422 }
 0x9b9   : > { %v5460_v51 = vmul.f32 %v5423_v22, %v5412_v44 }
 0x9bb   : > { %5476 = vrot.lane.b32.xlu0 %v5460_v51, %s6818_s28 }
 0x9bc   : > { %v5433_v54 = vpop.permute.xlu0 %5432 }
 0x9bd   : > { %v5462_v7 = vmul.f32 %v5433_v54, %v5414_v21 }
 0x9bf   : > { %5480 = vrot.lane.b32.xlu0 %v5462_v7, %s6818_s28 }
 0x9c0   : > { %v5443_v49 = vpop.permute.xlu0 %5442 }
 0x9c1   : > { %v5464_v19 = vmul.f32 %v5443_v49, %v5416_v30 }
 0x9c3   : > { %5484 = vrot.lane.b32.xlu0 %v5464_v19, %s6818_s28 }
 0x9c4   : > { %v5453_v45 = vpop.permute.xlu0 %5452 }
 0x9c5   : > { %v5466_v15 = vmul.f32 %v5453_v45, %v5418_v28 }
 0x9c7   : > { %5488 = vrot.lane.b32.xlu0 %v5466_v15, %s6818_s28 }
 0x9c8   : > { %v5536_v48 = vpop.permute.xlu0 %5535 }
 0x9c9   : > { %v5573_v35 = vmul.f32 %v5536_v48, %v5525_v37 }
 0x9cb   : > { %5589 = vrot.lane.b32.xlu0 %v5573_v35, %s6816_s26 }
 0x9cc   : > { %v5546_v13 = vpop.permute.xlu0 %5545 }
 0x9cd   : > { %v5575_v38 = vmul.f32 %v5546_v13, %v5527_v50 }
 0x9cf   : > { %5593 = vrot.lane.b32.xlu0 %v5575_v38, %s6816_s26 }
 0x9d0   : > { %v5556_v58 = vpop.permute.xlu0 %5555 }
 0x9d1   : > { %v5577_v20 = vmul.f32 %v5556_v58, %v5529_v4 }
 0x9d3   : > { %5597 = vrot.lane.b32.xlu0 %v5577_v20, %s6816_s26 }
 0x9d4   : > { %v5566_v39 = vpop.permute.xlu0 %5565 }
 0x9d5   : > { %v5579_v52 = vmul.f32 %v5566_v39, %v5531_v56 }
 0x9d7   : > { %5601 = vrot.lane.b32.xlu0 %v5579_v52, %s6816_s26 }
 0x9d8   : > { %v5649_v8 = vpop.permute.xlu0 %5648 }
 0x9d9   : > { %v5686_v33 = vmul.f32 %v5649_v8, %v5638_v26 }
 0x9db   : > { %5702 = vrot.lane.b32.xlu0 %v5686_v33, %s6814_s24 }
 0x9dc   : > { %v5659_v25 = vpop.permute.xlu0 %5658 }
 0x9dd   : > { %v5688_v24 = vmul.f32 %v5659_v25, %v5640_v2 }
 0x9df   : > { %5706 = vrot.lane.b32.xlu0 %v5688_v24, %s6814_s24 }
 0x9e0   : > { %v5669_v34 = vpop.permute.xlu0 %5668 }
 0x9e1   : > { %v5690_v36 = vmul.f32 %v5669_v34, %v5642_v63 }
 0x9e3   : > { %5710 = vrot.lane.b32.xlu0 %v5690_v36, %s6814_s24 }
 0x9e4   : > { %v5679_v9 = vpop.permute.xlu0 %5678 }
 0x9e5   : > { %v5692_v1 = vmul.f32 %v5679_v9, %v5644_v14 }
 0x9e7   : > { %5714 = vrot.lane.b32.xlu0 %v5692_v1, %s6814_s24 }
 0x9fb   : > { %v5479_v46 = vpop.permute.xlu1 %5478 }
 0x9fc   : > { %5502 = vst.msk [vmem:[%s9220_s15 + $0x8] sm:$0xff] %vm5500_vm6, %v5479_v46 }
 0x9ff   : > { %v5483_v32 = vpop.permute.xlu1 %5482 }
 0xa00   : > { %5504 = vst.msk [vmem:[%s9220_s15 + $0x18] sm:$0xff] %vm5500_vm6, %v5483_v32 }
 0xa03   : > { %v5487_v6 = vpop.permute.xlu1 %5486 }
 0xa04   : > { %5506 = vst.msk [vmem:[%s9220_s15 + $0x28] sm:$0xff] %vm5500_vm6, %v5487_v6 }
 0xa07   : > { %v5491_v10 = vpop.permute.xlu1 %5490 }
 0xa08   : > { %5508 = vst.msk [vmem:[%s9220_s15 + $0x38] sm:$0xff] %vm5500_vm6, %v5491_v10 }
 0xa0b   : > { %v5592_v61 = vpop.permute.xlu1 %5591 }
 0xa0c   : > { %5615 = vst.msk [vmem:[%s9220_s15 + $0x8] sm:$0xff] %vm5613_vm7, %v5592_v61 }
 0xa0f   : > { %v5596_v0 = vpop.permute.xlu1 %5595 }
 0xa10   : > { %5617 = vst.msk [vmem:[%s9220_s15 + $0x18] sm:$0xff] %vm5613_vm7, %v5596_v0 }
 0xa13   : > { %v5600_v16 = vpop.permute.xlu1 %5599 }
 0xa14   : > { %5619 = vst.msk [vmem:[%s9220_s15 + $0x28] sm:$0xff] %vm5613_vm7, %v5600_v16 }
 0xa17   : > { %v5604_v18 = vpop.permute.xlu1 %5603 }
 0xa18   : > { %5621 = vst.msk [vmem:[%s9220_s15 + $0x38] sm:$0xff] %vm5613_vm7, %v5604_v18 }
 0xa1b   : > { %v5705_v62 = vpop.permute.xlu1 %5704 }
 0xa1c   : > { %5728 = vst.msk [vmem:[%s9220_s15 + $0x8] sm:$0xff] %vm5726_vm8, %v5705_v62 }
 0xa1f   : > { %v5709_v31 = vpop.permute.xlu1 %5708 }
 0xa20   : > { %5730 = vst.msk [vmem:[%s9220_s15 + $0x18] sm:$0xff] %vm5726_vm8, %v5709_v31 }
 0xa23   : > { %v5713_v42 = vpop.permute.xlu1 %5712 }
 0xa24   : > { %5732 = vst.msk [vmem:[%s9220_s15 + $0x28] sm:$0xff] %vm5726_vm8, %v5713_v42 }
 0xa27   : > { %v5717_v40 = vpop.permute.xlu1 %5716 }
 0xa28   : > { %5734 = vst.msk [vmem:[%s9220_s15 + $0x38] sm:$0xff] %vm5726_vm8, %v5717_v40 }
 0xa2d   : > { %v5477_v29 = vpop.permute.xlu0 %5476 }
 0xa2e   : > { %5501 = vst.msk [vmem:[%s9220_s15] sm:$0xff] %vm5500_vm6, %v5477_v29 }
 0xa31   : > { %v5481_v47 = vpop.permute.xlu0 %5480 }
 0xa32   : > { %5503 = vst.msk [vmem:[%s9220_s15 + $0x10] sm:$0xff] %vm5500_vm6, %v5481_v47 }
 0xa35   : > { %v5485_v5 = vpop.permute.xlu0 %5484 }
 0xa36   : > { %5505 = vst.msk [vmem:[%s9220_s15 + $0x20] sm:$0xff] %vm5500_vm6, %v5485_v5 }
 0xa39   : > { %v5489_v12 = vpop.permute.xlu0 %5488 }
 0xa3a   : > { %5507 = vst.msk [vmem:[%s9220_s15 + $0x30] sm:$0xff] %vm5500_vm6, %v5489_v12 }
 0xa3d   : > { %v5590_v17 = vpop.permute.xlu0 %5589 }
 0xa3e   : > { %5614 = vst.msk [vmem:[%s9220_s15] sm:$0xff] %vm5613_vm7, %v5590_v17 }
 0xa41   : > { %v5594_v41 = vpop.permute.xlu0 %5593 }
 0xa42   : > { %5616 = vst.msk [vmem:[%s9220_s15 + $0x10] sm:$0xff] %vm5613_vm7, %v5594_v41 }
 0xa45   : > { %v5598_v11 = vpop.permute.xlu0 %5597 }
 0xa46   : > { %5618 = vst.msk [vmem:[%s9220_s15 + $0x20] sm:$0xff] %vm5613_vm7, %v5598_v11 }
 0xa49   : > { %v5602_v43 = vpop.permute.xlu0 %5601 }
 0xa4a   : > { %5620 = vst.msk [vmem:[%s9220_s15 + $0x30] sm:$0xff] %vm5613_vm7, %v5602_v43 }
 0xa4d   : > { %v5703_v60 = vpop.permute.xlu0 %5702 }
 0xa4e   : > { %5727 = vst.msk [vmem:[%s9220_s15] sm:$0xff] %vm5726_vm8, %v5703_v60 }
 0xa51   : > { %v5707_v59 = vpop.permute.xlu0 %5706 }
 0xa52   : > { %5729 = vst.msk [vmem:[%s9220_s15 + $0x10] sm:$0xff] %vm5726_vm8, %v5707_v59 }
 0xa55   : > { %v5711_v3 = vpop.permute.xlu0 %5710 }
 0xa56   : > { %5731 = vst.msk [vmem:[%s9220_s15 + $0x20] sm:$0xff] %vm5726_vm8, %v5711_v3 }
 0xa59   : > { %v5715_v53 = vpop.permute.xlu0 %5714 }
 0xa5a   : > { %5733 = vst.msk [vmem:[%s9220_s15 + $0x30] sm:$0xff] %vm5726_vm8, %v5715_v53 }
 0xa5b PF: > { %s12_s11 = sadd.s32 1, %s6809_s11   ;;  %s9814_s9 = smov %s6805_s10 }
 0xa5c   : > { %p9_p5 = scmp.ge.s32.totalorder %s12_s11, 4   ;;  %s9815_s10 = smov %s9817_s12 }
 0xa5e   :  { %11 = sbr.rel (!%p9_p5) target bundleno = 2 (0x2), region = 90 }

</bundles_post_ra>
